<compile_context>
chip_gen: v6e
topology: v6e:2x2x1
jax: 0.10.0
libtpu: 0.0.40
codegen_flags: <defaults>
</compile_context>

<pallas_src>
import functools

import jax
import jax.numpy as jnp
from jax import lax
from jax.experimental import pallas as pl
from jax.experimental.pallas import tpu as pltpu


MATMUL_DTYPE = jnp.bfloat16          # MXU operand dtype (f32 accumulation)
_MIB = 2 ** 20
_GATE_BUF_CAP = 8 * _MIB             # cap on the per-chunk gate scratch bytes


def _round_up(x, m):
    return (x + m - 1) // m * m


def _vmem_bytes(shape, dtype):
    """(sublane, lane)-tile-padded VMEM footprint estimate, in bytes."""
    itemsize = jnp.dtype(dtype).itemsize
    pack = max(1, 4 // itemsize)
    shape = tuple(int(d) for d in shape)
    if len(shape) < 2:
        shape = (1,) * (2 - len(shape)) + shape
    lead = 1
    for d in shape[:-2]:
        lead *= d
    s = _round_up(shape[-2], 8 * pack)
    l = _round_up(shape[-1], 128)
    return lead * s * l * itemsize


# ----------------------------------------------------------------------------
# Fused kernel: all LSTM layers + fc1 for one batch tile.
# Row layout everywhere: row = t * Bt + j  (time-major within the tile).
# ----------------------------------------------------------------------------
def _fused_lstm_fc_kernel(x_ref, wih0_ref, wihr_ref, whh_ref, b_ref,
                          fcw_ref, fcb_ref, out_ref, g_buf, *seq_bufs,
                          depth, hidden_p, batch_tile, t_chunk, t_total,
                          mm_dtype):
    """
    x_ref:    (T*Bt, Din)  mm_dtype   tile input (time-major rows)
    wih0_ref: (Din, 4Hp)   mm_dtype   layer-0 input->gates weight
    wihr_ref: (max(L-1,1), Hp, 4Hp)   input->gates weights for layers >= 1
    whh_ref:  (L, Hp, 4Hp) mm_dtype   hidden->gates weights
    b_ref:    (L, 1, 4Hp)  f32        per-layer (b_ih + b_hh)
    fcw_ref:  (Hp, Op)     mm_dtype   fc1 weight
    fcb_ref:  (1, Op)      f32        fc1 bias
    out_ref:  (Bt, Op)     f32        fc1 output
    g_buf:    (Tc*Bt, 4Hp) f32        per-chunk gate precompute scratch
    seq_bufs: 0..2 x (T*Bt, Hp) mm_dtype  inter-layer hidden sequences
    """
    Bt = batch_tile
    Hp = hidden_p
    Tc = t_chunk
    T = t_total
    n_full, rem = divmod(T, Tc)

    def run_chunk(layer, src, dst, t0, clen, carry):
        rows = clen * Bt
        r0 = t0 * Bt
        # Hoisted input projection for this time chunk: one MXU matmul for
        # clen timesteps, bias folded in once (not per step).
        if layer == 0:
            xin = x_ref[pl.ds(r0, rows), :].astype(mm_dtype)
            wih = wih0_ref[...]
        else:
            xin = src[pl.ds(r0, rows), :]          # already mm_dtype
            wih = wihr_ref[layer - 1]
        g_buf[pl.ds(0, rows), :] = (
            jnp.dot(xin, wih, preferred_element_type=jnp.float32)
            + b_ref[layer])

        # Partial unroll for long chunks so EUP sigmoid/tanh overlaps the
        # small per-step matmul without blowing code size / vreg pressure.
        unroll = clen if clen <= 16 else 8

        def step(i, c2):
            h_prev, c_prev = c2                     # (Bt, Hp) f32
            gates = g_buf[pl.ds(i * Bt, Bt), :] + jnp.dot(
                h_prev.astype(mm_dtype), whh_ref[layer],
                preferred_element_type=jnp.float32)          # (Bt, 4Hp) f32
            # PyTorch gate order i, f, g, o; i+f sigmoids fused (one EUP call
            # on the contiguous, 128-lane-aligned [0:2Hp) slice).
            ifg = jax.nn.sigmoid(gates[:, 0:2 * Hp])
            i_g = ifg[:, :Hp]
            f_g = ifg[:, Hp:]
            g_g = jnp.tanh(gates[:, 2 * Hp:3 * Hp])
            o_g = jax.nn.sigmoid(gates[:, 3 * Hp:4 * Hp])
            c_new = f_g * c_prev + i_g * g_g
            h_new = o_g * jnp.tanh(c_new)
            if dst is not None:
                dst[pl.ds((t0 + i) * Bt, Bt), :] = h_new.astype(dst.dtype)
            return (h_new, c_new)

        return lax.fori_loop(0, clen, step, carry, unroll=unroll)

    h_last = None
    for layer in range(depth):
        src = None if layer == 0 else seq_bufs[(layer - 1) % 2]
        # Last layer: only the final hidden state is consumed -> no seq write.
        dst = None if layer == depth - 1 else seq_bufs[layer % 2]

        carry = (jnp.zeros((Bt, Hp), jnp.float32),
                 jnp.zeros((Bt, Hp), jnp.float32))
        if n_full == 1:
            carry = run_chunk(layer, src, dst, 0, Tc, carry)
        elif n_full > 1:
            def chunk_body(c, cr, _l=layer, _s=src, _d=dst):
                return run_chunk(_l, _s, _d, c * Tc, Tc, cr)
            carry = lax.fori_loop(0, n_full, chunk_body, carry)
        if rem:
            carry = run_chunk(layer, src, dst, n_full * Tc, rem, carry)
        h_last = carry[0]

    # fc1 fused: (Bt, Hp) @ (Hp, Op) + (1, Op); lane-dense store.
    out = jnp.dot(h_last.astype(mm_dtype), fcw_ref[...],
                  preferred_element_type=jnp.float32) + fcb_ref[...]
    out_ref[...] = out.astype(out_ref.dtype)


# ----------------------------------------------------------------------------
# Parameter packing: pad hidden to 128 lanes (per gate), pre-transpose,
# fold biases.  Input feature dim is NOT padded.
# ----------------------------------------------------------------------------
def pack_params(raw, mm_dtype=MATMUL_DTYPE):
    layers = raw["layers"]
    depth = len(layers)
    H, D, O = raw["hidden"], raw["input_size"], raw["output_size"]
    Hp = _round_up(H, 128)
    Op = _round_up(O, 128)
    G = 4 * Hp

    def pad_gate_w(w_t, d_rows):
        # w_t: (d_in, 4H) gate order [i,f,g,o] -> (d_rows, 4Hp), per-gate pad.
        d_in = w_t.shape[0]
        out = jnp.zeros((d_rows, G), jnp.float32)
        for k in range(4):
            out = out.at[:d_in, k * Hp:k * Hp + H].set(w_t[:, k * H:(k + 1) * H])
        return out

    def pad_gate_b(b):
        out = jnp.zeros((G,), jnp.float32)
        for k in range(4):
            out = out.at[k * Hp:k * Hp + H].set(b[k * H:(k + 1) * H])
        return out

    wih0 = None
    wih_rest, whh_all, bias_all = [], [], []
    for l, (w_ih, w_hh, b_ih, b_hh) in enumerate(layers):
        if l == 0:
            wih0 = pad_gate_w(w_ih.T, D)            # rows = Din (unpadded)
        else:
            wih_rest.append(pad_gate_w(w_ih.T, Hp))
        whh_all.append(pad_gate_w(w_hh.T, Hp))
        bias_all.append(pad_gate_b(b_ih + b_hh))
    if not wih_rest:                                # depth == 1: dummy (unused)
        wih_rest = [jnp.zeros((Hp, G), jnp.float32)]

    fc_w_p = jnp.zeros((Hp, Op), jnp.float32).at[:H, :O].set(raw["fc_w"].T)
    fc_b_p = jnp.zeros((1, Op), jnp.float32).at[0, :O].set(raw["fc_b"])

    return {
        "wih0": wih0.astype(mm_dtype),
        "wih_rest": jnp.stack(wih_rest).astype(mm_dtype),
        "whh": jnp.stack(whh_all).astype(mm_dtype),
        "bias": jnp.stack(bias_all)[:, None, :],      # (L, 1, 4Hp) f32
        "fc_w": fc_w_p.astype(mm_dtype),
        "fc_b": fc_b_p,
        "dims": dict(depth=depth, H=H, Hp=Hp, D=D, O=O, Op=Op),
        "mm_dtype": mm_dtype,
    }


# ----------------------------------------------------------------------------
# Wrapper: adaptive batch tile, time-major tiled layout, launch fused kernel.
# ----------------------------------------------------------------------------
def lstm_model_forward(x, packed):
    dims = packed["dims"]
    depth, Hp, D, O, Op = dims["depth"], dims["Hp"], dims["D"], dims["O"], dims["Op"]
    G = 4 * Hp
    mm_dtype = packed["mm_dtype"]

    B, T, Din = x.shape
    assert Din == D

    n_seq = min(2, max(depth - 1, 0))      # inter-layer hidden-seq buffers
    weight_vmem = sum(_vmem_bytes(packed[k].shape, packed[k].dtype)
                      for k in ("wih0", "wih_rest", "whh", "bias", "fc_w", "fc_b"))

    # Generation-aware VMEM cap (v5e/v6e: 128 MiB, v7x: 64 MiB).
    try:
        vmem_cap = int(pltpu.get_tpu_info().vmem_capacity_bytes)
    except Exception:
        vmem_cap = 64 * _MIB
    usable = max(vmem_cap - 8 * _MIB, 32 * _MIB)

    def plan(bt):
        per_t = _vmem_bytes((bt, G), jnp.float32)
        tc = max(1, min(T, _GATE_BUF_CAP // max(per_t, 1)))
        est = (2 * _vmem_bytes((T * bt, D), mm_dtype)          # x tile (2-buf)
               + 2 * _vmem_bytes((bt, Op), jnp.float32)        # out tile
               + 2 * weight_vmem                               # weights (worst case)
               + _vmem_bytes((tc * bt, G), jnp.float32)        # gate chunk scratch
               + n_seq * _vmem_bytes((T * bt, Hp), mm_dtype))  # hidden sequences
        return tc, est

    # Adaptive batch tile: largest (8..256) that the batch warrants and VMEM
    # allows — fills the MXU M dim and cuts the number of serialized T-loops.
    b_ceil = _round_up(max(B, 1), 8)
    b_tile = 8
    for cand in (256, 128, 64, 32, 16, 8):
        if cand > b_ceil and cand != 8:
            continue
        _, est = plan(cand)
        if est <= 0.6 * usable or cand == 8:
            b_tile = cand
            break
    # v7x has 2 TensorCores: keep the parallel batch grid at >= 2 steps.
    if _round_up(B, b_tile) // b_tile < 2 and b_tile > 8:
        b_tile //= 2
    Tc, est = plan(b_tile)
    Bp = _round_up(B, b_tile)
    n_tiles = Bp // b_tile
    vmem_limit = int(min(usable, max(2 * est, 32 * _MIB)))

    # Host-side layout: (B,T,D) -> pad batch -> (n_tiles, T*b_tile, D),
    # rows time-major within each batch tile.  One-off XLA copy; no feature
    # padding (cheap DMA, especially on v5e).
    x_p = x.astype(mm_dtype)
    if Bp > B:
        x_p = jnp.pad(x_p, ((0, Bp - B), (0, 0), (0, 0)))
    x_tiled = (x_p.reshape(n_tiles, b_tile, T, D)
               .transpose(0, 2, 1, 3)
               .reshape(n_tiles, T * b_tile, D))

    n_rest = packed["wih_rest"].shape[0]
    kernel = functools.partial(_fused_lstm_fc_kernel, depth=depth, hidden_p=Hp,
                               batch_tile=b_tile, t_chunk=Tc, t_total=T,
                               mm_dtype=mm_dtype)

    def build(single_buffer_weights):
        def wspec(shape):
            kw = {}
            if single_buffer_weights:
                kw["pipeline_mode"] = pl.Buffered(1)   # constant index: 1 buffer
            return pl.BlockSpec(shape, lambda b, _n=len(shape): (0,) * _n, **kw)

        grid_spec = pltpu.PrefetchScalarGridSpec(
            num_scalar_prefetch=0,
            grid=(n_tiles,),
            in_specs=[
                pl.BlockSpec((None, T * b_tile, D), lambda b: (b, 0, 0)),  # x tile
                wspec((D, G)),              # wih0
                wspec((n_rest, Hp, G)),     # wih layers 1..L-1
                wspec((depth, Hp, G)),      # whh
                wspec((depth, 1, G)),       # bias
                wspec((Hp, Op)),            # fc1 weight
                wspec((1, Op)),             # fc1 bias
            ],
            out_specs=pl.BlockSpec((b_tile, Op), lambda b: (b, 0)),
            scratch_shapes=(
                [pltpu.VMEM((Tc * b_tile, G), jnp.float32)]          # gate chunk
                + [pltpu.VMEM((T * b_tile, Hp), mm_dtype)] * n_seq   # hidden seqs
            ),
        )
        return pl.pallas_call(
            kernel,
            out_shape=jax.ShapeDtypeStruct((Bp, Op), jnp.float32),
            grid_spec=grid_spec,
            compiler_params=pltpu.CompilerParams(
                dimension_semantics=("parallel",),   # batch tiles across TCs
                vmem_limit_bytes=vmem_limit,
            ),
        )

    args = (x_tiled, packed["wih0"], packed["wih_rest"], packed["whh"],
            packed["bias"], packed["fc_w"], packed["fc_b"])
    try:
        out_p = build(True)(*args)
    except Exception:
        # pipeline_mode=pl.Buffered(1) unsupported -> default double-buffering.
        out_p = build(False)(*args)

    return out_p[:B, :O]


# ----------------------------------------------------------------------------
# Deterministic PyTorch-style init (uniform(-1/sqrt(H), 1/sqrt(H))).
# ----------------------------------------------------------------------------
def init_params(key, input_size, hidden, depth, output_size):
    stdv = float(hidden) ** -0.5
    layers = []
    for layer in range(depth):
        d_in = input_size if layer == 0 else hidden
        key, k1, k2, k3, k4 = jax.random.split(key, 5)
        w_ih = jax.random.uniform(k1, (4 * hidden, d_in), jnp.float32, -stdv, stdv)
        w_hh = jax.random.uniform(k2, (4 * hidden, hidden), jnp.float32, -stdv, stdv)
        b_ih = jax.random.uniform(k3, (4 * hidden,), jnp.float32, -stdv, stdv)
        b_hh = jax.random.uniform(k4, (4 * hidden,), jnp.float32, -stdv, stdv)
        layers.append((w_ih, w_hh, b_ih, b_hh))
    key, k5, k6 = jax.random.split(key, 3)
    fc_w = jax.random.uniform(k5, (output_size, hidden), jnp.float32, -stdv, stdv)
    fc_b = jax.random.uniform(k6, (output_size,), jnp.float32, -stdv, stdv)
    return {"layers": layers, "fc_w": fc_w, "fc_b": fc_b,
            "input_size": input_size, "hidden": hidden, "output_size": output_size}


# ----------------------------------------------------------------------------
# Pure-JAX f32 reference (mirrors torch.nn.LSTM + nn.Linear exactly).
# ----------------------------------------------------------------------------
def reference_forward(x, raw):
    h_in = x.astype(jnp.float32)                     # (B, T, D)
    B, T, _ = h_in.shape
    for (w_ih, w_hh, b_ih, b_hh) in raw["layers"]:
        H = w_hh.shape[1]
        wih_t, whh_t = w_ih.T, w_hh.T
        bias = (b_ih + b_hh)[None, :]
        h = jnp.zeros((B, H), jnp.float32)
        c = jnp.zeros((B, H), jnp.float32)
        outs = []
        for t in range(T):
            gates = h_in[:, t, :] @ wih_t + h @ whh_t + bias
            i_g = jax.nn.sigmoid(gates[:, 0 * H:1 * H])
            f_g = jax.nn.sigmoid(gates[:, 1 * H:2 * H])
            g_g = jnp.tanh(gates[:, 2 * H:3 * H])
            o_g = jax.nn.sigmoid(gates[:, 3 * H:4 * H])
            c = f_g * c + i_g * g_g
            h = o_g * jnp.tanh(c)
            outs.append(h)
        h_in = jnp.stack(outs, axis=1)
    return h_in[:, -1, :] @ raw["fc_w"].T + raw["fc_b"][None, :]


# ----------------------------------------------------------------------------
if __name__ == "__main__":
    B, T = 2, 8
    INPUT_SIZE, HIDDEN, DEPTH, OUTPUT_SIZE = 16, 32, 2, 1

    key = jax.random.PRNGKey(0)
    key, xkey = jax.random.split(key)
    x = jax.random.normal(xkey, (B, T, INPUT_SIZE), jnp.float32)

    raw = init_params(key, INPUT_SIZE, HIDDEN, DEPTH, OUTPUT_SIZE)
    packed = pack_params(raw)

    out = jax.block_until_ready(lstm_model_forward(x, packed))
    ref = jax.block_until_ready(reference_forward(x, raw))

    assert out.shape == (B, OUTPUT_SIZE), out.shape
    # bf16 MXU operands (f32 accumulation) vs f32 reference: ~1e-3 error at
    # this T/H/depth; 2e-2 tolerance keeps ~10x margin while catching bugs.
    assert jnp.allclose(out, ref, atol=2e-2, rtol=2e-2), (out, ref)
    print("KERNEL_OK")
</pallas_src>

<mosaic_0001>
module attributes {stable_mosaic.version = 11 : i64} {
  func.func @_fused_lstm_fc_kernel(%arg0: i32, %arg1: memref<1x64x16xbf16, #tpu.memory_space<vmem>>, %arg2: memref<16x512xbf16, #tpu.memory_space<vmem>>, %arg3: memref<1x128x512xbf16, #tpu.memory_space<vmem>>, %arg4: memref<2x128x512xbf16, #tpu.memory_space<vmem>>, %arg5: memref<2x1x512xf32, #tpu.memory_space<vmem>>, %arg6: memref<128x128xbf16, #tpu.memory_space<vmem>>, %arg7: memref<1x128xf32, #tpu.memory_space<vmem>>, %arg8: memref<8x128xf32, #tpu.memory_space<vmem>>, %arg9: memref<64x512xf32, #tpu.memory_space<vmem>>, %arg10: memref<64x128xbf16, #tpu.memory_space<vmem>>) attributes {dimension_semantics = [#tpu.dimension_semantics<parallel>], iteration_bounds = array<i64: 1>, scalar_prefetch = 0 : i64, scratch_operands = 2 : i64, tpu.core_type = #tpu.core_type<tc>, window_params = [{transform_indices = @transform_0, window_bounds = array<i64: 1, 64, 16>}, {pipeline_mode = #tpu.pipeline_mode<synchronous>, transform_indices = @transform_1, window_bounds = array<i64: 16, 512>}, {pipeline_mode = #tpu.pipeline_mode<synchronous>, transform_indices = @transform_2, window_bounds = array<i64: 1, 128, 512>}, {pipeline_mode = #tpu.pipeline_mode<synchronous>, transform_indices = @transform_3, window_bounds = array<i64: 2, 128, 512>}, {pipeline_mode = #tpu.pipeline_mode<synchronous>, transform_indices = @transform_4, window_bounds = array<i64: 2, 1, 512>}, {pipeline_mode = #tpu.pipeline_mode<synchronous>, transform_indices = @transform_5, window_bounds = array<i64: 128, 128>}, {pipeline_mode = #tpu.pipeline_mode<synchronous>, transform_indices = @transform_6, window_bounds = array<i64: 1, 128>}, {transform_indices = @transform_7, window_bounds = array<i64: 8, 128>}]} {
    %cst = arith.constant 0.000000e+00 : f32
    %0 = vector.broadcast %cst : f32 to vector<8x128xf32>
    %cst_0 = arith.constant 0.000000e+00 : f32
    %1 = vector.broadcast %cst_0 : f32 to vector<8x128xf32>
    %c0 = arith.constant 0 : index
    %c0_1 = arith.constant 0 : index
    %c0_2 = arith.constant 0 : index
    %2 = vector.load %arg1[%c0, %c0_1, %c0_2] : memref<1x64x16xbf16, #tpu.memory_space<vmem>>, vector<1x64x16xbf16>
    %3 = vector.shape_cast %2 : vector<1x64x16xbf16> to vector<64x16xbf16>
    %c0_3 = arith.constant 0 : index
    %c0_4 = arith.constant 0 : index
    %4 = vector.load %arg2[%c0_3, %c0_4] : memref<16x512xbf16, #tpu.memory_space<vmem>>, vector<16x512xbf16>
    %cst_5 = arith.constant dense<0.000000e+00> : vector<64x512xf32>
    %5 = tpu.matmul %3, %4, %cst_5 {dimension_numbers = #tpu.dot_dimension_numbers<[1], [0], [0], [1], [0, 0, 1, 1], [], []>} : vector<64x16xbf16>, vector<16x512xbf16>, vector<64x512xf32> -> vector<64x512xf32>
    %c0_6 = arith.constant 0 : index
    %c0_7 = arith.constant 0 : index
    %c0_8 = arith.constant 0 : index
    %6 = vector.load %arg5[%c0_6, %c0_7, %c0_8] : memref<2x1x512xf32, #tpu.memory_space<vmem>>, vector<1x1x512xf32>
    %7 = vector.shape_cast %6 : vector<1x1x512xf32> to vector<1x512xf32>
    %8 = vector.broadcast %7 : vector<1x512xf32> to vector<64x512xf32>
    %9 = arith.addf %5, %8 : vector<64x512xf32>
    %c0_9 = arith.constant 0 : index
    %c0_10 = arith.constant 0 : index
    %10 = vector.load %arg9[%c0_9, %c0_10] : memref<64x512xf32, #tpu.memory_space<vmem>>, vector<64x512xf32>
    tpu.vector_store %arg9[%c0_9, %c0_10], %9 {strides = array<i32>} : memref<64x512xf32, #tpu.memory_space<vmem>>, vector<64x512xf32>,
    %c0_i32 = arith.constant 0 : i32
    %c8_i32 = arith.constant 8 : i32
    %11 = arith.muli %c0_i32, %c8_i32 : i32
    %12 = arith.index_cast %11 : i32 to index
    %c0_11 = arith.constant 0 : index
    %13 = vector.load %arg9[%12, %c0_11] : memref<64x512xf32, #tpu.memory_space<vmem>>, vector<8x512xf32>
    %14 = arith.truncf %0 : vector<8x128xf32> to vector<8x128xbf16>
    %c0_12 = arith.constant 0 : index
    %c0_13 = arith.constant 0 : index
    %c0_14 = arith.constant 0 : index
    %15 = vector.load %arg4[%c0_12, %c0_13, %c0_14] : memref<2x128x512xbf16, #tpu.memory_space<vmem>>, vector<1x128x512xbf16>
    %16 = vector.shape_cast %15 : vector<1x128x512xbf16> to vector<128x512xbf16>
    %cst_15 = arith.constant dense<0.000000e+00> : vector<8x512xf32>
    %17 = tpu.matmul %14, %16, %cst_15 {dimension_numbers = #tpu.dot_dimension_numbers<[1], [0], [0], [1], [0, 0, 1, 1], [], []>} : vector<8x128xbf16>, vector<128x512xbf16>, vector<8x512xf32> -> vector<8x512xf32>
    %18 = arith.addf %13, %17 : vector<8x512xf32>
    %19 = vector.extract_strided_slice %18 {offsets = [0, 0], sizes = [8, 256], strides = [1, 1]} : vector<8x512xf32> to vector<8x256xf32>
    %20 = arith.negf %19 : vector<8x256xf32>
    %21 = math.exp %20 : vector<8x256xf32>
    %cst_16 = arith.constant 1.000000e+00 : f32
    %22 = vector.broadcast %cst_16 : f32 to vector<8x256xf32>
    %23 = arith.addf %22, %21 : vector<8x256xf32>
    %24 = arith.divf %22, %23 : vector<8x256xf32>
    %25 = vector.extract_strided_slice %24 {offsets = [0, 0], sizes = [8, 128], strides = [1, 1]} : vector<8x256xf32> to vector<8x128xf32>
    %26 = vector.extract_strided_slice %24 {offsets = [0, 128], sizes = [8, 128], strides = [1, 1]} : vector<8x256xf32> to vector<8x128xf32>
    %27 = vector.extract_strided_slice %18 {offsets = [0, 256], sizes = [8, 128], strides = [1, 1]} : vector<8x512xf32> to vector<8x128xf32>
    %28 = math.tanh %27 : vector<8x128xf32>
    %29 = vector.extract_strided_slice %18 {offsets = [0, 384], sizes = [8, 128], strides = [1, 1]} : vector<8x512xf32> to vector<8x128xf32>
    %30 = arith.negf %29 : vector<8x128xf32>
    %31 = math.exp %30 : vector<8x128xf32>
    %cst_17 = arith.constant 1.000000e+00 : f32
    %32 = vector.broadcast %cst_17 : f32 to vector<8x128xf32>
    %33 = arith.addf %32, %31 : vector<8x128xf32>
    %34 = arith.divf %32, %33 : vector<8x128xf32>
    %35 = arith.mulf %26, %1 : vector<8x128xf32>
    %36 = arith.mulf %25, %28 : vector<8x128xf32>
    %37 = arith.addf %35, %36 : vector<8x128xf32>
    %38 = math.tanh %37 : vector<8x128xf32>
    %39 = arith.mulf %34, %38 : vector<8x128xf32>
    %40 = arith.truncf %39 : vector<8x128xf32> to vector<8x128xbf16>
    %c0_i32_18 = arith.constant 0 : i32
    %41 = arith.addi %c0_i32_18, %c0_i32 : i32
    %c8_i32_19 = arith.constant 8 : i32
    %42 = arith.muli %41, %c8_i32_19 : i32
    %43 = arith.index_cast %42 : i32 to index
    %c0_20 = arith.constant 0 : index
    %44 = vector.load %arg10[%43, %c0_20] : memref<64x128xbf16, #tpu.memory_space<vmem>>, vector<8x128xbf16>
    tpu.vector_store %arg10[%43, %c0_20], %40 {strides = array<i32>} : memref<64x128xbf16, #tpu.memory_space<vmem>>, vector<8x128xbf16>,
    %c1_i32 = arith.constant 1 : i32
    %c8_i32_21 = arith.constant 8 : i32
    %45 = arith.muli %c1_i32, %c8_i32_21 : i32
    %46 = arith.index_cast %45 : i32 to index
    %c0_22 = arith.constant 0 : index
    %47 = vector.load %arg9[%46, %c0_22] : memref<64x512xf32, #tpu.memory_space<vmem>>, vector<8x512xf32>
    %48 = arith.truncf %39 : vector<8x128xf32> to vector<8x128xbf16>
    %c0_23 = arith.constant 0 : index
    %c0_24 = arith.constant 0 : index
    %c0_25 = arith.constant 0 : index
    %49 = vector.load %arg4[%c0_23, %c0_24, %c0_25] : memref<2x128x512xbf16, #tpu.memory_space<vmem>>, vector<1x128x512xbf16>
    %50 = vector.shape_cast %49 : vector<1x128x512xbf16> to vector<128x512xbf16>
    %cst_26 = arith.constant dense<0.000000e+00> : vector<8x512xf32>
    %51 = tpu.matmul %48, %50, %cst_26 {dimension_numbers = #tpu.dot_dimension_numbers<[1], [0], [0], [1], [0, 0, 1, 1], [], []>} : vector<8x128xbf16>, vector<128x512xbf16>, vector<8x512xf32> -> vector<8x512xf32>
    %52 = arith.addf %47, %51 : vector<8x512xf32>
    %53 = vector.extract_strided_slice %52 {offsets = [0, 0], sizes = [8, 256], strides = [1, 1]} : vector<8x512xf32> to vector<8x256xf32>
    %54 = arith.negf %53 : vector<8x256xf32>
    %55 = math.exp %54 : vector<8x256xf32>
    %cst_27 = arith.constant 1.000000e+00 : f32
    %56 = vector.broadcast %cst_27 : f32 to vector<8x256xf32>
    %57 = arith.addf %56, %55 : vector<8x256xf32>
    %58 = arith.divf %56, %57 : vector<8x256xf32>
    %59 = vector.extract_strided_slice %58 {offsets = [0, 0], sizes = [8, 128], strides = [1, 1]} : vector<8x256xf32> to vector<8x128xf32>
    %60 = vector.extract_strided_slice %58 {offsets = [0, 128], sizes = [8, 128], strides = [1, 1]} : vector<8x256xf32> to vector<8x128xf32>
    %61 = vector.extract_strided_slice %52 {offsets = [0, 256], sizes = [8, 128], strides = [1, 1]} : vector<8x512xf32> to vector<8x128xf32>
    %62 = math.tanh %61 : vector<8x128xf32>
    %63 = vector.extract_strided_slice %52 {offsets = [0, 384], sizes = [8, 128], strides = [1, 1]} : vector<8x512xf32> to vector<8x128xf32>
    %64 = arith.negf %63 : vector<8x128xf32>
    %65 = math.exp %64 : vector<8x128xf32>
    %cst_28 = arith.constant 1.000000e+00 : f32
    %66 = vector.broadcast %cst_28 : f32 to vector<8x128xf32>
    %67 = arith.addf %66, %65 : vector<8x128xf32>
    %68 = arith.divf %66, %67 : vector<8x128xf32>
    %69 = arith.mulf %60, %37 : vector<8x128xf32>
    %70 = arith.mulf %59, %62 : vector<8x128xf32>
    %71 = arith.addf %69, %70 : vector<8x128xf32>
    %72 = math.tanh %71 : vector<8x128xf32>
    %73 = arith.mulf %68, %72 : vector<8x128xf32>
    %74 = arith.truncf %73 : vector<8x128xf32> to vector<8x128xbf16>
    %c0_i32_29 = arith.constant 0 : i32
    %75 = arith.addi %c0_i32_29, %c1_i32 : i32
    %c8_i32_30 = arith.constant 8 : i32
    %76 = arith.muli %75, %c8_i32_30 : i32
    %77 = arith.index_cast %76 : i32 to index
    %c0_31 = arith.constant 0 : index
    %78 = vector.load %arg10[%77, %c0_31] : memref<64x128xbf16, #tpu.memory_space<vmem>>, vector<8x128xbf16>
    tpu.vector_store %arg10[%77, %c0_31], %74 {strides = array<i32>} : memref<64x128xbf16, #tpu.memory_space<vmem>>, vector<8x128xbf16>,
    %c2_i32 = arith.constant 2 : i32
    %c8_i32_32 = arith.constant 8 : i32
    %79 = arith.muli %c2_i32, %c8_i32_32 : i32
    %80 = arith.index_cast %79 : i32 to index
    %c0_33 = arith.constant 0 : index
    %81 = vector.load %arg9[%80, %c0_33] : memref<64x512xf32, #tpu.memory_space<vmem>>, vector<8x512xf32>
    %82 = arith.truncf %73 : vector<8x128xf32> to vector<8x128xbf16>
    %c0_34 = arith.constant 0 : index
    %c0_35 = arith.constant 0 : index
    %c0_36 = arith.constant 0 : index
    %83 = vector.load %arg4[%c0_34, %c0_35, %c0_36] : memref<2x128x512xbf16, #tpu.memory_space<vmem>>, vector<1x128x512xbf16>
    %84 = vector.shape_cast %83 : vector<1x128x512xbf16> to vector<128x512xbf16>
    %cst_37 = arith.constant dense<0.000000e+00> : vector<8x512xf32>
    %85 = tpu.matmul %82, %84, %cst_37 {dimension_numbers = #tpu.dot_dimension_numbers<[1], [0], [0], [1], [0, 0, 1, 1], [], []>} : vector<8x128xbf16>, vector<128x512xbf16>, vector<8x512xf32> -> vector<8x512xf32>
    %86 = arith.addf %81, %85 : vector<8x512xf32>
    %87 = vector.extract_strided_slice %86 {offsets = [0, 0], sizes = [8, 256], strides = [1, 1]} : vector<8x512xf32> to vector<8x256xf32>
    %88 = arith.negf %87 : vector<8x256xf32>
    %89 = math.exp %88 : vector<8x256xf32>
    %cst_38 = arith.constant 1.000000e+00 : f32
    %90 = vector.broadcast %cst_38 : f32 to vector<8x256xf32>
    %91 = arith.addf %90, %89 : vector<8x256xf32>
    %92 = arith.divf %90, %91 : vector<8x256xf32>
    %93 = vector.extract_strided_slice %92 {offsets = [0, 0], sizes = [8, 128], strides = [1, 1]} : vector<8x256xf32> to vector<8x128xf32>
    %94 = vector.extract_strided_slice %92 {offsets = [0, 128], sizes = [8, 128], strides = [1, 1]} : vector<8x256xf32> to vector<8x128xf32>
    %95 = vector.extract_strided_slice %86 {offsets = [0, 256], sizes = [8, 128], strides = [1, 1]} : vector<8x512xf32> to vector<8x128xf32>
    %96 = math.tanh %95 : vector<8x128xf32>
    %97 = vector.extract_strided_slice %86 {offsets = [0, 384], sizes = [8, 128], strides = [1, 1]} : vector<8x512xf32> to vector<8x128xf32>
    %98 = arith.negf %97 : vector<8x128xf32>
    %99 = math.exp %98 : vector<8x128xf32>
    %cst_39 = arith.constant 1.000000e+00 : f32
    %100 = vector.broadcast %cst_39 : f32 to vector<8x128xf32>
    %101 = arith.addf %100, %99 : vector<8x128xf32>
    %102 = arith.divf %100, %101 : vector<8x128xf32>
    %103 = arith.mulf %94, %71 : vector<8x128xf32>
    %104 = arith.mulf %93, %96 : vector<8x128xf32>
    %105 = arith.addf %103, %104 : vector<8x128xf32>
    %106 = math.tanh %105 : vector<8x128xf32>
    %107 = arith.mulf %102, %106 : vector<8x128xf32>
    %108 = arith.truncf %107 : vector<8x128xf32> to vector<8x128xbf16>
    %c0_i32_40 = arith.constant 0 : i32
    %109 = arith.addi %c0_i32_40, %c2_i32 : i32
    %c8_i32_41 = arith.constant 8 : i32
    %110 = arith.muli %109, %c8_i32_41 : i32
    %111 = arith.index_cast %110 : i32 to index
    %c0_42 = arith.constant 0 : index
    %112 = vector.load %arg10[%111, %c0_42] : memref<64x128xbf16, #tpu.memory_space<vmem>>, vector<8x128xbf16>
    tpu.vector_store %arg10[%111, %c0_42], %108 {strides = array<i32>} : memref<64x128xbf16, #tpu.memory_space<vmem>>, vector<8x128xbf16>,
    %c3_i32 = arith.constant 3 : i32
    %c8_i32_43 = arith.constant 8 : i32
    %113 = arith.muli %c3_i32, %c8_i32_43 : i32
    %114 = arith.index_cast %113 : i32 to index
    %c0_44 = arith.constant 0 : index
    %115 = vector.load %arg9[%114, %c0_44] : memref<64x512xf32, #tpu.memory_space<vmem>>, vector<8x512xf32>
    %116 = arith.truncf %107 : vector<8x128xf32> to vector<8x128xbf16>
    %c0_45 = arith.constant 0 : index
    %c0_46 = arith.constant 0 : index
    %c0_47 = arith.constant 0 : index
    %117 = vector.load %arg4[%c0_45, %c0_46, %c0_47] : memref<2x128x512xbf16, #tpu.memory_space<vmem>>, vector<1x128x512xbf16>
    %118 = vector.shape_cast %117 : vector<1x128x512xbf16> to vector<128x512xbf16>
    %cst_48 = arith.constant dense<0.000000e+00> : vector<8x512xf32>
    %119 = tpu.matmul %116, %118, %cst_48 {dimension_numbers = #tpu.dot_dimension_numbers<[1], [0], [0], [1], [0, 0, 1, 1], [], []>} : vector<8x128xbf16>, vector<128x512xbf16>, vector<8x512xf32> -> vector<8x512xf32>
    %120 = arith.addf %115, %119 : vector<8x512xf32>
    %121 = vector.extract_strided_slice %120 {offsets = [0, 0], sizes = [8, 256], strides = [1, 1]} : vector<8x512xf32> to vector<8x256xf32>
    %122 = arith.negf %121 : vector<8x256xf32>
    %123 = math.exp %122 : vector<8x256xf32>
    %cst_49 = arith.constant 1.000000e+00 : f32
    %124 = vector.broadcast %cst_49 : f32 to vector<8x256xf32>
    %125 = arith.addf %124, %123 : vector<8x256xf32>
    %126 = arith.divf %124, %125 : vector<8x256xf32>
    %127 = vector.extract_strided_slice %126 {offsets = [0, 0], sizes = [8, 128], strides = [1, 1]} : vector<8x256xf32> to vector<8x128xf32>
    %128 = vector.extract_strided_slice %126 {offsets = [0, 128], sizes = [8, 128], strides = [1, 1]} : vector<8x256xf32> to vector<8x128xf32>
    %129 = vector.extract_strided_slice %120 {offsets = [0, 256], sizes = [8, 128], strides = [1, 1]} : vector<8x512xf32> to vector<8x128xf32>
    %130 = math.tanh %129 : vector<8x128xf32>
    %131 = vector.extract_strided_slice %120 {offsets = [0, 384], sizes = [8, 128], strides = [1, 1]} : vector<8x512xf32> to vector<8x128xf32>
    %132 = arith.negf %131 : vector<8x128xf32>
    %133 = math.exp %132 : vector<8x128xf32>
    %cst_50 = arith.constant 1.000000e+00 : f32
    %134 = vector.broadcast %cst_50 : f32 to vector<8x128xf32>
    %135 = arith.addf %134, %133 : vector<8x128xf32>
    %136 = arith.divf %134, %135 : vector<8x128xf32>
    %137 = arith.mulf %128, %105 : vector<8x128xf32>
    %138 = arith.mulf %127, %130 : vector<8x128xf32>
    %139 = arith.addf %137, %138 : vector<8x128xf32>
    %140 = math.tanh %139 : vector<8x128xf32>
    %141 = arith.mulf %136, %140 : vector<8x128xf32>
    %142 = arith.truncf %141 : vector<8x128xf32> to vector<8x128xbf16>
    %c0_i32_51 = arith.constant 0 : i32
    %143 = arith.addi %c0_i32_51, %c3_i32 : i32
    %c8_i32_52 = arith.constant 8 : i32
    %144 = arith.muli %143, %c8_i32_52 : i32
    %145 = arith.index_cast %144 : i32 to index
    %c0_53 = arith.constant 0 : index
    %146 = vector.load %arg10[%145, %c0_53] : memref<64x128xbf16, #tpu.memory_space<vmem>>, vector<8x128xbf16>
    tpu.vector_store %arg10[%145, %c0_53], %142 {strides = array<i32>} : memref<64x128xbf16, #tpu.memory_space<vmem>>, vector<8x128xbf16>,
    %c4_i32 = arith.constant 4 : i32
    %c8_i32_54 = arith.constant 8 : i32
    %147 = arith.muli %c4_i32, %c8_i32_54 : i32
    %148 = arith.index_cast %147 : i32 to index
    %c0_55 = arith.constant 0 : index
    %149 = vector.load %arg9[%148, %c0_55] : memref<64x512xf32, #tpu.memory_space<vmem>>, vector<8x512xf32>
    %150 = arith.truncf %141 : vector<8x128xf32> to vector<8x128xbf16>
    %c0_56 = arith.constant 0 : index
    %c0_57 = arith.constant 0 : index
    %c0_58 = arith.constant 0 : index
    %151 = vector.load %arg4[%c0_56, %c0_57, %c0_58] : memref<2x128x512xbf16, #tpu.memory_space<vmem>>, vector<1x128x512xbf16>
    %152 = vector.shape_cast %151 : vector<1x128x512xbf16> to vector<128x512xbf16>
    %cst_59 = arith.constant dense<0.000000e+00> : vector<8x512xf32>
    %153 = tpu.matmul %150, %152, %cst_59 {dimension_numbers = #tpu.dot_dimension_numbers<[1], [0], [0], [1], [0, 0, 1, 1], [], []>} : vector<8x128xbf16>, vector<128x512xbf16>, vector<8x512xf32> -> vector<8x512xf32>
    %154 = arith.addf %149, %153 : vector<8x512xf32>
    %155 = vector.extract_strided_slice %154 {offsets = [0, 0], sizes = [8, 256], strides = [1, 1]} : vector<8x512xf32> to vector<8x256xf32>
    %156 = arith.negf %155 : vector<8x256xf32>
    %157 = math.exp %156 : vector<8x256xf32>
    %cst_60 = arith.constant 1.000000e+00 : f32
    %158 = vector.broadcast %cst_60 : f32 to vector<8x256xf32>
    %159 = arith.addf %158, %157 : vector<8x256xf32>
    %160 = arith.divf %158, %159 : vector<8x256xf32>
    %161 = vector.extract_strided_slice %160 {offsets = [0, 0], sizes = [8, 128], strides = [1, 1]} : vector<8x256xf32> to vector<8x128xf32>
    %162 = vector.extract_strided_slice %160 {offsets = [0, 128], sizes = [8, 128], strides = [1, 1]} : vector<8x256xf32> to vector<8x128xf32>
    %163 = vector.extract_strided_slice %154 {offsets = [0, 256], sizes = [8, 128], strides = [1, 1]} : vector<8x512xf32> to vector<8x128xf32>
    %164 = math.tanh %163 : vector<8x128xf32>
    %165 = vector.extract_strided_slice %154 {offsets = [0, 384], sizes = [8, 128], strides = [1, 1]} : vector<8x512xf32> to vector<8x128xf32>
    %166 = arith.negf %165 : vector<8x128xf32>
    %167 = math.exp %166 : vector<8x128xf32>
    %cst_61 = arith.constant 1.000000e+00 : f32
    %168 = vector.broadcast %cst_61 : f32 to vector<8x128xf32>
    %169 = arith.addf %168, %167 : vector<8x128xf32>
    %170 = arith.divf %168, %169 : vector<8x128xf32>
    %171 = arith.mulf %162, %139 : vector<8x128xf32>
    %172 = arith.mulf %161, %164 : vector<8x128xf32>
    %173 = arith.addf %171, %172 : vector<8x128xf32>
    %174 = math.tanh %173 : vector<8x128xf32>
    %175 = arith.mulf %170, %174 : vector<8x128xf32>
    %176 = arith.truncf %175 : vector<8x128xf32> to vector<8x128xbf16>
    %c0_i32_62 = arith.constant 0 : i32
    %177 = arith.addi %c0_i32_62, %c4_i32 : i32
    %c8_i32_63 = arith.constant 8 : i32
    %178 = arith.muli %177, %c8_i32_63 : i32
    %179 = arith.index_cast %178 : i32 to index
    %c0_64 = arith.constant 0 : index
    %180 = vector.load %arg10[%179, %c0_64] : memref<64x128xbf16, #tpu.memory_space<vmem>>, vector<8x128xbf16>
    tpu.vector_store %arg10[%179, %c0_64], %176 {strides = array<i32>} : memref<64x128xbf16, #tpu.memory_space<vmem>>, vector<8x128xbf16>,
    %c5_i32 = arith.constant 5 : i32
    %c8_i32_65 = arith.constant 8 : i32
    %181 = arith.muli %c5_i32, %c8_i32_65 : i32
    %182 = arith.index_cast %181 : i32 to index
    %c0_66 = arith.constant 0 : index
    %183 = vector.load %arg9[%182, %c0_66] : memref<64x512xf32, #tpu.memory_space<vmem>>, vector<8x512xf32>
    %184 = arith.truncf %175 : vector<8x128xf32> to vector<8x128xbf16>
    %c0_67 = arith.constant 0 : index
    %c0_68 = arith.constant 0 : index
    %c0_69 = arith.constant 0 : index
    %185 = vector.load %arg4[%c0_67, %c0_68, %c0_69] : memref<2x128x512xbf16, #tpu.memory_space<vmem>>, vector<1x128x512xbf16>
    %186 = vector.shape_cast %185 : vector<1x128x512xbf16> to vector<128x512xbf16>
    %cst_70 = arith.constant dense<0.000000e+00> : vector<8x512xf32>
    %187 = tpu.matmul %184, %186, %cst_70 {dimension_numbers = #tpu.dot_dimension_numbers<[1], [0], [0], [1], [0, 0, 1, 1], [], []>} : vector<8x128xbf16>, vector<128x512xbf16>, vector<8x512xf32> -> vector<8x512xf32>
    %188 = arith.addf %183, %187 : vector<8x512xf32>
    %189 = vector.extract_strided_slice %188 {offsets = [0, 0], sizes = [8, 256], strides = [1, 1]} : vector<8x512xf32> to vector<8x256xf32>
    %190 = arith.negf %189 : vector<8x256xf32>
    %191 = math.exp %190 : vector<8x256xf32>
    %cst_71 = arith.constant 1.000000e+00 : f32
    %192 = vector.broadcast %cst_71 : f32 to vector<8x256xf32>
    %193 = arith.addf %192, %191 : vector<8x256xf32>
    %194 = arith.divf %192, %193 : vector<8x256xf32>
    %195 = vector.extract_strided_slice %194 {offsets = [0, 0], sizes = [8, 128], strides = [1, 1]} : vector<8x256xf32> to vector<8x128xf32>
    %196 = vector.extract_strided_slice %194 {offsets = [0, 128], sizes = [8, 128], strides = [1, 1]} : vector<8x256xf32> to vector<8x128xf32>
    %197 = vector.extract_strided_slice %188 {offsets = [0, 256], sizes = [8, 128], strides = [1, 1]} : vector<8x512xf32> to vector<8x128xf32>
    %198 = math.tanh %197 : vector<8x128xf32>
    %199 = vector.extract_strided_slice %188 {offsets = [0, 384], sizes = [8, 128], strides = [1, 1]} : vector<8x512xf32> to vector<8x128xf32>
    %200 = arith.negf %199 : vector<8x128xf32>
    %201 = math.exp %200 : vector<8x128xf32>
    %cst_72 = arith.constant 1.000000e+00 : f32
    %202 = vector.broadcast %cst_72 : f32 to vector<8x128xf32>
    %203 = arith.addf %202, %201 : vector<8x128xf32>
    %204 = arith.divf %202, %203 : vector<8x128xf32>
    %205 = arith.mulf %196, %173 : vector<8x128xf32>
    %206 = arith.mulf %195, %198 : vector<8x128xf32>
    %207 = arith.addf %205, %206 : vector<8x128xf32>
    %208 = math.tanh %207 : vector<8x128xf32>
    %209 = arith.mulf %204, %208 : vector<8x128xf32>
    %210 = arith.truncf %209 : vector<8x128xf32> to vector<8x128xbf16>
    %c0_i32_73 = arith.constant 0 : i32
    %211 = arith.addi %c0_i32_73, %c5_i32 : i32
    %c8_i32_74 = arith.constant 8 : i32
    %212 = arith.muli %211, %c8_i32_74 : i32
    %213 = arith.index_cast %212 : i32 to index
    %c0_75 = arith.constant 0 : index
    %214 = vector.load %arg10[%213, %c0_75] : memref<64x128xbf16, #tpu.memory_space<vmem>>, vector<8x128xbf16>
    tpu.vector_store %arg10[%213, %c0_75], %210 {strides = array<i32>} : memref<64x128xbf16, #tpu.memory_space<vmem>>, vector<8x128xbf16>,
    %c6_i32 = arith.constant 6 : i32
    %c8_i32_76 = arith.constant 8 : i32
    %215 = arith.muli %c6_i32, %c8_i32_76 : i32
    %216 = arith.index_cast %215 : i32 to index
    %c0_77 = arith.constant 0 : index
    %217 = vector.load %arg9[%216, %c0_77] : memref<64x512xf32, #tpu.memory_space<vmem>>, vector<8x512xf32>
    %218 = arith.truncf %209 : vector<8x128xf32> to vector<8x128xbf16>
    %c0_78 = arith.constant 0 : index
    %c0_79 = arith.constant 0 : index
    %c0_80 = arith.constant 0 : index
    %219 = vector.load %arg4[%c0_78, %c0_79, %c0_80] : memref<2x128x512xbf16, #tpu.memory_space<vmem>>, vector<1x128x512xbf16>
    %220 = vector.shape_cast %219 : vector<1x128x512xbf16> to vector<128x512xbf16>
    %cst_81 = arith.constant dense<0.000000e+00> : vector<8x512xf32>
    %221 = tpu.matmul %218, %220, %cst_81 {dimension_numbers = #tpu.dot_dimension_numbers<[1], [0], [0], [1], [0, 0, 1, 1], [], []>} : vector<8x128xbf16>, vector<128x512xbf16>, vector<8x512xf32> -> vector<8x512xf32>
    %222 = arith.addf %217, %221 : vector<8x512xf32>
    %223 = vector.extract_strided_slice %222 {offsets = [0, 0], sizes = [8, 256], strides = [1, 1]} : vector<8x512xf32> to vector<8x256xf32>
    %224 = arith.negf %223 : vector<8x256xf32>
    %225 = math.exp %224 : vector<8x256xf32>
    %cst_82 = arith.constant 1.000000e+00 : f32
    %226 = vector.broadcast %cst_82 : f32 to vector<8x256xf32>
    %227 = arith.addf %226, %225 : vector<8x256xf32>
    %228 = arith.divf %226, %227 : vector<8x256xf32>
    %229 = vector.extract_strided_slice %228 {offsets = [0, 0], sizes = [8, 128], strides = [1, 1]} : vector<8x256xf32> to vector<8x128xf32>
    %230 = vector.extract_strided_slice %228 {offsets = [0, 128], sizes = [8, 128], strides = [1, 1]} : vector<8x256xf32> to vector<8x128xf32>
    %231 = vector.extract_strided_slice %222 {offsets = [0, 256], sizes = [8, 128], strides = [1, 1]} : vector<8x512xf32> to vector<8x128xf32>
    %232 = math.tanh %231 : vector<8x128xf32>
    %233 = vector.extract_strided_slice %222 {offsets = [0, 384], sizes = [8, 128], strides = [1, 1]} : vector<8x512xf32> to vector<8x128xf32>
    %234 = arith.negf %233 : vector<8x128xf32>
    %235 = math.exp %234 : vector<8x128xf32>
    %cst_83 = arith.constant 1.000000e+00 : f32
    %236 = vector.broadcast %cst_83 : f32 to vector<8x128xf32>
    %237 = arith.addf %236, %235 : vector<8x128xf32>
    %238 = arith.divf %236, %237 : vector<8x128xf32>
    %239 = arith.mulf %230, %207 : vector<8x128xf32>
    %240 = arith.mulf %229, %232 : vector<8x128xf32>
    %241 = arith.addf %239, %240 : vector<8x128xf32>
    %242 = math.tanh %241 : vector<8x128xf32>
    %243 = arith.mulf %238, %242 : vector<8x128xf32>
    %244 = arith.truncf %243 : vector<8x128xf32> to vector<8x128xbf16>
    %c0_i32_84 = arith.constant 0 : i32
    %245 = arith.addi %c0_i32_84, %c6_i32 : i32
    %c8_i32_85 = arith.constant 8 : i32
    %246 = arith.muli %245, %c8_i32_85 : i32
    %247 = arith.index_cast %246 : i32 to index
    %c0_86 = arith.constant 0 : index
    %248 = vector.load %arg10[%247, %c0_86] : memref<64x128xbf16, #tpu.memory_space<vmem>>, vector<8x128xbf16>
    tpu.vector_store %arg10[%247, %c0_86], %244 {strides = array<i32>} : memref<64x128xbf16, #tpu.memory_space<vmem>>, vector<8x128xbf16>,
    %c7_i32 = arith.constant 7 : i32
    %c8_i32_87 = arith.constant 8 : i32
    %249 = arith.muli %c7_i32, %c8_i32_87 : i32
    %250 = arith.index_cast %249 : i32 to index
    %c0_88 = arith.constant 0 : index
    %251 = vector.load %arg9[%250, %c0_88] : memref<64x512xf32, #tpu.memory_space<vmem>>, vector<8x512xf32>
    %252 = arith.truncf %243 : vector<8x128xf32> to vector<8x128xbf16>
    %c0_89 = arith.constant 0 : index
    %c0_90 = arith.constant 0 : index
    %c0_91 = arith.constant 0 : index
    %253 = vector.load %arg4[%c0_89, %c0_90, %c0_91] : memref<2x128x512xbf16, #tpu.memory_space<vmem>>, vector<1x128x512xbf16>
    %254 = vector.shape_cast %253 : vector<1x128x512xbf16> to vector<128x512xbf16>
    %cst_92 = arith.constant dense<0.000000e+00> : vector<8x512xf32>
    %255 = tpu.matmul %252, %254, %cst_92 {dimension_numbers = #tpu.dot_dimension_numbers<[1], [0], [0], [1], [0, 0, 1, 1], [], []>} : vector<8x128xbf16>, vector<128x512xbf16>, vector<8x512xf32> -> vector<8x512xf32>
    %256 = arith.addf %251, %255 : vector<8x512xf32>
    %257 = vector.extract_strided_slice %256 {offsets = [0, 0], sizes = [8, 256], strides = [1, 1]} : vector<8x512xf32> to vector<8x256xf32>
    %258 = arith.negf %257 : vector<8x256xf32>
    %259 = math.exp %258 : vector<8x256xf32>
    %cst_93 = arith.constant 1.000000e+00 : f32
    %260 = vector.broadcast %cst_93 : f32 to vector<8x256xf32>
    %261 = arith.addf %260, %259 : vector<8x256xf32>
    %262 = arith.divf %260, %261 : vector<8x256xf32>
    %263 = vector.extract_strided_slice %262 {offsets = [0, 0], sizes = [8, 128], strides = [1, 1]} : vector<8x256xf32> to vector<8x128xf32>
    %264 = vector.extract_strided_slice %262 {offsets = [0, 128], sizes = [8, 128], strides = [1, 1]} : vector<8x256xf32> to vector<8x128xf32>
    %265 = vector.extract_strided_slice %256 {offsets = [0, 256], sizes = [8, 128], strides = [1, 1]} : vector<8x512xf32> to vector<8x128xf32>
    %266 = math.tanh %265 : vector<8x128xf32>
    %267 = vector.extract_strided_slice %256 {offsets = [0, 384], sizes = [8, 128], strides = [1, 1]} : vector<8x512xf32> to vector<8x128xf32>
    %268 = arith.negf %267 : vector<8x128xf32>
    %269 = math.exp %268 : vector<8x128xf32>
    %cst_94 = arith.constant 1.000000e+00 : f32
    %270 = vector.broadcast %cst_94 : f32 to vector<8x128xf32>
    %271 = arith.addf %270, %269 : vector<8x128xf32>
    %272 = arith.divf %270, %271 : vector<8x128xf32>
    %273 = arith.mulf %264, %241 : vector<8x128xf32>
    %274 = arith.mulf %263, %266 : vector<8x128xf32>
    %275 = arith.addf %273, %274 : vector<8x128xf32>
    %276 = math.tanh %275 : vector<8x128xf32>
    %277 = arith.mulf %272, %276 : vector<8x128xf32>
    %278 = arith.truncf %277 : vector<8x128xf32> to vector<8x128xbf16>
    %c0_i32_95 = arith.constant 0 : i32
    %279 = arith.addi %c0_i32_95, %c7_i32 : i32
    %c8_i32_96 = arith.constant 8 : i32
    %280 = arith.muli %279, %c8_i32_96 : i32
    %281 = arith.index_cast %280 : i32 to index
    %c0_97 = arith.constant 0 : index
    %282 = vector.load %arg10[%281, %c0_97] : memref<64x128xbf16, #tpu.memory_space<vmem>>, vector<8x128xbf16>
    tpu.vector_store %arg10[%281, %c0_97], %278 {strides = array<i32>} : memref<64x128xbf16, #tpu.memory_space<vmem>>, vector<8x128xbf16>,
    %c8_i32_98 = arith.constant 8 : i32
    %cst_99 = arith.constant 0.000000e+00 : f32
    %283 = vector.broadcast %cst_99 : f32 to vector<8x128xf32>
    %cst_100 = arith.constant 0.000000e+00 : f32
    %284 = vector.broadcast %cst_100 : f32 to vector<8x128xf32>
    %c0_101 = arith.constant 0 : index
    %c0_102 = arith.constant 0 : index
    %285 = vector.load %arg10[%c0_101, %c0_102] : memref<64x128xbf16, #tpu.memory_space<vmem>>, vector<64x128xbf16>
    %c0_103 = arith.constant 0 : index
    %c0_104 = arith.constant 0 : index
    %c0_105 = arith.constant 0 : index
    %286 = vector.load %arg3[%c0_103, %c0_104, %c0_105] : memref<1x128x512xbf16, #tpu.memory_space<vmem>>, vector<1x128x512xbf16>
    %287 = vector.shape_cast %286 : vector<1x128x512xbf16> to vector<128x512xbf16>
    %cst_106 = arith.constant dense<0.000000e+00> : vector<64x512xf32>
    %288 = tpu.matmul %285, %287, %cst_106 {dimension_numbers = #tpu.dot_dimension_numbers<[1], [0], [0], [1], [0, 0, 1, 1], [], []>} : vector<64x128xbf16>, vector<128x512xbf16>, vector<64x512xf32> -> vector<64x512xf32>
    %c1 = arith.constant 1 : index
    %c0_107 = arith.constant 0 : index
    %c0_108 = arith.constant 0 : index
    %289 = vector.load %arg5[%c1, %c0_107, %c0_108] : memref<2x1x512xf32, #tpu.memory_space<vmem>>, vector<1x1x512xf32>
    %290 = vector.shape_cast %289 : vector<1x1x512xf32> to vector<1x512xf32>
    %291 = vector.broadcast %290 : vector<1x512xf32> to vector<64x512xf32>
    %292 = arith.addf %288, %291 : vector<64x512xf32>
    %c0_109 = arith.constant 0 : index
    %c0_110 = arith.constant 0 : index
    %293 = vector.load %arg9[%c0_109, %c0_110] : memref<64x512xf32, #tpu.memory_space<vmem>>, vector<64x512xf32>
    tpu.vector_store %arg9[%c0_109, %c0_110], %292 {strides = array<i32>} : memref<64x512xf32, #tpu.memory_space<vmem>>, vector<64x512xf32>,
    %c0_i32_111 = arith.constant 0 : i32
    %c8_i32_112 = arith.constant 8 : i32
    %294 = arith.muli %c0_i32_111, %c8_i32_112 : i32
    %295 = arith.index_cast %294 : i32 to index
    %c0_113 = arith.constant 0 : index
    %296 = vector.load %arg9[%295, %c0_113] : memref<64x512xf32, #tpu.memory_space<vmem>>, vector<8x512xf32>
    %297 = arith.truncf %283 : vector<8x128xf32> to vector<8x128xbf16>
    %c1_114 = arith.constant 1 : index
    %c0_115 = arith.constant 0 : index
    %c0_116 = arith.constant 0 : index
    %298 = vector.load %arg4[%c1_114, %c0_115, %c0_116] : memref<2x128x512xbf16, #tpu.memory_space<vmem>>, vector<1x128x512xbf16>
    %299 = vector.shape_cast %298 : vector<1x128x512xbf16> to vector<128x512xbf16>
    %cst_117 = arith.constant dense<0.000000e+00> : vector<8x512xf32>
    %300 = tpu.matmul %297, %299, %cst_117 {dimension_numbers = #tpu.dot_dimension_numbers<[1], [0], [0], [1], [0, 0, 1, 1], [], []>} : vector<8x128xbf16>, vector<128x512xbf16>, vector<8x512xf32> -> vector<8x512xf32>
    %301 = arith.addf %296, %300 : vector<8x512xf32>
    %302 = vector.extract_strided_slice %301 {offsets = [0, 0], sizes = [8, 256], strides = [1, 1]} : vector<8x512xf32> to vector<8x256xf32>
    %303 = arith.negf %302 : vector<8x256xf32>
    %304 = math.exp %303 : vector<8x256xf32>
    %cst_118 = arith.constant 1.000000e+00 : f32
    %305 = vector.broadcast %cst_118 : f32 to vector<8x256xf32>
    %306 = arith.addf %305, %304 : vector<8x256xf32>
    %307 = arith.divf %305, %306 : vector<8x256xf32>
    %308 = vector.extract_strided_slice %307 {offsets = [0, 0], sizes = [8, 128], strides = [1, 1]} : vector<8x256xf32> to vector<8x128xf32>
    %309 = vector.extract_strided_slice %307 {offsets = [0, 128], sizes = [8, 128], strides = [1, 1]} : vector<8x256xf32> to vector<8x128xf32>
    %310 = vector.extract_strided_slice %301 {offsets = [0, 256], sizes = [8, 128], strides = [1, 1]} : vector<8x512xf32> to vector<8x128xf32>
    %311 = math.tanh %310 : vector<8x128xf32>
    %312 = vector.extract_strided_slice %301 {offsets = [0, 384], sizes = [8, 128], strides = [1, 1]} : vector<8x512xf32> to vector<8x128xf32>
    %313 = arith.negf %312 : vector<8x128xf32>
    %314 = math.exp %313 : vector<8x128xf32>
    %cst_119 = arith.constant 1.000000e+00 : f32
    %315 = vector.broadcast %cst_119 : f32 to vector<8x128xf32>
    %316 = arith.addf %315, %314 : vector<8x128xf32>
    %317 = arith.divf %315, %316 : vector<8x128xf32>
    %318 = arith.mulf %309, %284 : vector<8x128xf32>
    %319 = arith.mulf %308, %311 : vector<8x128xf32>
    %320 = arith.addf %318, %319 : vector<8x128xf32>
    %321 = math.tanh %320 : vector<8x128xf32>
    %322 = arith.mulf %317, %321 : vector<8x128xf32>
    %c1_i32_120 = arith.constant 1 : i32
    %c8_i32_121 = arith.constant 8 : i32
    %323 = arith.muli %c1_i32_120, %c8_i32_121 : i32
    %324 = arith.index_cast %323 : i32 to index
    %c0_122 = arith.constant 0 : index
    %325 = vector.load %arg9[%324, %c0_122] : memref<64x512xf32, #tpu.memory_space<vmem>>, vector<8x512xf32>
    %326 = arith.truncf %322 : vector<8x128xf32> to vector<8x128xbf16>
    %c1_123 = arith.constant 1 : index
    %c0_124 = arith.constant 0 : index
    %c0_125 = arith.constant 0 : index
    %327 = vector.load %arg4[%c1_123, %c0_124, %c0_125] : memref<2x128x512xbf16, #tpu.memory_space<vmem>>, vector<1x128x512xbf16>
    %328 = vector.shape_cast %327 : vector<1x128x512xbf16> to vector<128x512xbf16>
    %cst_126 = arith.constant dense<0.000000e+00> : vector<8x512xf32>
    %329 = tpu.matmul %326, %328, %cst_126 {dimension_numbers = #tpu.dot_dimension_numbers<[1], [0], [0], [1], [0, 0, 1, 1], [], []>} : vector<8x128xbf16>, vector<128x512xbf16>, vector<8x512xf32> -> vector<8x512xf32>
    %330 = arith.addf %325, %329 : vector<8x512xf32>
    %331 = vector.extract_strided_slice %330 {offsets = [0, 0], sizes = [8, 256], strides = [1, 1]} : vector<8x512xf32> to vector<8x256xf32>
    %332 = arith.negf %331 : vector<8x256xf32>
    %333 = math.exp %332 : vector<8x256xf32>
    %cst_127 = arith.constant 1.000000e+00 : f32
    %334 = vector.broadcast %cst_127 : f32 to vector<8x256xf32>
    %335 = arith.addf %334, %333 : vector<8x256xf32>
    %336 = arith.divf %334, %335 : vector<8x256xf32>
    %337 = vector.extract_strided_slice %336 {offsets = [0, 0], sizes = [8, 128], strides = [1, 1]} : vector<8x256xf32> to vector<8x128xf32>
    %338 = vector.extract_strided_slice %336 {offsets = [0, 128], sizes = [8, 128], strides = [1, 1]} : vector<8x256xf32> to vector<8x128xf32>
    %339 = vector.extract_strided_slice %330 {offsets = [0, 256], sizes = [8, 128], strides = [1, 1]} : vector<8x512xf32> to vector<8x128xf32>
    %340 = math.tanh %339 : vector<8x128xf32>
    %341 = vector.extract_strided_slice %330 {offsets = [0, 384], sizes = [8, 128], strides = [1, 1]} : vector<8x512xf32> to vector<8x128xf32>
    %342 = arith.negf %341 : vector<8x128xf32>
    %343 = math.exp %342 : vector<8x128xf32>
    %cst_128 = arith.constant 1.000000e+00 : f32
    %344 = vector.broadcast %cst_128 : f32 to vector<8x128xf32>
    %345 = arith.addf %344, %343 : vector<8x128xf32>
    %346 = arith.divf %344, %345 : vector<8x128xf32>
    %347 = arith.mulf %338, %320 : vector<8x128xf32>
    %348 = arith.mulf %337, %340 : vector<8x128xf32>
    %349 = arith.addf %347, %348 : vector<8x128xf32>
    %350 = math.tanh %349 : vector<8x128xf32>
    %351 = arith.mulf %346, %350 : vector<8x128xf32>
    %c2_i32_129 = arith.constant 2 : i32
    %c8_i32_130 = arith.constant 8 : i32
    %352 = arith.muli %c2_i32_129, %c8_i32_130 : i32
    %353 = arith.index_cast %352 : i32 to index
    %c0_131 = arith.constant 0 : index
    %354 = vector.load %arg9[%353, %c0_131] : memref<64x512xf32, #tpu.memory_space<vmem>>, vector<8x512xf32>
    %355 = arith.truncf %351 : vector<8x128xf32> to vector<8x128xbf16>
    %c1_132 = arith.constant 1 : index
    %c0_133 = arith.constant 0 : index
    %c0_134 = arith.constant 0 : index
    %356 = vector.load %arg4[%c1_132, %c0_133, %c0_134] : memref<2x128x512xbf16, #tpu.memory_space<vmem>>, vector<1x128x512xbf16>
    %357 = vector.shape_cast %356 : vector<1x128x512xbf16> to vector<128x512xbf16>
    %cst_135 = arith.constant dense<0.000000e+00> : vector<8x512xf32>
    %358 = tpu.matmul %355, %357, %cst_135 {dimension_numbers = #tpu.dot_dimension_numbers<[1], [0], [0], [1], [0, 0, 1, 1], [], []>} : vector<8x128xbf16>, vector<128x512xbf16>, vector<8x512xf32> -> vector<8x512xf32>
    %359 = arith.addf %354, %358 : vector<8x512xf32>
    %360 = vector.extract_strided_slice %359 {offsets = [0, 0], sizes = [8, 256], strides = [1, 1]} : vector<8x512xf32> to vector<8x256xf32>
    %361 = arith.negf %360 : vector<8x256xf32>
    %362 = math.exp %361 : vector<8x256xf32>
    %cst_136 = arith.constant 1.000000e+00 : f32
    %363 = vector.broadcast %cst_136 : f32 to vector<8x256xf32>
    %364 = arith.addf %363, %362 : vector<8x256xf32>
    %365 = arith.divf %363, %364 : vector<8x256xf32>
    %366 = vector.extract_strided_slice %365 {offsets = [0, 0], sizes = [8, 128], strides = [1, 1]} : vector<8x256xf32> to vector<8x128xf32>
    %367 = vector.extract_strided_slice %365 {offsets = [0, 128], sizes = [8, 128], strides = [1, 1]} : vector<8x256xf32> to vector<8x128xf32>
    %368 = vector.extract_strided_slice %359 {offsets = [0, 256], sizes = [8, 128], strides = [1, 1]} : vector<8x512xf32> to vector<8x128xf32>
    %369 = math.tanh %368 : vector<8x128xf32>
    %370 = vector.extract_strided_slice %359 {offsets = [0, 384], sizes = [8, 128], strides = [1, 1]} : vector<8x512xf32> to vector<8x128xf32>
    %371 = arith.negf %370 : vector<8x128xf32>
    %372 = math.exp %371 : vector<8x128xf32>
    %cst_137 = arith.constant 1.000000e+00 : f32
    %373 = vector.broadcast %cst_137 : f32 to vector<8x128xf32>
    %374 = arith.addf %373, %372 : vector<8x128xf32>
    %375 = arith.divf %373, %374 : vector<8x128xf32>
    %376 = arith.mulf %367, %349 : vector<8x128xf32>
    %377 = arith.mulf %366, %369 : vector<8x128xf32>
    %378 = arith.addf %376, %377 : vector<8x128xf32>
    %379 = math.tanh %378 : vector<8x128xf32>
    %380 = arith.mulf %375, %379 : vector<8x128xf32>
    %c3_i32_138 = arith.constant 3 : i32
    %c8_i32_139 = arith.constant 8 : i32
    %381 = arith.muli %c3_i32_138, %c8_i32_139 : i32
    %382 = arith.index_cast %381 : i32 to index
    %c0_140 = arith.constant 0 : index
    %383 = vector.load %arg9[%382, %c0_140] : memref<64x512xf32, #tpu.memory_space<vmem>>, vector<8x512xf32>
    %384 = arith.truncf %380 : vector<8x128xf32> to vector<8x128xbf16>
    %c1_141 = arith.constant 1 : index
    %c0_142 = arith.constant 0 : index
    %c0_143 = arith.constant 0 : index
    %385 = vector.load %arg4[%c1_141, %c0_142, %c0_143] : memref<2x128x512xbf16, #tpu.memory_space<vmem>>, vector<1x128x512xbf16>
    %386 = vector.shape_cast %385 : vector<1x128x512xbf16> to vector<128x512xbf16>
    %cst_144 = arith.constant dense<0.000000e+00> : vector<8x512xf32>
    %387 = tpu.matmul %384, %386, %cst_144 {dimension_numbers = #tpu.dot_dimension_numbers<[1], [0], [0], [1], [0, 0, 1, 1], [], []>} : vector<8x128xbf16>, vector<128x512xbf16>, vector<8x512xf32> -> vector<8x512xf32>
    %388 = arith.addf %383, %387 : vector<8x512xf32>
    %389 = vector.extract_strided_slice %388 {offsets = [0, 0], sizes = [8, 256], strides = [1, 1]} : vector<8x512xf32> to vector<8x256xf32>
    %390 = arith.negf %389 : vector<8x256xf32>
    %391 = math.exp %390 : vector<8x256xf32>
    %cst_145 = arith.constant 1.000000e+00 : f32
    %392 = vector.broadcast %cst_145 : f32 to vector<8x256xf32>
    %393 = arith.addf %392, %391 : vector<8x256xf32>
    %394 = arith.divf %392, %393 : vector<8x256xf32>
    %395 = vector.extract_strided_slice %394 {offsets = [0, 0], sizes = [8, 128], strides = [1, 1]} : vector<8x256xf32> to vector<8x128xf32>
    %396 = vector.extract_strided_slice %394 {offsets = [0, 128], sizes = [8, 128], strides = [1, 1]} : vector<8x256xf32> to vector<8x128xf32>
    %397 = vector.extract_strided_slice %388 {offsets = [0, 256], sizes = [8, 128], strides = [1, 1]} : vector<8x512xf32> to vector<8x128xf32>
    %398 = math.tanh %397 : vector<8x128xf32>
    %399 = vector.extract_strided_slice %388 {offsets = [0, 384], sizes = [8, 128], strides = [1, 1]} : vector<8x512xf32> to vector<8x128xf32>
    %400 = arith.negf %399 : vector<8x128xf32>
    %401 = math.exp %400 : vector<8x128xf32>
    %cst_146 = arith.constant 1.000000e+00 : f32
    %402 = vector.broadcast %cst_146 : f32 to vector<8x128xf32>
    %403 = arith.addf %402, %401 : vector<8x128xf32>
    %404 = arith.divf %402, %403 : vector<8x128xf32>
    %405 = arith.mulf %396, %378 : vector<8x128xf32>
    %406 = arith.mulf %395, %398 : vector<8x128xf32>
    %407 = arith.addf %405, %406 : vector<8x128xf32>
    %408 = math.tanh %407 : vector<8x128xf32>
    %409 = arith.mulf %404, %408 : vector<8x128xf32>
    %c4_i32_147 = arith.constant 4 : i32
    %c8_i32_148 = arith.constant 8 : i32
    %410 = arith.muli %c4_i32_147, %c8_i32_148 : i32
    %411 = arith.index_cast %410 : i32 to index
    %c0_149 = arith.constant 0 : index
    %412 = vector.load %arg9[%411, %c0_149] : memref<64x512xf32, #tpu.memory_space<vmem>>, vector<8x512xf32>
    %413 = arith.truncf %409 : vector<8x128xf32> to vector<8x128xbf16>
    %c1_150 = arith.constant 1 : index
    %c0_151 = arith.constant 0 : index
    %c0_152 = arith.constant 0 : index
    %414 = vector.load %arg4[%c1_150, %c0_151, %c0_152] : memref<2x128x512xbf16, #tpu.memory_space<vmem>>, vector<1x128x512xbf16>
    %415 = vector.shape_cast %414 : vector<1x128x512xbf16> to vector<128x512xbf16>
    %cst_153 = arith.constant dense<0.000000e+00> : vector<8x512xf32>
    %416 = tpu.matmul %413, %415, %cst_153 {dimension_numbers = #tpu.dot_dimension_numbers<[1], [0], [0], [1], [0, 0, 1, 1], [], []>} : vector<8x128xbf16>, vector<128x512xbf16>, vector<8x512xf32> -> vector<8x512xf32>
    %417 = arith.addf %412, %416 : vector<8x512xf32>
    %418 = vector.extract_strided_slice %417 {offsets = [0, 0], sizes = [8, 256], strides = [1, 1]} : vector<8x512xf32> to vector<8x256xf32>
    %419 = arith.negf %418 : vector<8x256xf32>
    %420 = math.exp %419 : vector<8x256xf32>
    %cst_154 = arith.constant 1.000000e+00 : f32
    %421 = vector.broadcast %cst_154 : f32 to vector<8x256xf32>
    %422 = arith.addf %421, %420 : vector<8x256xf32>
    %423 = arith.divf %421, %422 : vector<8x256xf32>
    %424 = vector.extract_strided_slice %423 {offsets = [0, 0], sizes = [8, 128], strides = [1, 1]} : vector<8x256xf32> to vector<8x128xf32>
    %425 = vector.extract_strided_slice %423 {offsets = [0, 128], sizes = [8, 128], strides = [1, 1]} : vector<8x256xf32> to vector<8x128xf32>
    %426 = vector.extract_strided_slice %417 {offsets = [0, 256], sizes = [8, 128], strides = [1, 1]} : vector<8x512xf32> to vector<8x128xf32>
    %427 = math.tanh %426 : vector<8x128xf32>
    %428 = vector.extract_strided_slice %417 {offsets = [0, 384], sizes = [8, 128], strides = [1, 1]} : vector<8x512xf32> to vector<8x128xf32>
    %429 = arith.negf %428 : vector<8x128xf32>
    %430 = math.exp %429 : vector<8x128xf32>
    %cst_155 = arith.constant 1.000000e+00 : f32
    %431 = vector.broadcast %cst_155 : f32 to vector<8x128xf32>
    %432 = arith.addf %431, %430 : vector<8x128xf32>
    %433 = arith.divf %431, %432 : vector<8x128xf32>
    %434 = arith.mulf %425, %407 : vector<8x128xf32>
    %435 = arith.mulf %424, %427 : vector<8x128xf32>
    %436 = arith.addf %434, %435 : vector<8x128xf32>
    %437 = math.tanh %436 : vector<8x128xf32>
    %438 = arith.mulf %433, %437 : vector<8x128xf32>
    %c5_i32_156 = arith.constant 5 : i32
    %c8_i32_157 = arith.constant 8 : i32
    %439 = arith.muli %c5_i32_156, %c8_i32_157 : i32
    %440 = arith.index_cast %439 : i32 to index
    %c0_158 = arith.constant 0 : index
    %441 = vector.load %arg9[%440, %c0_158] : memref<64x512xf32, #tpu.memory_space<vmem>>, vector<8x512xf32>
    %442 = arith.truncf %438 : vector<8x128xf32> to vector<8x128xbf16>
    %c1_159 = arith.constant 1 : index
    %c0_160 = arith.constant 0 : index
    %c0_161 = arith.constant 0 : index
    %443 = vector.load %arg4[%c1_159, %c0_160, %c0_161] : memref<2x128x512xbf16, #tpu.memory_space<vmem>>, vector<1x128x512xbf16>
    %444 = vector.shape_cast %443 : vector<1x128x512xbf16> to vector<128x512xbf16>
    %cst_162 = arith.constant dense<0.000000e+00> : vector<8x512xf32>
    %445 = tpu.matmul %442, %444, %cst_162 {dimension_numbers = #tpu.dot_dimension_numbers<[1], [0], [0], [1], [0, 0, 1, 1], [], []>} : vector<8x128xbf16>, vector<128x512xbf16>, vector<8x512xf32> -> vector<8x512xf32>
    %446 = arith.addf %441, %445 : vector<8x512xf32>
    %447 = vector.extract_strided_slice %446 {offsets = [0, 0], sizes = [8, 256], strides = [1, 1]} : vector<8x512xf32> to vector<8x256xf32>
    %448 = arith.negf %447 : vector<8x256xf32>
    %449 = math.exp %448 : vector<8x256xf32>
    %cst_163 = arith.constant 1.000000e+00 : f32
    %450 = vector.broadcast %cst_163 : f32 to vector<8x256xf32>
    %451 = arith.addf %450, %449 : vector<8x256xf32>
    %452 = arith.divf %450, %451 : vector<8x256xf32>
    %453 = vector.extract_strided_slice %452 {offsets = [0, 0], sizes = [8, 128], strides = [1, 1]} : vector<8x256xf32> to vector<8x128xf32>
    %454 = vector.extract_strided_slice %452 {offsets = [0, 128], sizes = [8, 128], strides = [1, 1]} : vector<8x256xf32> to vector<8x128xf32>
    %455 = vector.extract_strided_slice %446 {offsets = [0, 256], sizes = [8, 128], strides = [1, 1]} : vector<8x512xf32> to vector<8x128xf32>
    %456 = math.tanh %455 : vector<8x128xf32>
    %457 = vector.extract_strided_slice %446 {offsets = [0, 384], sizes = [8, 128], strides = [1, 1]} : vector<8x512xf32> to vector<8x128xf32>
    %458 = arith.negf %457 : vector<8x128xf32>
    %459 = math.exp %458 : vector<8x128xf32>
    %cst_164 = arith.constant 1.000000e+00 : f32
    %460 = vector.broadcast %cst_164 : f32 to vector<8x128xf32>
    %461 = arith.addf %460, %459 : vector<8x128xf32>
    %462 = arith.divf %460, %461 : vector<8x128xf32>
    %463 = arith.mulf %454, %436 : vector<8x128xf32>
    %464 = arith.mulf %453, %456 : vector<8x128xf32>
    %465 = arith.addf %463, %464 : vector<8x128xf32>
    %466 = math.tanh %465 : vector<8x128xf32>
    %467 = arith.mulf %462, %466 : vector<8x128xf32>
    %c6_i32_165 = arith.constant 6 : i32
    %c8_i32_166 = arith.constant 8 : i32
    %468 = arith.muli %c6_i32_165, %c8_i32_166 : i32
    %469 = arith.index_cast %468 : i32 to index
    %c0_167 = arith.constant 0 : index
    %470 = vector.load %arg9[%469, %c0_167] : memref<64x512xf32, #tpu.memory_space<vmem>>, vector<8x512xf32>
    %471 = arith.truncf %467 : vector<8x128xf32> to vector<8x128xbf16>
    %c1_168 = arith.constant 1 : index
    %c0_169 = arith.constant 0 : index
    %c0_170 = arith.constant 0 : index
    %472 = vector.load %arg4[%c1_168, %c0_169, %c0_170] : memref<2x128x512xbf16, #tpu.memory_space<vmem>>, vector<1x128x512xbf16>
    %473 = vector.shape_cast %472 : vector<1x128x512xbf16> to vector<128x512xbf16>
    %cst_171 = arith.constant dense<0.000000e+00> : vector<8x512xf32>
    %474 = tpu.matmul %471, %473, %cst_171 {dimension_numbers = #tpu.dot_dimension_numbers<[1], [0], [0], [1], [0, 0, 1, 1], [], []>} : vector<8x128xbf16>, vector<128x512xbf16>, vector<8x512xf32> -> vector<8x512xf32>
    %475 = arith.addf %470, %474 : vector<8x512xf32>
    %476 = vector.extract_strided_slice %475 {offsets = [0, 0], sizes = [8, 256], strides = [1, 1]} : vector<8x512xf32> to vector<8x256xf32>
    %477 = arith.negf %476 : vector<8x256xf32>
    %478 = math.exp %477 : vector<8x256xf32>
    %cst_172 = arith.constant 1.000000e+00 : f32
    %479 = vector.broadcast %cst_172 : f32 to vector<8x256xf32>
    %480 = arith.addf %479, %478 : vector<8x256xf32>
    %481 = arith.divf %479, %480 : vector<8x256xf32>
    %482 = vector.extract_strided_slice %481 {offsets = [0, 0], sizes = [8, 128], strides = [1, 1]} : vector<8x256xf32> to vector<8x128xf32>
    %483 = vector.extract_strided_slice %481 {offsets = [0, 128], sizes = [8, 128], strides = [1, 1]} : vector<8x256xf32> to vector<8x128xf32>
    %484 = vector.extract_strided_slice %475 {offsets = [0, 256], sizes = [8, 128], strides = [1, 1]} : vector<8x512xf32> to vector<8x128xf32>
    %485 = math.tanh %484 : vector<8x128xf32>
    %486 = vector.extract_strided_slice %475 {offsets = [0, 384], sizes = [8, 128], strides = [1, 1]} : vector<8x512xf32> to vector<8x128xf32>
    %487 = arith.negf %486 : vector<8x128xf32>
    %488 = math.exp %487 : vector<8x128xf32>
    %cst_173 = arith.constant 1.000000e+00 : f32
    %489 = vector.broadcast %cst_173 : f32 to vector<8x128xf32>
    %490 = arith.addf %489, %488 : vector<8x128xf32>
    %491 = arith.divf %489, %490 : vector<8x128xf32>
    %492 = arith.mulf %483, %465 : vector<8x128xf32>
    %493 = arith.mulf %482, %485 : vector<8x128xf32>
    %494 = arith.addf %492, %493 : vector<8x128xf32>
    %495 = math.tanh %494 : vector<8x128xf32>
    %496 = arith.mulf %491, %495 : vector<8x128xf32>
    %c7_i32_174 = arith.constant 7 : i32
    %c8_i32_175 = arith.constant 8 : i32
    %497 = arith.muli %c7_i32_174, %c8_i32_175 : i32
    %498 = arith.index_cast %497 : i32 to index
    %c0_176 = arith.constant 0 : index
    %499 = vector.load %arg9[%498, %c0_176] : memref<64x512xf32, #tpu.memory_space<vmem>>, vector<8x512xf32>
    %500 = arith.truncf %496 : vector<8x128xf32> to vector<8x128xbf16>
    %c1_177 = arith.constant 1 : index
    %c0_178 = arith.constant 0 : index
    %c0_179 = arith.constant 0 : index
    %501 = vector.load %arg4[%c1_177, %c0_178, %c0_179] : memref<2x128x512xbf16, #tpu.memory_space<vmem>>, vector<1x128x512xbf16>
    %502 = vector.shape_cast %501 : vector<1x128x512xbf16> to vector<128x512xbf16>
    %cst_180 = arith.constant dense<0.000000e+00> : vector<8x512xf32>
    %503 = tpu.matmul %500, %502, %cst_180 {dimension_numbers = #tpu.dot_dimension_numbers<[1], [0], [0], [1], [0, 0, 1, 1], [], []>} : vector<8x128xbf16>, vector<128x512xbf16>, vector<8x512xf32> -> vector<8x512xf32>
    %504 = arith.addf %499, %503 : vector<8x512xf32>
    %505 = vector.extract_strided_slice %504 {offsets = [0, 0], sizes = [8, 256], strides = [1, 1]} : vector<8x512xf32> to vector<8x256xf32>
    %506 = arith.negf %505 : vector<8x256xf32>
    %507 = math.exp %506 : vector<8x256xf32>
    %cst_181 = arith.constant 1.000000e+00 : f32
    %508 = vector.broadcast %cst_181 : f32 to vector<8x256xf32>
    %509 = arith.addf %508, %507 : vector<8x256xf32>
    %510 = arith.divf %508, %509 : vector<8x256xf32>
    %511 = vector.extract_strided_slice %510 {offsets = [0, 0], sizes = [8, 128], strides = [1, 1]} : vector<8x256xf32> to vector<8x128xf32>
    %512 = vector.extract_strided_slice %510 {offsets = [0, 128], sizes = [8, 128], strides = [1, 1]} : vector<8x256xf32> to vector<8x128xf32>
    %513 = vector.extract_strided_slice %504 {offsets = [0, 256], sizes = [8, 128], strides = [1, 1]} : vector<8x512xf32> to vector<8x128xf32>
    %514 = math.tanh %513 : vector<8x128xf32>
    %515 = vector.extract_strided_slice %504 {offsets = [0, 384], sizes = [8, 128], strides = [1, 1]} : vector<8x512xf32> to vector<8x128xf32>
    %516 = arith.negf %515 : vector<8x128xf32>
    %517 = math.exp %516 : vector<8x128xf32>
    %cst_182 = arith.constant 1.000000e+00 : f32
    %518 = vector.broadcast %cst_182 : f32 to vector<8x128xf32>
    %519 = arith.addf %518, %517 : vector<8x128xf32>
    %520 = arith.divf %518, %519 : vector<8x128xf32>
    %521 = arith.mulf %512, %494 : vector<8x128xf32>
    %522 = arith.mulf %511, %514 : vector<8x128xf32>
    %523 = arith.addf %521, %522 : vector<8x128xf32>
    %524 = math.tanh %523 : vector<8x128xf32>
    %525 = arith.mulf %520, %524 : vector<8x128xf32>
    %c8_i32_183 = arith.constant 8 : i32
    %526 = arith.truncf %525 : vector<8x128xf32> to vector<8x128xbf16>
    %c0_184 = arith.constant 0 : index
    %c0_185 = arith.constant 0 : index
    %527 = vector.load %arg6[%c0_184, %c0_185] : memref<128x128xbf16, #tpu.memory_space<vmem>>, vector<128x128xbf16>
    %cst_186 = arith.constant dense<0.000000e+00> : vector<8x128xf32>
    %528 = tpu.matmul %526, %527, %cst_186 {dimension_numbers = #tpu.dot_dimension_numbers<[1], [0], [0], [1], [0, 0, 1, 1], [], []>} : vector<8x128xbf16>, vector<128x128xbf16>, vector<8x128xf32> -> vector<8x128xf32>
    %c0_187 = arith.constant 0 : index
    %c0_188 = arith.constant 0 : index
    %529 = vector.load %arg7[%c0_187, %c0_188] : memref<1x128xf32, #tpu.memory_space<vmem>>, vector<1x128xf32>
    %530 = vector.broadcast %529 : vector<1x128xf32> to vector<8x128xf32>
    %531 = arith.addf %528, %530 : vector<8x128xf32>
    %c0_189 = arith.constant 0 : index
    %c0_190 = arith.constant 0 : index
    %532 = vector.load %arg8[%c0_189, %c0_190] : memref<8x128xf32, #tpu.memory_space<vmem>>, vector<8x128xf32>
    tpu.vector_store %arg8[%c0_189, %c0_190], %531 {strides = array<i32>} : memref<8x128xf32, #tpu.memory_space<vmem>>, vector<8x128xf32>,
    return
  }
  func.func @transform_0(%arg0: i32) -> (i32, i32, i32) {
    %c0_i32 = arith.constant 0 : i32
    %c0_i32_0 = arith.constant 0 : i32
    %c0_i32_1 = arith.constant 0 : i32
    return %arg0, %c0_i32, %c0_i32_0 : i32, i32, i32
  }
  func.func @transform_1(%arg0: i32) -> (i32, i32) {
    %c0_i32 = arith.constant 0 : i32
    %c0_i32_0 = arith.constant 0 : i32
    %c0_i32_1 = arith.constant 0 : i32
    return %c0_i32, %c0_i32_0 : i32, i32
  }
  func.func @transform_2(%arg0: i32) -> (i32, i32, i32) {
    %c0_i32 = arith.constant 0 : i32
    %c0_i32_0 = arith.constant 0 : i32
    %c0_i32_1 = arith.constant 0 : i32
    %c0_i32_2 = arith.constant 0 : i32
    return %c0_i32, %c0_i32_0, %c0_i32_1 : i32, i32, i32
  }
  func.func @transform_3(%arg0: i32) -> (i32, i32, i32) {
    %c0_i32 = arith.constant 0 : i32
    %c0_i32_0 = arith.constant 0 : i32
    %c0_i32_1 = arith.constant 0 : i32
    %c0_i32_2 = arith.constant 0 : i32
    return %c0_i32, %c0_i32_0, %c0_i32_1 : i32, i32, i32
  }
  func.func @transform_4(%arg0: i32) -> (i32, i32, i32) {
    %c0_i32 = arith.constant 0 : i32
    %c0_i32_0 = arith.constant 0 : i32
    %c0_i32_1 = arith.constant 0 : i32
    %c0_i32_2 = arith.constant 0 : i32
    return %c0_i32, %c0_i32_0, %c0_i32_1 : i32, i32, i32
  }
  func.func @transform_5(%arg0: i32) -> (i32, i32) {
    %c0_i32 = arith.constant 0 : i32
    %c0_i32_0 = arith.constant 0 : i32
    %c0_i32_1 = arith.constant 0 : i32
    return %c0_i32, %c0_i32_0 : i32, i32
  }
  func.func @transform_6(%arg0: i32) -> (i32, i32) {
    %c0_i32 = arith.constant 0 : i32
    %c0_i32_0 = arith.constant 0 : i32
    %c0_i32_1 = arith.constant 0 : i32
    return %c0_i32, %c0_i32_0 : i32, i32
  }
  func.func @transform_7(%arg0: i32) -> (i32, i32) {
    %c0_i32 = arith.constant 0 : i32
    %c0_i32_0 = arith.constant 0 : i32
    return %arg0, %c0_i32 : i32, i32
  }
}

module attributes {stable_mosaic.version = 11 : i64} {
  func.func @_fused_lstm_fc_kernel(%arg0: i32, %arg1: memref<1x64x16xbf16, #tpu.memory_space<vmem>>, %arg2: memref<16x512xbf16, #tpu.memory_space<vmem>>, %arg3: memref<1x128x512xbf16, #tpu.memory_space<vmem>>, %arg4: memref<2x128x512xbf16, #tpu.memory_space<vmem>>, %arg5: memref<2x1x512xf32, #tpu.memory_space<vmem>>, %arg6: memref<128x128xbf16, #tpu.memory_space<vmem>>, %arg7: memref<1x128xf32, #tpu.memory_space<vmem>>, %arg8: memref<8x128xf32, #tpu.memory_space<vmem>>, %arg9: memref<64x512xf32, #tpu.memory_space<vmem>>, %arg10: memref<64x128xbf16, #tpu.memory_space<vmem>>) attributes {dimension_semantics = [#tpu.dimension_semantics<parallel>], iteration_bounds = array<i64: 1>, scalar_prefetch = 0 : i64, scratch_operands = 2 : i64, tpu.core_type = #tpu.core_type<tc>, window_params = [{transform_indices = @transform_0, window_bounds = array<i64: 1, 64, 16>}, {pipeline_mode = #tpu.pipeline_mode<synchronous>, transform_indices = @transform_1, window_bounds = array<i64: 16, 512>}, {pipeline_mode = #tpu.pipeline_mode<synchronous>, transform_indices = @transform_2, window_bounds = array<i64: 1, 128, 512>}, {pipeline_mode = #tpu.pipeline_mode<synchronous>, transform_indices = @transform_3, window_bounds = array<i64: 2, 128, 512>}, {pipeline_mode = #tpu.pipeline_mode<synchronous>, transform_indices = @transform_4, window_bounds = array<i64: 2, 1, 512>}, {pipeline_mode = #tpu.pipeline_mode<synchronous>, transform_indices = @transform_5, window_bounds = array<i64: 128, 128>}, {pipeline_mode = #tpu.pipeline_mode<synchronous>, transform_indices = @transform_6, window_bounds = array<i64: 1, 128>}, {transform_indices = @transform_7, window_bounds = array<i64: 8, 128>}]} {
    %cst = arith.constant 0.000000e+00 : f32
    %0 = vector.broadcast %cst : f32 to vector<8x128xf32>
    %cst_0 = arith.constant 0.000000e+00 : f32
    %1 = vector.broadcast %cst_0 : f32 to vector<8x128xf32>
    %c0 = arith.constant 0 : index
    %c0_1 = arith.constant 0 : index
    %c0_2 = arith.constant 0 : index
    %2 = vector.load %arg1[%c0, %c0_1, %c0_2] : memref<1x64x16xbf16, #tpu.memory_space<vmem>>, vector<1x64x16xbf16>
    %3 = vector.shape_cast %2 : vector<1x64x16xbf16> to vector<64x16xbf16>
    %c0_3 = arith.constant 0 : index
    %c0_4 = arith.constant 0 : index
    %4 = vector.load %arg2[%c0_3, %c0_4] : memref<16x512xbf16, #tpu.memory_space<vmem>>, vector<16x512xbf16>
    %cst_5 = arith.constant dense<0.000000e+00> : vector<64x512xf32>
    %5 = tpu.matmul %3, %4, %cst_5 {dimension_numbers = #tpu.dot_dimension_numbers<[1], [0], [0], [1], [0, 0, 1, 1], [], []>} : vector<64x16xbf16>, vector<16x512xbf16>, vector<64x512xf32> -> vector<64x512xf32>
    %c0_6 = arith.constant 0 : index
    %c0_7 = arith.constant 0 : index
    %c0_8 = arith.constant 0 : index
    %6 = vector.load %arg5[%c0_6, %c0_7, %c0_8] : memref<2x1x512xf32, #tpu.memory_space<vmem>>, vector<1x1x512xf32>
    %7 = vector.shape_cast %6 : vector<1x1x512xf32> to vector<1x512xf32>
    %8 = vector.broadcast %7 : vector<1x512xf32> to vector<64x512xf32>
    %9 = arith.addf %5, %8 : vector<64x512xf32>
    %c0_9 = arith.constant 0 : index
    %c0_10 = arith.constant 0 : index
    %10 = vector.load %arg9[%c0_9, %c0_10] : memref<64x512xf32, #tpu.memory_space<vmem>>, vector<64x512xf32>
    tpu.vector_store %arg9[%c0_9, %c0_10], %9 {strides = array<i32>} : memref<64x512xf32, #tpu.memory_space<vmem>>, vector<64x512xf32>,
    %c0_i32 = arith.constant 0 : i32
    %c8_i32 = arith.constant 8 : i32
    %11 = arith.muli %c0_i32, %c8_i32 : i32
    %12 = arith.index_cast %11 : i32 to index
    %c0_11 = arith.constant 0 : index
    %13 = vector.load %arg9[%12, %c0_11] : memref<64x512xf32, #tpu.memory_space<vmem>>, vector<8x512xf32>
    %14 = arith.truncf %0 : vector<8x128xf32> to vector<8x128xbf16>
    %c0_12 = arith.constant 0 : index
    %c0_13 = arith.constant 0 : index
    %c0_14 = arith.constant 0 : index
    %15 = vector.load %arg4[%c0_12, %c0_13, %c0_14] : memref<2x128x512xbf16, #tpu.memory_space<vmem>>, vector<1x128x512xbf16>
    %16 = vector.shape_cast %15 : vector<1x128x512xbf16> to vector<128x512xbf16>
    %cst_15 = arith.constant dense<0.000000e+00> : vector<8x512xf32>
    %17 = tpu.matmul %14, %16, %cst_15 {dimension_numbers = #tpu.dot_dimension_numbers<[1], [0], [0], [1], [0, 0, 1, 1], [], []>} : vector<8x128xbf16>, vector<128x512xbf16>, vector<8x512xf32> -> vector<8x512xf32>
    %18 = arith.addf %13, %17 : vector<8x512xf32>
    %19 = vector.extract_strided_slice %18 {offsets = [0, 0], sizes = [8, 256], strides = [1, 1]} : vector<8x512xf32> to vector<8x256xf32>
    %20 = arith.negf %19 : vector<8x256xf32>
    %21 = math.exp %20 : vector<8x256xf32>
    %cst_16 = arith.constant 1.000000e+00 : f32
    %22 = vector.broadcast %cst_16 : f32 to vector<8x256xf32>
    %23 = arith.addf %22, %21 : vector<8x256xf32>
    %24 = arith.divf %22, %23 : vector<8x256xf32>
    %25 = vector.extract_strided_slice %24 {offsets = [0, 0], sizes = [8, 128], strides = [1, 1]} : vector<8x256xf32> to vector<8x128xf32>
    %26 = vector.extract_strided_slice %24 {offsets = [0, 128], sizes = [8, 128], strides = [1, 1]} : vector<8x256xf32> to vector<8x128xf32>
    %27 = vector.extract_strided_slice %18 {offsets = [0, 256], sizes = [8, 128], strides = [1, 1]} : vector<8x512xf32> to vector<8x128xf32>
    %28 = math.tanh %27 : vector<8x128xf32>
    %29 = vector.extract_strided_slice %18 {offsets = [0, 384], sizes = [8, 128], strides = [1, 1]} : vector<8x512xf32> to vector<8x128xf32>
    %30 = arith.negf %29 : vector<8x128xf32>
    %31 = math.exp %30 : vector<8x128xf32>
    %cst_17 = arith.constant 1.000000e+00 : f32
    %32 = vector.broadcast %cst_17 : f32 to vector<8x128xf32>
    %33 = arith.addf %32, %31 : vector<8x128xf32>
    %34 = arith.divf %32, %33 : vector<8x128xf32>
    %35 = arith.mulf %26, %1 : vector<8x128xf32>
    %36 = arith.mulf %25, %28 : vector<8x128xf32>
    %37 = arith.addf %35, %36 : vector<8x128xf32>
    %38 = math.tanh %37 : vector<8x128xf32>
    %39 = arith.mulf %34, %38 : vector<8x128xf32>
    %40 = arith.truncf %39 : vector<8x128xf32> to vector<8x128xbf16>
    %c0_i32_18 = arith.constant 0 : i32
    %41 = arith.addi %c0_i32_18, %c0_i32 : i32
    %c8_i32_19 = arith.constant 8 : i32
    %42 = arith.muli %41, %c8_i32_19 : i32
    %43 = arith.index_cast %42 : i32 to index
    %c0_20 = arith.constant 0 : index
    %44 = vector.load %arg10[%43, %c0_20] : memref<64x128xbf16, #tpu.memory_space<vmem>>, vector<8x128xbf16>
    tpu.vector_store %arg10[%43, %c0_20], %40 {strides = array<i32>} : memref<64x128xbf16, #tpu.memory_space<vmem>>, vector<8x128xbf16>,
    %c1_i32 = arith.constant 1 : i32
    %c8_i32_21 = arith.constant 8 : i32
    %45 = arith.muli %c1_i32, %c8_i32_21 : i32
    %46 = arith.index_cast %45 : i32 to index
    %c0_22 = arith.constant 0 : index
    %47 = vector.load %arg9[%46, %c0_22] : memref<64x512xf32, #tpu.memory_space<vmem>>, vector<8x512xf32>
    %48 = arith.truncf %39 : vector<8x128xf32> to vector<8x128xbf16>
    %c0_23 = arith.constant 0 : index
    %c0_24 = arith.constant 0 : index
    %c0_25 = arith.constant 0 : index
    %49 = vector.load %arg4[%c0_23, %c0_24, %c0_25] : memref<2x128x512xbf16, #tpu.memory_space<vmem>>, vector<1x128x512xbf16>
    %50 = vector.shape_cast %49 : vector<1x128x512xbf16> to vector<128x512xbf16>
    %cst_26 = arith.constant dense<0.000000e+00> : vector<8x512xf32>
    %51 = tpu.matmul %48, %50, %cst_26 {dimension_numbers = #tpu.dot_dimension_numbers<[1], [0], [0], [1], [0, 0, 1, 1], [], []>} : vector<8x128xbf16>, vector<128x512xbf16>, vector<8x512xf32> -> vector<8x512xf32>
    %52 = arith.addf %47, %51 : vector<8x512xf32>
    %53 = vector.extract_strided_slice %52 {offsets = [0, 0], sizes = [8, 256], strides = [1, 1]} : vector<8x512xf32> to vector<8x256xf32>
    %54 = arith.negf %53 : vector<8x256xf32>
    %55 = math.exp %54 : vector<8x256xf32>
    %cst_27 = arith.constant 1.000000e+00 : f32
    %56 = vector.broadcast %cst_27 : f32 to vector<8x256xf32>
    %57 = arith.addf %56, %55 : vector<8x256xf32>
    %58 = arith.divf %56, %57 : vector<8x256xf32>
    %59 = vector.extract_strided_slice %58 {offsets = [0, 0], sizes = [8, 128], strides = [1, 1]} : vector<8x256xf32> to vector<8x128xf32>
    %60 = vector.extract_strided_slice %58 {offsets = [0, 128], sizes = [8, 128], strides = [1, 1]} : vector<8x256xf32> to vector<8x128xf32>
    %61 = vector.extract_strided_slice %52 {offsets = [0, 256], sizes = [8, 128], strides = [1, 1]} : vector<8x512xf32> to vector<8x128xf32>
    %62 = math.tanh %61 : vector<8x128xf32>
    %63 = vector.extract_strided_slice %52 {offsets = [0, 384], sizes = [8, 128], strides = [1, 1]} : vector<8x512xf32> to vector<8x128xf32>
    %64 = arith.negf %63 : vector<8x128xf32>
    %65 = math.exp %64 : vector<8x128xf32>
    %cst_28 = arith.constant 1.000000e+00 : f32
    %66 = vector.broadcast %cst_28 : f32 to vector<8x128xf32>
    %67 = arith.addf %66, %65 : vector<8x128xf32>
    %68 = arith.divf %66, %67 : vector<8x128xf32>
    %69 = arith.mulf %60, %37 : vector<8x128xf32>
    %70 = arith.mulf %59, %62 : vector<8x128xf32>
    %71 = arith.addf %69, %70 : vector<8x128xf32>
    %72 = math.tanh %71 : vector<8x128xf32>
    %73 = arith.mulf %68, %72 : vector<8x128xf32>
    %74 = arith.truncf %73 : vector<8x128xf32> to vector<8x128xbf16>
    %c0_i32_29 = arith.constant 0 : i32
    %75 = arith.addi %c0_i32_29, %c1_i32 : i32
    %c8_i32_30 = arith.constant 8 : i32
    %76 = arith.muli %75, %c8_i32_30 : i32
    %77 = arith.index_cast %76 : i32 to index
    %c0_31 = arith.constant 0 : index
    %78 = vector.load %arg10[%77, %c0_31] : memref<64x128xbf16, #tpu.memory_space<vmem>>, vector<8x128xbf16>
    tpu.vector_store %arg10[%77, %c0_31], %74 {strides = array<i32>} : memref<64x128xbf16, #tpu.memory_space<vmem>>, vector<8x128xbf16>,
    %c2_i32 = arith.constant 2 : i32
    %c8_i32_32 = arith.constant 8 : i32
    %79 = arith.muli %c2_i32, %c8_i32_32 : i32
    %80 = arith.index_cast %79 : i32 to index
    %c0_33 = arith.constant 0 : index
    %81 = vector.load %arg9[%80, %c0_33] : memref<64x512xf32, #tpu.memory_space<vmem>>, vector<8x512xf32>
    %82 = arith.truncf %73 : vector<8x128xf32> to vector<8x128xbf16>
    %c0_34 = arith.constant 0 : index
    %c0_35 = arith.constant 0 : index
    %c0_36 = arith.constant 0 : index
    %83 = vector.load %arg4[%c0_34, %c0_35, %c0_36] : memref<2x128x512xbf16, #tpu.memory_space<vmem>>, vector<1x128x512xbf16>
    %84 = vector.shape_cast %83 : vector<1x128x512xbf16> to vector<128x512xbf16>
    %cst_37 = arith.constant dense<0.000000e+00> : vector<8x512xf32>
    %85 = tpu.matmul %82, %84, %cst_37 {dimension_numbers = #tpu.dot_dimension_numbers<[1], [0], [0], [1], [0, 0, 1, 1], [], []>} : vector<8x128xbf16>, vector<128x512xbf16>, vector<8x512xf32> -> vector<8x512xf32>
    %86 = arith.addf %81, %85 : vector<8x512xf32>
    %87 = vector.extract_strided_slice %86 {offsets = [0, 0], sizes = [8, 256], strides = [1, 1]} : vector<8x512xf32> to vector<8x256xf32>
    %88 = arith.negf %87 : vector<8x256xf32>
    %89 = math.exp %88 : vector<8x256xf32>
    %cst_38 = arith.constant 1.000000e+00 : f32
    %90 = vector.broadcast %cst_38 : f32 to vector<8x256xf32>
    %91 = arith.addf %90, %89 : vector<8x256xf32>
    %92 = arith.divf %90, %91 : vector<8x256xf32>
    %93 = vector.extract_strided_slice %92 {offsets = [0, 0], sizes = [8, 128], strides = [1, 1]} : vector<8x256xf32> to vector<8x128xf32>
    %94 = vector.extract_strided_slice %92 {offsets = [0, 128], sizes = [8, 128], strides = [1, 1]} : vector<8x256xf32> to vector<8x128xf32>
    %95 = vector.extract_strided_slice %86 {offsets = [0, 256], sizes = [8, 128], strides = [1, 1]} : vector<8x512xf32> to vector<8x128xf32>
    %96 = math.tanh %95 : vector<8x128xf32>
    %97 = vector.extract_strided_slice %86 {offsets = [0, 384], sizes = [8, 128], strides = [1, 1]} : vector<8x512xf32> to vector<8x128xf32>
    %98 = arith.negf %97 : vector<8x128xf32>
    %99 = math.exp %98 : vector<8x128xf32>
    %cst_39 = arith.constant 1.000000e+00 : f32
    %100 = vector.broadcast %cst_39 : f32 to vector<8x128xf32>
    %101 = arith.addf %100, %99 : vector<8x128xf32>
    %102 = arith.divf %100, %101 : vector<8x128xf32>
    %103 = arith.mulf %94, %71 : vector<8x128xf32>
    %104 = arith.mulf %93, %96 : vector<8x128xf32>
    %105 = arith.addf %103, %104 : vector<8x128xf32>
    %106 = math.tanh %105 : vector<8x128xf32>
    %107 = arith.mulf %102, %106 : vector<8x128xf32>
    %108 = arith.truncf %107 : vector<8x128xf32> to vector<8x128xbf16>
    %c0_i32_40 = arith.constant 0 : i32
    %109 = arith.addi %c0_i32_40, %c2_i32 : i32
    %c8_i32_41 = arith.constant 8 : i32
    %110 = arith.muli %109, %c8_i32_41 : i32
    %111 = arith.index_cast %110 : i32 to index
    %c0_42 = arith.constant 0 : index
    %112 = vector.load %arg10[%111, %c0_42] : memref<64x128xbf16, #tpu.memory_space<vmem>>, vector<8x128xbf16>
    tpu.vector_store %arg10[%111, %c0_42], %108 {strides = array<i32>} : memref<64x128xbf16, #tpu.memory_space<vmem>>, vector<8x128xbf16>,
    %c3_i32 = arith.constant 3 : i32
    %c8_i32_43 = arith.constant 8 : i32
    %113 = arith.muli %c3_i32, %c8_i32_43 : i32
    %114 = arith.index_cast %113 : i32 to index
    %c0_44 = arith.constant 0 : index
    %115 = vector.load %arg9[%114, %c0_44] : memref<64x512xf32, #tpu.memory_space<vmem>>, vector<8x512xf32>
    %116 = arith.truncf %107 : vector<8x128xf32> to vector<8x128xbf16>
    %c0_45 = arith.constant 0 : index
    %c0_46 = arith.constant 0 : index
    %c0_47 = arith.constant 0 : index
    %117 = vector.load %arg4[%c0_45, %c0_46, %c0_47] : memref<2x128x512xbf16, #tpu.memory_space<vmem>>, vector<1x128x512xbf16>
    %118 = vector.shape_cast %117 : vector<1x128x512xbf16> to vector<128x512xbf16>
    %cst_48 = arith.constant dense<0.000000e+00> : vector<8x512xf32>
    %119 = tpu.matmul %116, %118, %cst_48 {dimension_numbers = #tpu.dot_dimension_numbers<[1], [0], [0], [1], [0, 0, 1, 1], [], []>} : vector<8x128xbf16>, vector<128x512xbf16>, vector<8x512xf32> -> vector<8x512xf32>
    %120 = arith.addf %115, %119 : vector<8x512xf32>
    %121 = vector.extract_strided_slice %120 {offsets = [0, 0], sizes = [8, 256], strides = [1, 1]} : vector<8x512xf32> to vector<8x256xf32>
    %122 = arith.negf %121 : vector<8x256xf32>
    %123 = math.exp %122 : vector<8x256xf32>
    %cst_49 = arith.constant 1.000000e+00 : f32
    %124 = vector.broadcast %cst_49 : f32 to vector<8x256xf32>
    %125 = arith.addf %124, %123 : vector<8x256xf32>
    %126 = arith.divf %124, %125 : vector<8x256xf32>
    %127 = vector.extract_strided_slice %126 {offsets = [0, 0], sizes = [8, 128], strides = [1, 1]} : vector<8x256xf32> to vector<8x128xf32>
    %128 = vector.extract_strided_slice %126 {offsets = [0, 128], sizes = [8, 128], strides = [1, 1]} : vector<8x256xf32> to vector<8x128xf32>
    %129 = vector.extract_strided_slice %120 {offsets = [0, 256], sizes = [8, 128], strides = [1, 1]} : vector<8x512xf32> to vector<8x128xf32>
    %130 = math.tanh %129 : vector<8x128xf32>
    %131 = vector.extract_strided_slice %120 {offsets = [0, 384], sizes = [8, 128], strides = [1, 1]} : vector<8x512xf32> to vector<8x128xf32>
    %132 = arith.negf %131 : vector<8x128xf32>
    %133 = math.exp %132 : vector<8x128xf32>
    %cst_50 = arith.constant 1.000000e+00 : f32
    %134 = vector.broadcast %cst_50 : f32 to vector<8x128xf32>
    %135 = arith.addf %134, %133 : vector<8x128xf32>
    %136 = arith.divf %134, %135 : vector<8x128xf32>
    %137 = arith.mulf %128, %105 : vector<8x128xf32>
    %138 = arith.mulf %127, %130 : vector<8x128xf32>
    %139 = arith.addf %137, %138 : vector<8x128xf32>
    %140 = math.tanh %139 : vector<8x128xf32>
    %141 = arith.mulf %136, %140 : vector<8x128xf32>
    %142 = arith.truncf %141 : vector<8x128xf32> to vector<8x128xbf16>
    %c0_i32_51 = arith.constant 0 : i32
    %143 = arith.addi %c0_i32_51, %c3_i32 : i32
    %c8_i32_52 = arith.constant 8 : i32
    %144 = arith.muli %143, %c8_i32_52 : i32
    %145 = arith.index_cast %144 : i32 to index
    %c0_53 = arith.constant 0 : index
    %146 = vector.load %arg10[%145, %c0_53] : memref<64x128xbf16, #tpu.memory_space<vmem>>, vector<8x128xbf16>
    tpu.vector_store %arg10[%145, %c0_53], %142 {strides = array<i32>} : memref<64x128xbf16, #tpu.memory_space<vmem>>, vector<8x128xbf16>,
    %c4_i32 = arith.constant 4 : i32
    %c8_i32_54 = arith.constant 8 : i32
    %147 = arith.muli %c4_i32, %c8_i32_54 : i32
    %148 = arith.index_cast %147 : i32 to index
    %c0_55 = arith.constant 0 : index
    %149 = vector.load %arg9[%148, %c0_55] : memref<64x512xf32, #tpu.memory_space<vmem>>, vector<8x512xf32>
    %150 = arith.truncf %141 : vector<8x128xf32> to vector<8x128xbf16>
    %c0_56 = arith.constant 0 : index
    %c0_57 = arith.constant 0 : index
    %c0_58 = arith.constant 0 : index
    %151 = vector.load %arg4[%c0_56, %c0_57, %c0_58] : memref<2x128x512xbf16, #tpu.memory_space<vmem>>, vector<1x128x512xbf16>
    %152 = vector.shape_cast %151 : vector<1x128x512xbf16> to vector<128x512xbf16>
    %cst_59 = arith.constant dense<0.000000e+00> : vector<8x512xf32>
    %153 = tpu.matmul %150, %152, %cst_59 {dimension_numbers = #tpu.dot_dimension_numbers<[1], [0], [0], [1], [0, 0, 1, 1], [], []>} : vector<8x128xbf16>, vector<128x512xbf16>, vector<8x512xf32> -> vector<8x512xf32>
    %154 = arith.addf %149, %153 : vector<8x512xf32>
    %155 = vector.extract_strided_slice %154 {offsets = [0, 0], sizes = [8, 256], strides = [1, 1]} : vector<8x512xf32> to vector<8x256xf32>
    %156 = arith.negf %155 : vector<8x256xf32>
    %157 = math.exp %156 : vector<8x256xf32>
    %cst_60 = arith.constant 1.000000e+00 : f32
    %158 = vector.broadcast %cst_60 : f32 to vector<8x256xf32>
    %159 = arith.addf %158, %157 : vector<8x256xf32>
    %160 = arith.divf %158, %159 : vector<8x256xf32>
    %161 = vector.extract_strided_slice %160 {offsets = [0, 0], sizes = [8, 128], strides = [1, 1]} : vector<8x256xf32> to vector<8x128xf32>
    %162 = vector.extract_strided_slice %160 {offsets = [0, 128], sizes = [8, 128], strides = [1, 1]} : vector<8x256xf32> to vector<8x128xf32>
    %163 = vector.extract_strided_slice %154 {offsets = [0, 256], sizes = [8, 128], strides = [1, 1]} : vector<8x512xf32> to vector<8x128xf32>
    %164 = math.tanh %163 : vector<8x128xf32>
    %165 = vector.extract_strided_slice %154 {offsets = [0, 384], sizes = [8, 128], strides = [1, 1]} : vector<8x512xf32> to vector<8x128xf32>
    %166 = arith.negf %165 : vector<8x128xf32>
    %167 = math.exp %166 : vector<8x128xf32>
    %cst_61 = arith.constant 1.000000e+00 : f32
    %168 = vector.broadcast %cst_61 : f32 to vector<8x128xf32>
    %169 = arith.addf %168, %167 : vector<8x128xf32>
    %170 = arith.divf %168, %169 : vector<8x128xf32>
    %171 = arith.mulf %162, %139 : vector<8x128xf32>
    %172 = arith.mulf %161, %164 : vector<8x128xf32>
    %173 = arith.addf %171, %172 : vector<8x128xf32>
    %174 = math.tanh %173 : vector<8x128xf32>
    %175 = arith.mulf %170, %174 : vector<8x128xf32>
    %176 = arith.truncf %175 : vector<8x128xf32> to vector<8x128xbf16>
    %c0_i32_62 = arith.constant 0 : i32
    %177 = arith.addi %c0_i32_62, %c4_i32 : i32
    %c8_i32_63 = arith.constant 8 : i32
    %178 = arith.muli %177, %c8_i32_63 : i32
    %179 = arith.index_cast %178 : i32 to index
    %c0_64 = arith.constant 0 : index
    %180 = vector.load %arg10[%179, %c0_64] : memref<64x128xbf16, #tpu.memory_space<vmem>>, vector<8x128xbf16>
    tpu.vector_store %arg10[%179, %c0_64], %176 {strides = array<i32>} : memref<64x128xbf16, #tpu.memory_space<vmem>>, vector<8x128xbf16>,
    %c5_i32 = arith.constant 5 : i32
    %c8_i32_65 = arith.constant 8 : i32
    %181 = arith.muli %c5_i32, %c8_i32_65 : i32
    %182 = arith.index_cast %181 : i32 to index
    %c0_66 = arith.constant 0 : index
    %183 = vector.load %arg9[%182, %c0_66] : memref<64x512xf32, #tpu.memory_space<vmem>>, vector<8x512xf32>
    %184 = arith.truncf %175 : vector<8x128xf32> to vector<8x128xbf16>
    %c0_67 = arith.constant 0 : index
    %c0_68 = arith.constant 0 : index
    %c0_69 = arith.constant 0 : index
    %185 = vector.load %arg4[%c0_67, %c0_68, %c0_69] : memref<2x128x512xbf16, #tpu.memory_space<vmem>>, vector<1x128x512xbf16>
    %186 = vector.shape_cast %185 : vector<1x128x512xbf16> to vector<128x512xbf16>
    %cst_70 = arith.constant dense<0.000000e+00> : vector<8x512xf32>
    %187 = tpu.matmul %184, %186, %cst_70 {dimension_numbers = #tpu.dot_dimension_numbers<[1], [0], [0], [1], [0, 0, 1, 1], [], []>} : vector<8x128xbf16>, vector<128x512xbf16>, vector<8x512xf32> -> vector<8x512xf32>
    %188 = arith.addf %183, %187 : vector<8x512xf32>
    %189 = vector.extract_strided_slice %188 {offsets = [0, 0], sizes = [8, 256], strides = [1, 1]} : vector<8x512xf32> to vector<8x256xf32>
    %190 = arith.negf %189 : vector<8x256xf32>
    %191 = math.exp %190 : vector<8x256xf32>
    %cst_71 = arith.constant 1.000000e+00 : f32
    %192 = vector.broadcast %cst_71 : f32 to vector<8x256xf32>
    %193 = arith.addf %192, %191 : vector<8x256xf32>
    %194 = arith.divf %192, %193 : vector<8x256xf32>
    %195 = vector.extract_strided_slice %194 {offsets = [0, 0], sizes = [8, 128], strides = [1, 1]} : vector<8x256xf32> to vector<8x128xf32>
    %196 = vector.extract_strided_slice %194 {offsets = [0, 128], sizes = [8, 128], strides = [1, 1]} : vector<8x256xf32> to vector<8x128xf32>
    %197 = vector.extract_strided_slice %188 {offsets = [0, 256], sizes = [8, 128], strides = [1, 1]} : vector<8x512xf32> to vector<8x128xf32>
    %198 = math.tanh %197 : vector<8x128xf32>
    %199 = vector.extract_strided_slice %188 {offsets = [0, 384], sizes = [8, 128], strides = [1, 1]} : vector<8x512xf32> to vector<8x128xf32>
    %200 = arith.negf %199 : vector<8x128xf32>
    %201 = math.exp %200 : vector<8x128xf32>
    %cst_72 = arith.constant 1.000000e+00 : f32
    %202 = vector.broadcast %cst_72 : f32 to vector<8x128xf32>
    %203 = arith.addf %202, %201 : vector<8x128xf32>
    %204 = arith.divf %202, %203 : vector<8x128xf32>
    %205 = arith.mulf %196, %173 : vector<8x128xf32>
    %206 = arith.mulf %195, %198 : vector<8x128xf32>
    %207 = arith.addf %205, %206 : vector<8x128xf32>
    %208 = math.tanh %207 : vector<8x128xf32>
    %209 = arith.mulf %204, %208 : vector<8x128xf32>
    %210 = arith.truncf %209 : vector<8x128xf32> to vector<8x128xbf16>
    %c0_i32_73 = arith.constant 0 : i32
    %211 = arith.addi %c0_i32_73, %c5_i32 : i32
    %c8_i32_74 = arith.constant 8 : i32
    %212 = arith.muli %211, %c8_i32_74 : i32
    %213 = arith.index_cast %212 : i32 to index
    %c0_75 = arith.constant 0 : index
    %214 = vector.load %arg10[%213, %c0_75] : memref<64x128xbf16, #tpu.memory_space<vmem>>, vector<8x128xbf16>
    tpu.vector_store %arg10[%213, %c0_75], %210 {strides = array<i32>} : memref<64x128xbf16, #tpu.memory_space<vmem>>, vector<8x128xbf16>,
    %c6_i32 = arith.constant 6 : i32
    %c8_i32_76 = arith.constant 8 : i32
    %215 = arith.muli %c6_i32, %c8_i32_76 : i32
    %216 = arith.index_cast %215 : i32 to index
    %c0_77 = arith.constant 0 : index
    %217 = vector.load %arg9[%216, %c0_77] : memref<64x512xf32, #tpu.memory_space<vmem>>, vector<8x512xf32>
    %218 = arith.truncf %209 : vector<8x128xf32> to vector<8x128xbf16>
    %c0_78 = arith.constant 0 : index
    %c0_79 = arith.constant 0 : index
    %c0_80 = arith.constant 0 : index
    %219 = vector.load %arg4[%c0_78, %c0_79, %c0_80] : memref<2x128x512xbf16, #tpu.memory_space<vmem>>, vector<1x128x512xbf16>
    %220 = vector.shape_cast %219 : vector<1x128x512xbf16> to vector<128x512xbf16>
    %cst_81 = arith.constant dense<0.000000e+00> : vector<8x512xf32>
    %221 = tpu.matmul %218, %220, %cst_81 {dimension_numbers = #tpu.dot_dimension_numbers<[1], [0], [0], [1], [0, 0, 1, 1], [], []>} : vector<8x128xbf16>, vector<128x512xbf16>, vector<8x512xf32> -> vector<8x512xf32>
    %222 = arith.addf %217, %221 : vector<8x512xf32>
    %223 = vector.extract_strided_slice %222 {offsets = [0, 0], sizes = [8, 256], strides = [1, 1]} : vector<8x512xf32> to vector<8x256xf32>
    %224 = arith.negf %223 : vector<8x256xf32>
    %225 = math.exp %224 : vector<8x256xf32>
    %cst_82 = arith.constant 1.000000e+00 : f32
    %226 = vector.broadcast %cst_82 : f32 to vector<8x256xf32>
    %227 = arith.addf %226, %225 : vector<8x256xf32>
    %228 = arith.divf %226, %227 : vector<8x256xf32>
    %229 = vector.extract_strided_slice %228 {offsets = [0, 0], sizes = [8, 128], strides = [1, 1]} : vector<8x256xf32> to vector<8x128xf32>
    %230 = vector.extract_strided_slice %228 {offsets = [0, 128], sizes = [8, 128], strides = [1, 1]} : vector<8x256xf32> to vector<8x128xf32>
    %231 = vector.extract_strided_slice %222 {offsets = [0, 256], sizes = [8, 128], strides = [1, 1]} : vector<8x512xf32> to vector<8x128xf32>
    %232 = math.tanh %231 : vector<8x128xf32>
    %233 = vector.extract_strided_slice %222 {offsets = [0, 384], sizes = [8, 128], strides = [1, 1]} : vector<8x512xf32> to vector<8x128xf32>
    %234 = arith.negf %233 : vector<8x128xf32>
    %235 = math.exp %234 : vector<8x128xf32>
    %cst_83 = arith.constant 1.000000e+00 : f32
    %236 = vector.broadcast %cst_83 : f32 to vector<8x128xf32>
    %237 = arith.addf %236, %235 : vector<8x128xf32>
    %238 = arith.divf %236, %237 : vector<8x128xf32>
    %239 = arith.mulf %230, %207 : vector<8x128xf32>
    %240 = arith.mulf %229, %232 : vector<8x128xf32>
    %241 = arith.addf %239, %240 : vector<8x128xf32>
    %242 = math.tanh %241 : vector<8x128xf32>
    %243 = arith.mulf %238, %242 : vector<8x128xf32>
    %244 = arith.truncf %243 : vector<8x128xf32> to vector<8x128xbf16>
    %c0_i32_84 = arith.constant 0 : i32
    %245 = arith.addi %c0_i32_84, %c6_i32 : i32
    %c8_i32_85 = arith.constant 8 : i32
    %246 = arith.muli %245, %c8_i32_85 : i32
    %247 = arith.index_cast %246 : i32 to index
    %c0_86 = arith.constant 0 : index
    %248 = vector.load %arg10[%247, %c0_86] : memref<64x128xbf16, #tpu.memory_space<vmem>>, vector<8x128xbf16>
    tpu.vector_store %arg10[%247, %c0_86], %244 {strides = array<i32>} : memref<64x128xbf16, #tpu.memory_space<vmem>>, vector<8x128xbf16>,
    %c7_i32 = arith.constant 7 : i32
    %c8_i32_87 = arith.constant 8 : i32
    %249 = arith.muli %c7_i32, %c8_i32_87 : i32
    %250 = arith.index_cast %249 : i32 to index
    %c0_88 = arith.constant 0 : index
    %251 = vector.load %arg9[%250, %c0_88] : memref<64x512xf32, #tpu.memory_space<vmem>>, vector<8x512xf32>
    %252 = arith.truncf %243 : vector<8x128xf32> to vector<8x128xbf16>
    %c0_89 = arith.constant 0 : index
    %c0_90 = arith.constant 0 : index
    %c0_91 = arith.constant 0 : index
    %253 = vector.load %arg4[%c0_89, %c0_90, %c0_91] : memref<2x128x512xbf16, #tpu.memory_space<vmem>>, vector<1x128x512xbf16>
    %254 = vector.shape_cast %253 : vector<1x128x512xbf16> to vector<128x512xbf16>
    %cst_92 = arith.constant dense<0.000000e+00> : vector<8x512xf32>
    %255 = tpu.matmul %252, %254, %cst_92 {dimension_numbers = #tpu.dot_dimension_numbers<[1], [0], [0], [1], [0, 0, 1, 1], [], []>} : vector<8x128xbf16>, vector<128x512xbf16>, vector<8x512xf32> -> vector<8x512xf32>
    %256 = arith.addf %251, %255 : vector<8x512xf32>
    %257 = vector.extract_strided_slice %256 {offsets = [0, 0], sizes = [8, 256], strides = [1, 1]} : vector<8x512xf32> to vector<8x256xf32>
    %258 = arith.negf %257 : vector<8x256xf32>
    %259 = math.exp %258 : vector<8x256xf32>
    %cst_93 = arith.constant 1.000000e+00 : f32
    %260 = vector.broadcast %cst_93 : f32 to vector<8x256xf32>
    %261 = arith.addf %260, %259 : vector<8x256xf32>
    %262 = arith.divf %260, %261 : vector<8x256xf32>
    %263 = vector.extract_strided_slice %262 {offsets = [0, 0], sizes = [8, 128], strides = [1, 1]} : vector<8x256xf32> to vector<8x128xf32>
    %264 = vector.extract_strided_slice %262 {offsets = [0, 128], sizes = [8, 128], strides = [1, 1]} : vector<8x256xf32> to vector<8x128xf32>
    %265 = vector.extract_strided_slice %256 {offsets = [0, 256], sizes = [8, 128], strides = [1, 1]} : vector<8x512xf32> to vector<8x128xf32>
    %266 = math.tanh %265 : vector<8x128xf32>
    %267 = vector.extract_strided_slice %256 {offsets = [0, 384], sizes = [8, 128], strides = [1, 1]} : vector<8x512xf32> to vector<8x128xf32>
    %268 = arith.negf %267 : vector<8x128xf32>
    %269 = math.exp %268 : vector<8x128xf32>
    %cst_94 = arith.constant 1.000000e+00 : f32
    %270 = vector.broadcast %cst_94 : f32 to vector<8x128xf32>
    %271 = arith.addf %270, %269 : vector<8x128xf32>
    %272 = arith.divf %270, %271 : vector<8x128xf32>
    %273 = arith.mulf %264, %241 : vector<8x128xf32>
    %274 = arith.mulf %263, %266 : vector<8x128xf32>
    %275 = arith.addf %273, %274 : vector<8x128xf32>
    %276 = math.tanh %275 : vector<8x128xf32>
    %277 = arith.mulf %272, %276 : vector<8x128xf32>
    %278 = arith.truncf %277 : vector<8x128xf32> to vector<8x128xbf16>
    %c0_i32_95 = arith.constant 0 : i32
    %279 = arith.addi %c0_i32_95, %c7_i32 : i32
    %c8_i32_96 = arith.constant 8 : i32
    %280 = arith.muli %279, %c8_i32_96 : i32
    %281 = arith.index_cast %280 : i32 to index
    %c0_97 = arith.constant 0 : index
    %282 = vector.load %arg10[%281, %c0_97] : memref<64x128xbf16, #tpu.memory_space<vmem>>, vector<8x128xbf16>
    tpu.vector_store %arg10[%281, %c0_97], %278 {strides = array<i32>} : memref<64x128xbf16, #tpu.memory_space<vmem>>, vector<8x128xbf16>,
    %c8_i32_98 = arith.constant 8 : i32
    %cst_99 = arith.constant 0.000000e+00 : f32
    %283 = vector.broadcast %cst_99 : f32 to vector<8x128xf32>
    %cst_100 = arith.constant 0.000000e+00 : f32
    %284 = vector.broadcast %cst_100 : f32 to vector<8x128xf32>
    %c0_101 = arith.constant 0 : index
    %c0_102 = arith.constant 0 : index
    %285 = vector.load %arg10[%c0_101, %c0_102] : memref<64x128xbf16, #tpu.memory_space<vmem>>, vector<64x128xbf16>
    %c0_103 = arith.constant 0 : index
    %c0_104 = arith.constant 0 : index
    %c0_105 = arith.constant 0 : index
    %286 = vector.load %arg3[%c0_103, %c0_104, %c0_105] : memref<1x128x512xbf16, #tpu.memory_space<vmem>>, vector<1x128x512xbf16>
    %287 = vector.shape_cast %286 : vector<1x128x512xbf16> to vector<128x512xbf16>
    %cst_106 = arith.constant dense<0.000000e+00> : vector<64x512xf32>
    %288 = tpu.matmul %285, %287, %cst_106 {dimension_numbers = #tpu.dot_dimension_numbers<[1], [0], [0], [1], [0, 0, 1, 1], [], []>} : vector<64x128xbf16>, vector<128x512xbf16>, vector<64x512xf32> -> vector<64x512xf32>
    %c1 = arith.constant 1 : index
    %c0_107 = arith.constant 0 : index
    %c0_108 = arith.constant 0 : index
    %289 = vector.load %arg5[%c1, %c0_107, %c0_108] : memref<2x1x512xf32, #tpu.memory_space<vmem>>, vector<1x1x512xf32>
    %290 = vector.shape_cast %289 : vector<1x1x512xf32> to vector<1x512xf32>
    %291 = vector.broadcast %290 : vector<1x512xf32> to vector<64x512xf32>
    %292 = arith.addf %288, %291 : vector<64x512xf32>
    %c0_109 = arith.constant 0 : index
    %c0_110 = arith.constant 0 : index
    %293 = vector.load %arg9[%c0_109, %c0_110] : memref<64x512xf32, #tpu.memory_space<vmem>>, vector<64x512xf32>
    tpu.vector_store %arg9[%c0_109, %c0_110], %292 {strides = array<i32>} : memref<64x512xf32, #tpu.memory_space<vmem>>, vector<64x512xf32>,
    %c0_i32_111 = arith.constant 0 : i32
    %c8_i32_112 = arith.constant 8 : i32
    %294 = arith.muli %c0_i32_111, %c8_i32_112 : i32
    %295 = arith.index_cast %294 : i32 to index
    %c0_113 = arith.constant 0 : index
    %296 = vector.load %arg9[%295, %c0_113] : memref<64x512xf32, #tpu.memory_space<vmem>>, vector<8x512xf32>
    %297 = arith.truncf %283 : vector<8x128xf32> to vector<8x128xbf16>
    %c1_114 = arith.constant 1 : index
    %c0_115 = arith.constant 0 : index
    %c0_116 = arith.constant 0 : index
    %298 = vector.load %arg4[%c1_114, %c0_115, %c0_116] : memref<2x128x512xbf16, #tpu.memory_space<vmem>>, vector<1x128x512xbf16>
    %299 = vector.shape_cast %298 : vector<1x128x512xbf16> to vector<128x512xbf16>
    %cst_117 = arith.constant dense<0.000000e+00> : vector<8x512xf32>
    %300 = tpu.matmul %297, %299, %cst_117 {dimension_numbers = #tpu.dot_dimension_numbers<[1], [0], [0], [1], [0, 0, 1, 1], [], []>} : vector<8x128xbf16>, vector<128x512xbf16>, vector<8x512xf32> -> vector<8x512xf32>
    %301 = arith.addf %296, %300 : vector<8x512xf32>
    %302 = vector.extract_strided_slice %301 {offsets = [0, 0], sizes = [8, 256], strides = [1, 1]} : vector<8x512xf32> to vector<8x256xf32>
    %303 = arith.negf %302 : vector<8x256xf32>
    %304 = math.exp %303 : vector<8x256xf32>
    %cst_118 = arith.constant 1.000000e+00 : f32
    %305 = vector.broadcast %cst_118 : f32 to vector<8x256xf32>
    %306 = arith.addf %305, %304 : vector<8x256xf32>
    %307 = arith.divf %305, %306 : vector<8x256xf32>
    %308 = vector.extract_strided_slice %307 {offsets = [0, 0], sizes = [8, 128], strides = [1, 1]} : vector<8x256xf32> to vector<8x128xf32>
    %309 = vector.extract_strided_slice %307 {offsets = [0, 128], sizes = [8, 128], strides = [1, 1]} : vector<8x256xf32> to vector<8x128xf32>
    %310 = vector.extract_strided_slice %301 {offsets = [0, 256], sizes = [8, 128], strides = [1, 1]} : vector<8x512xf32> to vector<8x128xf32>
    %311 = math.tanh %310 : vector<8x128xf32>
    %312 = vector.extract_strided_slice %301 {offsets = [0, 384], sizes = [8, 128], strides = [1, 1]} : vector<8x512xf32> to vector<8x128xf32>
    %313 = arith.negf %312 : vector<8x128xf32>
    %314 = math.exp %313 : vector<8x128xf32>
    %cst_119 = arith.constant 1.000000e+00 : f32
    %315 = vector.broadcast %cst_119 : f32 to vector<8x128xf32>
    %316 = arith.addf %315, %314 : vector<8x128xf32>
    %317 = arith.divf %315, %316 : vector<8x128xf32>
    %318 = arith.mulf %309, %284 : vector<8x128xf32>
    %319 = arith.mulf %308, %311 : vector<8x128xf32>
    %320 = arith.addf %318, %319 : vector<8x128xf32>
    %321 = math.tanh %320 : vector<8x128xf32>
    %322 = arith.mulf %317, %321 : vector<8x128xf32>
    %c1_i32_120 = arith.constant 1 : i32
    %c8_i32_121 = arith.constant 8 : i32
    %323 = arith.muli %c1_i32_120, %c8_i32_121 : i32
    %324 = arith.index_cast %323 : i32 to index
    %c0_122 = arith.constant 0 : index
    %325 = vector.load %arg9[%324, %c0_122] : memref<64x512xf32, #tpu.memory_space<vmem>>, vector<8x512xf32>
    %326 = arith.truncf %322 : vector<8x128xf32> to vector<8x128xbf16>
    %c1_123 = arith.constant 1 : index
    %c0_124 = arith.constant 0 : index
    %c0_125 = arith.constant 0 : index
    %327 = vector.load %arg4[%c1_123, %c0_124, %c0_125] : memref<2x128x512xbf16, #tpu.memory_space<vmem>>, vector<1x128x512xbf16>
    %328 = vector.shape_cast %327 : vector<1x128x512xbf16> to vector<128x512xbf16>
    %cst_126 = arith.constant dense<0.000000e+00> : vector<8x512xf32>
    %329 = tpu.matmul %326, %328, %cst_126 {dimension_numbers = #tpu.dot_dimension_numbers<[1], [0], [0], [1], [0, 0, 1, 1], [], []>} : vector<8x128xbf16>, vector<128x512xbf16>, vector<8x512xf32> -> vector<8x512xf32>
    %330 = arith.addf %325, %329 : vector<8x512xf32>
    %331 = vector.extract_strided_slice %330 {offsets = [0, 0], sizes = [8, 256], strides = [1, 1]} : vector<8x512xf32> to vector<8x256xf32>
    %332 = arith.negf %331 : vector<8x256xf32>
    %333 = math.exp %332 : vector<8x256xf32>
    %cst_127 = arith.constant 1.000000e+00 : f32
    %334 = vector.broadcast %cst_127 : f32 to vector<8x256xf32>
    %335 = arith.addf %334, %333 : vector<8x256xf32>
    %336 = arith.divf %334, %335 : vector<8x256xf32>
    %337 = vector.extract_strided_slice %336 {offsets = [0, 0], sizes = [8, 128], strides = [1, 1]} : vector<8x256xf32> to vector<8x128xf32>
    %338 = vector.extract_strided_slice %336 {offsets = [0, 128], sizes = [8, 128], strides = [1, 1]} : vector<8x256xf32> to vector<8x128xf32>
    %339 = vector.extract_strided_slice %330 {offsets = [0, 256], sizes = [8, 128], strides = [1, 1]} : vector<8x512xf32> to vector<8x128xf32>
    %340 = math.tanh %339 : vector<8x128xf32>
    %341 = vector.extract_strided_slice %330 {offsets = [0, 384], sizes = [8, 128], strides = [1, 1]} : vector<8x512xf32> to vector<8x128xf32>
    %342 = arith.negf %341 : vector<8x128xf32>
    %343 = math.exp %342 : vector<8x128xf32>
    %cst_128 = arith.constant 1.000000e+00 : f32
    %344 = vector.broadcast %cst_128 : f32 to vector<8x128xf32>
    %345 = arith.addf %344, %343 : vector<8x128xf32>
    %346 = arith.divf %344, %345 : vector<8x128xf32>
    %347 = arith.mulf %338, %320 : vector<8x128xf32>
    %348 = arith.mulf %337, %340 : vector<8x128xf32>
    %349 = arith.addf %347, %348 : vector<8x128xf32>
    %350 = math.tanh %349 : vector<8x128xf32>
    %351 = arith.mulf %346, %350 : vector<8x128xf32>
    %c2_i32_129 = arith.constant 2 : i32
    %c8_i32_130 = arith.constant 8 : i32
    %352 = arith.muli %c2_i32_129, %c8_i32_130 : i32
    %353 = arith.index_cast %352 : i32 to index
    %c0_131 = arith.constant 0 : index
    %354 = vector.load %arg9[%353, %c0_131] : memref<64x512xf32, #tpu.memory_space<vmem>>, vector<8x512xf32>
    %355 = arith.truncf %351 : vector<8x128xf32> to vector<8x128xbf16>
    %c1_132 = arith.constant 1 : index
    %c0_133 = arith.constant 0 : index
    %c0_134 = arith.constant 0 : index
    %356 = vector.load %arg4[%c1_132, %c0_133, %c0_134] : memref<2x128x512xbf16, #tpu.memory_space<vmem>>, vector<1x128x512xbf16>
    %357 = vector.shape_cast %356 : vector<1x128x512xbf16> to vector<128x512xbf16>
    %cst_135 = arith.constant dense<0.000000e+00> : vector<8x512xf32>
    %358 = tpu.matmul %355, %357, %cst_135 {dimension_numbers = #tpu.dot_dimension_numbers<[1], [0], [0], [1], [0, 0, 1, 1], [], []>} : vector<8x128xbf16>, vector<128x512xbf16>, vector<8x512xf32> -> vector<8x512xf32>
    %359 = arith.addf %354, %358 : vector<8x512xf32>
    %360 = vector.extract_strided_slice %359 {offsets = [0, 0], sizes = [8, 256], strides = [1, 1]} : vector<8x512xf32> to vector<8x256xf32>
    %361 = arith.negf %360 : vector<8x256xf32>
    %362 = math.exp %361 : vector<8x256xf32>
    %cst_136 = arith.constant 1.000000e+00 : f32
    %363 = vector.broadcast %cst_136 : f32 to vector<8x256xf32>
    %364 = arith.addf %363, %362 : vector<8x256xf32>
    %365 = arith.divf %363, %364 : vector<8x256xf32>
    %366 = vector.extract_strided_slice %365 {offsets = [0, 0], sizes = [8, 128], strides = [1, 1]} : vector<8x256xf32> to vector<8x128xf32>
    %367 = vector.extract_strided_slice %365 {offsets = [0, 128], sizes = [8, 128], strides = [1, 1]} : vector<8x256xf32> to vector<8x128xf32>
    %368 = vector.extract_strided_slice %359 {offsets = [0, 256], sizes = [8, 128], strides = [1, 1]} : vector<8x512xf32> to vector<8x128xf32>
    %369 = math.tanh %368 : vector<8x128xf32>
    %370 = vector.extract_strided_slice %359 {offsets = [0, 384], sizes = [8, 128], strides = [1, 1]} : vector<8x512xf32> to vector<8x128xf32>
    %371 = arith.negf %370 : vector<8x128xf32>
    %372 = math.exp %371 : vector<8x128xf32>
    %cst_137 = arith.constant 1.000000e+00 : f32
    %373 = vector.broadcast %cst_137 : f32 to vector<8x128xf32>
    %374 = arith.addf %373, %372 : vector<8x128xf32>
    %375 = arith.divf %373, %374 : vector<8x128xf32>
    %376 = arith.mulf %367, %349 : vector<8x128xf32>
    %377 = arith.mulf %366, %369 : vector<8x128xf32>
    %378 = arith.addf %376, %377 : vector<8x128xf32>
    %379 = math.tanh %378 : vector<8x128xf32>
    %380 = arith.mulf %375, %379 : vector<8x128xf32>
    %c3_i32_138 = arith.constant 3 : i32
    %c8_i32_139 = arith.constant 8 : i32
    %381 = arith.muli %c3_i32_138, %c8_i32_139 : i32
    %382 = arith.index_cast %381 : i32 to index
    %c0_140 = arith.constant 0 : index
    %383 = vector.load %arg9[%382, %c0_140] : memref<64x512xf32, #tpu.memory_space<vmem>>, vector<8x512xf32>
    %384 = arith.truncf %380 : vector<8x128xf32> to vector<8x128xbf16>
    %c1_141 = arith.constant 1 : index
    %c0_142 = arith.constant 0 : index
    %c0_143 = arith.constant 0 : index
    %385 = vector.load %arg4[%c1_141, %c0_142, %c0_143] : memref<2x128x512xbf16, #tpu.memory_space<vmem>>, vector<1x128x512xbf16>
    %386 = vector.shape_cast %385 : vector<1x128x512xbf16> to vector<128x512xbf16>
    %cst_144 = arith.constant dense<0.000000e+00> : vector<8x512xf32>
    %387 = tpu.matmul %384, %386, %cst_144 {dimension_numbers = #tpu.dot_dimension_numbers<[1], [0], [0], [1], [0, 0, 1, 1], [], []>} : vector<8x128xbf16>, vector<128x512xbf16>, vector<8x512xf32> -> vector<8x512xf32>
    %388 = arith.addf %383, %387 : vector<8x512xf32>
    %389 = vector.extract_strided_slice %388 {offsets = [0, 0], sizes = [8, 256], strides = [1, 1]} : vector<8x512xf32> to vector<8x256xf32>
    %390 = arith.negf %389 : vector<8x256xf32>
    %391 = math.exp %390 : vector<8x256xf32>
    %cst_145 = arith.constant 1.000000e+00 : f32
    %392 = vector.broadcast %cst_145 : f32 to vector<8x256xf32>
    %393 = arith.addf %392, %391 : vector<8x256xf32>
    %394 = arith.divf %392, %393 : vector<8x256xf32>
    %395 = vector.extract_strided_slice %394 {offsets = [0, 0], sizes = [8, 128], strides = [1, 1]} : vector<8x256xf32> to vector<8x128xf32>
    %396 = vector.extract_strided_slice %394 {offsets = [0, 128], sizes = [8, 128], strides = [1, 1]} : vector<8x256xf32> to vector<8x128xf32>
    %397 = vector.extract_strided_slice %388 {offsets = [0, 256], sizes = [8, 128], strides = [1, 1]} : vector<8x512xf32> to vector<8x128xf32>
    %398 = math.tanh %397 : vector<8x128xf32>
    %399 = vector.extract_strided_slice %388 {offsets = [0, 384], sizes = [8, 128], strides = [1, 1]} : vector<8x512xf32> to vector<8x128xf32>
    %400 = arith.negf %399 : vector<8x128xf32>
    %401 = math.exp %400 : vector<8x128xf32>
    %cst_146 = arith.constant 1.000000e+00 : f32
    %402 = vector.broadcast %cst_146 : f32 to vector<8x128xf32>
    %403 = arith.addf %402, %401 : vector<8x128xf32>
    %404 = arith.divf %402, %403 : vector<8x128xf32>
    %405 = arith.mulf %396, %378 : vector<8x128xf32>
    %406 = arith.mulf %395, %398 : vector<8x128xf32>
    %407 = arith.addf %405, %406 : vector<8x128xf32>
    %408 = math.tanh %407 : vector<8x128xf32>
    %409 = arith.mulf %404, %408 : vector<8x128xf32>
    %c4_i32_147 = arith.constant 4 : i32
    %c8_i32_148 = arith.constant 8 : i32
    %410 = arith.muli %c4_i32_147, %c8_i32_148 : i32
    %411 = arith.index_cast %410 : i32 to index
    %c0_149 = arith.constant 0 : index
    %412 = vector.load %arg9[%411, %c0_149] : memref<64x512xf32, #tpu.memory_space<vmem>>, vector<8x512xf32>
    %413 = arith.truncf %409 : vector<8x128xf32> to vector<8x128xbf16>
    %c1_150 = arith.constant 1 : index
    %c0_151 = arith.constant 0 : index
    %c0_152 = arith.constant 0 : index
    %414 = vector.load %arg4[%c1_150, %c0_151, %c0_152] : memref<2x128x512xbf16, #tpu.memory_space<vmem>>, vector<1x128x512xbf16>
    %415 = vector.shape_cast %414 : vector<1x128x512xbf16> to vector<128x512xbf16>
    %cst_153 = arith.constant dense<0.000000e+00> : vector<8x512xf32>
    %416 = tpu.matmul %413, %415, %cst_153 {dimension_numbers = #tpu.dot_dimension_numbers<[1], [0], [0], [1], [0, 0, 1, 1], [], []>} : vector<8x128xbf16>, vector<128x512xbf16>, vector<8x512xf32> -> vector<8x512xf32>
    %417 = arith.addf %412, %416 : vector<8x512xf32>
    %418 = vector.extract_strided_slice %417 {offsets = [0, 0], sizes = [8, 256], strides = [1, 1]} : vector<8x512xf32> to vector<8x256xf32>
    %419 = arith.negf %418 : vector<8x256xf32>
    %420 = math.exp %419 : vector<8x256xf32>
    %cst_154 = arith.constant 1.000000e+00 : f32
    %421 = vector.broadcast %cst_154 : f32 to vector<8x256xf32>
    %422 = arith.addf %421, %420 : vector<8x256xf32>
    %423 = arith.divf %421, %422 : vector<8x256xf32>
    %424 = vector.extract_strided_slice %423 {offsets = [0, 0], sizes = [8, 128], strides = [1, 1]} : vector<8x256xf32> to vector<8x128xf32>
    %425 = vector.extract_strided_slice %423 {offsets = [0, 128], sizes = [8, 128], strides = [1, 1]} : vector<8x256xf32> to vector<8x128xf32>
    %426 = vector.extract_strided_slice %417 {offsets = [0, 256], sizes = [8, 128], strides = [1, 1]} : vector<8x512xf32> to vector<8x128xf32>
    %427 = math.tanh %426 : vector<8x128xf32>
    %428 = vector.extract_strided_slice %417 {offsets = [0, 384], sizes = [8, 128], strides = [1, 1]} : vector<8x512xf32> to vector<8x128xf32>
    %429 = arith.negf %428 : vector<8x128xf32>
    %430 = math.exp %429 : vector<8x128xf32>
    %cst_155 = arith.constant 1.000000e+00 : f32
    %431 = vector.broadcast %cst_155 : f32 to vector<8x128xf32>
    %432 = arith.addf %431, %430 : vector<8x128xf32>
    %433 = arith.divf %431, %432 : vector<8x128xf32>
    %434 = arith.mulf %425, %407 : vector<8x128xf32>
    %435 = arith.mulf %424, %427 : vector<8x128xf32>
    %436 = arith.addf %434, %435 : vector<8x128xf32>
    %437 = math.tanh %436 : vector<8x128xf32>
    %438 = arith.mulf %433, %437 : vector<8x128xf32>
    %c5_i32_156 = arith.constant 5 : i32
    %c8_i32_157 = arith.constant 8 : i32
    %439 = arith.muli %c5_i32_156, %c8_i32_157 : i32
    %440 = arith.index_cast %439 : i32 to index
    %c0_158 = arith.constant 0 : index
    %441 = vector.load %arg9[%440, %c0_158] : memref<64x512xf32, #tpu.memory_space<vmem>>, vector<8x512xf32>
    %442 = arith.truncf %438 : vector<8x128xf32> to vector<8x128xbf16>
    %c1_159 = arith.constant 1 : index
    %c0_160 = arith.constant 0 : index
    %c0_161 = arith.constant 0 : index
    %443 = vector.load %arg4[%c1_159, %c0_160, %c0_161] : memref<2x128x512xbf16, #tpu.memory_space<vmem>>, vector<1x128x512xbf16>
    %444 = vector.shape_cast %443 : vector<1x128x512xbf16> to vector<128x512xbf16>
    %cst_162 = arith.constant dense<0.000000e+00> : vector<8x512xf32>
    %445 = tpu.matmul %442, %444, %cst_162 {dimension_numbers = #tpu.dot_dimension_numbers<[1], [0], [0], [1], [0, 0, 1, 1], [], []>} : vector<8x128xbf16>, vector<128x512xbf16>, vector<8x512xf32> -> vector<8x512xf32>
    %446 = arith.addf %441, %445 : vector<8x512xf32>
    %447 = vector.extract_strided_slice %446 {offsets = [0, 0], sizes = [8, 256], strides = [1, 1]} : vector<8x512xf32> to vector<8x256xf32>
    %448 = arith.negf %447 : vector<8x256xf32>
    %449 = math.exp %448 : vector<8x256xf32>
    %cst_163 = arith.constant 1.000000e+00 : f32
    %450 = vector.broadcast %cst_163 : f32 to vector<8x256xf32>
    %451 = arith.addf %450, %449 : vector<8x256xf32>
    %452 = arith.divf %450, %451 : vector<8x256xf32>
    %453 = vector.extract_strided_slice %452 {offsets = [0, 0], sizes = [8, 128], strides = [1, 1]} : vector<8x256xf32> to vector<8x128xf32>
    %454 = vector.extract_strided_slice %452 {offsets = [0, 128], sizes = [8, 128], strides = [1, 1]} : vector<8x256xf32> to vector<8x128xf32>
    %455 = vector.extract_strided_slice %446 {offsets = [0, 256], sizes = [8, 128], strides = [1, 1]} : vector<8x512xf32> to vector<8x128xf32>
    %456 = math.tanh %455 : vector<8x128xf32>
    %457 = vector.extract_strided_slice %446 {offsets = [0, 384], sizes = [8, 128], strides = [1, 1]} : vector<8x512xf32> to vector<8x128xf32>
    %458 = arith.negf %457 : vector<8x128xf32>
    %459 = math.exp %458 : vector<8x128xf32>
    %cst_164 = arith.constant 1.000000e+00 : f32
    %460 = vector.broadcast %cst_164 : f32 to vector<8x128xf32>
    %461 = arith.addf %460, %459 : vector<8x128xf32>
    %462 = arith.divf %460, %461 : vector<8x128xf32>
    %463 = arith.mulf %454, %436 : vector<8x128xf32>
    %464 = arith.mulf %453, %456 : vector<8x128xf32>
    %465 = arith.addf %463, %464 : vector<8x128xf32>
    %466 = math.tanh %465 : vector<8x128xf32>
    %467 = arith.mulf %462, %466 : vector<8x128xf32>
    %c6_i32_165 = arith.constant 6 : i32
    %c8_i32_166 = arith.constant 8 : i32
    %468 = arith.muli %c6_i32_165, %c8_i32_166 : i32
    %469 = arith.index_cast %468 : i32 to index
    %c0_167 = arith.constant 0 : index
    %470 = vector.load %arg9[%469, %c0_167] : memref<64x512xf32, #tpu.memory_space<vmem>>, vector<8x512xf32>
    %471 = arith.truncf %467 : vector<8x128xf32> to vector<8x128xbf16>
    %c1_168 = arith.constant 1 : index
    %c0_169 = arith.constant 0 : index
    %c0_170 = arith.constant 0 : index
    %472 = vector.load %arg4[%c1_168, %c0_169, %c0_170] : memref<2x128x512xbf16, #tpu.memory_space<vmem>>, vector<1x128x512xbf16>
    %473 = vector.shape_cast %472 : vector<1x128x512xbf16> to vector<128x512xbf16>
    %cst_171 = arith.constant dense<0.000000e+00> : vector<8x512xf32>
    %474 = tpu.matmul %471, %473, %cst_171 {dimension_numbers = #tpu.dot_dimension_numbers<[1], [0], [0], [1], [0, 0, 1, 1], [], []>} : vector<8x128xbf16>, vector<128x512xbf16>, vector<8x512xf32> -> vector<8x512xf32>
    %475 = arith.addf %470, %474 : vector<8x512xf32>
    %476 = vector.extract_strided_slice %475 {offsets = [0, 0], sizes = [8, 256], strides = [1, 1]} : vector<8x512xf32> to vector<8x256xf32>
    %477 = arith.negf %476 : vector<8x256xf32>
    %478 = math.exp %477 : vector<8x256xf32>
    %cst_172 = arith.constant 1.000000e+00 : f32
    %479 = vector.broadcast %cst_172 : f32 to vector<8x256xf32>
    %480 = arith.addf %479, %478 : vector<8x256xf32>
    %481 = arith.divf %479, %480 : vector<8x256xf32>
    %482 = vector.extract_strided_slice %481 {offsets = [0, 0], sizes = [8, 128], strides = [1, 1]} : vector<8x256xf32> to vector<8x128xf32>
    %483 = vector.extract_strided_slice %481 {offsets = [0, 128], sizes = [8, 128], strides = [1, 1]} : vector<8x256xf32> to vector<8x128xf32>
    %484 = vector.extract_strided_slice %475 {offsets = [0, 256], sizes = [8, 128], strides = [1, 1]} : vector<8x512xf32> to vector<8x128xf32>
    %485 = math.tanh %484 : vector<8x128xf32>
    %486 = vector.extract_strided_slice %475 {offsets = [0, 384], sizes = [8, 128], strides = [1, 1]} : vector<8x512xf32> to vector<8x128xf32>
    %487 = arith.negf %486 : vector<8x128xf32>
    %488 = math.exp %487 : vector<8x128xf32>
    %cst_173 = arith.constant 1.000000e+00 : f32
    %489 = vector.broadcast %cst_173 : f32 to vector<8x128xf32>
    %490 = arith.addf %489, %488 : vector<8x128xf32>
    %491 = arith.divf %489, %490 : vector<8x128xf32>
    %492 = arith.mulf %483, %465 : vector<8x128xf32>
    %493 = arith.mulf %482, %485 : vector<8x128xf32>
    %494 = arith.addf %492, %493 : vector<8x128xf32>
    %495 = math.tanh %494 : vector<8x128xf32>
    %496 = arith.mulf %491, %495 : vector<8x128xf32>
    %c7_i32_174 = arith.constant 7 : i32
    %c8_i32_175 = arith.constant 8 : i32
    %497 = arith.muli %c7_i32_174, %c8_i32_175 : i32
    %498 = arith.index_cast %497 : i32 to index
    %c0_176 = arith.constant 0 : index
    %499 = vector.load %arg9[%498, %c0_176] : memref<64x512xf32, #tpu.memory_space<vmem>>, vector<8x512xf32>
    %500 = arith.truncf %496 : vector<8x128xf32> to vector<8x128xbf16>
    %c1_177 = arith.constant 1 : index
    %c0_178 = arith.constant 0 : index
    %c0_179 = arith.constant 0 : index
    %501 = vector.load %arg4[%c1_177, %c0_178, %c0_179] : memref<2x128x512xbf16, #tpu.memory_space<vmem>>, vector<1x128x512xbf16>
    %502 = vector.shape_cast %501 : vector<1x128x512xbf16> to vector<128x512xbf16>
    %cst_180 = arith.constant dense<0.000000e+00> : vector<8x512xf32>
    %503 = tpu.matmul %500, %502, %cst_180 {dimension_numbers = #tpu.dot_dimension_numbers<[1], [0], [0], [1], [0, 0, 1, 1], [], []>} : vector<8x128xbf16>, vector<128x512xbf16>, vector<8x512xf32> -> vector<8x512xf32>
    %504 = arith.addf %499, %503 : vector<8x512xf32>
    %505 = vector.extract_strided_slice %504 {offsets = [0, 0], sizes = [8, 256], strides = [1, 1]} : vector<8x512xf32> to vector<8x256xf32>
    %506 = arith.negf %505 : vector<8x256xf32>
    %507 = math.exp %506 : vector<8x256xf32>
    %cst_181 = arith.constant 1.000000e+00 : f32
    %508 = vector.broadcast %cst_181 : f32 to vector<8x256xf32>
    %509 = arith.addf %508, %507 : vector<8x256xf32>
    %510 = arith.divf %508, %509 : vector<8x256xf32>
    %511 = vector.extract_strided_slice %510 {offsets = [0, 0], sizes = [8, 128], strides = [1, 1]} : vector<8x256xf32> to vector<8x128xf32>
    %512 = vector.extract_strided_slice %510 {offsets = [0, 128], sizes = [8, 128], strides = [1, 1]} : vector<8x256xf32> to vector<8x128xf32>
    %513 = vector.extract_strided_slice %504 {offsets = [0, 256], sizes = [8, 128], strides = [1, 1]} : vector<8x512xf32> to vector<8x128xf32>
    %514 = math.tanh %513 : vector<8x128xf32>
    %515 = vector.extract_strided_slice %504 {offsets = [0, 384], sizes = [8, 128], strides = [1, 1]} : vector<8x512xf32> to vector<8x128xf32>
    %516 = arith.negf %515 : vector<8x128xf32>
    %517 = math.exp %516 : vector<8x128xf32>
    %cst_182 = arith.constant 1.000000e+00 : f32
    %518 = vector.broadcast %cst_182 : f32 to vector<8x128xf32>
    %519 = arith.addf %518, %517 : vector<8x128xf32>
    %520 = arith.divf %518, %519 : vector<8x128xf32>
    %521 = arith.mulf %512, %494 : vector<8x128xf32>
    %522 = arith.mulf %511, %514 : vector<8x128xf32>
    %523 = arith.addf %521, %522 : vector<8x128xf32>
    %524 = math.tanh %523 : vector<8x128xf32>
    %525 = arith.mulf %520, %524 : vector<8x128xf32>
    %c8_i32_183 = arith.constant 8 : i32
    %526 = arith.truncf %525 : vector<8x128xf32> to vector<8x128xbf16>
    %c0_184 = arith.constant 0 : index
    %c0_185 = arith.constant 0 : index
    %527 = vector.load %arg6[%c0_184, %c0_185] : memref<128x128xbf16, #tpu.memory_space<vmem>>, vector<128x128xbf16>
    %cst_186 = arith.constant dense<0.000000e+00> : vector<8x128xf32>
    %528 = tpu.matmul %526, %527, %cst_186 {dimension_numbers = #tpu.dot_dimension_numbers<[1], [0], [0], [1], [0, 0, 1, 1], [], []>} : vector<8x128xbf16>, vector<128x128xbf16>, vector<8x128xf32> -> vector<8x128xf32>
    %c0_187 = arith.constant 0 : index
    %c0_188 = arith.constant 0 : index
    %529 = vector.load %arg7[%c0_187, %c0_188] : memref<1x128xf32, #tpu.memory_space<vmem>>, vector<1x128xf32>
    %530 = vector.broadcast %529 : vector<1x128xf32> to vector<8x128xf32>
    %531 = arith.addf %528, %530 : vector<8x128xf32>
    %c0_189 = arith.constant 0 : index
    %c0_190 = arith.constant 0 : index
    %532 = vector.load %arg8[%c0_189, %c0_190] : memref<8x128xf32, #tpu.memory_space<vmem>>, vector<8x128xf32>
    tpu.vector_store %arg8[%c0_189, %c0_190], %531 {strides = array<i32>} : memref<8x128xf32, #tpu.memory_space<vmem>>, vector<8x128xf32>,
    return
  }
  func.func @transform_0(%arg0: i32) -> (i32, i32, i32) {
    %c0_i32 = arith.constant 0 : i32
    %c0_i32_0 = arith.constant 0 : i32
    %c0_i32_1 = arith.constant 0 : i32
    return %arg0, %c0_i32, %c0_i32_0 : i32, i32, i32
  }
  func.func @transform_1(%arg0: i32) -> (i32, i32) {
    %c0_i32 = arith.constant 0 : i32
    %c0_i32_0 = arith.constant 0 : i32
    %c0_i32_1 = arith.constant 0 : i32
    return %c0_i32, %c0_i32_0 : i32, i32
  }
  func.func @transform_2(%arg0: i32) -> (i32, i32, i32) {
    %c0_i32 = arith.constant 0 : i32
    %c0_i32_0 = arith.constant 0 : i32
    %c0_i32_1 = arith.constant 0 : i32
    %c0_i32_2 = arith.constant 0 : i32
    return %c0_i32, %c0_i32_0, %c0_i32_1 : i32, i32, i32
  }
  func.func @transform_3(%arg0: i32) -> (i32, i32, i32) {
    %c0_i32 = arith.constant 0 : i32
    %c0_i32_0 = arith.constant 0 : i32
    %c0_i32_1 = arith.constant 0 : i32
    %c0_i32_2 = arith.constant 0 : i32
    return %c0_i32, %c0_i32_0, %c0_i32_1 : i32, i32, i32
  }
  func.func @transform_4(%arg0: i32) -> (i32, i32, i32) {
    %c0_i32 = arith.constant 0 : i32
    %c0_i32_0 = arith.constant 0 : i32
    %c0_i32_1 = arith.constant 0 : i32
    %c0_i32_2 = arith.constant 0 : i32
    return %c0_i32, %c0_i32_0, %c0_i32_1 : i32, i32, i32
  }
  func.func @transform_5(%arg0: i32) -> (i32, i32) {
    %c0_i32 = arith.constant 0 : i32
    %c0_i32_0 = arith.constant 0 : i32
    %c0_i32_1 = arith.constant 0 : i32
    return %c0_i32, %c0_i32_0 : i32, i32
  }
  func.func @transform_6(%arg0: i32) -> (i32, i32) {
    %c0_i32 = arith.constant 0 : i32
    %c0_i32_0 = arith.constant 0 : i32
    %c0_i32_1 = arith.constant 0 : i32
    return %c0_i32, %c0_i32_0 : i32, i32
  }
  func.func @transform_7(%arg0: i32) -> (i32, i32) {
    %c0_i32 = arith.constant 0 : i32
    %c0_i32_0 = arith.constant 0 : i32
    return %arg0, %c0_i32 : i32, i32
  }
}

</mosaic_0001>

<bundles_post_ra>
// kernel: tpu_custom_call.1
= control target key start
LH: loop header
LB: loop body
LE: loop exit
PB: predicated region body
PF: predicated region fallthrough
CT: control target
= control target key end

     0   :  { %12 = vsyncpa [#allocation5], 0  ;;  %s6726_s0 = inlined_call_operand.vmem [shape: bf16[1,64,16], index: 0, kind: input, shape index: {}]   ;;  %s6727_s1 = inlined_call_operand.vmem [shape: bf16[16,512], index: 1, kind: input, shape index: {}]   ;;  %s6728_s2 = inlined_call_operand.hbm [shape: bf16[1,128,512], index: 2, kind: input, shape index: {}]   ;;  %s6729_s3 = inlined_call_operand.hbm [shape: bf16[2,128,512], index: 3, kind: input, shape index: {}]   ;;  %s6730_s4 = inlined_call_operand.vmem [shape: f32[2,1,512], index: 4, kind: input, shape index: {}]   ;;  %s6731_s5 = inlined_call_operand.hbm [shape: bf16[128,128], index: 5, kind: input, shape index: {}]   ;;  %s6732_s6 = inlined_call_operand.vmem [shape: f32[1,128], index: 6, kind: input, shape index: {}]   ;;  %s6733_s7 = inlined_call_operand.hbm [shape: f32[8,128], index: 7, kind: output, shape index: {}]  }
   0x1   :  { %13 = vsyncpa [#allocation8], 0 }
   0x2   :  { %14 = vsyncpa [#allocation6], 0  ;;  %s5490_s24 = smov [#allocation7]   ;;  %s5491_s26 = smov [#allocation4]  }
   0x3   :  { %s36_s25 = sshll.u32 %s5490_s24, 4  ;;  %s24_s27 = sshll.u32 %s5491_s26, 4  ;;  %s37_s25 = int_to_ptr.vmem [resolvable:$true] %s36_s25  ;;  %s25_s27 = int_to_ptr.vmem [resolvable:$true] %s24_s27 }
   0x4   :  { %s5412_s28 = scalar_lea.vmem %s37_s25, 8192  ;;  %p5417_p1 = scmp.lt.s32.totalorder %s37_s25, %s37_s25 }
   0x5   :  { %p5413_p0 = scmp.ne.s32.totalorder %s37_s25, %s5412_s28  ;;  %p5418_p2 = scmp.lt.s32.totalorder %s5412_s28, %s5412_s28 }
   0x7   :  { %p5419_p3 = por %p5418_p2, %p5417_p1 }
   0x9   :  { %p5420_p4 = pnand %p5419_p3, %p5413_p0 }
   0xb   :  { %5423 = shalt.err (!%p5420_p4)
}
   0xc   :  { %s5492_s29 = smov 256   ;;  %s5493_s30 = smov 16  }
   0xd   :  { %42 = dma.hbm_to_vmem [thread:$0]  %s6729_s3, 8192, %s37_s25, [#allocation8], %s5492_s29, %s5492_s29, %s5493_s30  }
   0xe   :  { %s5432_s10 = scalar_lea.vmem %s25_s27, 4096  ;;  %p5437_p6 = scmp.lt.s32.totalorder %s25_s27, %s25_s27 }
   0xf   :  { %p5433_p5 = scmp.ne.s32.totalorder %s25_s27, %s5432_s10  ;;  %p5438_p7 = scmp.lt.s32.totalorder %s5432_s10, %s5432_s10 }
  0x11   :  { %p5439_p8 = por %p5438_p7, %p5437_p6 }
  0x13   :  { %p5440_p9 = pnand %p5439_p8, %p5433_p5 }
  0x15   :  { %5443 = shalt.err (!%p5440_p9)
}
  0x16   :  { %30 = dma.hbm_to_vmem [thread:$0]  %s6728_s2, 4096, %s25_s27, [#allocation5], %s5492_s29, %s5492_s29, %s5493_s30  }
  0x17   :  { %s5494_s13 = smov [#allocation9]  }
  0x18   :  { %s50_s14 = sshll.u32 %s5494_s13, 4  ;;  %s51_s14 = int_to_ptr.vmem [resolvable:$true] %s50_s14 }
  0x19   :  { %s5452_s15 = scalar_lea.vmem %s51_s14, 1024  ;;  %p5457_p11 = scmp.lt.s32.totalorder %s51_s14, %s51_s14 }
  0x1a   :  { %p5453_p10 = scmp.ne.s32.totalorder %s51_s14, %s5452_s15  ;;  %p5458_p12 = scmp.lt.s32.totalorder %s5452_s15, %s5452_s15 }
  0x1c   :  { %p5459_p13 = por %p5458_p12, %p5457_p11 }
  0x1e   :  { %p5460_p0 = pnand %p5459_p13, %p5453_p10 }
  0x20   :  { %5463 = shalt.err (!%p5460_p0)
}
  0x21   :  { %s5495_s3 = smov 64   ;;  %s5496_s16 = smov 4  }
  0x22   :  { %56 = dma.hbm_to_vmem [thread:$0]  %s6731_s5, 1024, %s51_s14, [#allocation8], %s5495_s3, %s5495_s3, %s5496_s16  }
  0x23   :  { %5484 = dma.done.wait [#allocation5], 4096  }
  0x24   :  { %5485 = vsyncadd [#allocation5], 4294963200 }
  0x25   :  { %5486 = dma.done.wait [#allocation8], 9216  }
  0x26   :  { %5487 = vsyncadd [#allocation8], 4294958080  ;;  %v6738_v0 = vmov 0   ;;  %v4902_v1 = vld [vmem:[%s6727_s1 + $0x4] ss:$16 sps:$4 sm:$0xff]   ;;  %vm143_vm0 = vcmask 130048   ;;  %v83_v41 = vlaneseq }
  0x27   :  { %188 = vmatprep.mubr.bf16.mxu0 %v6738_v0  ;;  %261 = vmatprep.mubr.bf16.mxu1 %v6738_v0  ;;  %v4904_v2 = vld [vmem:[%s6727_s1 + $0xc] ss:$16 sps:$4 sm:$0xff]   ;;  %v4906_v3 = vld [vmem:[%s6727_s1] ss:$16 sps:$4 sm:$0xff]   ;;  %v4907_v4 = vld [vmem:[%s6727_s1 + $0x8] ss:$16 sps:$4 sm:$0xff]  }
  0x28   :  { %170 = vmatprep.subr.bf16.mxu0 %v4902_v1  ;;  %243 = vmatprep.subr.bf16.mxu1 %v4904_v2  ;;  %v4908_v5 = vld [vmem:[%s6726_s0] sm:$0xff]   ;;  %v5571_v8 = vld [vmem:[#allocation7 + $0xe8] ss:$16 sps:$4 sm:$0xff]   ;;  %v5574_v9 = vld [vmem:[#allocation7 + $0xec] ss:$16 sps:$4 sm:$0xff]   ;;  %v5726_v42 = vshrl.u32 %v83_v41, 7 }
  0x29   :  { %171 = vmatpush1.bf16.msra.mxu0 %v4906_v3  ;;  %244 = vmatpush1.bf16.msra.mxu1 %v4907_v4  ;;  %v5567_v6 = vld [vmem:[#allocation7 + $0xe0] ss:$16 sps:$4 sm:$0xff]   ;;  %v5569_v7 = vld [vmem:[#allocation7 + $0xe4] ss:$16 sps:$4 sm:$0xff]   ;;  %v5584_v12 = vld [vmem:[#allocation7 + $0xcc] ss:$16 sps:$4 sm:$0xff]  }
  0x2a   :  { %530 = vmatprep.subr.bf16.mxu0 %v5569_v7  ;;  %v5578_v10 = vld [vmem:[#allocation7 + $0xc4] ss:$16 sps:$4 sm:$0xff]   ;;  %571 = vmatprep.subr.bf16.mxu1 %v5574_v9  ;;  %v5582_v11 = vld [vmem:[#allocation7 + $0xc0] ss:$16 sps:$4 sm:$0xff]   ;;  %v5588_v13 = vld [vmem:[#allocation7 + $0xc8] ss:$16 sps:$4 sm:$0xff]  }
  0x2b   :  { %v4921_v14 = vld [vmem:[%s6726_s0 + $0x8] sm:$0xff]   ;;  %v5596_v15 = vld [vmem:[#allocation7 + $0xa4] ss:$16 sps:$4 sm:$0xff]   ;;  %v5599_v16 = vld [vmem:[#allocation7 + $0xa0] ss:$16 sps:$4 sm:$0xff]   ;;  %6742 = vst [vmem:[#allocation14_spill] sm:$0xff] %v5726_v42 }
  0x2c   :  { %4472 = vmatmul.mubr.msk.bf16.vlgmr.msra.gmra.mxu0 %vm143_vm0, %v4908_v5  ;;  %4476 = vmatmul.mubr.msk.bf16.vlgmr.msra.gmra.mxu1 %vm143_vm0, %v4908_v5  ;;  %v5601_v17 = vld [vmem:[#allocation7 + $0xac] ss:$16 sps:$4 sm:$0xff]   ;;  %v5605_v18 = vld [vmem:[#allocation7 + $0xa8] ss:$16 sps:$4 sm:$0xff]   ;;  %v5607_v19 = vld [vmem:[#allocation7 + $0x84] ss:$16 sps:$4 sm:$0xff]  }
  0x2d   :  { %531 = vmatpush1.bf16.msra.mxu0 %v5567_v6  ;;  %572 = vmatpush1.bf16.msra.mxu1 %v5571_v8  ;;  %v5612_v20 = vld [vmem:[#allocation7 + $0x8c] ss:$16 sps:$4 sm:$0xff]   ;;  %v5615_v21 = vld [vmem:[#allocation7 + $0x80] ss:$16 sps:$4 sm:$0xff]   ;;  %v5620_v22 = vld [vmem:[#allocation7 + $0x88] ss:$16 sps:$4 sm:$0xff]  }
  0x2e   :  { %532 = vmatprep.subr.bf16.mxu0 %v5578_v10  ;;  %573 = vmatprep.subr.bf16.mxu1 %v5584_v12  ;;  %v5622_v23 = vld [vmem:[#allocation7 + $0x64] ss:$16 sps:$4 sm:$0xff]   ;;  %v5626_v24 = vld [vmem:[#allocation7 + $0x6c] ss:$16 sps:$4 sm:$0xff]   ;;  %v5632_v26 = vld [vmem:[#allocation7 + $0x60] ss:$16 sps:$4 sm:$0xff]  }
  0x2f   :  { %198 = vmatprep.mubr.bf16.mxu0 %v6738_v0  ;;  %271 = vmatprep.mubr.bf16.mxu1 %v6738_v0  ;;  %v4934_v25 = vld [vmem:[%s6726_s0 + $0x10] sm:$0xff]   ;;  %v5636_v27 = vld [vmem:[#allocation7 + $0x68] ss:$16 sps:$4 sm:$0xff]   ;;  %v5641_v29 = vld [vmem:[#allocation7 + $0x4c] ss:$16 sps:$4 sm:$0xff]   ;;  %v6734_v43 = vsub.s32 2, %v5726_v42 }
  0x30   :  { %v5638_v28 = vld [vmem:[#allocation7 + $0x44] ss:$16 sps:$4 sm:$0xff]   ;;  %v5645_v30 = vld [vmem:[#allocation7 + $0x40] ss:$16 sps:$4 sm:$0xff]   ;;  %v5648_v31 = vld [vmem:[#allocation7 + $0x48] ss:$16 sps:$4 sm:$0xff]  }
  0x31   :  { %533 = vmatpush1.bf16.msra.mxu0 %v5582_v11  ;;  %574 = vmatpush1.bf16.msra.mxu1 %v5588_v13  ;;  %v4947_v32 = vld [vmem:[%s6726_s0 + $0x18] sm:$0xff]   ;;  %v5656_v33 = vld [vmem:[#allocation7 + $0x24] ss:$16 sps:$4 sm:$0xff]   ;;  %v5660_v34 = vld [vmem:[#allocation7 + $0x20] ss:$16 sps:$4 sm:$0xff]   ;;  %v6737_v44 = vsub.s32 0, %v5726_v42 }
  0x32   :  { %534 = vmatprep.subr.bf16.mxu0 %v5596_v15  ;;  %575 = vmatprep.subr.bf16.mxu1 %v5601_v17  ;;  %v5662_v35 = vld [vmem:[#allocation7 + $0x2c] ss:$16 sps:$4 sm:$0xff]   ;;  %v5664_v36 = vld [vmem:[#allocation7 + $0x28] ss:$16 sps:$4 sm:$0xff]   ;;  %v5666_v37 = vld [vmem:[#allocation7 + $0x4] ss:$16 sps:$4 sm:$0xff]  }
  0x33   :  { %v5669_v38 = vld [vmem:[#allocation7 + $0xc] ss:$16 sps:$4 sm:$0xff]   ;;  %v5674_v39 = vld [vmem:[#allocation7] ss:$16 sps:$4 sm:$0xff]   ;;  %v5678_v40 = vld [vmem:[#allocation7 + $0x8] ss:$16 sps:$4 sm:$0xff]  }
  0x34   :  { %4473 = vmatmul.mubr.msk.bf16.gmra.mxu0 %vm143_vm0, %v4921_v14  ;;  %4477 = vmatmul.mubr.msk.bf16.gmra.mxu1 %vm143_vm0, %v4921_v14  ;;  %v6735_v45 = vsub.s32 3, %v5726_v42  ;;  %v81_v46 = vld [vmem:[%s6730_s4] sm:$0xf]  ;;  %v6736_v50 = vsub.s32 1, %v5726_v42  ;;  %vm5499_vm1 = vmmov 0   ;;  %s5500_s13 = smov [#allocation10]  }
  0x35   :  { %535 = vmatpush1.bf16.msra.mxu0 %v5599_v16  ;;  %208 = vmatprep.mubr.bf16.mxu0 %v6738_v0  ;;  %v5740_v49 = vrot.slane %v81_v46, %v6734_v43  ;;  %v86_v53 = vrot.slane %v81_v46, %v6737_v44  ;;  %s4454_s14 = sshll.u32 %s5500_s13, 4  ;;  %s4455_s14 = int_to_ptr.vmem [resolvable:$true] %s4454_s14 }
  0x36   :  { %576 = vmatpush1.bf16.msra.mxu1 %v5605_v18  ;;  %536 = vmatprep.subr.bf16.mxu0 %v5607_v19  ;;  %v5751_v54 = vrot.slane %v81_v46, %v6735_v45  ;;  %v90_v57 = vrot.slane %v81_v46, %v6736_v50  ;;  %s5464_s15 = scalar_lea.vmem %s4455_s14, 128  ;;  %p5469_p2 = scmp.lt.s32.totalorder %s4455_s14, %s4455_s14 }
  0x37   :  { %577 = vmatprep.subr.bf16.mxu1 %v5612_v20  ;;  %281 = vmatprep.mubr.bf16.mxu1 %v6738_v0  ;;  %p5465_p1 = scmp.ne.s32.totalorder %s4455_s14, %s5464_s15  ;;  %p5470_p3 = scmp.lt.s32.totalorder %s5464_s15, %s5464_s15 }
  0x39   :  { %537 = vmatpush1.bf16.msra.mxu0 %v5615_v21  ;;  %p5471_p4 = por %p5470_p3, %p5469_p2 }
  0x3a   :  { %578 = vmatpush1.bf16.msra.mxu1 %v5620_v22  ;;  %538 = vmatprep.subr.bf16.mxu0 %v5622_v23 }
  0x3b   :  { %579 = vmatprep.subr.bf16.mxu1 %v5626_v24  ;;  %p5472_p5 = pnand %p5471_p4, %p5465_p1 }
  0x3c   :  { %4474 = vmatmul.mubr.msk.bf16.gmra.mxu0 %vm143_vm0, %v4934_v25  ;;  %4478 = vmatmul.mubr.msk.bf16.gmra.mxu1 %vm143_vm0, %v4934_v25 }
  0x3d   :  { %539 = vmatpush1.bf16.msra.mxu0 %v5632_v26  ;;  %218 = vmatprep.mubr.bf16.mxu0 %v6738_v0 }
  0x3e   :  { %580 = vmatpush1.bf16.msra.mxu1 %v5636_v27  ;;  %540 = vmatprep.subr.bf16.mxu0 %v5638_v28 }
  0x3f   :  { %581 = vmatprep.subr.bf16.mxu1 %v5641_v29  ;;  %291 = vmatprep.mubr.bf16.mxu1 %v6738_v0 }
  0x41   :  { %541 = vmatpush1.bf16.msra.mxu0 %v5645_v30 }
  0x42   :  { %582 = vmatpush1.bf16.msra.mxu1 %v5648_v31  ;;  %542 = vmatprep.subr.bf16.mxu0 %v5656_v33 }
  0x43   :  { %583 = vmatprep.subr.bf16.mxu1 %v5662_v35 }
  0x44   :  { %4475 = vmatmul.mubr.msk.bf16.gmra.mxu0 %vm143_vm0, %v4947_v32  ;;  %4479 = vmatmul.mubr.msk.bf16.gmra.mxu1 %vm143_vm0, %v4947_v32 }
  0x45   :  { %543 = vmatpush1.bf16.msra.mxu0 %v5660_v34  ;;  %562 = vmatprep.mubr.bf16.mxu0 %v6738_v0 }
  0x46   :  { %584 = vmatpush1.bf16.msra.mxu1 %v5664_v36  ;;  %544 = vmatprep.subr.bf16.mxu0 %v5666_v37 }
  0x47   :  { %585 = vmatprep.subr.bf16.mxu1 %v5669_v38  ;;  %603 = vmatprep.mubr.bf16.mxu1 %v6738_v0 }
  0x49   :  { %545 = vmatpush1.bf16.msra.mxu0 %v5674_v39 }
  0x4a   :  { %586 = vmatpush1.bf16.msra.mxu1 %v5678_v40  ;;  %838 = vmatprep.subr.bf16.mxu0 %v5569_v7 }
  0x4b   :  { %879 = vmatprep.subr.bf16.mxu1 %v5574_v9 }
  0x4c   :  { %563 = vmatmul.mubr.bf16.vlgmr.msra.gmra.mxu0 %v6738_v0 }
  0x4d   :  { %604 = vmatmul.mubr.bf16.vlgmr.msra.gmra.mxu1 %v6738_v0  ;;  %839 = vmatpush1.bf16.msra.mxu0 %v5567_v6 }
  0x4e   :  { %880 = vmatpush1.bf16.msra.mxu1 %v5571_v8  ;;  %840 = vmatprep.subr.bf16.mxu0 %v5578_v10 }
  0x4f   :  { %881 = vmatprep.subr.bf16.mxu1 %v5584_v12  ;;  %870 = vmatprep.mubr.bf16.mxu0 %v6738_v0 }
  0x50   :  { %911 = vmatprep.mubr.bf16.mxu1 %v6738_v0 }
  0x51   :  { %841 = vmatpush1.bf16.msra.mxu0 %v5582_v11 }
  0x52   :  { %882 = vmatpush1.bf16.msra.mxu1 %v5588_v13  ;;  %842 = vmatprep.subr.bf16.mxu0 %v5596_v15 }
  0x53   :  { %883 = vmatprep.subr.bf16.mxu1 %v5601_v17 }
  0x55   :  { %843 = vmatpush1.bf16.msra.mxu0 %v5599_v16 }
  0x56   :  { %884 = vmatpush1.bf16.msra.mxu1 %v5605_v18  ;;  %844 = vmatprep.subr.bf16.mxu0 %v5607_v19 }
  0x57   :  { %885 = vmatprep.subr.bf16.mxu1 %v5612_v20 }
  0x59   :  { %845 = vmatpush1.bf16.msra.mxu0 %v5615_v21 }
  0x5a   :  { %886 = vmatpush1.bf16.msra.mxu1 %v5620_v22  ;;  %846 = vmatprep.subr.bf16.mxu0 %v5622_v23 }
  0x5b   :  { %887 = vmatprep.subr.bf16.mxu1 %v5626_v24 }
  0x5d   :  { %847 = vmatpush1.bf16.msra.mxu0 %v5632_v26 }
  0x5e   :  { %888 = vmatpush1.bf16.msra.mxu1 %v5636_v27  ;;  %848 = vmatprep.subr.bf16.mxu0 %v5638_v28 }
  0x5f   :  { %889 = vmatprep.subr.bf16.mxu1 %v5641_v29 }
  0x61   :  { %849 = vmatpush1.bf16.msra.mxu0 %v5645_v30 }
  0x62   :  { %890 = vmatpush1.bf16.msra.mxu1 %v5648_v31  ;;  %850 = vmatprep.subr.bf16.mxu0 %v5656_v33 }
  0x63   :  { %891 = vmatprep.subr.bf16.mxu1 %v5662_v35 }
  0x65   :  { %851 = vmatpush1.bf16.msra.mxu0 %v5660_v34 }
  0x66   :  { %892 = vmatpush1.bf16.msra.mxu1 %v5664_v36  ;;  %852 = vmatprep.subr.bf16.mxu0 %v5666_v37 }
  0x67   :  { %893 = vmatprep.subr.bf16.mxu1 %v5669_v38 }
  0x69   :  { %853 = vmatpush1.bf16.msra.mxu0 %v5674_v39 }
  0x6a   :  { %894 = vmatpush1.bf16.msra.mxu1 %v5678_v40  ;;  %1146 = vmatprep.subr.bf16.mxu0 %v5569_v7 }
  0x6b   :  { %1187 = vmatprep.subr.bf16.mxu1 %v5574_v9 }
  0xec   :  { %v5734_v47 = vpop.f32.mrf.mxu0  ;;  %v5736_v48 = vpop.f32.mrf.mxu1 }
  0xee   :  { %v5743_v51 = vpop.f32.mrf.mxu0  ;;  %v5745_v52 = vpop.f32.mrf.mxu1 }
  0xf0   :  { %v194_v55 = vpop.f32.mrf.mxu0  ;;  %v267_v56 = vpop.f32.mrf.mxu1 }
  0xf1   :  { %v5755_v58 = vadd.f32 %v194_v55, %v86_v53  ;;  %v5758_v59 = vadd.f32 %v267_v56, %v5740_v49 }
  0xf2   :  { %v196_v60 = vpop.f32.mrf.mxu0  ;;  %v269_v61 = vpop.f32.mrf.mxu1 }
  0xf3   :  { %v5760_v62 = vadd.f32 %v196_v60, %v90_v57  ;;  %v5763_v63 = vadd.f32 %v269_v61, %v5751_v54 }
  0xf4   :  { %v200_v1 = vpop.f32.mrf.mxu0  ;;  %v273_v2 = vpop.f32.mrf.mxu1 }
  0xf5   :  { %v5765_v3 = vadd.f32 %v200_v1, %v86_v53  ;;  %v5768_v4 = vadd.f32 %v273_v2, %v5740_v49 }
  0xf6   :  { %v202_v5 = vpop.f32.mrf.mxu0  ;;  %v275_v14 = vpop.f32.mrf.mxu1 }
  0xf7   :  { %6743 = vst [vmem:[#allocation15_spill] sm:$0xff] %v5768_v4  ;;  %v5770_v25 = vadd.f32 %v202_v5, %v90_v57  ;;  %v5773_v32 = vadd.f32 %v275_v14, %v5751_v54 }
  0xf8   :  { %v204_v41 = vpop.f32.mrf.mxu0  ;;  %v277_v46 = vpop.f32.mrf.mxu1 }
  0xf9   :  { %v5775_v55 = vadd.f32 %v204_v41, %v86_v53  ;;  %v5778_v56 = vadd.f32 %v277_v46, %v5740_v49 }
  0xfa   :  { %v206_v60 = vpop.f32.mrf.mxu0  ;;  %v279_v61 = vpop.f32.mrf.mxu1 }
  0xfb   :  { %6744 = vst [vmem:[#allocation16_spill] sm:$0xff] %v5775_v55  ;;  %6745 = vst [vmem:[#allocation17_spill] sm:$0xff] %v5778_v56  ;;  %v5780_v1 = vadd.f32 %v206_v60, %v90_v57  ;;  %v5783_v2 = vadd.f32 %v279_v61, %v5751_v54 }
  0xfc   :  { %v210_v43 = vpop.f32.mrf.mxu0  ;;  %v283_v5 = vpop.f32.mrf.mxu1 }
  0xfd   :  { %6746 = vst [vmem:[#allocation18_spill] sm:$0xff] %v5780_v1  ;;  %6747 = vst [vmem:[#allocation19_spill] sm:$0xff] %v5783_v2  ;;  %v5785_v45 = vadd.f32 %v210_v43, %v86_v53  ;;  %v5788_v14 = vadd.f32 %v283_v5, %v5740_v49 }
  0xfe   :  { %v212_v50 = vpop.f32.mrf.mxu0  ;;  %v285_v41 = vpop.f32.mrf.mxu1 }
  0xff   :  { %6748 = vst [vmem:[#allocation20_spill] sm:$0xff] %v5785_v45  ;;  %6749 = vst [vmem:[#allocation21_spill] sm:$0xff] %v5788_v14  ;;  %v5790_v44 = vadd.f32 %v212_v50, %v90_v57  ;;  %v5793_v46 = vadd.f32 %v285_v41, %v5751_v54 }
 0x100   :  { %v214_v0 = vpop.f32.mrf.mxu0  ;;  %v287_v60 = vpop.f32.mrf.mxu1 }
 0x101   :  { %6750 = vst [vmem:[#allocation22_spill] sm:$0xff] %v5790_v44  ;;  %6751 = vst [vmem:[#allocation23_spill] sm:$0xff] %v5793_v46  ;;  %v5795_v42 = vadd.f32 %v214_v0, %v86_v53  ;;  %v5798_v61 = vadd.f32 %v287_v60, %v5740_v49 }
 0x102   :  { %v216_v56 = vpop.f32.mrf.mxu0  ;;  %v289_v43 = vpop.f32.mrf.mxu1 }
 0x103   :  { %6752 = vst [vmem:[#allocation24_spill] sm:$0xff] %v5795_v42  ;;  %6753 = vst [vmem:[#allocation25_spill] sm:$0xff] %v5798_v61  ;;  %v5800_v45 = vadd.f32 %v216_v56, %v90_v57  ;;  %v5803_v5 = vadd.f32 %v289_v43, %v5751_v54 }
 0x104   :  { %v220_v14 = vpop.f32.mrf.mxu0  ;;  %v293_v50 = vpop.f32.mrf.mxu1 }
 0x105   :  { %6754 = vst [vmem:[#allocation26_spill] sm:$0xff] %v5800_v45  ;;  %6755 = vst [vmem:[#allocation27_spill] sm:$0xff] %v5803_v5  ;;  %v5805_v44 = vadd.f32 %v220_v14, %v86_v53  ;;  %v5808_v41 = vadd.f32 %v293_v50, %v5740_v49 }
 0x106   :  { %v222_v46 = vpop.f32.mrf.mxu0  ;;  %v295_v0 = vpop.f32.mrf.mxu1 }
 0x107   :  { %6756 = vst [vmem:[#allocation28_spill] sm:$0xff] %v5805_v44  ;;  %6757 = vst [vmem:[#allocation29_spill] sm:$0xff] %v5808_v41  ;;  %v5810_v42 = vadd.f32 %v222_v46, %v90_v57  ;;  %v5813_v60 = vadd.f32 %v295_v0, %v5751_v54  ;;  %v191_v44 = vadd.f32 %v5734_v47, %v86_v53 }
 0x108   :  { %v224_v61 = vpop.f32.mrf.mxu0  ;;  %v297_v56 = vpop.f32.mrf.mxu1  ;;  %v193_v0 = vadd.f32 %v5743_v51, %v90_v57  ;;  %v264_v51 = vadd.f32 %v5736_v48, %v5740_v49 }
 0x109   :  { %6758 = vst [vmem:[#allocation30_spill] sm:$0xff] %v5810_v42  ;;  %6759 = vst [vmem:[#allocation31_spill] sm:$0xff] %v5813_v60  ;;  %v5815_v45 = vadd.f32 %v224_v61, %v86_v53  ;;  %v5818_v43 = vadd.f32 %v297_v56, %v5740_v49  ;;  %v266_v53 = vadd.f32 %v5745_v52, %v5751_v54 }
 0x10a   :  { %v226_v5 = vpop.f32.mrf.mxu0  ;;  %v299_v14 = vpop.f32.mrf.mxu1 }
 0x10b   :  { %6760 = vst [vmem:[#allocation32_spill] sm:$0xff] %v5815_v45  ;;  %6761 = vst [vmem:[#allocation33_spill] sm:$0xff] %v5818_v43  ;;  %v5821_v50 = vadd.f32 %v226_v5, %v90_v57  ;;  %v5824_v41 = vadd.f32 %v299_v14, %v5751_v54 }
 0x10c   :  { %v564_v46 = vpop.f32.mrf.mxu0 }
 0x10d   :  { %v612_v60 = vadd.f32 %v564_v46, %v191_v44  ;;  %v605_v42 = vpop.f32.mrf.mxu1 }
 0x10e   :  { %v566_v2 = vpop.f32.mrf.mxu0  ;;  %v614_v14 = vadd.f32 %v605_v42, %v264_v51 }
 0x10f   :  { %v4512_v61 = vmul.f32 -1.442695, %v612_v60  ;;  %v613_v45 = vadd.f32 %v566_v2, %v193_v0  ;;  %v607_v1 = vpop.f32.mrf.mxu1 }
 0x110   :  { %v568_v56 = vpop.f32.mrf.mxu0  ;;  %v615_v5 = vadd.f32 %v607_v1, %v266_v53 }
 0x111   :  { %5116 = vpow2.f32 %v4512_v61  ;;  %v4513_v43 = vmul.f32 -1.442695, %v613_v45  ;;  %v609_v55 = vpop.f32.mrf.mxu1  ;;  %v6762_v56 = vmov 0  }
 0x112   :  { %v569_v4 = vpop.f32.mrf.mxu0  ;;  %v4514_v44 = vmul.f32 -1.442695, %v615_v5 }
 0x113   :  { %5118 = vpow2.f32 %v4513_v43  ;;  %v610_v47 = vpop.f32.mrf.mxu1 }
 0x114   :  { %5120 = vpow2.f32 %v4514_v44 }
 0x11e   :  { %v5117_v57 = vpop.eup %5116 }
 0x11f   :  { %v622_v60 = vadd.f32 1.0, %v5117_v57 }
 0x120   :  { %v5119_v2 = vpop.eup %5118 }
 0x121   :  { %5122 = vrcp.f32 %v622_v60  ;;  %v623_v46 = vadd.f32 1.0, %v5119_v2  ;;  %v5121_v45 = vpop.eup %5120 }
 0x122   :  { %5124 = vtanh.f32 %v614_v14  ;;  %v632_v0 = vadd.f32 1.0, %v5121_v45 }
 0x123   :  { %5126 = vrcp.f32 %v623_v46 }
 0x124   :  { %5128 = vrcp.f32 %v632_v0 }
 0x12e   :  { %v5123_v4 = vpop.eup %5122 }
 0x12f   :  { %v5125_v55 = vpop.eup %5124 }
 0x130   :  { %v5127_v43 = vpop.eup %5126  ;;  %v636_v54 = vmul.f32 %v5125_v55, %v5123_v4 }
 0x131   :  { %v635_v52 = vmul.f32 0.0, %v5127_v43  ;;  %v5129_v42 = vpop.eup %5128 }
 0x133   :  { %v5831_v1 = vadd.f32 %v636_v54, %v635_v52 }
 0x135   :  { %5130 = vtanh.f32 %v5831_v1 }
 0x142   :  { %v5131_v48 = vpop.eup %5130 }
 0x143   :  { %v639_v49 = vmul.f32 %v5131_v48, %v5129_v42 }
 0x145   :  { %v640_v61 = vpack.c.bf16 %v639_v49, %v639_v49 }
 0x147   :  { %641 = vst [vmem:[#allocation3] sm:$0xf] %v640_v61  ;;  %871 = vmatmul.mubr.bf16.vlgmr.msra.gmra.mxu0 %v640_v61  ;;  %912 = vmatmul.mubr.bf16.vlgmr.msra.gmra.mxu1 %v640_v61 }
 0x148   :  { %1147 = vmatpush1.bf16.msra.mxu0 %v5567_v6  ;;  %1188 = vmatpush1.bf16.msra.mxu1 %v5571_v8 }
 0x149   :  { %1148 = vmatprep.subr.bf16.mxu0 %v5578_v10  ;;  %1189 = vmatprep.subr.bf16.mxu1 %v5584_v12 }
 0x14a   :  { %1178 = vmatprep.mubr.bf16.mxu0 %v6762_v56  ;;  %1219 = vmatprep.mubr.bf16.mxu1 %v6762_v56 }
 0x14c   :  { %1149 = vmatpush1.bf16.msra.mxu0 %v5582_v11  ;;  %1190 = vmatpush1.bf16.msra.mxu1 %v5588_v13 }
 0x14d   :  { %1150 = vmatprep.subr.bf16.mxu0 %v5596_v15  ;;  %1191 = vmatprep.subr.bf16.mxu1 %v5601_v17 }
 0x150   :  { %1151 = vmatpush1.bf16.msra.mxu0 %v5599_v16  ;;  %1192 = vmatpush1.bf16.msra.mxu1 %v5605_v18 }
 0x151   :  { %1152 = vmatprep.subr.bf16.mxu0 %v5607_v19  ;;  %1193 = vmatprep.subr.bf16.mxu1 %v5612_v20 }
 0x154   :  { %1153 = vmatpush1.bf16.msra.mxu0 %v5615_v21  ;;  %1194 = vmatpush1.bf16.msra.mxu1 %v5620_v22 }
 0x155   :  { %1154 = vmatprep.subr.bf16.mxu0 %v5622_v23  ;;  %1195 = vmatprep.subr.bf16.mxu1 %v5626_v24 }
 0x158   :  { %1155 = vmatpush1.bf16.msra.mxu0 %v5632_v26  ;;  %1196 = vmatpush1.bf16.msra.mxu1 %v5636_v27 }
 0x159   :  { %1156 = vmatprep.subr.bf16.mxu0 %v5638_v28  ;;  %1197 = vmatprep.subr.bf16.mxu1 %v5641_v29 }
 0x15c   :  { %1157 = vmatpush1.bf16.msra.mxu0 %v5645_v30  ;;  %1198 = vmatpush1.bf16.msra.mxu1 %v5648_v31 }
 0x15d   :  { %1158 = vmatprep.subr.bf16.mxu0 %v5656_v33  ;;  %1199 = vmatprep.subr.bf16.mxu1 %v5662_v35 }
 0x160   :  { %1159 = vmatpush1.bf16.msra.mxu0 %v5660_v34  ;;  %1200 = vmatpush1.bf16.msra.mxu1 %v5664_v36 }
 0x161   :  { %1160 = vmatprep.subr.bf16.mxu0 %v5666_v37  ;;  %1201 = vmatprep.subr.bf16.mxu1 %v5669_v38 }
 0x164   :  { %1161 = vmatpush1.bf16.msra.mxu0 %v5674_v39  ;;  %1202 = vmatpush1.bf16.msra.mxu1 %v5678_v40 }
 0x165   :  { %1454 = vmatprep.subr.bf16.mxu0 %v5569_v7  ;;  %1495 = vmatprep.subr.bf16.mxu1 %v5574_v9 }
 0x207   :  { %v872_v47 = vpop.f32.mrf.mxu0  ;;  %v913_v53 = vpop.f32.mrf.mxu1 }
 0x208   :  { %v920_v5 = vadd.f32 %v872_v47, %v5755_v58  ;;  %v922_v9 = vadd.f32 %v913_v53, %v5758_v59 }
 0x209   :  { %v874_v51 = vpop.f32.mrf.mxu0  ;;  %v915_v44 = vpop.f32.mrf.mxu1 }
 0x20a   :  { %v4547_v57 = vmul.f32 -1.442695, %v920_v5  ;;  %v921_v14 = vadd.f32 %v874_v51, %v5760_v62  ;;  %v923_v7 = vadd.f32 %v915_v44, %v5763_v63  ;;  %v5922_v44 = vld [vmem:[#allocation7 + $0xe0] ss:$16 sps:$4 sm:$0xff]  }
 0x20b   :  { %v876_v60 = vpop.f32.mrf.mxu0  ;;  %v917_v2 = vpop.f32.mrf.mxu1 }
 0x20c   :  { %5132 = vpow2.f32 %v4547_v57  ;;  %v4548_v46 = vmul.f32 -1.442695, %v921_v14  ;;  %v4549_v55 = vmul.f32 -1.442695, %v923_v7  ;;  %v5924_v57 = vld [vmem:[#allocation7 + $0xe8] ss:$16 sps:$4 sm:$0xff]  }
 0x20d   :  { %v877_v45 = vpop.f32.mrf.mxu0  ;;  %v918_v4 = vpop.f32.mrf.mxu1  ;;  %v5930_v14 = vld [vmem:[#allocation7 + $0xc4] ss:$16 sps:$4 sm:$0xff]   ;;  %v5932_v60 = vld [vmem:[#allocation7 + $0xcc] ss:$16 sps:$4 sm:$0xff]   ;;  %v5934_v2 = vld [vmem:[#allocation7 + $0xc0] ss:$16 sps:$4 sm:$0xff]  }
 0x20e   :  { %5134 = vpow2.f32 %v4548_v46  ;;  %v5936_v46 = vld [vmem:[#allocation7 + $0xc8] ss:$16 sps:$4 sm:$0xff]   ;;  %v5942_v45 = vld [vmem:[#allocation7 + $0xa4] ss:$16 sps:$4 sm:$0xff]   ;;  %v5944_v4 = vld [vmem:[#allocation7 + $0xac] ss:$16 sps:$4 sm:$0xff]  }
 0x20f   :  { %5136 = vtanh.f32 %v922_v9  ;;  %v5946_v7 = vld [vmem:[#allocation7 + $0xa0] ss:$16 sps:$4 sm:$0xff]   ;;  %v5948_v9 = vld [vmem:[#allocation7 + $0xa8] ss:$16 sps:$4 sm:$0xff]  }
 0x210   :  { %5138 = vpow2.f32 %v4549_v55  ;;  %v5954_v55 = vld [vmem:[#allocation7 + $0x84] ss:$16 sps:$4 sm:$0xff]  }
 0x219   :  { %v5133_v43 = vpop.eup %5132 }
 0x21a   :  { %v930_v0 = vadd.f32 1.0, %v5133_v43  ;;  %v5956_v43 = vld [vmem:[#allocation7 + $0x8c] ss:$16 sps:$4 sm:$0xff]  }
 0x21b   :  { %v5135_v58 = vpop.eup %5134 }
 0x21c   :  { %5140 = vrcp.f32 %v930_v0  ;;  %v931_v52 = vadd.f32 1.0, %v5135_v58  ;;  %v5137_v62 = vpop.eup %5136  ;;  %v5958_v0 = vld [vmem:[#allocation7 + $0x80] ss:$16 sps:$4 sm:$0xff]   ;;  %v5960_v58 = vld [vmem:[#allocation7 + $0x88] ss:$16 sps:$4 sm:$0xff]  }
 0x21d   :  { %v5139_v54 = vpop.eup %5138 }
 0x21e   :  { %5142 = vrcp.f32 %v931_v52  ;;  %v940_v61 = vadd.f32 1.0, %v5139_v54  ;;  %v5964_v52 = vld [vmem:[#allocation7 + $0x64] ss:$16 sps:$4 sm:$0xff]   ;;  %v5970_v54 = vld [vmem:[#allocation7 + $0x60] ss:$16 sps:$4 sm:$0xff]  }
 0x220   :  { %5144 = vrcp.f32 %v940_v61  ;;  %v5982_v61 = vld [vmem:[#allocation7 + $0x40] ss:$16 sps:$4 sm:$0xff]  }
 0x229   :  { %v5141_v42 = vpop.eup %5140 }
 0x22a   :  { %v944_v48 = vmul.f32 %v5141_v42, %v5137_v62  ;;  %v5966_v62 = vld [vmem:[#allocation7 + $0x6c] ss:$16 sps:$4 sm:$0xff]   ;;  %v5972_v42 = vld [vmem:[#allocation7 + $0x68] ss:$16 sps:$4 sm:$0xff]  }
 0x22b   :  { %v5143_v49 = vpop.eup %5142 }
 0x22c   :  { %v943_v47 = vmul.f32 %v5143_v49, %v5831_v1  ;;  %v5920_v1 = vld [vmem:[#allocation7 + $0xec] ss:$16 sps:$4 sm:$0xff]  }
 0x22d   :  { %v5145_v59 = vpop.eup %5144  ;;  %v5978_v49 = vld [vmem:[#allocation7 + $0x4c] ss:$16 sps:$4 sm:$0xff]  }
 0x22e   :  { %v5873_v63 = vadd.f32 %v944_v48, %v943_v47  ;;  %v5976_v48 = vld [vmem:[#allocation7 + $0x44] ss:$16 sps:$4 sm:$0xff]   ;;  %v5984_v47 = vld [vmem:[#allocation7 + $0x48] ss:$16 sps:$4 sm:$0xff]  }
 0x230   :  { %5146 = vtanh.f32 %v5873_v63 }
 0x23d   :  { %v5147_v53 = vpop.eup %5146 }
 0x23e   :  { %v947_v5 = vmul.f32 %v5147_v53, %v5145_v59  ;;  %v5990_v59 = vld [vmem:[#allocation7 + $0x2c] ss:$16 sps:$4 sm:$0xff]   ;;  %v5994_v53 = vld [vmem:[#allocation7 + $0x20] ss:$16 sps:$4 sm:$0xff]  }
 0x240   :  { %v948_v51 = vpack.c.bf16 %v947_v5, %v947_v5  ;;  %v5996_v5 = vld [vmem:[#allocation7 + $0x28] ss:$16 sps:$4 sm:$0xff]  }
 0x242   :  { %949 = vst [vmem:[#allocation3 + $0x4] sm:$0xf] %v948_v51  ;;  %1179 = vmatmul.mubr.bf16.vlgmr.msra.gmra.mxu0 %v948_v51  ;;  %1220 = vmatmul.mubr.bf16.vlgmr.msra.gmra.mxu1 %v948_v51  ;;  %v6000_v51 = vld [vmem:[#allocation7 + $0x4] ss:$16 sps:$4 sm:$0xff]  }
 0x243   :  { %1455 = vmatpush1.bf16.msra.mxu0 %v5567_v6  ;;  %1496 = vmatpush1.bf16.msra.mxu1 %v5571_v8 }
 0x244   :  { %1456 = vmatprep.subr.bf16.mxu0 %v5578_v10  ;;  %1497 = vmatprep.subr.bf16.mxu1 %v5584_v12 }
 0x245   :  { %1486 = vmatprep.mubr.bf16.mxu0 %v6762_v56  ;;  %1527 = vmatprep.mubr.bf16.mxu1 %v6762_v56 }
 0x247   :  { %1457 = vmatpush1.bf16.msra.mxu0 %v5582_v11  ;;  %1498 = vmatpush1.bf16.msra.mxu1 %v5588_v13 }
 0x248   :  { %1458 = vmatprep.subr.bf16.mxu0 %v5596_v15  ;;  %1499 = vmatprep.subr.bf16.mxu1 %v5601_v17 }
 0x24b   :  { %1459 = vmatpush1.bf16.msra.mxu0 %v5599_v16  ;;  %1500 = vmatpush1.bf16.msra.mxu1 %v5605_v18 }
 0x24c   :  { %1460 = vmatprep.subr.bf16.mxu0 %v5607_v19  ;;  %1501 = vmatprep.subr.bf16.mxu1 %v5612_v20 }
 0x24f   :  { %1461 = vmatpush1.bf16.msra.mxu0 %v5615_v21  ;;  %1502 = vmatpush1.bf16.msra.mxu1 %v5620_v22  ;;  %v6763_v22 = vld [vmem:[#allocation15_spill] sm:$0xff] }
 0x250   :  { %1462 = vmatprep.subr.bf16.mxu0 %v5622_v23  ;;  %1503 = vmatprep.subr.bf16.mxu1 %v5626_v24 }
 0x253   :  { %1463 = vmatpush1.bf16.msra.mxu0 %v5632_v26  ;;  %1504 = vmatpush1.bf16.msra.mxu1 %v5636_v27 }
 0x254   :  { %1464 = vmatprep.subr.bf16.mxu0 %v5638_v28  ;;  %1505 = vmatprep.subr.bf16.mxu1 %v5641_v29 }
 0x257   :  { %1465 = vmatpush1.bf16.msra.mxu0 %v5645_v30  ;;  %1506 = vmatpush1.bf16.msra.mxu1 %v5648_v31 }
 0x258   :  { %1466 = vmatprep.subr.bf16.mxu0 %v5656_v33  ;;  %1507 = vmatprep.subr.bf16.mxu1 %v5662_v35 }
 0x25b   :  { %1467 = vmatpush1.bf16.msra.mxu0 %v5660_v34  ;;  %1508 = vmatpush1.bf16.msra.mxu1 %v5664_v36 }
 0x25c   :  { %1468 = vmatprep.subr.bf16.mxu0 %v5666_v37  ;;  %1509 = vmatprep.subr.bf16.mxu1 %v5669_v38 }
 0x25f   :  { %1469 = vmatpush1.bf16.msra.mxu0 %v5674_v39  ;;  %1510 = vmatpush1.bf16.msra.mxu1 %v5678_v40 }
 0x260   :  { %1803 = vmatprep.subr.bf16.mxu1 %v5920_v1 }
 0x302   :  { %v1180_v6 = vpop.f32.mrf.mxu0  ;;  %v1221_v8 = vpop.f32.mrf.mxu1 }
 0x303   :  { %v1228_v10 = vadd.f32 %v1180_v6, %v5765_v3  ;;  %v1230_v23 = vadd.f32 %v1221_v8, %v6763_v22  ;;  %v6002_v6 = vld [vmem:[#allocation7 + $0xc] ss:$16 sps:$4 sm:$0xff]   ;;  %v6006_v8 = vld [vmem:[#allocation7] ss:$16 sps:$4 sm:$0xff]  }
 0x304   :  { %v1182_v11 = vpop.f32.mrf.mxu0  ;;  %v1223_v12 = vpop.f32.mrf.mxu1 }
 0x305   :  { %v4582_v13 = vmul.f32 -1.442695, %v1228_v10  ;;  %v1229_v15 = vadd.f32 %v1182_v11, %v5770_v25  ;;  %v1231_v21 = vadd.f32 %v1223_v12, %v5773_v32  ;;  %v5918_v32 = vld [vmem:[#allocation7 + $0xe4] ss:$16 sps:$4 sm:$0xff]   ;;  %v6008_v10 = vld [vmem:[#allocation7 + $0x8] ss:$16 sps:$4 sm:$0xff]  }
 0x306   :  { %v1184_v16 = vpop.f32.mrf.mxu0  ;;  %v1225_v17 = vpop.f32.mrf.mxu1  ;;  %1762 = vmatprep.subr.bf16.mxu0 %v5918_v32 }
 0x307   :  { %5148 = vpow2.f32 %v4582_v13  ;;  %v4583_v18 = vmul.f32 -1.442695, %v1229_v15  ;;  %v4584_v24 = vmul.f32 -1.442695, %v1231_v21  ;;  %v6764_v13 = vld [vmem:[#allocation16_spill] sm:$0xff] }
 0x308   :  { %v1185_v19 = vpop.f32.mrf.mxu0  ;;  %v1226_v20 = vpop.f32.mrf.mxu1 }
 0x309   :  { %5150 = vpow2.f32 %v4583_v18  ;;  %v6765_v19 = vld [vmem:[#allocation18_spill] sm:$0xff] }
 0x30a   :  { %5152 = vtanh.f32 %v1230_v23 }
 0x30b   :  { %5154 = vpow2.f32 %v4584_v24 }
 0x314   :  { %v5149_v26 = vpop.eup %5148 }
 0x315   :  { %v1238_v27 = vadd.f32 1.0, %v5149_v26 }
 0x316   :  { %v5151_v28 = vpop.eup %5150 }
 0x317   :  { %5156 = vrcp.f32 %v1238_v27  ;;  %v1239_v29 = vadd.f32 1.0, %v5151_v28  ;;  %v5153_v30 = vpop.eup %5152  ;;  %v6766_v27 = vld [vmem:[#allocation19_spill] sm:$0xff] }
 0x318   :  { %v5155_v31 = vpop.eup %5154 }
 0x319   :  { %5158 = vrcp.f32 %v1239_v29  ;;  %v1248_v36 = vadd.f32 1.0, %v5155_v31  ;;  %v6767_v29 = vld [vmem:[#allocation17_spill] sm:$0xff] }
 0x31b   :  { %5160 = vrcp.f32 %v1248_v36 }
 0x324   :  { %v5157_v33 = vpop.eup %5156 }
 0x325   :  { %v1252_v34 = vmul.f32 %v5157_v33, %v5153_v30 }
 0x326   :  { %v5159_v35 = vpop.eup %5158 }
 0x327   :  { %v1251_v37 = vmul.f32 %v5159_v35, %v5873_v63  ;;  %v5988_v63 = vld [vmem:[#allocation7 + $0x24] ss:$16 sps:$4 sm:$0xff]  }
 0x328   :  { %v5161_v39 = vpop.eup %5160 }
 0x329   :  { %v5913_v38 = vadd.f32 %v1252_v34, %v1251_v37 }
 0x32b   :  { %5162 = vtanh.f32 %v5913_v38 }
 0x338   :  { %v5163_v40 = vpop.eup %5162 }
 0x339   :  { %v1255_v3 = vmul.f32 %v5163_v40, %v5161_v39 }
 0x33b   :  { %v1256_v25 = vpack.c.bf16 %v1255_v3, %v1255_v3 }
 0x33d   :  { %1257 = vst [vmem:[#allocation3 + $0x8] sm:$0xf] %v1256_v25  ;;  %1487 = vmatmul.mubr.bf16.vlgmr.msra.gmra.mxu0 %v1256_v25  ;;  %1528 = vmatmul.mubr.bf16.vlgmr.msra.gmra.mxu1 %v1256_v25 }
 0x33e   :  { %1794 = vmatprep.mubr.bf16.mxu0 %v6762_v56  ;;  %1835 = vmatprep.mubr.bf16.mxu1 %v6762_v56 }
 0x33f   :  { %1763 = vmatpush1.bf16.msra.mxu0 %v5922_v44  ;;  %1804 = vmatpush1.bf16.msra.mxu1 %v5924_v57 }
 0x340   :  { %1764 = vmatprep.subr.bf16.mxu0 %v5930_v14  ;;  %1805 = vmatprep.subr.bf16.mxu1 %v5932_v60 }
 0x343   :  { %1765 = vmatpush1.bf16.msra.mxu0 %v5934_v2  ;;  %1806 = vmatpush1.bf16.msra.mxu1 %v5936_v46 }
 0x344   :  { %1766 = vmatprep.subr.bf16.mxu0 %v5942_v45  ;;  %1807 = vmatprep.subr.bf16.mxu1 %v5944_v4 }
 0x347   :  { %1767 = vmatpush1.bf16.msra.mxu0 %v5946_v7  ;;  %1808 = vmatpush1.bf16.msra.mxu1 %v5948_v9 }
 0x348   :  { %1768 = vmatprep.subr.bf16.mxu0 %v5954_v55  ;;  %1809 = vmatprep.subr.bf16.mxu1 %v5956_v43 }
 0x34b   :  { %1769 = vmatpush1.bf16.msra.mxu0 %v5958_v0  ;;  %1810 = vmatpush1.bf16.msra.mxu1 %v5960_v58 }
 0x34c   :  { %1770 = vmatprep.subr.bf16.mxu0 %v5964_v52  ;;  %1811 = vmatprep.subr.bf16.mxu1 %v5966_v62 }
 0x34f   :  { %1771 = vmatpush1.bf16.msra.mxu0 %v5970_v54  ;;  %1812 = vmatpush1.bf16.msra.mxu1 %v5972_v42 }
 0x350   :  { %1772 = vmatprep.subr.bf16.mxu0 %v5976_v48  ;;  %1813 = vmatprep.subr.bf16.mxu1 %v5978_v49 }
 0x353   :  { %1773 = vmatpush1.bf16.msra.mxu0 %v5982_v61  ;;  %1814 = vmatpush1.bf16.msra.mxu1 %v5984_v47 }
 0x354   :  { %1774 = vmatprep.subr.bf16.mxu0 %v5988_v63  ;;  %1815 = vmatprep.subr.bf16.mxu1 %v5990_v59 }
 0x357   :  { %1775 = vmatpush1.bf16.msra.mxu0 %v5994_v53  ;;  %1816 = vmatpush1.bf16.msra.mxu1 %v5996_v5 }
 0x358   :  { %1776 = vmatprep.subr.bf16.mxu0 %v6000_v51  ;;  %1817 = vmatprep.subr.bf16.mxu1 %v6002_v6 }
 0x35b   :  { %1777 = vmatpush1.bf16.msra.mxu0 %v6006_v8  ;;  %1818 = vmatpush1.bf16.msra.mxu1 %v6008_v10 }
 0x35c   :  { %2070 = vmatprep.subr.bf16.mxu0 %v5918_v32  ;;  %2111 = vmatprep.subr.bf16.mxu1 %v5920_v1 }
 0x3fd   :  { %v1488_v11 = vpop.f32.mrf.mxu0  ;;  %v1529_v12 = vpop.f32.mrf.mxu1 }
 0x3fe   :  { %v1536_v15 = vadd.f32 %v1488_v11, %v6764_v13  ;;  %v1538_v30 = vadd.f32 %v1529_v12, %v6767_v29 }
 0x3ff   :  { %v1490_v16 = vpop.f32.mrf.mxu0  ;;  %v1531_v17 = vpop.f32.mrf.mxu1 }
 0x400   :  { %v4617_v18 = vmul.f32 -1.442695, %v1536_v15  ;;  %v1537_v20 = vadd.f32 %v1490_v16, %v6765_v19  ;;  %v1539_v28 = vadd.f32 %v1531_v17, %v6766_v27 }
 0x401   :  { %v1492_v21 = vpop.f32.mrf.mxu0  ;;  %v1533_v22 = vpop.f32.mrf.mxu1 }
 0x402   :  { %5164 = vpow2.f32 %v4617_v18  ;;  %v4618_v23 = vmul.f32 -1.442695, %v1537_v20  ;;  %v4619_v31 = vmul.f32 -1.442695, %v1539_v28  ;;  %v6768_v20 = vld [vmem:[#allocation20_spill] sm:$0xff] }
 0x403   :  { %v1493_v24 = vpop.f32.mrf.mxu0  ;;  %v1534_v26 = vpop.f32.mrf.mxu1 }
 0x404   :  { %5166 = vpow2.f32 %v4618_v23  ;;  %v6769_v26 = vld [vmem:[#allocation22_spill] sm:$0xff] }
 0x405   :  { %5168 = vtanh.f32 %v1538_v30 }
 0x406   :  { %5170 = vpow2.f32 %v4619_v31 }
 0x40f   :  { %v5165_v33 = vpop.eup %5164 }
 0x410   :  { %v1546_v34 = vadd.f32 1.0, %v5165_v33 }
 0x411   :  { %v5167_v35 = vpop.eup %5166 }
 0x412   :  { %5172 = vrcp.f32 %v1546_v34  ;;  %v1547_v36 = vadd.f32 1.0, %v5167_v35  ;;  %v5169_v37 = vpop.eup %5168  ;;  %v6770_v34 = vld [vmem:[#allocation23_spill] sm:$0xff] }
 0x413   :  { %v5171_v39 = vpop.eup %5170 }
 0x414   :  { %5174 = vrcp.f32 %v1547_v36  ;;  %v1556_v11 = vadd.f32 1.0, %v5171_v39  ;;  %v6771_v36 = vld [vmem:[#allocation21_spill] sm:$0xff] }
 0x416   :  { %5176 = vrcp.f32 %v1556_v11 }
 0x41f   :  { %v5173_v40 = vpop.eup %5172 }
 0x420   :  { %v1560_v3 = vmul.f32 %v5173_v40, %v5169_v37 }
 0x421   :  { %v5175_v25 = vpop.eup %5174 }
 0x422   :  { %v1559_v13 = vmul.f32 %v5175_v25, %v5913_v38 }
 0x423   :  { %v5177_v12 = vpop.eup %5176 }
 0x424   :  { %v6021_v15 = vadd.f32 %v1560_v3, %v1559_v13 }
 0x426   :  { %5178 = vtanh.f32 %v6021_v15 }
 0x433   :  { %v5179_v16 = vpop.eup %5178 }
 0x434   :  { %v1563_v17 = vmul.f32 %v5179_v16, %v5177_v12 }
 0x436   :  { %v1564_v18 = vpack.c.bf16 %v1563_v17, %v1563_v17 }
 0x438   :  { %1565 = vst [vmem:[#allocation3 + $0xc] sm:$0xf] %v1564_v18  ;;  %1795 = vmatmul.mubr.bf16.vlgmr.msra.gmra.mxu0 %v1564_v18  ;;  %1836 = vmatmul.mubr.bf16.vlgmr.msra.gmra.mxu1 %v1564_v18 }
 0x439   :  { %2071 = vmatpush1.bf16.msra.mxu0 %v5922_v44  ;;  %2112 = vmatpush1.bf16.msra.mxu1 %v5924_v57 }
 0x43a   :  { %2072 = vmatprep.subr.bf16.mxu0 %v5930_v14  ;;  %2113 = vmatprep.subr.bf16.mxu1 %v5932_v60 }
 0x43b   :  { %2102 = vmatprep.mubr.bf16.mxu0 %v6762_v56  ;;  %2143 = vmatprep.mubr.bf16.mxu1 %v6762_v56 }
 0x43d   :  { %2073 = vmatpush1.bf16.msra.mxu0 %v5934_v2  ;;  %2114 = vmatpush1.bf16.msra.mxu1 %v5936_v46 }
 0x43e   :  { %2074 = vmatprep.subr.bf16.mxu0 %v5942_v45  ;;  %2115 = vmatprep.subr.bf16.mxu1 %v5944_v4 }
 0x441   :  { %2075 = vmatpush1.bf16.msra.mxu0 %v5946_v7  ;;  %2116 = vmatpush1.bf16.msra.mxu1 %v5948_v9 }
 0x442   :  { %2076 = vmatprep.subr.bf16.mxu0 %v5954_v55  ;;  %2117 = vmatprep.subr.bf16.mxu1 %v5956_v43 }
 0x445   :  { %2077 = vmatpush1.bf16.msra.mxu0 %v5958_v0  ;;  %2118 = vmatpush1.bf16.msra.mxu1 %v5960_v58 }
 0x446   :  { %2078 = vmatprep.subr.bf16.mxu0 %v5964_v52  ;;  %2119 = vmatprep.subr.bf16.mxu1 %v5966_v62 }
 0x449   :  { %2079 = vmatpush1.bf16.msra.mxu0 %v5970_v54  ;;  %2120 = vmatpush1.bf16.msra.mxu1 %v5972_v42 }
 0x44a   :  { %2080 = vmatprep.subr.bf16.mxu0 %v5976_v48  ;;  %2121 = vmatprep.subr.bf16.mxu1 %v5978_v49 }
 0x44d   :  { %2081 = vmatpush1.bf16.msra.mxu0 %v5982_v61  ;;  %2122 = vmatpush1.bf16.msra.mxu1 %v5984_v47 }
 0x44e   :  { %2082 = vmatprep.subr.bf16.mxu0 %v5988_v63  ;;  %2123 = vmatprep.subr.bf16.mxu1 %v5990_v59 }
 0x451   :  { %2083 = vmatpush1.bf16.msra.mxu0 %v5994_v53  ;;  %2124 = vmatpush1.bf16.msra.mxu1 %v5996_v5 }
 0x452   :  { %2084 = vmatprep.subr.bf16.mxu0 %v6000_v51  ;;  %2125 = vmatprep.subr.bf16.mxu1 %v6002_v6 }
 0x455   :  { %2085 = vmatpush1.bf16.msra.mxu0 %v6006_v8  ;;  %2126 = vmatpush1.bf16.msra.mxu1 %v6008_v10 }
 0x456   :  { %2378 = vmatprep.subr.bf16.mxu0 %v5918_v32  ;;  %2419 = vmatprep.subr.bf16.mxu1 %v5920_v1 }
 0x4f8   :  { %v1796_v38 = vpop.f32.mrf.mxu0  ;;  %v1837_v19 = vpop.f32.mrf.mxu1 }
 0x4f9   :  { %v1844_v21 = vadd.f32 %v1796_v38, %v6768_v20  ;;  %v1846_v37 = vadd.f32 %v1837_v19, %v6771_v36 }
 0x4fa   :  { %v1798_v22 = vpop.f32.mrf.mxu0  ;;  %v1839_v23 = vpop.f32.mrf.mxu1 }
 0x4fb   :  { %v4652_v24 = vmul.f32 -1.442695, %v1844_v21  ;;  %v1845_v27 = vadd.f32 %v1798_v22, %v6769_v26  ;;  %v1847_v35 = vadd.f32 %v1839_v23, %v6770_v34 }
 0x4fc   :  { %v1800_v28 = vpop.f32.mrf.mxu0  ;;  %v1841_v29 = vpop.f32.mrf.mxu1 }
 0x4fd   :  { %5180 = vpow2.f32 %v4652_v24  ;;  %v4653_v30 = vmul.f32 -1.442695, %v1845_v27  ;;  %v4654_v39 = vmul.f32 -1.442695, %v1847_v35  ;;  %v6772_v27 = vld [vmem:[#allocation24_spill] sm:$0xff] }
 0x4fe   :  { %v1801_v31 = vpop.f32.mrf.mxu0  ;;  %v1842_v33 = vpop.f32.mrf.mxu1 }
 0x4ff   :  { %5182 = vpow2.f32 %v4653_v30  ;;  %v6773_v33 = vld [vmem:[#allocation26_spill] sm:$0xff] }
 0x500   :  { %5184 = vtanh.f32 %v1846_v37 }
 0x501   :  { %5186 = vpow2.f32 %v4654_v39 }
 0x50a   :  { %v5181_v40 = vpop.eup %5180 }
 0x50b   :  { %v1854_v3 = vadd.f32 1.0, %v5181_v40 }
 0x50c   :  { %v5183_v25 = vpop.eup %5182 }
 0x50d   :  { %5188 = vrcp.f32 %v1854_v3  ;;  %v1855_v11 = vadd.f32 1.0, %v5183_v25  ;;  %v5185_v13 = vpop.eup %5184  ;;  %v6774_v3 = vld [vmem:[#allocation27_spill] sm:$0xff]  ;;  %v6775_v25 = vld [vmem:[#allocation25_spill] sm:$0xff] }
 0x50e   :  { %v5187_v12 = vpop.eup %5186 }
 0x50f   :  { %5190 = vrcp.f32 %v1855_v11  ;;  %v1864_v38 = vadd.f32 1.0, %v5187_v12 }
 0x511   :  { %5192 = vrcp.f32 %v1864_v38 }
 0x51a   :  { %v5189_v16 = vpop.eup %5188 }
 0x51b   :  { %v1868_v17 = vmul.f32 %v5189_v16, %v5185_v13 }
 0x51c   :  { %v5191_v18 = vpop.eup %5190 }
 0x51d   :  { %v1867_v20 = vmul.f32 %v5191_v18, %v6021_v15 }
 0x51e   :  { %v5193_v19 = vpop.eup %5192 }
 0x51f   :  { %v6063_v21 = vadd.f32 %v1868_v17, %v1867_v20 }
 0x521   :  { %5194 = vtanh.f32 %v6063_v21 }
 0x52e   :  { %v5195_v22 = vpop.eup %5194 }
 0x52f   :  { %v1871_v23 = vmul.f32 %v5195_v22, %v5193_v19 }
 0x531   :  { %v1872_v24 = vpack.c.bf16 %v1871_v23, %v1871_v23 }
 0x533   :  { %1873 = vst [vmem:[#allocation3 + $0x10] sm:$0xf] %v1872_v24  ;;  %2103 = vmatmul.mubr.bf16.vlgmr.msra.gmra.mxu0 %v1872_v24  ;;  %2144 = vmatmul.mubr.bf16.vlgmr.msra.gmra.mxu1 %v1872_v24 }
 0x534   :  { %2379 = vmatpush1.bf16.msra.mxu0 %v5922_v44  ;;  %2420 = vmatpush1.bf16.msra.mxu1 %v5924_v57 }
 0x535   :  { %2380 = vmatprep.subr.bf16.mxu0 %v5930_v14  ;;  %2421 = vmatprep.subr.bf16.mxu1 %v5932_v60 }
 0x536   :  { %2410 = vmatprep.mubr.bf16.mxu0 %v6762_v56  ;;  %2451 = vmatprep.mubr.bf16.mxu1 %v6762_v56 }
 0x538   :  { %2381 = vmatpush1.bf16.msra.mxu0 %v5934_v2  ;;  %2422 = vmatpush1.bf16.msra.mxu1 %v5936_v46 }
 0x539   :  { %2382 = vmatprep.subr.bf16.mxu0 %v5942_v45  ;;  %2423 = vmatprep.subr.bf16.mxu1 %v5944_v4 }
 0x53c   :  { %2383 = vmatpush1.bf16.msra.mxu0 %v5946_v7  ;;  %2424 = vmatpush1.bf16.msra.mxu1 %v5948_v9 }
 0x53d   :  { %2384 = vmatprep.subr.bf16.mxu0 %v5954_v55  ;;  %2425 = vmatprep.subr.bf16.mxu1 %v5956_v43 }
 0x540   :  { %2385 = vmatpush1.bf16.msra.mxu0 %v5958_v0  ;;  %2426 = vmatpush1.bf16.msra.mxu1 %v5960_v58 }
 0x541   :  { %2386 = vmatprep.subr.bf16.mxu0 %v5964_v52  ;;  %2427 = vmatprep.subr.bf16.mxu1 %v5966_v62 }
 0x544   :  { %2387 = vmatpush1.bf16.msra.mxu0 %v5970_v54  ;;  %2428 = vmatpush1.bf16.msra.mxu1 %v5972_v42 }
 0x545   :  { %2388 = vmatprep.subr.bf16.mxu0 %v5976_v48  ;;  %2429 = vmatprep.subr.bf16.mxu1 %v5978_v49 }
 0x548   :  { %2389 = vmatpush1.bf16.msra.mxu0 %v5982_v61  ;;  %2430 = vmatpush1.bf16.msra.mxu1 %v5984_v47 }
 0x549   :  { %2390 = vmatprep.subr.bf16.mxu0 %v5988_v63  ;;  %2431 = vmatprep.subr.bf16.mxu1 %v5990_v59 }
 0x54c   :  { %2391 = vmatpush1.bf16.msra.mxu0 %v5994_v53  ;;  %2432 = vmatpush1.bf16.msra.mxu1 %v5996_v5 }
 0x54d   :  { %2392 = vmatprep.subr.bf16.mxu0 %v6000_v51  ;;  %2433 = vmatprep.subr.bf16.mxu1 %v6002_v6 }
 0x550   :  { %2393 = vmatpush1.bf16.msra.mxu0 %v6006_v8  ;;  %2434 = vmatpush1.bf16.msra.mxu1 %v6008_v10 }
 0x551   :  { %2686 = vmatprep.subr.bf16.mxu0 %v5918_v32  ;;  %2727 = vmatprep.subr.bf16.mxu1 %v5920_v1 }
 0x5f3   :  { %v2104_v15 = vpop.f32.mrf.mxu0  ;;  %v2145_v26 = vpop.f32.mrf.mxu1 }
 0x5f4   :  { %v2152_v28 = vadd.f32 %v2104_v15, %v6772_v27  ;;  %v2154_v1 = vadd.f32 %v2145_v26, %v6775_v25  ;;  %v5017_v25 = vld [vmem:[#allocation4 + $0xc8] ss:$16 sps:$4 sm:$0xff]  }
 0x5f5   :  { %v2106_v29 = vpop.f32.mrf.mxu0  ;;  %v2147_v30 = vpop.f32.mrf.mxu1 }
 0x5f6   :  { %v4687_v31 = vmul.f32 -1.442695, %v2152_v28  ;;  %v2153_v34 = vadd.f32 %v2106_v29, %v6773_v33  ;;  %v2155_v32 = vadd.f32 %v2147_v30, %v6774_v3  ;;  %v5019_v3 = vld [vmem:[#allocation4 + $0xcc] ss:$16 sps:$4 sm:$0xff]  }
 0x5f7   :  { %v2108_v35 = vpop.f32.mrf.mxu0  ;;  %v2149_v36 = vpop.f32.mrf.mxu1 }
 0x5f8   :  { %5196 = vpow2.f32 %v4687_v31  ;;  %v4688_v37 = vmul.f32 -1.442695, %v2153_v34  ;;  %v4689_v11 = vmul.f32 -1.442695, %v2155_v32  ;;  %v5008_v36 = vld [vmem:[#allocation4 + $0xe0] ss:$16 sps:$4 sm:$0xff]  }
 0x5f9   :  { %v2109_v39 = vpop.f32.mrf.mxu0  ;;  %v2150_v40 = vpop.f32.mrf.mxu1  ;;  %v5014_v32 = vld [vmem:[#allocation4 + $0xc0] ss:$16 sps:$4 sm:$0xff]  }
 0x5fa   :  { %5198 = vpow2.f32 %v4688_v37  ;;  %v5011_v37 = vld [vmem:[#allocation4 + $0xe8] ss:$16 sps:$4 sm:$0xff]   ;;  %v5016_v40 = vld [vmem:[#allocation4 + $0xc4] ss:$16 sps:$4 sm:$0xff]  }
 0x5fb   :  { %5200 = vtanh.f32 %v2154_v1  ;;  %v5022_v1 = vld [vmem:[#allocation4 + $0xa4] ss:$16 sps:$4 sm:$0xff]  }
 0x5fc   :  { %5202 = vpow2.f32 %v4689_v11  ;;  %v5025_v11 = vld [vmem:[#allocation4 + $0xac] ss:$16 sps:$4 sm:$0xff]  }
 0x605   :  { %v5197_v13 = vpop.eup %5196 }
 0x606   :  { %v2162_v12 = vadd.f32 1.0, %v5197_v13  ;;  %v5020_v13 = vld [vmem:[#allocation4 + $0xa0] ss:$16 sps:$4 sm:$0xff]  }
 0x607   :  { %v5199_v16 = vpop.eup %5198 }
 0x608   :  { %5204 = vrcp.f32 %v2162_v12  ;;  %v2163_v17 = vadd.f32 1.0, %v5199_v16  ;;  %v5201_v18 = vpop.eup %5200  ;;  %v5023_v12 = vld [vmem:[#allocation4 + $0xa8] ss:$16 sps:$4 sm:$0xff]   ;;  %v5028_v16 = vld [vmem:[#allocation4 + $0x84] ss:$16 sps:$4 sm:$0xff]  }
 0x609   :  { %v5203_v38 = vpop.eup %5202 }
 0x60a   :  { %5206 = vrcp.f32 %v2163_v17  ;;  %v2172_v23 = vadd.f32 1.0, %v5203_v38  ;;  %v5031_v17 = vld [vmem:[#allocation4 + $0x8c] ss:$16 sps:$4 sm:$0xff]   ;;  %v5029_v38 = vld [vmem:[#allocation4 + $0x88] ss:$16 sps:$4 sm:$0xff]  }
 0x60c   :  { %5208 = vrcp.f32 %v2172_v23  ;;  %v5035_v23 = vld [vmem:[#allocation4 + $0x68] ss:$16 sps:$4 sm:$0xff]  }
 0x615   :  { %v5205_v20 = vpop.eup %5204 }
 0x616   :  { %v2176_v19 = vmul.f32 %v5205_v20, %v5201_v18  ;;  %v5026_v18 = vld [vmem:[#allocation4 + $0x80] ss:$16 sps:$4 sm:$0xff]   ;;  %v5034_v20 = vld [vmem:[#allocation4 + $0x64] ss:$16 sps:$4 sm:$0xff]  }
 0x617   :  { %v5207_v22 = vpop.eup %5206 }
 0x618   :  { %v2175_v24 = vmul.f32 %v5207_v22, %v6063_v21  ;;  %v5032_v22 = vld [vmem:[#allocation4 + $0x60] ss:$16 sps:$4 sm:$0xff]  }
 0x619   :  { %v5209_v26 = vpop.eup %5208 }
 0x61a   :  { %v6105_v15 = vadd.f32 %v2176_v19, %v2175_v24  ;;  %v5037_v19 = vld [vmem:[#allocation4 + $0x6c] ss:$16 sps:$4 sm:$0xff]   ;;  %v5040_v24 = vld [vmem:[#allocation4 + $0x44] ss:$16 sps:$4 sm:$0xff]  }
 0x61c   :  { %5210 = vtanh.f32 %v6105_v15 }
 0x629   :  { %v5211_v27 = vpop.eup %5210 }
 0x62a   :  { %v2179_v28 = vmul.f32 %v5211_v27, %v5209_v26  ;;  %v5038_v26 = vld [vmem:[#allocation4 + $0x40] ss:$16 sps:$4 sm:$0xff]   ;;  %v5041_v27 = vld [vmem:[#allocation4 + $0x48] ss:$16 sps:$4 sm:$0xff]  }
 0x62c   :  { %v2180_v29 = vpack.c.bf16 %v2179_v28, %v2179_v28  ;;  %v5046_v28 = vld [vmem:[#allocation4 + $0x24] ss:$16 sps:$4 sm:$0xff]  }
 0x62e   :  { %2181 = vst [vmem:[#allocation3 + $0x14] sm:$0xf] %v2180_v29  ;;  %2411 = vmatmul.mubr.bf16.vlgmr.msra.gmra.mxu0 %v2180_v29  ;;  %2452 = vmatmul.mubr.bf16.vlgmr.msra.gmra.mxu1 %v2180_v29  ;;  %v5049_v29 = vld [vmem:[#allocation4 + $0x2c] ss:$16 sps:$4 sm:$0xff]  }
 0x62f   :  { %2687 = vmatpush1.bf16.msra.mxu0 %v5922_v44  ;;  %2728 = vmatpush1.bf16.msra.mxu1 %v5924_v57  ;;  %v5010_v44 = vld [vmem:[#allocation4 + $0xe4] ss:$16 sps:$4 sm:$0xff]   ;;  %v5013_v57 = vld [vmem:[#allocation4 + $0xec] ss:$16 sps:$4 sm:$0xff]  }
 0x630   :  { %2688 = vmatprep.subr.bf16.mxu0 %v5930_v14  ;;  %2729 = vmatprep.subr.bf16.mxu1 %v5932_v60 }
 0x631   :  { %2718 = vmatprep.mubr.bf16.mxu0 %v6762_v56  ;;  %2759 = vmatprep.mubr.bf16.mxu1 %v6762_v56 }
 0x633   :  { %2689 = vmatpush1.bf16.msra.mxu0 %v5934_v2  ;;  %2730 = vmatpush1.bf16.msra.mxu1 %v5936_v46  ;;  %v6776_v2 = vld [vmem:[#allocation28_spill] sm:$0xff] }
 0x634   :  { %2690 = vmatprep.subr.bf16.mxu0 %v5942_v45  ;;  %2731 = vmatprep.subr.bf16.mxu1 %v5944_v4 }
 0x637   :  { %2691 = vmatpush1.bf16.msra.mxu0 %v5946_v7  ;;  %2732 = vmatpush1.bf16.msra.mxu1 %v5948_v9  ;;  %v6777_v9 = vld [vmem:[#allocation30_spill] sm:$0xff] }
 0x638   :  { %2692 = vmatprep.subr.bf16.mxu0 %v5954_v55  ;;  %2733 = vmatprep.subr.bf16.mxu1 %v5956_v43 }
 0x63b   :  { %2693 = vmatpush1.bf16.msra.mxu0 %v5958_v0  ;;  %2734 = vmatpush1.bf16.msra.mxu1 %v5960_v58 }
 0x63c   :  { %2694 = vmatprep.subr.bf16.mxu0 %v5964_v52  ;;  %2735 = vmatprep.subr.bf16.mxu1 %v5966_v62 }
 0x63f   :  { %2695 = vmatpush1.bf16.msra.mxu0 %v5970_v54  ;;  %2736 = vmatpush1.bf16.msra.mxu1 %v5972_v42  ;;  %v6778_v54 = vld [vmem:[#allocation31_spill] sm:$0xff] }
 0x640   :  { %2696 = vmatprep.subr.bf16.mxu0 %v5976_v48  ;;  %2737 = vmatprep.subr.bf16.mxu1 %v5978_v49  ;;  %v6779_v48 = vld [vmem:[#allocation29_spill] sm:$0xff] }
 0x643   :  { %2697 = vmatpush1.bf16.msra.mxu0 %v5982_v61  ;;  %2738 = vmatpush1.bf16.msra.mxu1 %v5984_v47 }
 0x644   :  { %2698 = vmatprep.subr.bf16.mxu0 %v5988_v63  ;;  %2739 = vmatprep.subr.bf16.mxu1 %v5990_v59 }
 0x647   :  { %2699 = vmatpush1.bf16.msra.mxu0 %v5994_v53  ;;  %2740 = vmatpush1.bf16.msra.mxu1 %v5996_v5 }
 0x648   :  { %2700 = vmatprep.subr.bf16.mxu0 %v6000_v51  ;;  %2741 = vmatprep.subr.bf16.mxu1 %v6002_v6 }
 0x64b   :  { %2701 = vmatpush1.bf16.msra.mxu0 %v6006_v8  ;;  %2742 = vmatpush1.bf16.msra.mxu1 %v6008_v10 }
 0x64c   :  { %3045 = vmatprep.subr.bf16.mxu0 %v5010_v44  ;;  %3118 = vmatprep.subr.bf16.mxu1 %v5013_v57  ;;  %v5044_v44 = vld [vmem:[#allocation4 + $0x20] ss:$16 sps:$4 sm:$0xff]   ;;  %v5047_v57 = vld [vmem:[#allocation4 + $0x28] ss:$16 sps:$4 sm:$0xff]  }
 0x6ee   :  { %v2412_v14 = vpop.f32.mrf.mxu0  ;;  %v2453_v60 = vpop.f32.mrf.mxu1 }
 0x6ef   :  { %v2460_v46 = vadd.f32 %v2412_v14, %v6776_v2  ;;  %v2462_v49 = vadd.f32 %v2453_v60, %v6779_v48  ;;  %v5052_v14 = vld [vmem:[#allocation4 + $0x4] ss:$16 sps:$4 sm:$0xff]   ;;  %v5055_v60 = vld [vmem:[#allocation4 + $0xc] ss:$16 sps:$4 sm:$0xff]   ;;  %v5050_v2 = vld [vmem:[#allocation4] ss:$16 sps:$4 sm:$0xff]  }
 0x6f0   :  { %v2414_v45 = vpop.f32.mrf.mxu0  ;;  %v2455_v4 = vpop.f32.mrf.mxu1  ;;  %v6182_v48 = vld [vmem:[#allocation7 + $0x1ac] ss:$16 sps:$4 sm:$0xff]  }
 0x6f1   :  { %v4722_v7 = vmul.f32 -1.442695, %v2460_v46  ;;  %v2461_v55 = vadd.f32 %v2414_v45, %v6777_v9  ;;  %v2463_v42 = vadd.f32 %v2455_v4, %v6778_v54  ;;  %v5053_v46 = vld [vmem:[#allocation4 + $0x8] ss:$16 sps:$4 sm:$0xff]   ;;  %v5056_v45 = vld [vmem:[#allocation3] sm:$0xff]  }
 0x6f2   :  { %v2416_v43 = vpop.f32.mrf.mxu0  ;;  %v2457_v0 = vpop.f32.mrf.mxu1  ;;  %v5057_v4 = vld [vmem:[#allocation3 + $0x8] sm:$0xff]   ;;  %v6156_v9 = vld [vmem:[#allocation7 + $0x1e4] ss:$16 sps:$4 sm:$0xff]  }
 0x6f3   :  { %5212 = vpow2.f32 %v4722_v7  ;;  %v4723_v58 = vmul.f32 -1.442695, %v2461_v55  ;;  %v4724_v61 = vmul.f32 -1.442695, %v2463_v42  ;;  %v5058_v7 = vld [vmem:[#allocation3 + $0x10] sm:$0xff]  }
 0x6f4   :  { %v2417_v52 = vpop.f32.mrf.mxu0  ;;  %v2458_v62 = vpop.f32.mrf.mxu1  ;;  %v6158_v55 = vld [vmem:[#allocation7 + $0x1ec] ss:$16 sps:$4 sm:$0xff]   ;;  %v6160_v43 = vld [vmem:[#allocation7 + $0x1e0] ss:$16 sps:$4 sm:$0xff]   ;;  %v6162_v0 = vld [vmem:[#allocation7 + $0x1e8] ss:$16 sps:$4 sm:$0xff]  }
 0x6f5   :  { %5214 = vpow2.f32 %v4723_v58  ;;  %v6168_v58 = vld [vmem:[#allocation7 + $0x1c4] ss:$16 sps:$4 sm:$0xff]   ;;  %v6170_v52 = vld [vmem:[#allocation7 + $0x1cc] ss:$16 sps:$4 sm:$0xff]   ;;  %v6172_v62 = vld [vmem:[#allocation7 + $0x1c0] ss:$16 sps:$4 sm:$0xff]  }
 0x6f6   :  { %5216 = vtanh.f32 %v2462_v49  ;;  %v6174_v54 = vld [vmem:[#allocation7 + $0x1c8] ss:$16 sps:$4 sm:$0xff]   ;;  %v6180_v42 = vld [vmem:[#allocation7 + $0x1a4] ss:$16 sps:$4 sm:$0xff]   ;;  %v6184_v49 = vld [vmem:[#allocation7 + $0x1a0] ss:$16 sps:$4 sm:$0xff]  }
 0x6f7   :  { %5218 = vpow2.f32 %v4724_v61  ;;  %v6186_v61 = vld [vmem:[#allocation7 + $0x1a8] ss:$16 sps:$4 sm:$0xff]  }
 0x700   :  { %v5213_v47 = vpop.eup %5212 }
 0x701   :  { %v2470_v63 = vadd.f32 1.0, %v5213_v47  ;;  %v6192_v47 = vld [vmem:[#allocation7 + $0x184] ss:$16 sps:$4 sm:$0xff]  }
 0x702   :  { %v5215_v59 = vpop.eup %5214 }
 0x703   :  { %5220 = vrcp.f32 %v2470_v63  ;;  %v2471_v53 = vadd.f32 1.0, %v5215_v59  ;;  %v5217_v5 = vpop.eup %5216  ;;  %v6194_v63 = vld [vmem:[#allocation7 + $0x18c] ss:$16 sps:$4 sm:$0xff]   ;;  %v6196_v59 = vld [vmem:[#allocation7 + $0x180] ss:$16 sps:$4 sm:$0xff]  }
 0x704   :  { %v5219_v51 = vpop.eup %5218 }
 0x705   :  { %5222 = vrcp.f32 %v2471_v53  ;;  %v2480_v21 = vadd.f32 1.0, %v5219_v51  ;;  %v6198_v53 = vld [vmem:[#allocation7 + $0x188] ss:$16 sps:$4 sm:$0xff]   ;;  %v6206_v51 = vld [vmem:[#allocation7 + $0x16c] ss:$16 sps:$4 sm:$0xff]  }
 0x707   :  { %5224 = vrcp.f32 %v2480_v21  ;;  %v6214_v21 = vld [vmem:[#allocation7 + $0x14c] ss:$16 sps:$4 sm:$0xff]  }
 0x710   :  { %v5221_v6 = vpop.eup %5220 }
 0x711   :  { %v2484_v8 = vmul.f32 %v5221_v6, %v5217_v5  ;;  %v6204_v5 = vld [vmem:[#allocation7 + $0x164] ss:$16 sps:$4 sm:$0xff]   ;;  %v6208_v6 = vld [vmem:[#allocation7 + $0x160] ss:$16 sps:$4 sm:$0xff]  }
 0x712   :  { %v5223_v10 = vpop.eup %5222 }
 0x713   :  { %v2483_v30 = vmul.f32 %v5223_v10, %v6105_v15  ;;  %v5043_v15 = vld [vmem:[#allocation4 + $0x4c] ss:$16 sps:$4 sm:$0xff]   ;;  %v6212_v10 = vld [vmem:[#allocation7 + $0x144] ss:$16 sps:$4 sm:$0xff]  }
 0x714   :  { %v5225_v33 = vpop.eup %5224 }
 0x715   :  { %v6145_v31 = vadd.f32 %v2484_v8, %v2483_v30  ;;  %v6210_v8 = vld [vmem:[#allocation7 + $0x168] ss:$16 sps:$4 sm:$0xff]   ;;  %v6220_v30 = vld [vmem:[#allocation7 + $0x140] ss:$16 sps:$4 sm:$0xff]  }
 0x717   :  { %5226 = vtanh.f32 %v6145_v31 }
 0x724   :  { %v5227_v34 = vpop.eup %5226 }
 0x725   :  { %v2487_v35 = vmul.f32 %v5227_v34, %v5225_v33  ;;  %v6222_v33 = vld [vmem:[#allocation7 + $0x148] ss:$16 sps:$4 sm:$0xff]   ;;  %v6228_v34 = vld [vmem:[#allocation7 + $0x124] ss:$16 sps:$4 sm:$0xff]  }
 0x727   :  { %v2488_v39 = vpack.c.bf16 %v2487_v35, %v2487_v35  ;;  %v6230_v35 = vld [vmem:[#allocation7 + $0x12c] ss:$16 sps:$4 sm:$0xff]  }
 0x729   :  { %2489 = vst [vmem:[#allocation3 + $0x18] sm:$0xf] %v2488_v39  ;;  %2719 = vmatmul.mubr.bf16.vlgmr.msra.gmra.mxu0 %v2488_v39  ;;  %2760 = vmatmul.mubr.bf16.vlgmr.msra.gmra.mxu1 %v2488_v39  ;;  %v6236_v39 = vld [vmem:[#allocation7 + $0x104] ss:$16 sps:$4 sm:$0xff]  }
 0x72a   :  { %3046 = vmatpush1.bf16.msra.mxu0 %v5008_v36  ;;  %3119 = vmatpush1.bf16.msra.mxu1 %v5011_v37  ;;  %v6232_v36 = vld [vmem:[#allocation7 + $0x120] ss:$16 sps:$4 sm:$0xff]   ;;  %v6234_v37 = vld [vmem:[#allocation7 + $0x128] ss:$16 sps:$4 sm:$0xff]  }
 0x72b   :  { %3047 = vmatprep.subr.bf16.mxu0 %v5016_v40  ;;  %3120 = vmatprep.subr.bf16.mxu1 %v5019_v3  ;;  %v6240_v40 = vld [vmem:[#allocation7 + $0x10c] ss:$16 sps:$4 sm:$0xff]   ;;  %v6244_v3 = vld [vmem:[#allocation7 + $0x100] ss:$16 sps:$4 sm:$0xff]  }
 0x72c   :  { %3077 = vmatprep.mubr.bf16.mxu0 %v6762_v56  ;;  %3150 = vmatprep.mubr.bf16.mxu1 %v6762_v56 }
 0x72e   :  { %3048 = vmatpush1.bf16.msra.mxu0 %v5014_v32  ;;  %3121 = vmatpush1.bf16.msra.mxu1 %v5017_v25  ;;  %v6246_v32 = vld [vmem:[#allocation7 + $0x108] ss:$16 sps:$4 sm:$0xff]  }
 0x72f   :  { %3049 = vmatprep.subr.bf16.mxu0 %v5022_v1  ;;  %3122 = vmatprep.subr.bf16.mxu1 %v5025_v11  ;;  %v6780_v11 = vld [vmem:[#allocation32_spill] sm:$0xff] }
 0x732   :  { %3050 = vmatpush1.bf16.msra.mxu0 %v5020_v13  ;;  %3123 = vmatpush1.bf16.msra.mxu1 %v5023_v12 }
 0x733   :  { %3051 = vmatprep.subr.bf16.mxu0 %v5028_v16  ;;  %3124 = vmatprep.subr.bf16.mxu1 %v5031_v17 }
 0x736   :  { %3052 = vmatpush1.bf16.msra.mxu0 %v5026_v18  ;;  %3125 = vmatpush1.bf16.msra.mxu1 %v5029_v38 }
 0x737   :  { %3053 = vmatprep.subr.bf16.mxu0 %v5034_v20  ;;  %3126 = vmatprep.subr.bf16.mxu1 %v5037_v19 }
 0x73a   :  { %3054 = vmatpush1.bf16.msra.mxu0 %v5032_v22  ;;  %3127 = vmatpush1.bf16.msra.mxu1 %v5035_v23 }
 0x73b   :  { %3055 = vmatprep.subr.bf16.mxu0 %v5040_v24  ;;  %3128 = vmatprep.subr.bf16.mxu1 %v5043_v15  ;;  %v6781_v15 = vld [vmem:[#allocation33_spill] sm:$0xff] }
 0x73e   :  { %3056 = vmatpush1.bf16.msra.mxu0 %v5038_v26  ;;  %3129 = vmatpush1.bf16.msra.mxu1 %v5041_v27 }
 0x73f   :  { %3057 = vmatprep.subr.bf16.mxu0 %v5046_v28  ;;  %3130 = vmatprep.subr.bf16.mxu1 %v5049_v29 }
 0x742   :  { %3058 = vmatpush1.bf16.msra.mxu0 %v5044_v44  ;;  %3131 = vmatpush1.bf16.msra.mxu1 %v5047_v57 }
 0x743   :  { %3059 = vmatprep.subr.bf16.mxu0 %v5052_v14  ;;  %3132 = vmatprep.subr.bf16.mxu1 %v5055_v60 }
 0x746   :  { %3060 = vmatpush1.bf16.msra.mxu0 %v5050_v2  ;;  %3133 = vmatpush1.bf16.msra.mxu1 %v5053_v46 }
 0x747   :  { %3420 = vmatprep.subr.bf16.mxu0 %v6156_v9  ;;  %3461 = vmatprep.subr.bf16.mxu1 %v6158_v55 }
 0x749   :  { %3078 = vmatmul.mubr.bf16.vlgmr.msra.gmra.mxu0 %v5056_v45  ;;  %3151 = vmatmul.mubr.bf16.vlgmr.msra.gmra.mxu1 %v5056_v45 }
 0x74a   :  { %3087 = vmatprep.mubr.bf16.mxu0 %v6762_v56  ;;  %3160 = vmatprep.mubr.bf16.mxu1 %v6762_v56 }
 0x74b   :  { %3421 = vmatpush1.bf16.msra.mxu0 %v6160_v43  ;;  %3462 = vmatpush1.bf16.msra.mxu1 %v6162_v0 }
 0x74c   :  { %3422 = vmatprep.subr.bf16.mxu0 %v6168_v58  ;;  %3463 = vmatprep.subr.bf16.mxu1 %v6170_v52 }
 0x74f   :  { %3423 = vmatpush1.bf16.msra.mxu0 %v6172_v62  ;;  %3464 = vmatpush1.bf16.msra.mxu1 %v6174_v54 }
 0x750   :  { %3424 = vmatprep.subr.bf16.mxu0 %v6180_v42  ;;  %3465 = vmatprep.subr.bf16.mxu1 %v6182_v48 }
 0x751   :  { %3088 = vmatmul.mubr.bf16.gmra.mxu0 %v5057_v4  ;;  %3161 = vmatmul.mubr.bf16.gmra.mxu1 %v5057_v4 }
 0x752   :  { %3097 = vmatprep.mubr.bf16.mxu0 %v6762_v56  ;;  %3170 = vmatprep.mubr.bf16.mxu1 %v6762_v56 }
 0x753   :  { %3425 = vmatpush1.bf16.msra.mxu0 %v6184_v49  ;;  %3466 = vmatpush1.bf16.msra.mxu1 %v6186_v61 }
 0x754   :  { %3426 = vmatprep.subr.bf16.mxu0 %v6192_v47  ;;  %3467 = vmatprep.subr.bf16.mxu1 %v6194_v63 }
 0x757   :  { %3427 = vmatpush1.bf16.msra.mxu0 %v6196_v59  ;;  %3468 = vmatpush1.bf16.msra.mxu1 %v6198_v53 }
 0x758   :  { %3428 = vmatprep.subr.bf16.mxu0 %v6204_v5  ;;  %3469 = vmatprep.subr.bf16.mxu1 %v6206_v51 }
 0x759   :  { %3098 = vmatmul.mubr.bf16.gmra.mxu0 %v5058_v7  ;;  %3171 = vmatmul.mubr.bf16.gmra.mxu1 %v5058_v7 }
 0x75a   :  { %3107 = vmatprep.mubr.bf16.mxu0 %v6762_v56  ;;  %3180 = vmatprep.mubr.bf16.mxu1 %v6762_v56 }
 0x75b   :  { %3429 = vmatpush1.bf16.msra.mxu0 %v6208_v6  ;;  %3470 = vmatpush1.bf16.msra.mxu1 %v6210_v8 }
 0x75c   :  { %3430 = vmatprep.subr.bf16.mxu0 %v6212_v10  ;;  %3471 = vmatprep.subr.bf16.mxu1 %v6214_v21 }
 0x75f   :  { %3431 = vmatpush1.bf16.msra.mxu0 %v6220_v30  ;;  %3472 = vmatpush1.bf16.msra.mxu1 %v6222_v33 }
 0x760   :  { %3432 = vmatprep.subr.bf16.mxu0 %v6228_v34  ;;  %3473 = vmatprep.subr.bf16.mxu1 %v6230_v35 }
 0x763   :  { %3433 = vmatpush1.bf16.msra.mxu0 %v6232_v36  ;;  %3474 = vmatpush1.bf16.msra.mxu1 %v6234_v37 }
 0x764   :  { %3434 = vmatprep.subr.bf16.mxu0 %v6236_v39  ;;  %3475 = vmatprep.subr.bf16.mxu1 %v6240_v40 }
 0x767   :  { %3435 = vmatpush1.bf16.msra.mxu0 %v6244_v3  ;;  %3476 = vmatpush1.bf16.msra.mxu1 %v6246_v32 }
 0x768   :  { %3535 = vmatprep.subr.bf16.mxu0 %v6156_v9  ;;  %3576 = vmatprep.subr.bf16.mxu1 %v6158_v55 }
 0x7e9   :  { %v2720_v25 = vpop.f32.mrf.mxu0  ;;  %v2761_v1 = vpop.f32.mrf.mxu1 }
 0x7ea   :  { %v2768_v13 = vadd.f32 %v2720_v25, %v6780_v11  ;;  %v2770_v26 = vadd.f32 %v2761_v1, %v6781_v15 }
 0x7eb   :  { %v2722_v12 = vpop.f32.mrf.mxu0  ;;  %v2763_v16 = vpop.f32.mrf.mxu1 }
 0x7ec   :  { %v4757_v17 = vmul.f32 -1.442695, %v2768_v13  ;;  %v2769_v18 = vadd.f32 %v2722_v12, %v5821_v50  ;;  %v2771_v24 = vadd.f32 %v2763_v16, %v5824_v41 }
 0x7ed   :  { %v2724_v38 = vpop.f32.mrf.mxu0  ;;  %v2765_v20 = vpop.f32.mrf.mxu1 }
 0x7ee   :  { %5228 = vpow2.f32 %v4757_v17  ;;  %v4758_v19 = vmul.f32 -1.442695, %v2769_v18  ;;  %v4759_v27 = vmul.f32 -1.442695, %v2771_v24 }
 0x7ef   :  { %v2725_v22 = vpop.f32.mrf.mxu0  ;;  %v2766_v23 = vpop.f32.mrf.mxu1 }
 0x7f0   :  { %5230 = vpow2.f32 %v4758_v19 }
 0x7f1   :  { %5232 = vtanh.f32 %v2770_v26 }
 0x7f2   :  { %5234 = vpow2.f32 %v4759_v27 }
 0x7fb   :  { %v5229_v28 = vpop.eup %5228 }
 0x7fc   :  { %v2778_v29 = vadd.f32 1.0, %v5229_v28 }
 0x7fd   :  { %v5231_v44 = vpop.eup %5230 }
 0x7fe   :  { %5236 = vrcp.f32 %v2778_v29  ;;  %v2779_v57 = vadd.f32 1.0, %v5231_v44  ;;  %v5233_v50 = vpop.eup %5232 }
 0x7ff   :  { %v5235_v14 = vpop.eup %5234 }
 0x800   :  { %5238 = vrcp.f32 %v2779_v57  ;;  %v2788_v45 = vadd.f32 1.0, %v5235_v14 }
 0x802   :  { %5240 = vrcp.f32 %v2788_v45 }
 0x809   :  { %v3152_v12 = vpop.f32.mrf.mxu1 }
 0x80b   :  { %v5237_v60 = vpop.eup %5236  ;;  %v3154_v17 = vpop.f32.mrf.mxu1 }
 0x80c   :  { %v2792_v2 = vmul.f32 %v5237_v60, %v5233_v50 }
 0x80d   :  { %v5239_v46 = vpop.eup %5238  ;;  %v6299_v38 = vpop.f32.mrf.mxu1 }
 0x80e   :  { %v2791_v4 = vmul.f32 %v5239_v46, %v6145_v31  ;;  %v3079_v31 = vpop.f32.mrf.mxu0 }
 0x80f   :  { %v5241_v7 = vpop.eup %5240  ;;  %v6303_v19 = vpop.f32.mrf.mxu1 }
 0x810   :  { %v2793_v41 = vadd.f32 %v2792_v2, %v2791_v4  ;;  %v3081_v16 = vpop.f32.mrf.mxu0  ;;  %v4760_v4 = vld [vmem:[%s6730_s4 + $0x4] sm:$0xf] }
 0x811   :  { %v6307_v23 = vpop.f32.mrf.mxu1 }
 0x812   :  { %5242 = vtanh.f32 %v2793_v41  ;;  %v6297_v18 = vpop.f32.mrf.mxu0  ;;  %6782 = vst [vmem:[#allocation15_spill] sm:$0xff] %v6307_v23 }
 0x813   :  { %v6311_v15 = vpop.f32.mrf.mxu1 }
 0x814   :  { %v6301_v20 = vpop.f32.mrf.mxu0 }
 0x815   :  { %v6315_v27 = vpop.f32.mrf.mxu1 }
 0x816   :  { %v6305_v22 = vpop.f32.mrf.mxu0  ;;  %6784 = vst [vmem:[#allocation18_spill] sm:$0xff] %v6315_v27 }
 0x817   :  { %v6319_v29 = vpop.f32.mrf.mxu1 }
 0x818   :  { %v6309_v24 = vpop.f32.mrf.mxu0  ;;  %6786 = vst [vmem:[#allocation17_spill] sm:$0xff] %v6319_v29 }
 0x819   :  { %v6323_v57 = vpop.f32.mrf.mxu1 }
 0x81a   :  { %v6313_v26 = vpop.f32.mrf.mxu0  ;;  %6788 = vst [vmem:[#allocation22_spill] sm:$0xff] %v6323_v57 }
 0x81b   :  { %6783 = vst [vmem:[#allocation16_spill] sm:$0xff] %v6313_v26  ;;  %v6327_v14 = vpop.f32.mrf.mxu1 }
 0x81c   :  { %v6317_v28 = vpop.f32.mrf.mxu0  ;;  %6790 = vst [vmem:[#allocation21_spill] sm:$0xff] %v6327_v14 }
 0x81d   :  { %6785 = vst [vmem:[#allocation19_spill] sm:$0xff] %v6317_v28  ;;  %v6331_v2 = vpop.f32.mrf.mxu1 }
 0x81e   :  { %v6321_v44 = vpop.f32.mrf.mxu0  ;;  %6792 = vst [vmem:[#allocation26_spill] sm:$0xff] %v6331_v2 }
 0x81f   :  { %v5243_v25 = vpop.eup %5242  ;;  %6787 = vst [vmem:[#allocation20_spill] sm:$0xff] %v6321_v44  ;;  %v6335_v45 = vpop.f32.mrf.mxu1 }
 0x820   :  { %v2795_v1 = vmul.f32 %v5243_v25, %v5241_v7  ;;  %v6325_v50 = vpop.f32.mrf.mxu0  ;;  %6794 = vst [vmem:[#allocation25_spill] sm:$0xff] %v6335_v45 }
 0x821   :  { %6789 = vst [vmem:[#allocation23_spill] sm:$0xff] %v6325_v50 }
 0x822   :  { %v2796_v11 = vpack.c.bf16 %v2795_v1, %v2795_v1  ;;  %v6329_v60 = vpop.f32.mrf.mxu0 }
 0x823   :  { %6791 = vst [vmem:[#allocation24_spill] sm:$0xff] %v6329_v60 }
 0x824   :  { %2797 = vst [vmem:[#allocation3 + $0x1c] sm:$0xf] %v2796_v11  ;;  %v6333_v46 = vpop.f32.mrf.mxu0  ;;  %v6799_v11 = vld [vmem:[#allocation14_spill] sm:$0xff] }
 0x825   :  { %6793 = vst [vmem:[#allocation27_spill] sm:$0xff] %v6333_v46  ;;  %v6803_v45 = vsub.s32 1, %v6799_v11  ;;  %v6806_v26 = vsub.s32 3, %v6799_v11 }
 0x827   :  { %v6358_v57 = vrot.slane %v4760_v4, %v6803_v45 }
 0x829   :  { %v3082_v50 = vadd.f32 %v3081_v16, %v6358_v57  ;;  %v6807_v16 = vsub.s32 2, %v6799_v11 }
 0x82b   :  { %v5095_v13 = vld [vmem:[#allocation3 + $0x18] sm:$0xff]  }
 0x82c   :  { %3108 = vmatmul.mubr.bf16.gmra.mxu0 %v5095_v13  ;;  %3181 = vmatmul.mubr.bf16.gmra.mxu1 %v5095_v13  ;;  %v6800_v13 = vsub.s32 0, %v6799_v11 }
 0x82d   :  { %3452 = vmatprep.mubr.bf16.mxu0 %v6762_v56  ;;  %3493 = vmatprep.mubr.bf16.mxu1 %v6762_v56 }
 0x82e   :  { %v6350_v60 = vrot.slane %v4760_v4, %v6800_v13 }
 0x834   :  { %3453 = vmatmul.mubr.bf16.vlgmr.msra.gmra.mxu0 %v6762_v56  ;;  %3494 = vmatmul.mubr.bf16.vlgmr.msra.gmra.mxu1 %v6762_v56 }
 0x835   :  { %3536 = vmatpush1.bf16.msra.mxu0 %v6160_v43  ;;  %3577 = vmatpush1.bf16.msra.mxu1 %v6162_v0 }
 0x836   :  { %3537 = vmatprep.subr.bf16.mxu0 %v6168_v58  ;;  %3578 = vmatprep.subr.bf16.mxu1 %v6170_v52 }
 0x837   :  { %3567 = vmatprep.mubr.bf16.mxu0 %v6762_v56  ;;  %3608 = vmatprep.mubr.bf16.mxu1 %v6762_v56 }
 0x839   :  { %3538 = vmatpush1.bf16.msra.mxu0 %v6172_v62  ;;  %3579 = vmatpush1.bf16.msra.mxu1 %v6174_v54 }
 0x83a   :  { %3539 = vmatprep.subr.bf16.mxu0 %v6180_v42  ;;  %3580 = vmatprep.subr.bf16.mxu1 %v6182_v48 }
 0x83d   :  { %3540 = vmatpush1.bf16.msra.mxu0 %v6184_v49  ;;  %3581 = vmatpush1.bf16.msra.mxu1 %v6186_v61 }
 0x83e   :  { %3541 = vmatprep.subr.bf16.mxu0 %v6192_v47  ;;  %3582 = vmatprep.subr.bf16.mxu1 %v6194_v63 }
 0x841   :  { %3542 = vmatpush1.bf16.msra.mxu0 %v6196_v59  ;;  %3583 = vmatpush1.bf16.msra.mxu1 %v6198_v53 }
 0x842   :  { %3543 = vmatprep.subr.bf16.mxu0 %v6204_v5  ;;  %3584 = vmatprep.subr.bf16.mxu1 %v6206_v51 }
 0x845   :  { %3544 = vmatpush1.bf16.msra.mxu0 %v6208_v6  ;;  %3585 = vmatpush1.bf16.msra.mxu1 %v6210_v8 }
 0x846   :  { %3545 = vmatprep.subr.bf16.mxu0 %v6212_v10  ;;  %3586 = vmatprep.subr.bf16.mxu1 %v6214_v21 }
 0x849   :  { %3546 = vmatpush1.bf16.msra.mxu0 %v6220_v30  ;;  %3587 = vmatpush1.bf16.msra.mxu1 %v6222_v33 }
 0x84a   :  { %3547 = vmatprep.subr.bf16.mxu0 %v6228_v34  ;;  %3588 = vmatprep.subr.bf16.mxu1 %v6230_v35 }
 0x84d   :  { %3548 = vmatpush1.bf16.msra.mxu0 %v6232_v36  ;;  %3589 = vmatpush1.bf16.msra.mxu1 %v6234_v37 }
 0x84e   :  { %3549 = vmatprep.subr.bf16.mxu0 %v6236_v39  ;;  %3590 = vmatprep.subr.bf16.mxu1 %v6240_v40 }
 0x851   :  { %3550 = vmatpush1.bf16.msra.mxu0 %v6244_v3  ;;  %3591 = vmatpush1.bf16.msra.mxu1 %v6246_v32 }
 0x852   :  { %3650 = vmatprep.subr.bf16.mxu0 %v6156_v9  ;;  %3691 = vmatprep.subr.bf16.mxu1 %v6158_v55 }
 0x8ec   :  { %v6340_v41 = vpop.f32.mrf.mxu0  ;;  %v6342_v7 = vpop.f32.mrf.mxu1 }
 0x8ed   :  { %6795 = vst [vmem:[#allocation28_spill] sm:$0xff] %v6340_v41  ;;  %6796 = vst [vmem:[#allocation30_spill] sm:$0xff] %v6342_v7  ;;  %v3080_v7 = vadd.f32 %v3079_v31, %v6350_v60 }
 0x8ee   :  { %v6344_v25 = vpop.f32.mrf.mxu0  ;;  %v6346_v1 = vpop.f32.mrf.mxu1 }
 0x8ef   :  { %6797 = vst [vmem:[#allocation31_spill] sm:$0xff] %v6344_v25  ;;  %6798 = vst [vmem:[#allocation29_spill] sm:$0xff] %v6346_v1 }
 0x8f0   :  { %v6352_v2 = vpop.f32.mrf.mxu0  ;;  %v6354_v46 = vpop.f32.mrf.mxu1 }
 0x8f1   :  { %6801 = vst [vmem:[#allocation32_spill] sm:$0xff] %v6352_v2  ;;  %6802 = vst [vmem:[#allocation33_spill] sm:$0xff] %v6354_v46 }
 0x8f2   :  { %v6360_v14 = vpop.f32.mrf.mxu0  ;;  %v6362_v41 = vpop.f32.mrf.mxu1 }
 0x8f3   :  { %6804 = vst [vmem:[#allocation14_spill] sm:$0xff] %v6360_v14  ;;  %6805 = vst [vmem:[#allocation34_spill] sm:$0xff] %v6362_v41  ;;  %v6368_v14 = vrot.slane %v4760_v4, %v6806_v26 }
 0x8f4   :  { %v3454_v25 = vpop.f32.mrf.mxu0  ;;  %v3495_v1 = vpop.f32.mrf.mxu1 }
 0x8f5   :  { %v3502_v13 = vadd.f32 %v3454_v25, %v3080_v7  ;;  %v3155_v31 = vadd.f32 %v3154_v17, %v6368_v14  ;;  %v6373_v7 = vrot.slane %v4760_v4, %v6807_v16 }
 0x8f6   :  { %v3456_v44 = vpop.f32.mrf.mxu0  ;;  %v3497_v27 = vpop.f32.mrf.mxu1 }
 0x8f7   :  { %v4829_v2 = vmul.f32 -1.442695, %v3502_v13  ;;  %v3503_v29 = vadd.f32 %v3456_v44, %v3082_v50  ;;  %v3505_v25 = vadd.f32 %v3497_v27, %v3155_v31  ;;  %v3153_v44 = vadd.f32 %v3152_v12, %v6373_v7 }
 0x8f8   :  { %v3458_v46 = vpop.f32.mrf.mxu0  ;;  %v3499_v28 = vpop.f32.mrf.mxu1 }
 0x8f9   :  { %5244 = vpow2.f32 %v4829_v2  ;;  %v4830_v45 = vmul.f32 -1.442695, %v3503_v29  ;;  %v4831_v50 = vmul.f32 -1.442695, %v3505_v25  ;;  %v3504_v2 = vadd.f32 %v3495_v1, %v3153_v44 }
 0x8fa   :  { %v3459_v41 = vpop.f32.mrf.mxu0  ;;  %v3500_v23 = vpop.f32.mrf.mxu1  ;;  %v3084_v25 = vadd.f32 %v6297_v18, %v6350_v60  ;;  %v3159_v18 = vadd.f32 %v6303_v19, %v6368_v14 }
 0x8fb   :  { %5246 = vpow2.f32 %v4830_v45 }
 0x8fc   :  { %5248 = vpow2.f32 %v4831_v50 }
 0x906   :  { %v5245_v28 = vpop.eup %5244 }
 0x907   :  { %v3512_v29 = vadd.f32 1.0, %v5245_v28  ;;  %v3086_v28 = vadd.f32 %v6301_v20, %v6358_v57 }
 0x908   :  { %v5247_v46 = vpop.eup %5246 }
 0x909   :  { %5250 = vrcp.f32 %v3512_v29  ;;  %v3513_v26 = vadd.f32 1.0, %v5247_v46  ;;  %v5249_v23 = vpop.eup %5248 }
 0x90a   :  { %5252 = vtanh.f32 %v3504_v2  ;;  %v3522_v11 = vadd.f32 1.0, %v5249_v23 }
 0x90b   :  { %5254 = vrcp.f32 %v3513_v26 }
 0x90c   :  { %5256 = vrcp.f32 %v3522_v11 }
 0x916   :  { %v5251_v41 = vpop.eup %5250 }
 0x917   :  { %v5253_v17 = vpop.eup %5252 }
 0x918   :  { %v5255_v13 = vpop.eup %5254  ;;  %v3526_v45 = vmul.f32 %v5253_v17, %v5251_v41 }
 0x919   :  { %v3525_v4 = vmul.f32 0.0, %v5255_v13  ;;  %v5257_v12 = vpop.eup %5256 }
 0x91b   :  { %v6376_v27 = vadd.f32 %v3526_v45, %v3525_v4 }
 0x91d   :  { %5258 = vtanh.f32 %v6376_v27 }
 0x92a   :  { %v5259_v1 = vpop.eup %5258 }
 0x92b   :  { %v3529_v31 = vmul.f32 %v5259_v1, %v5257_v12  ;;  %v3157_v12 = vadd.f32 %v6299_v38, %v6373_v7 }
 0x92d   :  { %v3534_v16 = vpack.c.bf16 %v3529_v31, %v3529_v31 }
 0x92f   :  { %3568 = vmatmul.mubr.bf16.vlgmr.msra.gmra.mxu0 %v3534_v16  ;;  %3609 = vmatmul.mubr.bf16.vlgmr.msra.gmra.mxu1 %v3534_v16 }
 0x930   :  { %3651 = vmatpush1.bf16.msra.mxu0 %v6160_v43  ;;  %3692 = vmatpush1.bf16.msra.mxu1 %v6162_v0 }
 0x931   :  { %3652 = vmatprep.subr.bf16.mxu0 %v6168_v58  ;;  %3693 = vmatprep.subr.bf16.mxu1 %v6170_v52 }
 0x932   :  { %3682 = vmatprep.mubr.bf16.mxu0 %v6762_v56  ;;  %3723 = vmatprep.mubr.bf16.mxu1 %v6762_v56 }
 0x934   :  { %3653 = vmatpush1.bf16.msra.mxu0 %v6172_v62  ;;  %3694 = vmatpush1.bf16.msra.mxu1 %v6174_v54 }
 0x935   :  { %3654 = vmatprep.subr.bf16.mxu0 %v6180_v42  ;;  %3695 = vmatprep.subr.bf16.mxu1 %v6182_v48 }
 0x938   :  { %3655 = vmatpush1.bf16.msra.mxu0 %v6184_v49  ;;  %3696 = vmatpush1.bf16.msra.mxu1 %v6186_v61 }
 0x939   :  { %3656 = vmatprep.subr.bf16.mxu0 %v6192_v47  ;;  %3697 = vmatprep.subr.bf16.mxu1 %v6194_v63 }
 0x93c   :  { %3657 = vmatpush1.bf16.msra.mxu0 %v6196_v59  ;;  %3698 = vmatpush1.bf16.msra.mxu1 %v6198_v53 }
 0x93d   :  { %3658 = vmatprep.subr.bf16.mxu0 %v6204_v5  ;;  %3699 = vmatprep.subr.bf16.mxu1 %v6206_v51 }
 0x940   :  { %3659 = vmatpush1.bf16.msra.mxu0 %v6208_v6  ;;  %3700 = vmatpush1.bf16.msra.mxu1 %v6210_v8 }
 0x941   :  { %3660 = vmatprep.subr.bf16.mxu0 %v6212_v10  ;;  %3701 = vmatprep.subr.bf16.mxu1 %v6214_v21 }
 0x944   :  { %3661 = vmatpush1.bf16.msra.mxu0 %v6220_v30  ;;  %3702 = vmatpush1.bf16.msra.mxu1 %v6222_v33 }
 0x945   :  { %3662 = vmatprep.subr.bf16.mxu0 %v6228_v34  ;;  %3703 = vmatprep.subr.bf16.mxu1 %v6230_v35 }
 0x948   :  { %3663 = vmatpush1.bf16.msra.mxu0 %v6232_v36  ;;  %3704 = vmatpush1.bf16.msra.mxu1 %v6234_v37 }
 0x949   :  { %3664 = vmatprep.subr.bf16.mxu0 %v6236_v39  ;;  %3705 = vmatprep.subr.bf16.mxu1 %v6240_v40 }
 0x94c   :  { %3665 = vmatpush1.bf16.msra.mxu0 %v6244_v3  ;;  %3706 = vmatpush1.bf16.msra.mxu1 %v6246_v32 }
 0x94d   :  { %3765 = vmatprep.subr.bf16.mxu0 %v6156_v9  ;;  %3806 = vmatprep.subr.bf16.mxu1 %v6158_v55 }
 0x9ef   :  { %v3569_v44 = vpop.f32.mrf.mxu0  ;;  %v3610_v50 = vpop.f32.mrf.mxu1 }
 0x9f0   :  { %v3617_v2 = vadd.f32 %v3569_v44, %v3084_v25  ;;  %v3619_v20 = vadd.f32 %v3610_v50, %v3157_v12 }
 0x9f1   :  { %v3571_v29 = vpop.f32.mrf.mxu0  ;;  %v3612_v46 = vpop.f32.mrf.mxu1 }
 0x9f2   :  { %v4832_v26 = vmul.f32 -1.442695, %v3617_v2  ;;  %v3618_v23 = vadd.f32 %v3571_v29, %v3086_v28  ;;  %v3620_v45 = vadd.f32 %v3612_v46, %v3159_v18  ;;  %v3092_v18 = vadd.f32 %v6309_v24, %v6358_v57 }
 0x9f3   :  { %v3573_v41 = vpop.f32.mrf.mxu0  ;;  %v3614_v17 = vpop.f32.mrf.mxu1 }
 0x9f4   :  { %5260 = vpow2.f32 %v4832_v26  ;;  %v4833_v13 = vmul.f32 -1.442695, %v3618_v23  ;;  %v4834_v1 = vmul.f32 -1.442695, %v3620_v45 }
 0x9f5   :  { %v3574_v11 = vpop.f32.mrf.mxu0  ;;  %v3615_v4 = vpop.f32.mrf.mxu1 }
 0x9f6   :  { %5262 = vpow2.f32 %v4833_v13 }
 0x9f7   :  { %5264 = vtanh.f32 %v3619_v20 }
 0x9f8   :  { %5266 = vpow2.f32 %v4834_v1 }
 0xa01   :  { %v5261_v31 = vpop.eup %5260 }
 0xa02   :  { %v3627_v16 = vadd.f32 1.0, %v5261_v31 }
 0xa03   :  { %v5263_v25 = vpop.eup %5262 }
 0xa04   :  { %5268 = vrcp.f32 %v3627_v16  ;;  %v3628_v44 = vadd.f32 1.0, %v5263_v25  ;;  %v5265_v28 = vpop.eup %5264 }
 0xa05   :  { %v5267_v2 = vpop.eup %5266 }
 0xa06   :  { %5270 = vrcp.f32 %v3628_v44  ;;  %v3637_v19 = vadd.f32 1.0, %v5267_v2 }
 0xa08   :  { %5272 = vrcp.f32 %v3637_v19 }
 0xa11   :  { %v5269_v29 = vpop.eup %5268 }
 0xa12   :  { %v3641_v26 = vmul.f32 %v5269_v29, %v5265_v28 }
 0xa13   :  { %v5271_v23 = vpop.eup %5270 }
 0xa14   :  { %v3640_v46 = vmul.f32 %v5271_v23, %v6376_v27  ;;  %v3090_v27 = vadd.f32 %v6305_v22, %v6350_v60  ;;  %v3165_v22 = vadd.f32 %v6311_v15, %v6368_v14 }
 0xa15   :  { %v5273_v38 = vpop.eup %5272 }
 0xa16   :  { %v6422_v41 = vadd.f32 %v3641_v26, %v3640_v46  ;;  %v6808_v26 = vld [vmem:[#allocation15_spill] sm:$0xff] }
 0xa17   :  { %v3163_v23 = vadd.f32 %v6808_v26, %v6373_v7 }
 0xa18   :  { %5274 = vtanh.f32 %v6422_v41 }
 0xa25   :  { %v5275_v50 = vpop.eup %5274 }
 0xa26   :  { %v3644_v17 = vmul.f32 %v5275_v50, %v5273_v38 }
 0xa28   :  { %v3649_v13 = vpack.c.bf16 %v3644_v17, %v3644_v17 }
 0xa2a   :  { %3683 = vmatmul.mubr.bf16.vlgmr.msra.gmra.mxu0 %v3649_v13  ;;  %3724 = vmatmul.mubr.bf16.vlgmr.msra.gmra.mxu1 %v3649_v13 }
 0xa2b   :  { %3766 = vmatpush1.bf16.msra.mxu0 %v6160_v43  ;;  %3807 = vmatpush1.bf16.msra.mxu1 %v6162_v0 }
 0xa2c   :  { %3767 = vmatprep.subr.bf16.mxu0 %v6168_v58  ;;  %3808 = vmatprep.subr.bf16.mxu1 %v6170_v52 }
 0xa2d   :  { %3797 = vmatprep.mubr.bf16.mxu0 %v6762_v56  ;;  %3838 = vmatprep.mubr.bf16.mxu1 %v6762_v56 }
 0xa2f   :  { %3768 = vmatpush1.bf16.msra.mxu0 %v6172_v62  ;;  %3809 = vmatpush1.bf16.msra.mxu1 %v6174_v54 }
 0xa30   :  { %3769 = vmatprep.subr.bf16.mxu0 %v6180_v42  ;;  %3810 = vmatprep.subr.bf16.mxu1 %v6182_v48 }
 0xa33   :  { %3770 = vmatpush1.bf16.msra.mxu0 %v6184_v49  ;;  %3811 = vmatpush1.bf16.msra.mxu1 %v6186_v61 }
 0xa34   :  { %3771 = vmatprep.subr.bf16.mxu0 %v6192_v47  ;;  %3812 = vmatprep.subr.bf16.mxu1 %v6194_v63 }
 0xa37   :  { %3772 = vmatpush1.bf16.msra.mxu0 %v6196_v59  ;;  %3813 = vmatpush1.bf16.msra.mxu1 %v6198_v53 }
 0xa38   :  { %3773 = vmatprep.subr.bf16.mxu0 %v6204_v5  ;;  %3814 = vmatprep.subr.bf16.mxu1 %v6206_v51 }
 0xa3b   :  { %3774 = vmatpush1.bf16.msra.mxu0 %v6208_v6  ;;  %3815 = vmatpush1.bf16.msra.mxu1 %v6210_v8 }
 0xa3c   :  { %3775 = vmatprep.subr.bf16.mxu0 %v6212_v10  ;;  %3816 = vmatprep.subr.bf16.mxu1 %v6214_v21 }
 0xa3f   :  { %3776 = vmatpush1.bf16.msra.mxu0 %v6220_v30  ;;  %3817 = vmatpush1.bf16.msra.mxu1 %v6222_v33 }
 0xa40   :  { %3777 = vmatprep.subr.bf16.mxu0 %v6228_v34  ;;  %3818 = vmatprep.subr.bf16.mxu1 %v6230_v35 }
 0xa43   :  { %3778 = vmatpush1.bf16.msra.mxu0 %v6232_v36  ;;  %3819 = vmatpush1.bf16.msra.mxu1 %v6234_v37 }
 0xa44   :  { %3779 = vmatprep.subr.bf16.mxu0 %v6236_v39  ;;  %3820 = vmatprep.subr.bf16.mxu1 %v6240_v40 }
 0xa47   :  { %3780 = vmatpush1.bf16.msra.mxu0 %v6244_v3  ;;  %3821 = vmatpush1.bf16.msra.mxu1 %v6246_v32 }
 0xa48   :  { %3880 = vmatprep.subr.bf16.mxu0 %v6156_v9  ;;  %3921 = vmatprep.subr.bf16.mxu1 %v6158_v55 }
 0xaea   :  { %v3684_v11 = vpop.f32.mrf.mxu0  ;;  %v3725_v4 = vpop.f32.mrf.mxu1 }
 0xaeb   :  { %v3732_v45 = vadd.f32 %v3684_v11, %v3090_v27  ;;  %v3734_v24 = vadd.f32 %v3725_v4, %v3163_v23 }
 0xaec   :  { %v3686_v12 = vpop.f32.mrf.mxu0  ;;  %v3727_v20 = vpop.f32.mrf.mxu1 }
 0xaed   :  { %v4835_v1 = vmul.f32 -1.442695, %v3732_v45  ;;  %v3733_v31 = vadd.f32 %v3686_v12, %v3092_v18  ;;  %v3735_v29 = vadd.f32 %v3727_v20, %v3165_v22 }
 0xaee   :  { %v3688_v16 = vpop.f32.mrf.mxu0  ;;  %v3729_v25 = vpop.f32.mrf.mxu1 }
 0xaef   :  { %5276 = vpow2.f32 %v4835_v1  ;;  %v4836_v44 = vmul.f32 -1.442695, %v3733_v31  ;;  %v4837_v19 = vmul.f32 -1.442695, %v3735_v29 }
 0xaf0   :  { %v3689_v28 = vpop.f32.mrf.mxu0  ;;  %v3730_v2 = vpop.f32.mrf.mxu1 }
 0xaf1   :  { %5278 = vpow2.f32 %v4836_v44  ;;  %v6810_v2 = vld [vmem:[#allocation19_spill] sm:$0xff] }
 0xaf2   :  { %5280 = vtanh.f32 %v3734_v24  ;;  %v3096_v22 = vadd.f32 %v6810_v2, %v6358_v57 }
 0xaf3   :  { %5282 = vpow2.f32 %v4837_v19 }
 0xafc   :  { %v5277_v46 = vpop.eup %5276 }
 0xafd   :  { %v3742_v38 = vadd.f32 1.0, %v5277_v46 }
 0xafe   :  { %v5279_v50 = vpop.eup %5278 }
 0xaff   :  { %5284 = vrcp.f32 %v3742_v38  ;;  %v3743_v17 = vadd.f32 1.0, %v5279_v50  ;;  %v5281_v13 = vpop.eup %5280 }
 0xb00   :  { %v5283_v27 = vpop.eup %5282 }
 0xb01   :  { %5286 = vrcp.f32 %v3743_v17  ;;  %v3752_v15 = vadd.f32 1.0, %v5283_v27  ;;  %v6811_v27 = vld [vmem:[#allocation17_spill] sm:$0xff] }
 0xb03   :  { %5288 = vrcp.f32 %v3752_v15 }
 0xb0c   :  { %v5285_v11 = vpop.eup %5284 }
 0xb0d   :  { %v3756_v18 = vmul.f32 %v5285_v11, %v5281_v13  ;;  %v3169_v11 = vadd.f32 %v6811_v27, %v6368_v14 }
 0xb0e   :  { %v5287_v45 = vpop.eup %5286 }
 0xb0f   :  { %v3755_v12 = vmul.f32 %v5287_v45, %v6422_v41  ;;  %v6809_v41 = vld [vmem:[#allocation16_spill] sm:$0xff]  ;;  %v6812_v45 = vld [vmem:[#allocation18_spill] sm:$0xff] }
 0xb10   :  { %v5289_v4 = vpop.eup %5288  ;;  %v3094_v25 = vadd.f32 %v6809_v41, %v6350_v60  ;;  %v3167_v15 = vadd.f32 %v6812_v45, %v6373_v7  ;;  %v6563_v45 = vld [vmem:[#allocation7 + $0x1e0] ss:$16 sps:$4 sm:$0xff]  }
 0xb11   :  { %v6468_v20 = vadd.f32 %v3756_v18, %v3755_v12 }
 0xb13   :  { %5290 = vtanh.f32 %v6468_v20 }
 0xb20   :  { %v5291_v1 = vpop.eup %5290 }
 0xb21   :  { %v3759_v31 = vmul.f32 %v5291_v1, %v5289_v4 }
 0xb23   :  { %v3764_v16 = vpack.c.bf16 %v3759_v31, %v3759_v31 }
 0xb25   :  { %3798 = vmatmul.mubr.bf16.vlgmr.msra.gmra.mxu0 %v3764_v16  ;;  %3839 = vmatmul.mubr.bf16.vlgmr.msra.gmra.mxu1 %v3764_v16 }
 0xb26   :  { %3881 = vmatpush1.bf16.msra.mxu0 %v6160_v43  ;;  %3922 = vmatpush1.bf16.msra.mxu1 %v6162_v0 }
 0xb27   :  { %3882 = vmatprep.subr.bf16.mxu0 %v6168_v58  ;;  %3923 = vmatprep.subr.bf16.mxu1 %v6170_v52 }
 0xb28   :  { %3912 = vmatprep.mubr.bf16.mxu0 %v6762_v56  ;;  %3953 = vmatprep.mubr.bf16.mxu1 %v6762_v56 }
 0xb2a   :  { %3883 = vmatpush1.bf16.msra.mxu0 %v6172_v62  ;;  %3924 = vmatpush1.bf16.msra.mxu1 %v6174_v54 }
 0xb2b   :  { %3884 = vmatprep.subr.bf16.mxu0 %v6180_v42  ;;  %3925 = vmatprep.subr.bf16.mxu1 %v6182_v48 }
 0xb2e   :  { %3885 = vmatpush1.bf16.msra.mxu0 %v6184_v49  ;;  %3926 = vmatpush1.bf16.msra.mxu1 %v6186_v61 }
 0xb2f   :  { %3886 = vmatprep.subr.bf16.mxu0 %v6192_v47  ;;  %3927 = vmatprep.subr.bf16.mxu1 %v6194_v63 }
 0xb32   :  { %3887 = vmatpush1.bf16.msra.mxu0 %v6196_v59  ;;  %3928 = vmatpush1.bf16.msra.mxu1 %v6198_v53 }
 0xb33   :  { %3888 = vmatprep.subr.bf16.mxu0 %v6204_v5  ;;  %3929 = vmatprep.subr.bf16.mxu1 %v6206_v51 }
 0xb36   :  { %3889 = vmatpush1.bf16.msra.mxu0 %v6208_v6  ;;  %3930 = vmatpush1.bf16.msra.mxu1 %v6210_v8 }
 0xb37   :  { %3890 = vmatprep.subr.bf16.mxu0 %v6212_v10  ;;  %3931 = vmatprep.subr.bf16.mxu1 %v6214_v21 }
 0xb3a   :  { %3891 = vmatpush1.bf16.msra.mxu0 %v6220_v30  ;;  %3932 = vmatpush1.bf16.msra.mxu1 %v6222_v33 }
 0xb3b   :  { %3892 = vmatprep.subr.bf16.mxu0 %v6228_v34  ;;  %3933 = vmatprep.subr.bf16.mxu1 %v6230_v35 }
 0xb3e   :  { %3893 = vmatpush1.bf16.msra.mxu0 %v6232_v36  ;;  %3934 = vmatpush1.bf16.msra.mxu1 %v6234_v37 }
 0xb3f   :  { %3894 = vmatprep.subr.bf16.mxu0 %v6236_v39  ;;  %3935 = vmatprep.subr.bf16.mxu1 %v6240_v40 }
 0xb42   :  { %3895 = vmatpush1.bf16.msra.mxu0 %v6244_v3  ;;  %3936 = vmatpush1.bf16.msra.mxu1 %v6246_v32 }
 0xb43   :  { %3995 = vmatprep.subr.bf16.mxu0 %v6156_v9  ;;  %4036 = vmatprep.subr.bf16.mxu1 %v6158_v55 }
 0xbe5   :  { %v3799_v44 = vpop.f32.mrf.mxu0  ;;  %v3840_v28 = vpop.f32.mrf.mxu1 }
 0xbe6   :  { %v3847_v29 = vadd.f32 %v3799_v44, %v3094_v25  ;;  %v3849_v12 = vadd.f32 %v3840_v28, %v3167_v15  ;;  %v6566_v15 = vld [vmem:[#allocation7 + $0x1e8] ss:$16 sps:$4 sm:$0xff]  }
 0xbe7   :  { %v3801_v26 = vpop.f32.mrf.mxu0  ;;  %v3842_v23 = vpop.f32.mrf.mxu1 }
 0xbe8   :  { %v4838_v24 = vmul.f32 -1.442695, %v3847_v29  ;;  %v3848_v19 = vadd.f32 %v3801_v26, %v3096_v22  ;;  %v3850_v18 = vadd.f32 %v3842_v23, %v3169_v11 }
 0xbe9   :  { %v3803_v46 = vpop.f32.mrf.mxu0  ;;  %v3844_v38 = vpop.f32.mrf.mxu1 }
 0xbea   :  { %5292 = vpow2.f32 %v4838_v24  ;;  %v4839_v50 = vmul.f32 -1.442695, %v3848_v19  ;;  %v4840_v4 = vmul.f32 -1.442695, %v3850_v18 }
 0xbeb   :  { %v3804_v17 = vpop.f32.mrf.mxu0  ;;  %v3845_v13 = vpop.f32.mrf.mxu1 }
 0xbec   :  { %5294 = vpow2.f32 %v4839_v50 }
 0xbed   :  { %5296 = vtanh.f32 %v3849_v12  ;;  %v6569_v12 = vld [vmem:[#allocation7 + $0x1c4] ss:$16 sps:$4 sm:$0xff]  }
 0xbee   :  { %5298 = vpow2.f32 %v4840_v4  ;;  %v6572_v4 = vld [vmem:[#allocation7 + $0x1cc] ss:$16 sps:$4 sm:$0xff]  }
 0xbf7   :  { %v5293_v1 = vpop.eup %5292 }
 0xbf8   :  { %v3857_v31 = vadd.f32 1.0, %v5293_v1  ;;  %v6577_v1 = vld [vmem:[#allocation7 + $0x1c0] ss:$16 sps:$4 sm:$0xff]  }
 0xbf9   :  { %v5295_v16 = vpop.eup %5294 }
 0xbfa   :  { %5300 = vrcp.f32 %v3857_v31  ;;  %v3858_v41 = vadd.f32 1.0, %v5295_v16  ;;  %v5297_v25 = vpop.eup %5296  ;;  %v6580_v31 = vld [vmem:[#allocation7 + $0x1c8] ss:$16 sps:$4 sm:$0xff]   ;;  %v6583_v16 = vld [vmem:[#allocation7 + $0x1a4] ss:$16 sps:$4 sm:$0xff]  }
 0xbfb   :  { %v5299_v44 = vpop.eup %5298 }
 0xbfc   :  { %5302 = vrcp.f32 %v3858_v41  ;;  %v3867_v26 = vadd.f32 1.0, %v5299_v44  ;;  %v6586_v41 = vld [vmem:[#allocation7 + $0x1ac] ss:$16 sps:$4 sm:$0xff]   ;;  %v6592_v44 = vld [vmem:[#allocation7 + $0x1a8] ss:$16 sps:$4 sm:$0xff]  }
 0xbfe   :  { %5304 = vrcp.f32 %v3867_v26  ;;  %v6604_v26 = vld [vmem:[#allocation7 + $0x188] ss:$16 sps:$4 sm:$0xff]  }
 0xc07   :  { %v5301_v2 = vpop.eup %5300 }
 0xc08   :  { %v3871_v22 = vmul.f32 %v5301_v2, %v5297_v25  ;;  %v6589_v25 = vld [vmem:[#allocation7 + $0x1a0] ss:$16 sps:$4 sm:$0xff]   ;;  %v6595_v2 = vld [vmem:[#allocation7 + $0x184] ss:$16 sps:$4 sm:$0xff]  }
 0xc09   :  { %v5303_v29 = vpop.eup %5302 }
 0xc0a   :  { %v3870_v23 = vmul.f32 %v5303_v29, %v6468_v20  ;;  %v6601_v29 = vld [vmem:[#allocation7 + $0x180] ss:$16 sps:$4 sm:$0xff]  }
 0xc0b   :  { %v5305_v28 = vpop.eup %5304 }
 0xc0c   :  { %v6514_v24 = vadd.f32 %v3871_v22, %v3870_v23  ;;  %v6598_v22 = vld [vmem:[#allocation7 + $0x18c] ss:$16 sps:$4 sm:$0xff]   ;;  %v6607_v23 = vld [vmem:[#allocation7 + $0x164] ss:$16 sps:$4 sm:$0xff]  }
 0xc0e   :  { %5306 = vtanh.f32 %v6514_v24 }
 0xc1b   :  { %v5307_v19 = vpop.eup %5306 }
 0xc1c   :  { %v3874_v46 = vmul.f32 %v5307_v19, %v5305_v28  ;;  %v6613_v28 = vld [vmem:[#allocation7 + $0x160] ss:$16 sps:$4 sm:$0xff]   ;;  %v6616_v19 = vld [vmem:[#allocation7 + $0x168] ss:$16 sps:$4 sm:$0xff]  }
 0xc1e   :  { %v3879_v38 = vpack.c.bf16 %v3874_v46, %v3874_v46  ;;  %v6619_v46 = vld [vmem:[#allocation7 + $0x144] ss:$16 sps:$4 sm:$0xff]  }
 0xc20   :  { %3913 = vmatmul.mubr.bf16.vlgmr.msra.gmra.mxu0 %v3879_v38  ;;  %3954 = vmatmul.mubr.bf16.vlgmr.msra.gmra.mxu1 %v3879_v38  ;;  %v6622_v38 = vld [vmem:[#allocation7 + $0x14c] ss:$16 sps:$4 sm:$0xff]  }
 0xc21   :  { %3996 = vmatpush1.bf16.msra.mxu0 %v6160_v43  ;;  %4037 = vmatpush1.bf16.msra.mxu1 %v6162_v0  ;;  %v6813_v43 = vld [vmem:[#allocation20_spill] sm:$0xff] }
 0xc22   :  { %3997 = vmatprep.subr.bf16.mxu0 %v6168_v58  ;;  %4038 = vmatprep.subr.bf16.mxu1 %v6170_v52  ;;  %v3100_v0 = vadd.f32 %v6813_v43, %v6350_v60  ;;  %v6625_v43 = vld [vmem:[#allocation7 + $0x140] ss:$16 sps:$4 sm:$0xff]  }
 0xc23   :  { %4027 = vmatprep.mubr.bf16.mxu0 %v6762_v56  ;;  %4068 = vmatprep.mubr.bf16.mxu1 %v6762_v56 }
 0xc25   :  { %3998 = vmatpush1.bf16.msra.mxu0 %v6172_v62  ;;  %4039 = vmatpush1.bf16.msra.mxu1 %v6174_v54  ;;  %v6814_v62 = vld [vmem:[#allocation23_spill] sm:$0xff] }
 0xc26   :  { %3999 = vmatprep.subr.bf16.mxu0 %v6180_v42  ;;  %4040 = vmatprep.subr.bf16.mxu1 %v6182_v48  ;;  %v3102_v54 = vadd.f32 %v6814_v62, %v6358_v57  ;;  %v6637_v62 = vld [vmem:[#allocation7 + $0x120] ss:$16 sps:$4 sm:$0xff]  }
 0xc29   :  { %4000 = vmatpush1.bf16.msra.mxu0 %v6184_v49  ;;  %4041 = vmatpush1.bf16.msra.mxu1 %v6186_v61 }
 0xc2a   :  { %4001 = vmatprep.subr.bf16.mxu0 %v6192_v47  ;;  %4042 = vmatprep.subr.bf16.mxu1 %v6194_v63 }
 0xc2d   :  { %4002 = vmatpush1.bf16.msra.mxu0 %v6196_v59  ;;  %4043 = vmatpush1.bf16.msra.mxu1 %v6198_v53 }
 0xc2e   :  { %4003 = vmatprep.subr.bf16.mxu0 %v6204_v5  ;;  %4044 = vmatprep.subr.bf16.mxu1 %v6206_v51 }
 0xc31   :  { %4004 = vmatpush1.bf16.msra.mxu0 %v6208_v6  ;;  %4045 = vmatpush1.bf16.msra.mxu1 %v6210_v8  ;;  %v6816_v8 = vld [vmem:[#allocation22_spill] sm:$0xff] }
 0xc32   :  { %4005 = vmatprep.subr.bf16.mxu0 %v6212_v10  ;;  %4046 = vmatprep.subr.bf16.mxu1 %v6214_v21  ;;  %v3173_v10 = vadd.f32 %v6816_v8, %v6373_v7 }
 0xc35   :  { %4006 = vmatpush1.bf16.msra.mxu0 %v6220_v30  ;;  %4047 = vmatpush1.bf16.msra.mxu1 %v6222_v33 }
 0xc36   :  { %4007 = vmatprep.subr.bf16.mxu0 %v6228_v34  ;;  %4048 = vmatprep.subr.bf16.mxu1 %v6230_v35 }
 0xc39   :  { %4008 = vmatpush1.bf16.msra.mxu0 %v6232_v36  ;;  %4049 = vmatpush1.bf16.msra.mxu1 %v6234_v37 }
 0xc3a   :  { %4009 = vmatprep.subr.bf16.mxu0 %v6236_v39  ;;  %4050 = vmatprep.subr.bf16.mxu1 %v6240_v40 }
 0xc3d   :  { %4010 = vmatpush1.bf16.msra.mxu0 %v6244_v3  ;;  %4051 = vmatpush1.bf16.msra.mxu1 %v6246_v32 }
 0xc3e   :  { %4110 = vmatprep.subr.bf16.mxu0 %v6156_v9  ;;  %4151 = vmatprep.subr.bf16.mxu1 %v6158_v55  ;;  %v6815_v55 = vld [vmem:[#allocation21_spill] sm:$0xff] }
 0xc3f   :  { %v3175_v51 = vadd.f32 %v6815_v55, %v6368_v14  ;;  %v6818_v55 = vld [vmem:[#allocation27_spill] sm:$0xff] }
 0xce0   :  { %v3914_v58 = vpop.f32.mrf.mxu0  ;;  %v3955_v52 = vpop.f32.mrf.mxu1 }
 0xce1   :  { %v3962_v42 = vadd.f32 %v3914_v58, %v3100_v0  ;;  %v3964_v21 = vadd.f32 %v3955_v52, %v3173_v10  ;;  %v6628_v0 = vld [vmem:[#allocation7 + $0x148] ss:$16 sps:$4 sm:$0xff]   ;;  %v6631_v58 = vld [vmem:[#allocation7 + $0x124] ss:$16 sps:$4 sm:$0xff]   ;;  %v6634_v52 = vld [vmem:[#allocation7 + $0x12c] ss:$16 sps:$4 sm:$0xff]  }
 0xce2   :  { %v3916_v48 = vpop.f32.mrf.mxu0  ;;  %v3957_v49 = vpop.f32.mrf.mxu1 }
 0xce3   :  { %v4841_v61 = vmul.f32 -1.442695, %v3962_v42  ;;  %v3963_v47 = vadd.f32 %v3916_v48, %v3102_v54  ;;  %v3965_v6 = vadd.f32 %v3957_v49, %v3175_v51  ;;  %v6640_v54 = vld [vmem:[#allocation7 + $0x128] ss:$16 sps:$4 sm:$0xff]   ;;  %v6643_v42 = vld [vmem:[#allocation7 + $0x104] ss:$16 sps:$4 sm:$0xff]   ;;  %v3106_v51 = vadd.f32 %v6818_v55, %v6358_v57 }
 0xce4   :  { %v3918_v63 = vpop.f32.mrf.mxu0  ;;  %v3959_v59 = vpop.f32.mrf.mxu1  ;;  %v6646_v48 = vld [vmem:[#allocation7 + $0x10c] ss:$16 sps:$4 sm:$0xff]   ;;  %v6649_v49 = vld [vmem:[#allocation7 + $0x100] ss:$16 sps:$4 sm:$0xff]  }
 0xce5   :  { %5308 = vpow2.f32 %v4841_v61  ;;  %v4842_v53 = vmul.f32 -1.442695, %v3963_v47  ;;  %v4843_v30 = vmul.f32 -1.442695, %v3965_v6  ;;  %v6652_v61 = vld [vmem:[#allocation7 + $0x108] ss:$16 sps:$4 sm:$0xff]  }
 0xce6   :  { %v3919_v9 = vpop.f32.mrf.mxu0  ;;  %v3960_v5 = vpop.f32.mrf.mxu1  ;;  %v5402_v47 = vld [vmem:[#allocation7 + $0x1e4] ss:$16 sps:$4 sm:$0xff]   ;;  %v5403_v63 = vld [vmem:[#allocation7 + $0x1ec] ss:$16 sps:$4 sm:$0xff]  }
 0xce7   :  { %5310 = vpow2.f32 %v4842_v53  ;;  %v6817_v59 = vld [vmem:[#allocation24_spill] sm:$0xff] }
 0xce8   :  { %5312 = vtanh.f32 %v3964_v21  ;;  %v3104_v53 = vadd.f32 %v6817_v59, %v6350_v60 }
 0xce9   :  { %5314 = vpow2.f32 %v4843_v30 }
 0xcf2   :  { %v5309_v33 = vpop.eup %5308 }
 0xcf3   :  { %v3972_v34 = vadd.f32 1.0, %v5309_v33 }
 0xcf4   :  { %v5311_v35 = vpop.eup %5310 }
 0xcf5   :  { %5316 = vrcp.f32 %v3972_v34  ;;  %v3973_v36 = vadd.f32 1.0, %v5311_v35  ;;  %v5313_v37 = vpop.eup %5312 }
 0xcf6   :  { %v5315_v39 = vpop.eup %5314 }
 0xcf7   :  { %5318 = vrcp.f32 %v3973_v36  ;;  %v3982_v20 = vadd.f32 1.0, %v5315_v39  ;;  %v6819_v39 = vld [vmem:[#allocation25_spill] sm:$0xff] }
 0xcf9   :  { %5320 = vrcp.f32 %v3982_v20 }
 0xd02   :  { %v5317_v40 = vpop.eup %5316 }
 0xd03   :  { %v3986_v3 = vmul.f32 %v5317_v40, %v5313_v37  ;;  %v3179_v40 = vadd.f32 %v6819_v39, %v6368_v14 }
 0xd04   :  { %v5319_v32 = vpop.eup %5318 }
 0xd05   :  { %v3985_v50 = vmul.f32 %v5319_v32, %v6514_v24  ;;  %v6610_v24 = vld [vmem:[#allocation7 + $0x16c] ss:$16 sps:$4 sm:$0xff]  }
 0xd06   :  { %v5321_v13 = vpop.eup %5320  ;;  %v6820_v32 = vld [vmem:[#allocation26_spill] sm:$0xff] }
 0xd07   :  { %v6560_v17 = vadd.f32 %v3986_v3, %v3985_v50  ;;  %v3177_v20 = vadd.f32 %v6820_v32, %v6373_v7  ;;  %v5498_v32 = vmov 0.0  }
 0xd09   :  { %5322 = vtanh.f32 %v6560_v17 }
 0xd16   :  { %v5323_v27 = vpop.eup %5322 }
 0xd17   :  { %v3989_v11 = vmul.f32 %v5323_v27, %v5321_v13 }
 0xd19   :  { %v3994_v18 = vpack.c.bf16 %v3989_v11, %v3989_v11 }
 0xd1b   :  { %4028 = vmatmul.mubr.bf16.vlgmr.msra.gmra.mxu0 %v3994_v18  ;;  %4069 = vmatmul.mubr.bf16.vlgmr.msra.gmra.mxu1 %v3994_v18 }
 0xd1c   :  { %4111 = vmatpush1.bf16.msra.mxu0 %v6563_v45  ;;  %4152 = vmatpush1.bf16.msra.mxu1 %v6566_v15 }
 0xd1d   :  { %4112 = vmatprep.subr.bf16.mxu0 %v6569_v12  ;;  %4153 = vmatprep.subr.bf16.mxu1 %v6572_v4 }
 0xd1e   :  { %4142 = vmatprep.mubr.bf16.mxu0 %v6762_v56  ;;  %4183 = vmatprep.mubr.bf16.mxu1 %v6762_v56 }
 0xd20   :  { %4113 = vmatpush1.bf16.msra.mxu0 %v6577_v1  ;;  %4154 = vmatpush1.bf16.msra.mxu1 %v6580_v31 }
 0xd21   :  { %4114 = vmatprep.subr.bf16.mxu0 %v6583_v16  ;;  %4155 = vmatprep.subr.bf16.mxu1 %v6586_v41 }
 0xd24   :  { %4115 = vmatpush1.bf16.msra.mxu0 %v6589_v25  ;;  %4156 = vmatpush1.bf16.msra.mxu1 %v6592_v44 }
 0xd25   :  { %4116 = vmatprep.subr.bf16.mxu0 %v6595_v2  ;;  %4157 = vmatprep.subr.bf16.mxu1 %v6598_v22 }
 0xd28   :  { %4117 = vmatpush1.bf16.msra.mxu0 %v6601_v29  ;;  %4158 = vmatpush1.bf16.msra.mxu1 %v6604_v26 }
 0xd29   :  { %4118 = vmatprep.subr.bf16.mxu0 %v6607_v23  ;;  %4159 = vmatprep.subr.bf16.mxu1 %v6610_v24 }
 0xd2c   :  { %4119 = vmatpush1.bf16.msra.mxu0 %v6613_v28  ;;  %4160 = vmatpush1.bf16.msra.mxu1 %v6616_v19 }
 0xd2d   :  { %4120 = vmatprep.subr.bf16.mxu0 %v6619_v46  ;;  %4161 = vmatprep.subr.bf16.mxu1 %v6622_v38 }
 0xd30   :  { %4121 = vmatpush1.bf16.msra.mxu0 %v6625_v43  ;;  %4162 = vmatpush1.bf16.msra.mxu1 %v6628_v0 }
 0xd31   :  { %4122 = vmatprep.subr.bf16.mxu0 %v6631_v58  ;;  %4163 = vmatprep.subr.bf16.mxu1 %v6634_v52 }
 0xd34   :  { %4123 = vmatpush1.bf16.msra.mxu0 %v6637_v62  ;;  %4164 = vmatpush1.bf16.msra.mxu1 %v6640_v54 }
 0xd35   :  { %4124 = vmatprep.subr.bf16.mxu0 %v6643_v42  ;;  %4165 = vmatprep.subr.bf16.mxu1 %v6646_v48 }
 0xd38   :  { %4125 = vmatpush1.bf16.msra.mxu0 %v6649_v49  ;;  %4166 = vmatpush1.bf16.msra.mxu1 %v6652_v61 }
 0xd39   :  { %4225 = vmatprep.subr.bf16.mxu0 %v5402_v47  ;;  %4266 = vmatprep.subr.bf16.mxu1 %v5403_v63 }
 0xddb   :  { %v4029_v9 = vpop.f32.mrf.mxu0  ;;  %v4070_v5 = vpop.f32.mrf.mxu1 }
 0xddc   :  { %v4077_v6 = vadd.f32 %v4029_v9, %v3104_v53  ;;  %v4079_v50 = vadd.f32 %v4070_v5, %v3177_v20  ;;  %v5109_v20 = vld [vmem:[#allocation9 + $0x30] sm:$0xff]  }
 0xddd   :  { %v4031_v8 = vpop.f32.mrf.mxu0  ;;  %v4072_v10 = vpop.f32.mrf.mxu1 }
 0xdde   :  { %v4844_v21 = vmul.f32 -1.442695, %v4077_v6  ;;  %v4078_v30 = vadd.f32 %v4031_v8, %v3106_v51  ;;  %v4080_v3 = vadd.f32 %v4072_v10, %v3179_v40 }
 0xddf   :  { %v4033_v33 = vpop.f32.mrf.mxu0  ;;  %v4074_v34 = vpop.f32.mrf.mxu1 }
 0xde0   :  { %5324 = vpow2.f32 %v4844_v21  ;;  %v4845_v35 = vmul.f32 -1.442695, %v4078_v30  ;;  %v4846_v13 = vmul.f32 -1.442695, %v4080_v3  ;;  %v5108_v3 = vld [vmem:[#allocation9 + $0x38] sm:$0xff]  }
 0xde1   :  { %v4034_v36 = vpop.f32.mrf.mxu0  ;;  %v4075_v37 = vpop.f32.mrf.mxu1 }
 0xde2   :  { %5326 = vpow2.f32 %v4845_v35 }
 0xde3   :  { %5328 = vtanh.f32 %v4079_v50  ;;  %v5110_v50 = vld [vmem:[#allocation9 + $0x28] sm:$0xff]  }
 0xde4   :  { %5330 = vpow2.f32 %v4846_v13  ;;  %v5111_v13 = vld [vmem:[#allocation9 + $0x20] sm:$0xff]  }
 0xded   :  { %v5325_v27 = vpop.eup %5324 }
 0xdee   :  { %v4087_v11 = vadd.f32 1.0, %v5325_v27  ;;  %v5112_v27 = vld [vmem:[#allocation9 + $0x18] sm:$0xff]  }
 0xdef   :  { %v5327_v18 = vpop.eup %5326 }
 0xdf0   :  { %5332 = vrcp.f32 %v4087_v11  ;;  %v4088_v47 = vadd.f32 1.0, %v5327_v18  ;;  %v5329_v63 = vpop.eup %5328  ;;  %v5113_v11 = vld [vmem:[#allocation9 + $0x10] sm:$0xff]   ;;  %v5114_v18 = vld [vmem:[#allocation9 + $0x8] sm:$0xff]  }
 0xdf1   :  { %v5331_v59 = vpop.eup %5330 }
 0xdf2   :  { %5334 = vrcp.f32 %v4088_v47  ;;  %v4097_v51 = vadd.f32 1.0, %v5331_v59  ;;  %v5115_v47 = vld [vmem:[#allocation9] sm:$0xff]  }
 0xdf4   :  { %5336 = vrcp.f32 %v4097_v51 }
 0xdfd   :  { %v5333_v53 = vpop.eup %5332 }
 0xdfe   :  { %v4101_v9 = vmul.f32 %v5333_v53, %v5329_v63  ;;  %v6825_v63 = vld [vmem:[#allocation32_spill] sm:$0xff] }
 0xdff   :  { %v5335_v55 = vpop.eup %5334  ;;  %v3114_v59 = vadd.f32 %v6825_v63, %v6350_v60 }
 0xe00   :  { %v4100_v6 = vmul.f32 %v5335_v55, %v6560_v17  ;;  %v6826_v55 = vld [vmem:[#allocation14_spill] sm:$0xff] }
 0xe01   :  { %v5337_v5 = vpop.eup %5336  ;;  %v3116_v51 = vadd.f32 %v6826_v55, %v6358_v57 }
 0xe02   :  { %v6664_v8 = vadd.f32 %v4101_v9, %v4100_v6 }
 0xe04   :  { %5338 = vtanh.f32 %v6664_v8 }
 0xe11   :  { %v5339_v10 = vpop.eup %5338 }
 0xe12   :  { %v4104_v21 = vmul.f32 %v5339_v10, %v5337_v5 }
 0xe14   :  { %v4109_v30 = vpack.c.bf16 %v4104_v21, %v4104_v21 }
 0xe16   :  { %4143 = vmatmul.mubr.bf16.vlgmr.msra.gmra.mxu0 %v4109_v30  ;;  %4184 = vmatmul.mubr.bf16.vlgmr.msra.gmra.mxu1 %v4109_v30 }
 0xe17   :  { %4226 = vmatpush1.bf16.msra.mxu0 %v6563_v45  ;;  %4267 = vmatpush1.bf16.msra.mxu1 %v6566_v15 }
 0xe18   :  { %4227 = vmatprep.subr.bf16.mxu0 %v6569_v12  ;;  %4268 = vmatprep.subr.bf16.mxu1 %v6572_v4  ;;  %v6822_v12 = vld [vmem:[#allocation31_spill] sm:$0xff] }
 0xe19   :  { %4257 = vmatprep.mubr.bf16.mxu0 %v6762_v56  ;;  %4298 = vmatprep.mubr.bf16.mxu1 %v6762_v56  ;;  %v6821_v56 = vld [vmem:[#allocation28_spill] sm:$0xff]  ;;  %v3112_v4 = vadd.f32 %v6822_v12, %v6358_v57  ;;  %v6827_v12 = vld [vmem:[#allocation34_spill] sm:$0xff] }
 0xe1a   :  { %v3110_v17 = vadd.f32 %v6821_v56, %v6350_v60  ;;  %v3189_v60 = vadd.f32 %v6827_v12, %v6368_v14 }
 0xe1b   :  { %4228 = vmatpush1.bf16.msra.mxu0 %v6577_v1  ;;  %4269 = vmatpush1.bf16.msra.mxu1 %v6580_v31 }
 0xe1c   :  { %4229 = vmatprep.subr.bf16.mxu0 %v6583_v16  ;;  %4270 = vmatprep.subr.bf16.mxu1 %v6586_v41 }
 0xe1f   :  { %4230 = vmatpush1.bf16.msra.mxu0 %v6589_v25  ;;  %4271 = vmatpush1.bf16.msra.mxu1 %v6592_v44 }
 0xe20   :  { %4231 = vmatprep.subr.bf16.mxu0 %v6595_v2  ;;  %4272 = vmatprep.subr.bf16.mxu1 %v6598_v22 }
 0xe23   :  { %4232 = vmatpush1.bf16.msra.mxu0 %v6601_v29  ;;  %4273 = vmatpush1.bf16.msra.mxu1 %v6604_v26 }
 0xe24   :  { %4233 = vmatprep.subr.bf16.mxu0 %v6607_v23  ;;  %4274 = vmatprep.subr.bf16.mxu1 %v6610_v24  ;;  %v6823_v23 = vld [vmem:[#allocation29_spill] sm:$0xff] }
 0xe25   :  { %v3185_v24 = vadd.f32 %v6823_v23, %v6368_v14 }
 0xe27   :  { %4234 = vmatpush1.bf16.msra.mxu0 %v6613_v28  ;;  %4275 = vmatpush1.bf16.msra.mxu1 %v6616_v19  ;;  %v6824_v19 = vld [vmem:[#allocation30_spill] sm:$0xff] }
 0xe28   :  { %4235 = vmatprep.subr.bf16.mxu0 %v6619_v46  ;;  %4276 = vmatprep.subr.bf16.mxu1 %v6622_v38  ;;  %v3183_v46 = vadd.f32 %v6824_v19, %v6373_v7 }
 0xe2b   :  { %4236 = vmatpush1.bf16.msra.mxu0 %v6625_v43  ;;  %4277 = vmatpush1.bf16.msra.mxu1 %v6628_v0 }
 0xe2c   :  { %4237 = vmatprep.subr.bf16.mxu0 %v6631_v58  ;;  %4278 = vmatprep.subr.bf16.mxu1 %v6634_v52 }
 0xe2f   :  { %4238 = vmatpush1.bf16.msra.mxu0 %v6637_v62  ;;  %4279 = vmatpush1.bf16.msra.mxu1 %v6640_v54 }
 0xe30   :  { %4239 = vmatprep.subr.bf16.mxu0 %v6643_v42  ;;  %4280 = vmatprep.subr.bf16.mxu1 %v6646_v48 }
 0xe33   :  { %4240 = vmatpush1.bf16.msra.mxu0 %v6649_v49  ;;  %4281 = vmatpush1.bf16.msra.mxu1 %v6652_v61 }
 0xe34   :  { %4871 = vmatprep.subr.bf16.mxu0 %v5498_v32 }
 0xed6   :  { %v4144_v45 = vpop.f32.mrf.mxu0  ;;  %v4185_v15 = vpop.f32.mrf.mxu1 }
 0xed7   :  { %v4192_v1 = vadd.f32 %v4144_v45, %v3110_v17  ;;  %v4194_v38 = vadd.f32 %v4185_v15, %v3183_v46 }
 0xed8   :  { %v4146_v31 = vpop.f32.mrf.mxu0  ;;  %v4187_v16 = vpop.f32.mrf.mxu1 }
 0xed9   :  { %v4847_v41 = vmul.f32 -1.442695, %v4192_v1  ;;  %v4193_v25 = vadd.f32 %v4146_v31, %v3112_v4  ;;  %v4195_v28 = vadd.f32 %v4187_v16, %v3185_v24  ;;  %v6828_v1 = vld [vmem:[#allocation33_spill] sm:$0xff] }
 0xeda   :  { %v4148_v44 = vpop.f32.mrf.mxu0  ;;  %v4189_v2 = vpop.f32.mrf.mxu1  ;;  %v3187_v31 = vadd.f32 %v6828_v1, %v6373_v7 }
 0xedb   :  { %5340 = vpow2.f32 %v4847_v41  ;;  %v4848_v22 = vmul.f32 -1.442695, %v4193_v25  ;;  %v4849_v43 = vmul.f32 -1.442695, %v4195_v28 }
 0xedc   :  { %v4149_v29 = vpop.f32.mrf.mxu0  ;;  %v4190_v26 = vpop.f32.mrf.mxu1 }
 0xedd   :  { %5342 = vpow2.f32 %v4848_v22 }
 0xede   :  { %5344 = vtanh.f32 %v4194_v38 }
 0xedf   :  { %5346 = vpow2.f32 %v4849_v43 }
 0xee8   :  { %v5341_v0 = vpop.eup %5340 }
 0xee9   :  { %v4202_v58 = vadd.f32 1.0, %v5341_v0  ;;  %v4853_v0 = vld [vmem:[%s6732_s6] ss:$0 sm:$0xff] }
 0xeea   :  { %v5343_v52 = vpop.eup %5342 }
 0xeeb   :  { %5348 = vrcp.f32 %v4202_v58  ;;  %v4203_v62 = vadd.f32 1.0, %v5343_v52  ;;  %v5345_v54 = vpop.eup %5344 }
 0xeec   :  { %v5347_v42 = vpop.eup %5346 }
 0xeed   :  { %5350 = vrcp.f32 %v4203_v62  ;;  %v4212_v33 = vadd.f32 1.0, %v5347_v42 }
 0xeef   :  { %5352 = vrcp.f32 %v4212_v33 }
 0xef8   :  { %v5349_v48 = vpop.eup %5348 }
 0xef9   :  { %v4216_v49 = vmul.f32 %v5349_v48, %v5345_v54 }
 0xefa   :  { %v5351_v61 = vpop.eup %5350 }
 0xefb   :  { %v4215_v34 = vmul.f32 %v5351_v61, %v6664_v8 }
 0xefc   :  { %v5353_v36 = vpop.eup %5352 }
 0xefd   :  { %v6708_v35 = vadd.f32 %v4216_v49, %v4215_v34 }
 0xeff   :  { %5354 = vtanh.f32 %v6708_v35 }
 0xf0c   :  { %v5355_v37 = vpop.eup %5354 }
 0xf0d   :  { %v4219_v39 = vmul.f32 %v5355_v37, %v5353_v36 }
 0xf0f   :  { %v4224_v40 = vpack.c.bf16 %v4219_v39, %v4219_v39 }
 0xf11   :  { %4258 = vmatmul.mubr.bf16.vlgmr.msra.gmra.mxu0 %v4224_v40  ;;  %4299 = vmatmul.mubr.bf16.vlgmr.msra.gmra.mxu1 %v4224_v40 }
 0xf12   :  { %4872 = vmatpush3.bf16.msra.mxu0 %v5108_v3  ;;  %4887 = vmatprep.mubr.msk.bf16.mxu0 %vm5499_vm1, %v5498_v32 }
 0xf13   :  { %4873 = vmatprep.subr.bf16.mxu0 %v5498_v32 }
 0xf16   :  { %4874 = vmatpush3.bf16.msra.mxu0 %v5109_v20 }
 0xf17   :  { %4875 = vmatprep.subr.bf16.mxu0 %v5498_v32 }
 0xf1a   :  { %4876 = vmatpush3.bf16.msra.mxu0 %v5110_v50 }
 0xf1b   :  { %4877 = vmatprep.subr.bf16.mxu0 %v5498_v32 }
 0xf1e   :  { %4878 = vmatpush3.bf16.msra.mxu0 %v5111_v13 }
 0xf1f   :  { %4879 = vmatprep.subr.bf16.mxu0 %v5498_v32 }
 0xf22   :  { %4880 = vmatpush3.bf16.msra.mxu0 %v5112_v27 }
 0xf23   :  { %4881 = vmatprep.subr.bf16.mxu0 %v5498_v32 }
 0xf26   :  { %4882 = vmatpush3.bf16.msra.mxu0 %v5113_v11 }
 0xf27   :  { %4883 = vmatprep.subr.bf16.mxu0 %v5498_v32 }
 0xf2a   :  { %4884 = vmatpush3.bf16.msra.mxu0 %v5114_v18 }
 0xf2b   :  { %4885 = vmatprep.subr.bf16.mxu0 %v5498_v32 }
 0xf2e   :  { %4886 = vmatpush3.bf16.msra.mxu0 %v5115_v47 }
 0xfd1   :  { %v4259_v53 = vpop.f32.mrf.mxu0  ;;  %v4300_v9 = vpop.f32.mrf.mxu1 }
 0xfd2   :  { %v4307_v6 = vadd.f32 %v4259_v53, %v3114_v59  ;;  %v4309_v57 = vadd.f32 %v4300_v9, %v3187_v31 }
 0xfd3   :  { %v4261_v8 = vpop.f32.mrf.mxu0  ;;  %v4302_v5 = vpop.f32.mrf.mxu1 }
 0xfd4   :  { %v4850_v10 = vmul.f32 -1.442695, %v4307_v6  ;;  %v4308_v21 = vadd.f32 %v4261_v8, %v3116_v51  ;;  %v4310_v4 = vadd.f32 %v4302_v5, %v3189_v60 }
 0xfd5   :  { %v4263_v30 = vpop.f32.mrf.mxu0  ;;  %v4304_v56 = vpop.f32.mrf.mxu1 }
 0xfd6   :  { %5356 = vpow2.f32 %v4850_v10  ;;  %v4851_v17 = vmul.f32 -1.442695, %v4308_v21  ;;  %v4852_v16 = vmul.f32 -1.442695, %v4310_v4 }
 0xfd7   :  { %v4264_v45 = vpop.f32.mrf.mxu0  ;;  %v4305_v15 = vpop.f32.mrf.mxu1 }
 0xfd8   :  { %5358 = vpow2.f32 %v4851_v17 }
 0xfd9   :  { %5360 = vtanh.f32 %v4309_v57 }
 0xfda   :  { %5362 = vpow2.f32 %v4852_v16 }
 0xfe3   :  { %v5357_v41 = vpop.eup %5356 }
 0xfe4   :  { %v4317_v25 = vadd.f32 1.0, %v5357_v41 }
 0xfe5   :  { %v5359_v44 = vpop.eup %5358 }
 0xfe6   :  { %5364 = vrcp.f32 %v4317_v25  ;;  %v4318_v2 = vadd.f32 1.0, %v5359_v44  ;;  %v5361_v22 = vpop.eup %5360 }
 0xfe7   :  { %v5363_v29 = vpop.eup %5362 }
 0xfe8   :  { %5366 = vrcp.f32 %v4318_v2  ;;  %v4327_v14 = vadd.f32 1.0, %v5363_v29 }
 0xfea   :  { %5368 = vrcp.f32 %v4327_v14 }
 0xff3   :  { %v5365_v26 = vpop.eup %5364 }
 0xff4   :  { %v4331_v23 = vmul.f32 %v5365_v26, %v5361_v22 }
 0xff5   :  { %v5367_v24 = vpop.eup %5366 }
 0xff6   :  { %v4330_v28 = vmul.f32 %v5367_v24, %v6708_v35 }
 0xff7   :  { %v5369_v7 = vpop.eup %5368 }
 0xff8   :  { %v4332_v19 = vadd.f32 %v4331_v23, %v4330_v28 }
 0xffa   :  { %5370 = vtanh.f32 %v4332_v19 }
0x1007   :  { %v5371_v46 = vpop.eup %5370 }
0x1008   :  { %v4334_v38 = vmul.f32 %v5371_v46, %v5369_v7 }
0x100a   :  { %v4335_v43 = vpack.c.bf16 %v4334_v38, %v4334_v38 }
0x100c   :  { %4888 = vmatmul.mubr.bf16.vlgmr.msra.gmra.mxu0 %v4335_v43 }
0x10cc   :  { %v4441_v58 = vpop.f32.mrf.mxu0 }
0x10cd   :  { %v4442_v52 = vadd.f32 %v4853_v0, %v4441_v58 }
0x10ce   :  { %v4889_v62 = vpop.f32.mrf.mxu0 }
0x10cf   :  { %4447 = vst [vmem:[#allocation10] sm:$0xff] %v4442_v52 }
0x10d0   :  { %v4444_v54 = vpop.f32.mrf.mxu0 }
0x10d1   :  { %5475 = shalt.err (!%p5472_p5)
}
0x10d2   :  { %4457 = dma.vmem_to_hbm [thread:$0]  %s4455_s14, 128, %s6733_s7, [#allocation6]   ;;  %v4890_v42 = vpop.f32.mrf.mxu0 }
0x10d3   :  { %5488 = dma.done.wait [#allocation6], 128  }
0x10d4   :  { %5489 = vsyncadd [#allocation6], 4294967168 }
0x10d5   :  { %4461 = vsyncpa [#allocation5], 1 }
0x10d6   :  { %4462 = vsyncpa [#allocation8], 1 }
0x10d7   :  { %4463 = vsyncpa [#allocation6], 1 }

// kernel: tpu_custom_call.1
= control target key start
LH: loop header
LB: loop body
LE: loop exit
PB: predicated region body
PF: predicated region fallthrough
CT: control target
= control target key end

     0   :  { %12 = vsyncpa [#allocation5], 0  ;;  %s6726_s0 = inlined_call_operand.vmem [shape: bf16[1,64,16], index: 0, kind: input, shape index: {}]   ;;  %s6727_s1 = inlined_call_operand.vmem [shape: bf16[16,512], index: 1, kind: input, shape index: {}]   ;;  %s6728_s2 = inlined_call_operand.hbm [shape: bf16[1,128,512], index: 2, kind: input, shape index: {}]   ;;  %s6729_s3 = inlined_call_operand.hbm [shape: bf16[2,128,512], index: 3, kind: input, shape index: {}]   ;;  %s6730_s4 = inlined_call_operand.vmem [shape: f32[2,1,512], index: 4, kind: input, shape index: {}]   ;;  %s6731_s5 = inlined_call_operand.hbm [shape: bf16[128,128], index: 5, kind: input, shape index: {}]   ;;  %s6732_s6 = inlined_call_operand.vmem [shape: f32[1,128], index: 6, kind: input, shape index: {}]   ;;  %s6733_s7 = inlined_call_operand.hbm [shape: f32[8,128], index: 7, kind: output, shape index: {}]  }
   0x1   :  { %13 = vsyncpa [#allocation8], 0 }
   0x2   :  { %14 = vsyncpa [#allocation6], 0  ;;  %s5490_s24 = smov [#allocation7]   ;;  %s5491_s26 = smov [#allocation4]  }
   0x3   :  { %s36_s25 = sshll.u32 %s5490_s24, 4  ;;  %s24_s27 = sshll.u32 %s5491_s26, 4  ;;  %s37_s25 = int_to_ptr.vmem [resolvable:$true] %s36_s25  ;;  %s25_s27 = int_to_ptr.vmem [resolvable:$true] %s24_s27 }
   0x4   :  { %s5412_s28 = scalar_lea.vmem %s37_s25, 8192  ;;  %p5417_p1 = scmp.lt.s32.totalorder %s37_s25, %s37_s25 }
   0x5   :  { %p5413_p0 = scmp.ne.s32.totalorder %s37_s25, %s5412_s28  ;;  %p5418_p2 = scmp.lt.s32.totalorder %s5412_s28, %s5412_s28 }
   0x7   :  { %p5419_p3 = por %p5418_p2, %p5417_p1 }
   0x9   :  { %p5420_p4 = pnand %p5419_p3, %p5413_p0 }
   0xb   :  { %5423 = shalt.err (!%p5420_p4)
}
   0xc   :  { %s5492_s29 = smov 256   ;;  %s5493_s30 = smov 16  }
   0xd   :  { %42 = dma.hbm_to_vmem [thread:$0]  %s6729_s3, 8192, %s37_s25, [#allocation8], %s5492_s29, %s5492_s29, %s5493_s30  }
   0xe   :  { %s5432_s10 = scalar_lea.vmem %s25_s27, 4096  ;;  %p5437_p6 = scmp.lt.s32.totalorder %s25_s27, %s25_s27 }
   0xf   :  { %p5433_p5 = scmp.ne.s32.totalorder %s25_s27, %s5432_s10  ;;  %p5438_p7 = scmp.lt.s32.totalorder %s5432_s10, %s5432_s10 }
  0x11   :  { %p5439_p8 = por %p5438_p7, %p5437_p6 }
  0x13   :  { %p5440_p9 = pnand %p5439_p8, %p5433_p5 }
  0x15   :  { %5443 = shalt.err (!%p5440_p9)
}
  0x16   :  { %30 = dma.hbm_to_vmem [thread:$0]  %s6728_s2, 4096, %s25_s27, [#allocation5], %s5492_s29, %s5492_s29, %s5493_s30  }
  0x17   :  { %s5494_s13 = smov [#allocation9]  }
  0x18   :  { %s50_s14 = sshll.u32 %s5494_s13, 4  ;;  %s51_s14 = int_to_ptr.vmem [resolvable:$true] %s50_s14 }
  0x19   :  { %s5452_s15 = scalar_lea.vmem %s51_s14, 1024  ;;  %p5457_p11 = scmp.lt.s32.totalorder %s51_s14, %s51_s14 }
  0x1a   :  { %p5453_p10 = scmp.ne.s32.totalorder %s51_s14, %s5452_s15  ;;  %p5458_p12 = scmp.lt.s32.totalorder %s5452_s15, %s5452_s15 }
  0x1c   :  { %p5459_p13 = por %p5458_p12, %p5457_p11 }
  0x1e   :  { %p5460_p0 = pnand %p5459_p13, %p5453_p10 }
  0x20   :  { %5463 = shalt.err (!%p5460_p0)
}
  0x21   :  { %s5495_s3 = smov 64   ;;  %s5496_s16 = smov 4  }
  0x22   :  { %56 = dma.hbm_to_vmem [thread:$0]  %s6731_s5, 1024, %s51_s14, [#allocation8], %s5495_s3, %s5495_s3, %s5496_s16  }
  0x23   :  { %5484 = dma.done.wait [#allocation5], 4096  }
  0x24   :  { %5485 = vsyncadd [#allocation5], 4294963200 }
  0x25   :  { %5486 = dma.done.wait [#allocation8], 9216  }
  0x26   :  { %5487 = vsyncadd [#allocation8], 4294958080  ;;  %v6738_v0 = vmov 0   ;;  %v4902_v1 = vld [vmem:[%s6727_s1 + $0x4] ss:$16 sps:$4 sm:$0xff]   ;;  %vm143_vm0 = vcmask 130048   ;;  %v83_v41 = vlaneseq }
  0x27   :  { %188 = vmatprep.mubr.bf16.mxu0 %v6738_v0  ;;  %261 = vmatprep.mubr.bf16.mxu1 %v6738_v0  ;;  %v4904_v2 = vld [vmem:[%s6727_s1 + $0xc] ss:$16 sps:$4 sm:$0xff]   ;;  %v4906_v3 = vld [vmem:[%s6727_s1] ss:$16 sps:$4 sm:$0xff]   ;;  %v4907_v4 = vld [vmem:[%s6727_s1 + $0x8] ss:$16 sps:$4 sm:$0xff]  }
  0x28   :  { %170 = vmatprep.subr.bf16.mxu0 %v4902_v1  ;;  %243 = vmatprep.subr.bf16.mxu1 %v4904_v2  ;;  %v4908_v5 = vld [vmem:[%s6726_s0] sm:$0xff]   ;;  %v5571_v8 = vld [vmem:[#allocation7 + $0xe8] ss:$16 sps:$4 sm:$0xff]   ;;  %v5574_v9 = vld [vmem:[#allocation7 + $0xec] ss:$16 sps:$4 sm:$0xff]   ;;  %v5726_v42 = vshrl.u32 %v83_v41, 7 }
  0x29   :  { %171 = vmatpush1.bf16.msra.mxu0 %v4906_v3  ;;  %244 = vmatpush1.bf16.msra.mxu1 %v4907_v4  ;;  %v5567_v6 = vld [vmem:[#allocation7 + $0xe0] ss:$16 sps:$4 sm:$0xff]   ;;  %v5569_v7 = vld [vmem:[#allocation7 + $0xe4] ss:$16 sps:$4 sm:$0xff]   ;;  %v5584_v12 = vld [vmem:[#allocation7 + $0xcc] ss:$16 sps:$4 sm:$0xff]  }
  0x2a   :  { %530 = vmatprep.subr.bf16.mxu0 %v5569_v7  ;;  %v5578_v10 = vld [vmem:[#allocation7 + $0xc4] ss:$16 sps:$4 sm:$0xff]   ;;  %571 = vmatprep.subr.bf16.mxu1 %v5574_v9  ;;  %v5582_v11 = vld [vmem:[#allocation7 + $0xc0] ss:$16 sps:$4 sm:$0xff]   ;;  %v5588_v13 = vld [vmem:[#allocation7 + $0xc8] ss:$16 sps:$4 sm:$0xff]  }
  0x2b   :  { %v4921_v14 = vld [vmem:[%s6726_s0 + $0x8] sm:$0xff]   ;;  %v5596_v15 = vld [vmem:[#allocation7 + $0xa4] ss:$16 sps:$4 sm:$0xff]   ;;  %v5599_v16 = vld [vmem:[#allocation7 + $0xa0] ss:$16 sps:$4 sm:$0xff]   ;;  %6742 = vst [vmem:[#allocation14_spill] sm:$0xff] %v5726_v42 }
  0x2c   :  { %4472 = vmatmul.mubr.msk.bf16.vlgmr.msra.gmra.mxu0 %vm143_vm0, %v4908_v5  ;;  %4476 = vmatmul.mubr.msk.bf16.vlgmr.msra.gmra.mxu1 %vm143_vm0, %v4908_v5  ;;  %v5601_v17 = vld [vmem:[#allocation7 + $0xac] ss:$16 sps:$4 sm:$0xff]   ;;  %v5605_v18 = vld [vmem:[#allocation7 + $0xa8] ss:$16 sps:$4 sm:$0xff]   ;;  %v5607_v19 = vld [vmem:[#allocation7 + $0x84] ss:$16 sps:$4 sm:$0xff]  }
  0x2d   :  { %531 = vmatpush1.bf16.msra.mxu0 %v5567_v6  ;;  %572 = vmatpush1.bf16.msra.mxu1 %v5571_v8  ;;  %v5612_v20 = vld [vmem:[#allocation7 + $0x8c] ss:$16 sps:$4 sm:$0xff]   ;;  %v5615_v21 = vld [vmem:[#allocation7 + $0x80] ss:$16 sps:$4 sm:$0xff]   ;;  %v5620_v22 = vld [vmem:[#allocation7 + $0x88] ss:$16 sps:$4 sm:$0xff]  }
  0x2e   :  { %532 = vmatprep.subr.bf16.mxu0 %v5578_v10  ;;  %573 = vmatprep.subr.bf16.mxu1 %v5584_v12  ;;  %v5622_v23 = vld [vmem:[#allocation7 + $0x64] ss:$16 sps:$4 sm:$0xff]   ;;  %v5626_v24 = vld [vmem:[#allocation7 + $0x6c] ss:$16 sps:$4 sm:$0xff]   ;;  %v5632_v26 = vld [vmem:[#allocation7 + $0x60] ss:$16 sps:$4 sm:$0xff]  }
  0x2f   :  { %198 = vmatprep.mubr.bf16.mxu0 %v6738_v0  ;;  %271 = vmatprep.mubr.bf16.mxu1 %v6738_v0  ;;  %v4934_v25 = vld [vmem:[%s6726_s0 + $0x10] sm:$0xff]   ;;  %v5636_v27 = vld [vmem:[#allocation7 + $0x68] ss:$16 sps:$4 sm:$0xff]   ;;  %v5641_v29 = vld [vmem:[#allocation7 + $0x4c] ss:$16 sps:$4 sm:$0xff]   ;;  %v6734_v43 = vsub.s32 2, %v5726_v42 }
  0x30   :  { %v5638_v28 = vld [vmem:[#allocation7 + $0x44] ss:$16 sps:$4 sm:$0xff]   ;;  %v5645_v30 = vld [vmem:[#allocation7 + $0x40] ss:$16 sps:$4 sm:$0xff]   ;;  %v5648_v31 = vld [vmem:[#allocation7 + $0x48] ss:$16 sps:$4 sm:$0xff]  }
  0x31   :  { %533 = vmatpush1.bf16.msra.mxu0 %v5582_v11  ;;  %574 = vmatpush1.bf16.msra.mxu1 %v5588_v13  ;;  %v4947_v32 = vld [vmem:[%s6726_s0 + $0x18] sm:$0xff]   ;;  %v5656_v33 = vld [vmem:[#allocation7 + $0x24] ss:$16 sps:$4 sm:$0xff]   ;;  %v5660_v34 = vld [vmem:[#allocation7 + $0x20] ss:$16 sps:$4 sm:$0xff]   ;;  %v6737_v44 = vsub.s32 0, %v5726_v42 }
  0x32   :  { %534 = vmatprep.subr.bf16.mxu0 %v5596_v15  ;;  %575 = vmatprep.subr.bf16.mxu1 %v5601_v17  ;;  %v5662_v35 = vld [vmem:[#allocation7 + $0x2c] ss:$16 sps:$4 sm:$0xff]   ;;  %v5664_v36 = vld [vmem:[#allocation7 + $0x28] ss:$16 sps:$4 sm:$0xff]   ;;  %v5666_v37 = vld [vmem:[#allocation7 + $0x4] ss:$16 sps:$4 sm:$0xff]  }
  0x33   :  { %v5669_v38 = vld [vmem:[#allocation7 + $0xc] ss:$16 sps:$4 sm:$0xff]   ;;  %v5674_v39 = vld [vmem:[#allocation7] ss:$16 sps:$4 sm:$0xff]   ;;  %v5678_v40 = vld [vmem:[#allocation7 + $0x8] ss:$16 sps:$4 sm:$0xff]  }
  0x34   :  { %4473 = vmatmul.mubr.msk.bf16.gmra.mxu0 %vm143_vm0, %v4921_v14  ;;  %4477 = vmatmul.mubr.msk.bf16.gmra.mxu1 %vm143_vm0, %v4921_v14  ;;  %v6735_v45 = vsub.s32 3, %v5726_v42  ;;  %v81_v46 = vld [vmem:[%s6730_s4] sm:$0xf]  ;;  %v6736_v50 = vsub.s32 1, %v5726_v42  ;;  %vm5499_vm1 = vmmov 0   ;;  %s5500_s13 = smov [#allocation10]  }
  0x35   :  { %535 = vmatpush1.bf16.msra.mxu0 %v5599_v16  ;;  %208 = vmatprep.mubr.bf16.mxu0 %v6738_v0  ;;  %v5740_v49 = vrot.slane %v81_v46, %v6734_v43  ;;  %v86_v53 = vrot.slane %v81_v46, %v6737_v44  ;;  %s4454_s14 = sshll.u32 %s5500_s13, 4  ;;  %s4455_s14 = int_to_ptr.vmem [resolvable:$true] %s4454_s14 }
  0x36   :  { %576 = vmatpush1.bf16.msra.mxu1 %v5605_v18  ;;  %536 = vmatprep.subr.bf16.mxu0 %v5607_v19  ;;  %v5751_v54 = vrot.slane %v81_v46, %v6735_v45  ;;  %v90_v57 = vrot.slane %v81_v46, %v6736_v50  ;;  %s5464_s15 = scalar_lea.vmem %s4455_s14, 128  ;;  %p5469_p2 = scmp.lt.s32.totalorder %s4455_s14, %s4455_s14 }
  0x37   :  { %577 = vmatprep.subr.bf16.mxu1 %v5612_v20  ;;  %281 = vmatprep.mubr.bf16.mxu1 %v6738_v0  ;;  %p5465_p1 = scmp.ne.s32.totalorder %s4455_s14, %s5464_s15  ;;  %p5470_p3 = scmp.lt.s32.totalorder %s5464_s15, %s5464_s15 }
  0x39   :  { %537 = vmatpush1.bf16.msra.mxu0 %v5615_v21  ;;  %p5471_p4 = por %p5470_p3, %p5469_p2 }
  0x3a   :  { %578 = vmatpush1.bf16.msra.mxu1 %v5620_v22  ;;  %538 = vmatprep.subr.bf16.mxu0 %v5622_v23 }
  0x3b   :  { %579 = vmatprep.subr.bf16.mxu1 %v5626_v24  ;;  %p5472_p5 = pnand %p5471_p4, %p5465_p1 }
  0x3c   :  { %4474 = vmatmul.mubr.msk.bf16.gmra.mxu0 %vm143_vm0, %v4934_v25  ;;  %4478 = vmatmul.mubr.msk.bf16.gmra.mxu1 %vm143_vm0, %v4934_v25 }
  0x3d   :  { %539 = vmatpush1.bf16.msra.mxu0 %v5632_v26  ;;  %218 = vmatprep.mubr.bf16.mxu0 %v6738_v0 }
  0x3e   :  { %580 = vmatpush1.bf16.msra.mxu1 %v5636_v27  ;;  %540 = vmatprep.subr.bf16.mxu0 %v5638_v28 }
  0x3f   :  { %581 = vmatprep.subr.bf16.mxu1 %v5641_v29  ;;  %291 = vmatprep.mubr.bf16.mxu1 %v6738_v0 }
  0x41   :  { %541 = vmatpush1.bf16.msra.mxu0 %v5645_v30 }
  0x42   :  { %582 = vmatpush1.bf16.msra.mxu1 %v5648_v31  ;;  %542 = vmatprep.subr.bf16.mxu0 %v5656_v33 }
  0x43   :  { %583 = vmatprep.subr.bf16.mxu1 %v5662_v35 }
  0x44   :  { %4475 = vmatmul.mubr.msk.bf16.gmra.mxu0 %vm143_vm0, %v4947_v32  ;;  %4479 = vmatmul.mubr.msk.bf16.gmra.mxu1 %vm143_vm0, %v4947_v32 }
  0x45   :  { %543 = vmatpush1.bf16.msra.mxu0 %v5660_v34  ;;  %562 = vmatprep.mubr.bf16.mxu0 %v6738_v0 }
  0x46   :  { %584 = vmatpush1.bf16.msra.mxu1 %v5664_v36  ;;  %544 = vmatprep.subr.bf16.mxu0 %v5666_v37 }
  0x47   :  { %585 = vmatprep.subr.bf16.mxu1 %v5669_v38  ;;  %603 = vmatprep.mubr.bf16.mxu1 %v6738_v0 }
  0x49   :  { %545 = vmatpush1.bf16.msra.mxu0 %v5674_v39 }
  0x4a   :  { %586 = vmatpush1.bf16.msra.mxu1 %v5678_v40  ;;  %838 = vmatprep.subr.bf16.mxu0 %v5569_v7 }
  0x4b   :  { %879 = vmatprep.subr.bf16.mxu1 %v5574_v9 }
  0x4c   :  { %563 = vmatmul.mubr.bf16.vlgmr.msra.gmra.mxu0 %v6738_v0 }
  0x4d   :  { %604 = vmatmul.mubr.bf16.vlgmr.msra.gmra.mxu1 %v6738_v0  ;;  %839 = vmatpush1.bf16.msra.mxu0 %v5567_v6 }
  0x4e   :  { %880 = vmatpush1.bf16.msra.mxu1 %v5571_v8  ;;  %840 = vmatprep.subr.bf16.mxu0 %v5578_v10 }
  0x4f   :  { %881 = vmatprep.subr.bf16.mxu1 %v5584_v12  ;;  %870 = vmatprep.mubr.bf16.mxu0 %v6738_v0 }
  0x50   :  { %911 = vmatprep.mubr.bf16.mxu1 %v6738_v0 }
  0x51   :  { %841 = vmatpush1.bf16.msra.mxu0 %v5582_v11 }
  0x52   :  { %882 = vmatpush1.bf16.msra.mxu1 %v5588_v13  ;;  %842 = vmatprep.subr.bf16.mxu0 %v5596_v15 }
  0x53   :  { %883 = vmatprep.subr.bf16.mxu1 %v5601_v17 }
  0x55   :  { %843 = vmatpush1.bf16.msra.mxu0 %v5599_v16 }
  0x56   :  { %884 = vmatpush1.bf16.msra.mxu1 %v5605_v18  ;;  %844 = vmatprep.subr.bf16.mxu0 %v5607_v19 }
  0x57   :  { %885 = vmatprep.subr.bf16.mxu1 %v5612_v20 }
  0x59   :  { %845 = vmatpush1.bf16.msra.mxu0 %v5615_v21 }
  0x5a   :  { %886 = vmatpush1.bf16.msra.mxu1 %v5620_v22  ;;  %846 = vmatprep.subr.bf16.mxu0 %v5622_v23 }
  0x5b   :  { %887 = vmatprep.subr.bf16.mxu1 %v5626_v24 }
  0x5d   :  { %847 = vmatpush1.bf16.msra.mxu0 %v5632_v26 }
  0x5e   :  { %888 = vmatpush1.bf16.msra.mxu1 %v5636_v27  ;;  %848 = vmatprep.subr.bf16.mxu0 %v5638_v28 }
  0x5f   :  { %889 = vmatprep.subr.bf16.mxu1 %v5641_v29 }
  0x61   :  { %849 = vmatpush1.bf16.msra.mxu0 %v5645_v30 }
  0x62   :  { %890 = vmatpush1.bf16.msra.mxu1 %v5648_v31  ;;  %850 = vmatprep.subr.bf16.mxu0 %v5656_v33 }
  0x63   :  { %891 = vmatprep.subr.bf16.mxu1 %v5662_v35 }
  0x65   :  { %851 = vmatpush1.bf16.msra.mxu0 %v5660_v34 }
  0x66   :  { %892 = vmatpush1.bf16.msra.mxu1 %v5664_v36  ;;  %852 = vmatprep.subr.bf16.mxu0 %v5666_v37 }
  0x67   :  { %893 = vmatprep.subr.bf16.mxu1 %v5669_v38 }
  0x69   :  { %853 = vmatpush1.bf16.msra.mxu0 %v5674_v39 }
  0x6a   :  { %894 = vmatpush1.bf16.msra.mxu1 %v5678_v40  ;;  %1146 = vmatprep.subr.bf16.mxu0 %v5569_v7 }
  0x6b   :  { %1187 = vmatprep.subr.bf16.mxu1 %v5574_v9 }
  0xec   :  { %v5734_v47 = vpop.f32.mrf.mxu0  ;;  %v5736_v48 = vpop.f32.mrf.mxu1 }
  0xee   :  { %v5743_v51 = vpop.f32.mrf.mxu0  ;;  %v5745_v52 = vpop.f32.mrf.mxu1 }
  0xf0   :  { %v194_v55 = vpop.f32.mrf.mxu0  ;;  %v267_v56 = vpop.f32.mrf.mxu1 }
  0xf1   :  { %v5755_v58 = vadd.f32 %v194_v55, %v86_v53  ;;  %v5758_v59 = vadd.f32 %v267_v56, %v5740_v49 }
  0xf2   :  { %v196_v60 = vpop.f32.mrf.mxu0  ;;  %v269_v61 = vpop.f32.mrf.mxu1 }
  0xf3   :  { %v5760_v62 = vadd.f32 %v196_v60, %v90_v57  ;;  %v5763_v63 = vadd.f32 %v269_v61, %v5751_v54 }
  0xf4   :  { %v200_v1 = vpop.f32.mrf.mxu0  ;;  %v273_v2 = vpop.f32.mrf.mxu1 }
  0xf5   :  { %v5765_v3 = vadd.f32 %v200_v1, %v86_v53  ;;  %v5768_v4 = vadd.f32 %v273_v2, %v5740_v49 }
  0xf6   :  { %v202_v5 = vpop.f32.mrf.mxu0  ;;  %v275_v14 = vpop.f32.mrf.mxu1 }
  0xf7   :  { %6743 = vst [vmem:[#allocation15_spill] sm:$0xff] %v5768_v4  ;;  %v5770_v25 = vadd.f32 %v202_v5, %v90_v57  ;;  %v5773_v32 = vadd.f32 %v275_v14, %v5751_v54 }
  0xf8   :  { %v204_v41 = vpop.f32.mrf.mxu0  ;;  %v277_v46 = vpop.f32.mrf.mxu1 }
  0xf9   :  { %v5775_v55 = vadd.f32 %v204_v41, %v86_v53  ;;  %v5778_v56 = vadd.f32 %v277_v46, %v5740_v49 }
  0xfa   :  { %v206_v60 = vpop.f32.mrf.mxu0  ;;  %v279_v61 = vpop.f32.mrf.mxu1 }
  0xfb   :  { %6744 = vst [vmem:[#allocation16_spill] sm:$0xff] %v5775_v55  ;;  %6745 = vst [vmem:[#allocation17_spill] sm:$0xff] %v5778_v56  ;;  %v5780_v1 = vadd.f32 %v206_v60, %v90_v57  ;;  %v5783_v2 = vadd.f32 %v279_v61, %v5751_v54 }
  0xfc   :  { %v210_v43 = vpop.f32.mrf.mxu0  ;;  %v283_v5 = vpop.f32.mrf.mxu1 }
  0xfd   :  { %6746 = vst [vmem:[#allocation18_spill] sm:$0xff] %v5780_v1  ;;  %6747 = vst [vmem:[#allocation19_spill] sm:$0xff] %v5783_v2  ;;  %v5785_v45 = vadd.f32 %v210_v43, %v86_v53  ;;  %v5788_v14 = vadd.f32 %v283_v5, %v5740_v49 }
  0xfe   :  { %v212_v50 = vpop.f32.mrf.mxu0  ;;  %v285_v41 = vpop.f32.mrf.mxu1 }
  0xff   :  { %6748 = vst [vmem:[#allocation20_spill] sm:$0xff] %v5785_v45  ;;  %6749 = vst [vmem:[#allocation21_spill] sm:$0xff] %v5788_v14  ;;  %v5790_v44 = vadd.f32 %v212_v50, %v90_v57  ;;  %v5793_v46 = vadd.f32 %v285_v41, %v5751_v54 }
 0x100   :  { %v214_v0 = vpop.f32.mrf.mxu0  ;;  %v287_v60 = vpop.f32.mrf.mxu1 }
 0x101   :  { %6750 = vst [vmem:[#allocation22_spill] sm:$0xff] %v5790_v44  ;;  %6751 = vst [vmem:[#allocation23_spill] sm:$0xff] %v5793_v46  ;;  %v5795_v42 = vadd.f32 %v214_v0, %v86_v53  ;;  %v5798_v61 = vadd.f32 %v287_v60, %v5740_v49 }
 0x102   :  { %v216_v56 = vpop.f32.mrf.mxu0  ;;  %v289_v43 = vpop.f32.mrf.mxu1 }
 0x103   :  { %6752 = vst [vmem:[#allocation24_spill] sm:$0xff] %v5795_v42  ;;  %6753 = vst [vmem:[#allocation25_spill] sm:$0xff] %v5798_v61  ;;  %v5800_v45 = vadd.f32 %v216_v56, %v90_v57  ;;  %v5803_v5 = vadd.f32 %v289_v43, %v5751_v54 }
 0x104   :  { %v220_v14 = vpop.f32.mrf.mxu0  ;;  %v293_v50 = vpop.f32.mrf.mxu1 }
 0x105   :  { %6754 = vst [vmem:[#allocation26_spill] sm:$0xff] %v5800_v45  ;;  %6755 = vst [vmem:[#allocation27_spill] sm:$0xff] %v5803_v5  ;;  %v5805_v44 = vadd.f32 %v220_v14, %v86_v53  ;;  %v5808_v41 = vadd.f32 %v293_v50, %v5740_v49 }
 0x106   :  { %v222_v46 = vpop.f32.mrf.mxu0  ;;  %v295_v0 = vpop.f32.mrf.mxu1 }
 0x107   :  { %6756 = vst [vmem:[#allocation28_spill] sm:$0xff] %v5805_v44  ;;  %6757 = vst [vmem:[#allocation29_spill] sm:$0xff] %v5808_v41  ;;  %v5810_v42 = vadd.f32 %v222_v46, %v90_v57  ;;  %v5813_v60 = vadd.f32 %v295_v0, %v5751_v54  ;;  %v191_v44 = vadd.f32 %v5734_v47, %v86_v53 }
 0x108   :  { %v224_v61 = vpop.f32.mrf.mxu0  ;;  %v297_v56 = vpop.f32.mrf.mxu1  ;;  %v193_v0 = vadd.f32 %v5743_v51, %v90_v57  ;;  %v264_v51 = vadd.f32 %v5736_v48, %v5740_v49 }
 0x109   :  { %6758 = vst [vmem:[#allocation30_spill] sm:$0xff] %v5810_v42  ;;  %6759 = vst [vmem:[#allocation31_spill] sm:$0xff] %v5813_v60  ;;  %v5815_v45 = vadd.f32 %v224_v61, %v86_v53  ;;  %v5818_v43 = vadd.f32 %v297_v56, %v5740_v49  ;;  %v266_v53 = vadd.f32 %v5745_v52, %v5751_v54 }
 0x10a   :  { %v226_v5 = vpop.f32.mrf.mxu0  ;;  %v299_v14 = vpop.f32.mrf.mxu1 }
 0x10b   :  { %6760 = vst [vmem:[#allocation32_spill] sm:$0xff] %v5815_v45  ;;  %6761 = vst [vmem:[#allocation33_spill] sm:$0xff] %v5818_v43  ;;  %v5821_v50 = vadd.f32 %v226_v5, %v90_v57  ;;  %v5824_v41 = vadd.f32 %v299_v14, %v5751_v54 }
 0x10c   :  { %v564_v46 = vpop.f32.mrf.mxu0 }
 0x10d   :  { %v612_v60 = vadd.f32 %v564_v46, %v191_v44  ;;  %v605_v42 = vpop.f32.mrf.mxu1 }
 0x10e   :  { %v566_v2 = vpop.f32.mrf.mxu0  ;;  %v614_v14 = vadd.f32 %v605_v42, %v264_v51 }
 0x10f   :  { %v4512_v61 = vmul.f32 -1.442695, %v612_v60  ;;  %v613_v45 = vadd.f32 %v566_v2, %v193_v0  ;;  %v607_v1 = vpop.f32.mrf.mxu1 }
 0x110   :  { %v568_v56 = vpop.f32.mrf.mxu0  ;;  %v615_v5 = vadd.f32 %v607_v1, %v266_v53 }
 0x111   :  { %5116 = vpow2.f32 %v4512_v61  ;;  %v4513_v43 = vmul.f32 -1.442695, %v613_v45  ;;  %v609_v55 = vpop.f32.mrf.mxu1  ;;  %v6762_v56 = vmov 0  }
 0x112   :  { %v569_v4 = vpop.f32.mrf.mxu0  ;;  %v4514_v44 = vmul.f32 -1.442695, %v615_v5 }
 0x113   :  { %5118 = vpow2.f32 %v4513_v43  ;;  %v610_v47 = vpop.f32.mrf.mxu1 }
 0x114   :  { %5120 = vpow2.f32 %v4514_v44 }
 0x11e   :  { %v5117_v57 = vpop.eup %5116 }
 0x11f   :  { %v622_v60 = vadd.f32 1.0, %v5117_v57 }
 0x120   :  { %v5119_v2 = vpop.eup %5118 }
 0x121   :  { %5122 = vrcp.f32 %v622_v60  ;;  %v623_v46 = vadd.f32 1.0, %v5119_v2  ;;  %v5121_v45 = vpop.eup %5120 }
 0x122   :  { %5124 = vtanh.f32 %v614_v14  ;;  %v632_v0 = vadd.f32 1.0, %v5121_v45 }
 0x123   :  { %5126 = vrcp.f32 %v623_v46 }
 0x124   :  { %5128 = vrcp.f32 %v632_v0 }
 0x12e   :  { %v5123_v4 = vpop.eup %5122 }
 0x12f   :  { %v5125_v55 = vpop.eup %5124 }
 0x130   :  { %v5127_v43 = vpop.eup %5126  ;;  %v636_v54 = vmul.f32 %v5125_v55, %v5123_v4 }
 0x131   :  { %v635_v52 = vmul.f32 0.0, %v5127_v43  ;;  %v5129_v42 = vpop.eup %5128 }
 0x133   :  { %v5831_v1 = vadd.f32 %v636_v54, %v635_v52 }
 0x135   :  { %5130 = vtanh.f32 %v5831_v1 }
 0x142   :  { %v5131_v48 = vpop.eup %5130 }
 0x143   :  { %v639_v49 = vmul.f32 %v5131_v48, %v5129_v42 }
 0x145   :  { %v640_v61 = vpack.c.bf16 %v639_v49, %v639_v49 }
 0x147   :  { %641 = vst [vmem:[#allocation3] sm:$0xf] %v640_v61  ;;  %871 = vmatmul.mubr.bf16.vlgmr.msra.gmra.mxu0 %v640_v61  ;;  %912 = vmatmul.mubr.bf16.vlgmr.msra.gmra.mxu1 %v640_v61 }
 0x148   :  { %1147 = vmatpush1.bf16.msra.mxu0 %v5567_v6  ;;  %1188 = vmatpush1.bf16.msra.mxu1 %v5571_v8 }
 0x149   :  { %1148 = vmatprep.subr.bf16.mxu0 %v5578_v10  ;;  %1189 = vmatprep.subr.bf16.mxu1 %v5584_v12 }
 0x14a   :  { %1178 = vmatprep.mubr.bf16.mxu0 %v6762_v56  ;;  %1219 = vmatprep.mubr.bf16.mxu1 %v6762_v56 }
 0x14c   :  { %1149 = vmatpush1.bf16.msra.mxu0 %v5582_v11  ;;  %1190 = vmatpush1.bf16.msra.mxu1 %v5588_v13 }
 0x14d   :  { %1150 = vmatprep.subr.bf16.mxu0 %v5596_v15  ;;  %1191 = vmatprep.subr.bf16.mxu1 %v5601_v17 }
 0x150   :  { %1151 = vmatpush1.bf16.msra.mxu0 %v5599_v16  ;;  %1192 = vmatpush1.bf16.msra.mxu1 %v5605_v18 }
 0x151   :  { %1152 = vmatprep.subr.bf16.mxu0 %v5607_v19  ;;  %1193 = vmatprep.subr.bf16.mxu1 %v5612_v20 }
 0x154   :  { %1153 = vmatpush1.bf16.msra.mxu0 %v5615_v21  ;;  %1194 = vmatpush1.bf16.msra.mxu1 %v5620_v22 }
 0x155   :  { %1154 = vmatprep.subr.bf16.mxu0 %v5622_v23  ;;  %1195 = vmatprep.subr.bf16.mxu1 %v5626_v24 }
 0x158   :  { %1155 = vmatpush1.bf16.msra.mxu0 %v5632_v26  ;;  %1196 = vmatpush1.bf16.msra.mxu1 %v5636_v27 }
 0x159   :  { %1156 = vmatprep.subr.bf16.mxu0 %v5638_v28  ;;  %1197 = vmatprep.subr.bf16.mxu1 %v5641_v29 }
 0x15c   :  { %1157 = vmatpush1.bf16.msra.mxu0 %v5645_v30  ;;  %1198 = vmatpush1.bf16.msra.mxu1 %v5648_v31 }
 0x15d   :  { %1158 = vmatprep.subr.bf16.mxu0 %v5656_v33  ;;  %1199 = vmatprep.subr.bf16.mxu1 %v5662_v35 }
 0x160   :  { %1159 = vmatpush1.bf16.msra.mxu0 %v5660_v34  ;;  %1200 = vmatpush1.bf16.msra.mxu1 %v5664_v36 }
 0x161   :  { %1160 = vmatprep.subr.bf16.mxu0 %v5666_v37  ;;  %1201 = vmatprep.subr.bf16.mxu1 %v5669_v38 }
 0x164   :  { %1161 = vmatpush1.bf16.msra.mxu0 %v5674_v39  ;;  %1202 = vmatpush1.bf16.msra.mxu1 %v5678_v40 }
 0x165   :  { %1454 = vmatprep.subr.bf16.mxu0 %v5569_v7  ;;  %1495 = vmatprep.subr.bf16.mxu1 %v5574_v9 }
 0x207   :  { %v872_v47 = vpop.f32.mrf.mxu0  ;;  %v913_v53 = vpop.f32.mrf.mxu1 }
 0x208   :  { %v920_v5 = vadd.f32 %v872_v47, %v5755_v58  ;;  %v922_v9 = vadd.f32 %v913_v53, %v5758_v59 }
 0x209   :  { %v874_v51 = vpop.f32.mrf.mxu0  ;;  %v915_v44 = vpop.f32.mrf.mxu1 }
 0x20a   :  { %v4547_v57 = vmul.f32 -1.442695, %v920_v5  ;;  %v921_v14 = vadd.f32 %v874_v51, %v5760_v62  ;;  %v923_v7 = vadd.f32 %v915_v44, %v5763_v63  ;;  %v5922_v44 = vld [vmem:[#allocation7 + $0xe0] ss:$16 sps:$4 sm:$0xff]  }
 0x20b   :  { %v876_v60 = vpop.f32.mrf.mxu0  ;;  %v917_v2 = vpop.f32.mrf.mxu1 }
 0x20c   :  { %5132 = vpow2.f32 %v4547_v57  ;;  %v4548_v46 = vmul.f32 -1.442695, %v921_v14  ;;  %v4549_v55 = vmul.f32 -1.442695, %v923_v7  ;;  %v5924_v57 = vld [vmem:[#allocation7 + $0xe8] ss:$16 sps:$4 sm:$0xff]  }
 0x20d   :  { %v877_v45 = vpop.f32.mrf.mxu0  ;;  %v918_v4 = vpop.f32.mrf.mxu1  ;;  %v5930_v14 = vld [vmem:[#allocation7 + $0xc4] ss:$16 sps:$4 sm:$0xff]   ;;  %v5932_v60 = vld [vmem:[#allocation7 + $0xcc] ss:$16 sps:$4 sm:$0xff]   ;;  %v5934_v2 = vld [vmem:[#allocation7 + $0xc0] ss:$16 sps:$4 sm:$0xff]  }
 0x20e   :  { %5134 = vpow2.f32 %v4548_v46  ;;  %v5936_v46 = vld [vmem:[#allocation7 + $0xc8] ss:$16 sps:$4 sm:$0xff]   ;;  %v5942_v45 = vld [vmem:[#allocation7 + $0xa4] ss:$16 sps:$4 sm:$0xff]   ;;  %v5944_v4 = vld [vmem:[#allocation7 + $0xac] ss:$16 sps:$4 sm:$0xff]  }
 0x20f   :  { %5136 = vtanh.f32 %v922_v9  ;;  %v5946_v7 = vld [vmem:[#allocation7 + $0xa0] ss:$16 sps:$4 sm:$0xff]   ;;  %v5948_v9 = vld [vmem:[#allocation7 + $0xa8] ss:$16 sps:$4 sm:$0xff]  }
 0x210   :  { %5138 = vpow2.f32 %v4549_v55  ;;  %v5954_v55 = vld [vmem:[#allocation7 + $0x84] ss:$16 sps:$4 sm:$0xff]  }
 0x219   :  { %v5133_v43 = vpop.eup %5132 }
 0x21a   :  { %v930_v0 = vadd.f32 1.0, %v5133_v43  ;;  %v5956_v43 = vld [vmem:[#allocation7 + $0x8c] ss:$16 sps:$4 sm:$0xff]  }
 0x21b   :  { %v5135_v58 = vpop.eup %5134 }
 0x21c   :  { %5140 = vrcp.f32 %v930_v0  ;;  %v931_v52 = vadd.f32 1.0, %v5135_v58  ;;  %v5137_v62 = vpop.eup %5136  ;;  %v5958_v0 = vld [vmem:[#allocation7 + $0x80] ss:$16 sps:$4 sm:$0xff]   ;;  %v5960_v58 = vld [vmem:[#allocation7 + $0x88] ss:$16 sps:$4 sm:$0xff]  }
 0x21d   :  { %v5139_v54 = vpop.eup %5138 }
 0x21e   :  { %5142 = vrcp.f32 %v931_v52  ;;  %v940_v61 = vadd.f32 1.0, %v5139_v54  ;;  %v5964_v52 = vld [vmem:[#allocation7 + $0x64] ss:$16 sps:$4 sm:$0xff]   ;;  %v5970_v54 = vld [vmem:[#allocation7 + $0x60] ss:$16 sps:$4 sm:$0xff]  }
 0x220   :  { %5144 = vrcp.f32 %v940_v61  ;;  %v5982_v61 = vld [vmem:[#allocation7 + $0x40] ss:$16 sps:$4 sm:$0xff]  }
 0x229   :  { %v5141_v42 = vpop.eup %5140 }
 0x22a   :  { %v944_v48 = vmul.f32 %v5141_v42, %v5137_v62  ;;  %v5966_v62 = vld [vmem:[#allocation7 + $0x6c] ss:$16 sps:$4 sm:$0xff]   ;;  %v5972_v42 = vld [vmem:[#allocation7 + $0x68] ss:$16 sps:$4 sm:$0xff]  }
 0x22b   :  { %v5143_v49 = vpop.eup %5142 }
 0x22c   :  { %v943_v47 = vmul.f32 %v5143_v49, %v5831_v1  ;;  %v5920_v1 = vld [vmem:[#allocation7 + $0xec] ss:$16 sps:$4 sm:$0xff]  }
 0x22d   :  { %v5145_v59 = vpop.eup %5144  ;;  %v5978_v49 = vld [vmem:[#allocation7 + $0x4c] ss:$16 sps:$4 sm:$0xff]  }
 0x22e   :  { %v5873_v63 = vadd.f32 %v944_v48, %v943_v47  ;;  %v5976_v48 = vld [vmem:[#allocation7 + $0x44] ss:$16 sps:$4 sm:$0xff]   ;;  %v5984_v47 = vld [vmem:[#allocation7 + $0x48] ss:$16 sps:$4 sm:$0xff]  }
 0x230   :  { %5146 = vtanh.f32 %v5873_v63 }
 0x23d   :  { %v5147_v53 = vpop.eup %5146 }
 0x23e   :  { %v947_v5 = vmul.f32 %v5147_v53, %v5145_v59  ;;  %v5990_v59 = vld [vmem:[#allocation7 + $0x2c] ss:$16 sps:$4 sm:$0xff]   ;;  %v5994_v53 = vld [vmem:[#allocation7 + $0x20] ss:$16 sps:$4 sm:$0xff]  }
 0x240   :  { %v948_v51 = vpack.c.bf16 %v947_v5, %v947_v5  ;;  %v5996_v5 = vld [vmem:[#allocation7 + $0x28] ss:$16 sps:$4 sm:$0xff]  }
 0x242   :  { %949 = vst [vmem:[#allocation3 + $0x4] sm:$0xf] %v948_v51  ;;  %1179 = vmatmul.mubr.bf16.vlgmr.msra.gmra.mxu0 %v948_v51  ;;  %1220 = vmatmul.mubr.bf16.vlgmr.msra.gmra.mxu1 %v948_v51  ;;  %v6000_v51 = vld [vmem:[#allocation7 + $0x4] ss:$16 sps:$4 sm:$0xff]  }
 0x243   :  { %1455 = vmatpush1.bf16.msra.mxu0 %v5567_v6  ;;  %1496 = vmatpush1.bf16.msra.mxu1 %v5571_v8 }
 0x244   :  { %1456 = vmatprep.subr.bf16.mxu0 %v5578_v10  ;;  %1497 = vmatprep.subr.bf16.mxu1 %v5584_v12 }
 0x245   :  { %1486 = vmatprep.mubr.bf16.mxu0 %v6762_v56  ;;  %1527 = vmatprep.mubr.bf16.mxu1 %v6762_v56 }
 0x247   :  { %1457 = vmatpush1.bf16.msra.mxu0 %v5582_v11  ;;  %1498 = vmatpush1.bf16.msra.mxu1 %v5588_v13 }
 0x248   :  { %1458 = vmatprep.subr.bf16.mxu0 %v5596_v15  ;;  %1499 = vmatprep.subr.bf16.mxu1 %v5601_v17 }
 0x24b   :  { %1459 = vmatpush1.bf16.msra.mxu0 %v5599_v16  ;;  %1500 = vmatpush1.bf16.msra.mxu1 %v5605_v18 }
 0x24c   :  { %1460 = vmatprep.subr.bf16.mxu0 %v5607_v19  ;;  %1501 = vmatprep.subr.bf16.mxu1 %v5612_v20 }
 0x24f   :  { %1461 = vmatpush1.bf16.msra.mxu0 %v5615_v21  ;;  %1502 = vmatpush1.bf16.msra.mxu1 %v5620_v22  ;;  %v6763_v22 = vld [vmem:[#allocation15_spill] sm:$0xff] }
 0x250   :  { %1462 = vmatprep.subr.bf16.mxu0 %v5622_v23  ;;  %1503 = vmatprep.subr.bf16.mxu1 %v5626_v24 }
 0x253   :  { %1463 = vmatpush1.bf16.msra.mxu0 %v5632_v26  ;;  %1504 = vmatpush1.bf16.msra.mxu1 %v5636_v27 }
 0x254   :  { %1464 = vmatprep.subr.bf16.mxu0 %v5638_v28  ;;  %1505 = vmatprep.subr.bf16.mxu1 %v5641_v29 }
 0x257   :  { %1465 = vmatpush1.bf16.msra.mxu0 %v5645_v30  ;;  %1506 = vmatpush1.bf16.msra.mxu1 %v5648_v31 }
 0x258   :  { %1466 = vmatprep.subr.bf16.mxu0 %v5656_v33  ;;  %1507 = vmatprep.subr.bf16.mxu1 %v5662_v35 }
 0x25b   :  { %1467 = vmatpush1.bf16.msra.mxu0 %v5660_v34  ;;  %1508 = vmatpush1.bf16.msra.mxu1 %v5664_v36 }
 0x25c   :  { %1468 = vmatprep.subr.bf16.mxu0 %v5666_v37  ;;  %1509 = vmatprep.subr.bf16.mxu1 %v5669_v38 }
 0x25f   :  { %1469 = vmatpush1.bf16.msra.mxu0 %v5674_v39  ;;  %1510 = vmatpush1.bf16.msra.mxu1 %v5678_v40 }
 0x260   :  { %1803 = vmatprep.subr.bf16.mxu1 %v5920_v1 }
 0x302   :  { %v1180_v6 = vpop.f32.mrf.mxu0  ;;  %v1221_v8 = vpop.f32.mrf.mxu1 }
 0x303   :  { %v1228_v10 = vadd.f32 %v1180_v6, %v5765_v3  ;;  %v1230_v23 = vadd.f32 %v1221_v8, %v6763_v22  ;;  %v6002_v6 = vld [vmem:[#allocation7 + $0xc] ss:$16 sps:$4 sm:$0xff]   ;;  %v6006_v8 = vld [vmem:[#allocation7] ss:$16 sps:$4 sm:$0xff]  }
 0x304   :  { %v1182_v11 = vpop.f32.mrf.mxu0  ;;  %v1223_v12 = vpop.f32.mrf.mxu1 }
 0x305   :  { %v4582_v13 = vmul.f32 -1.442695, %v1228_v10  ;;  %v1229_v15 = vadd.f32 %v1182_v11, %v5770_v25  ;;  %v1231_v21 = vadd.f32 %v1223_v12, %v5773_v32  ;;  %v5918_v32 = vld [vmem:[#allocation7 + $0xe4] ss:$16 sps:$4 sm:$0xff]   ;;  %v6008_v10 = vld [vmem:[#allocation7 + $0x8] ss:$16 sps:$4 sm:$0xff]  }
 0x306   :  { %v1184_v16 = vpop.f32.mrf.mxu0  ;;  %v1225_v17 = vpop.f32.mrf.mxu1  ;;  %1762 = vmatprep.subr.bf16.mxu0 %v5918_v32 }
 0x307   :  { %5148 = vpow2.f32 %v4582_v13  ;;  %v4583_v18 = vmul.f32 -1.442695, %v1229_v15  ;;  %v4584_v24 = vmul.f32 -1.442695, %v1231_v21  ;;  %v6764_v13 = vld [vmem:[#allocation16_spill] sm:$0xff] }
 0x308   :  { %v1185_v19 = vpop.f32.mrf.mxu0  ;;  %v1226_v20 = vpop.f32.mrf.mxu1 }
 0x309   :  { %5150 = vpow2.f32 %v4583_v18  ;;  %v6765_v19 = vld [vmem:[#allocation18_spill] sm:$0xff] }
 0x30a   :  { %5152 = vtanh.f32 %v1230_v23 }
 0x30b   :  { %5154 = vpow2.f32 %v4584_v24 }
 0x314   :  { %v5149_v26 = vpop.eup %5148 }
 0x315   :  { %v1238_v27 = vadd.f32 1.0, %v5149_v26 }
 0x316   :  { %v5151_v28 = vpop.eup %5150 }
 0x317   :  { %5156 = vrcp.f32 %v1238_v27  ;;  %v1239_v29 = vadd.f32 1.0, %v5151_v28  ;;  %v5153_v30 = vpop.eup %5152  ;;  %v6766_v27 = vld [vmem:[#allocation19_spill] sm:$0xff] }
 0x318   :  { %v5155_v31 = vpop.eup %5154 }
 0x319   :  { %5158 = vrcp.f32 %v1239_v29  ;;  %v1248_v36 = vadd.f32 1.0, %v5155_v31  ;;  %v6767_v29 = vld [vmem:[#allocation17_spill] sm:$0xff] }
 0x31b   :  { %5160 = vrcp.f32 %v1248_v36 }
 0x324   :  { %v5157_v33 = vpop.eup %5156 }
 0x325   :  { %v1252_v34 = vmul.f32 %v5157_v33, %v5153_v30 }
 0x326   :  { %v5159_v35 = vpop.eup %5158 }
 0x327   :  { %v1251_v37 = vmul.f32 %v5159_v35, %v5873_v63  ;;  %v5988_v63 = vld [vmem:[#allocation7 + $0x24] ss:$16 sps:$4 sm:$0xff]  }
 0x328   :  { %v5161_v39 = vpop.eup %5160 }
 0x329   :  { %v5913_v38 = vadd.f32 %v1252_v34, %v1251_v37 }
 0x32b   :  { %5162 = vtanh.f32 %v5913_v38 }
 0x338   :  { %v5163_v40 = vpop.eup %5162 }
 0x339   :  { %v1255_v3 = vmul.f32 %v5163_v40, %v5161_v39 }
 0x33b   :  { %v1256_v25 = vpack.c.bf16 %v1255_v3, %v1255_v3 }
 0x33d   :  { %1257 = vst [vmem:[#allocation3 + $0x8] sm:$0xf] %v1256_v25  ;;  %1487 = vmatmul.mubr.bf16.vlgmr.msra.gmra.mxu0 %v1256_v25  ;;  %1528 = vmatmul.mubr.bf16.vlgmr.msra.gmra.mxu1 %v1256_v25 }
 0x33e   :  { %1794 = vmatprep.mubr.bf16.mxu0 %v6762_v56  ;;  %1835 = vmatprep.mubr.bf16.mxu1 %v6762_v56 }
 0x33f   :  { %1763 = vmatpush1.bf16.msra.mxu0 %v5922_v44  ;;  %1804 = vmatpush1.bf16.msra.mxu1 %v5924_v57 }
 0x340   :  { %1764 = vmatprep.subr.bf16.mxu0 %v5930_v14  ;;  %1805 = vmatprep.subr.bf16.mxu1 %v5932_v60 }
 0x343   :  { %1765 = vmatpush1.bf16.msra.mxu0 %v5934_v2  ;;  %1806 = vmatpush1.bf16.msra.mxu1 %v5936_v46 }
 0x344   :  { %1766 = vmatprep.subr.bf16.mxu0 %v5942_v45  ;;  %1807 = vmatprep.subr.bf16.mxu1 %v5944_v4 }
 0x347   :  { %1767 = vmatpush1.bf16.msra.mxu0 %v5946_v7  ;;  %1808 = vmatpush1.bf16.msra.mxu1 %v5948_v9 }
 0x348   :  { %1768 = vmatprep.subr.bf16.mxu0 %v5954_v55  ;;  %1809 = vmatprep.subr.bf16.mxu1 %v5956_v43 }
 0x34b   :  { %1769 = vmatpush1.bf16.msra.mxu0 %v5958_v0  ;;  %1810 = vmatpush1.bf16.msra.mxu1 %v5960_v58 }
 0x34c   :  { %1770 = vmatprep.subr.bf16.mxu0 %v5964_v52  ;;  %1811 = vmatprep.subr.bf16.mxu1 %v5966_v62 }
 0x34f   :  { %1771 = vmatpush1.bf16.msra.mxu0 %v5970_v54  ;;  %1812 = vmatpush1.bf16.msra.mxu1 %v5972_v42 }
 0x350   :  { %1772 = vmatprep.subr.bf16.mxu0 %v5976_v48  ;;  %1813 = vmatprep.subr.bf16.mxu1 %v5978_v49 }
 0x353   :  { %1773 = vmatpush1.bf16.msra.mxu0 %v5982_v61  ;;  %1814 = vmatpush1.bf16.msra.mxu1 %v5984_v47 }
 0x354   :  { %1774 = vmatprep.subr.bf16.mxu0 %v5988_v63  ;;  %1815 = vmatprep.subr.bf16.mxu1 %v5990_v59 }
 0x357   :  { %1775 = vmatpush1.bf16.msra.mxu0 %v5994_v53  ;;  %1816 = vmatpush1.bf16.msra.mxu1 %v5996_v5 }
 0x358   :  { %1776 = vmatprep.subr.bf16.mxu0 %v6000_v51  ;;  %1817 = vmatprep.subr.bf16.mxu1 %v6002_v6 }
 0x35b   :  { %1777 = vmatpush1.bf16.msra.mxu0 %v6006_v8  ;;  %1818 = vmatpush1.bf16.msra.mxu1 %v6008_v10 }
 0x35c   :  { %2070 = vmatprep.subr.bf16.mxu0 %v5918_v32  ;;  %2111 = vmatprep.subr.bf16.mxu1 %v5920_v1 }
 0x3fd   :  { %v1488_v11 = vpop.f32.mrf.mxu0  ;;  %v1529_v12 = vpop.f32.mrf.mxu1 }
 0x3fe   :  { %v1536_v15 = vadd.f32 %v1488_v11, %v6764_v13  ;;  %v1538_v30 = vadd.f32 %v1529_v12, %v6767_v29 }
 0x3ff   :  { %v1490_v16 = vpop.f32.mrf.mxu0  ;;  %v1531_v17 = vpop.f32.mrf.mxu1 }
 0x400   :  { %v4617_v18 = vmul.f32 -1.442695, %v1536_v15  ;;  %v1537_v20 = vadd.f32 %v1490_v16, %v6765_v19  ;;  %v1539_v28 = vadd.f32 %v1531_v17, %v6766_v27 }
 0x401   :  { %v1492_v21 = vpop.f32.mrf.mxu0  ;;  %v1533_v22 = vpop.f32.mrf.mxu1 }
 0x402   :  { %5164 = vpow2.f32 %v4617_v18  ;;  %v4618_v23 = vmul.f32 -1.442695, %v1537_v20  ;;  %v4619_v31 = vmul.f32 -1.442695, %v1539_v28  ;;  %v6768_v20 = vld [vmem:[#allocation20_spill] sm:$0xff] }
 0x403   :  { %v1493_v24 = vpop.f32.mrf.mxu0  ;;  %v1534_v26 = vpop.f32.mrf.mxu1 }
 0x404   :  { %5166 = vpow2.f32 %v4618_v23  ;;  %v6769_v26 = vld [vmem:[#allocation22_spill] sm:$0xff] }
 0x405   :  { %5168 = vtanh.f32 %v1538_v30 }
 0x406   :  { %5170 = vpow2.f32 %v4619_v31 }
 0x40f   :  { %v5165_v33 = vpop.eup %5164 }
 0x410   :  { %v1546_v34 = vadd.f32 1.0, %v5165_v33 }
 0x411   :  { %v5167_v35 = vpop.eup %5166 }
 0x412   :  { %5172 = vrcp.f32 %v1546_v34  ;;  %v1547_v36 = vadd.f32 1.0, %v5167_v35  ;;  %v5169_v37 = vpop.eup %5168  ;;  %v6770_v34 = vld [vmem:[#allocation23_spill] sm:$0xff] }
 0x413   :  { %v5171_v39 = vpop.eup %5170 }
 0x414   :  { %5174 = vrcp.f32 %v1547_v36  ;;  %v1556_v11 = vadd.f32 1.0, %v5171_v39  ;;  %v6771_v36 = vld [vmem:[#allocation21_spill] sm:$0xff] }
 0x416   :  { %5176 = vrcp.f32 %v1556_v11 }
 0x41f   :  { %v5173_v40 = vpop.eup %5172 }
 0x420   :  { %v1560_v3 = vmul.f32 %v5173_v40, %v5169_v37 }
 0x421   :  { %v5175_v25 = vpop.eup %5174 }
 0x422   :  { %v1559_v13 = vmul.f32 %v5175_v25, %v5913_v38 }
 0x423   :  { %v5177_v12 = vpop.eup %5176 }
 0x424   :  { %v6021_v15 = vadd.f32 %v1560_v3, %v1559_v13 }
 0x426   :  { %5178 = vtanh.f32 %v6021_v15 }
 0x433   :  { %v5179_v16 = vpop.eup %5178 }
 0x434   :  { %v1563_v17 = vmul.f32 %v5179_v16, %v5177_v12 }
 0x436   :  { %v1564_v18 = vpack.c.bf16 %v1563_v17, %v1563_v17 }
 0x438   :  { %1565 = vst [vmem:[#allocation3 + $0xc] sm:$0xf] %v1564_v18  ;;  %1795 = vmatmul.mubr.bf16.vlgmr.msra.gmra.mxu0 %v1564_v18  ;;  %1836 = vmatmul.mubr.bf16.vlgmr.msra.gmra.mxu1 %v1564_v18 }
 0x439   :  { %2071 = vmatpush1.bf16.msra.mxu0 %v5922_v44  ;;  %2112 = vmatpush1.bf16.msra.mxu1 %v5924_v57 }
 0x43a   :  { %2072 = vmatprep.subr.bf16.mxu0 %v5930_v14  ;;  %2113 = vmatprep.subr.bf16.mxu1 %v5932_v60 }
 0x43b   :  { %2102 = vmatprep.mubr.bf16.mxu0 %v6762_v56  ;;  %2143 = vmatprep.mubr.bf16.mxu1 %v6762_v56 }
 0x43d   :  { %2073 = vmatpush1.bf16.msra.mxu0 %v5934_v2  ;;  %2114 = vmatpush1.bf16.msra.mxu1 %v5936_v46 }
 0x43e   :  { %2074 = vmatprep.subr.bf16.mxu0 %v5942_v45  ;;  %2115 = vmatprep.subr.bf16.mxu1 %v5944_v4 }
 0x441   :  { %2075 = vmatpush1.bf16.msra.mxu0 %v5946_v7  ;;  %2116 = vmatpush1.bf16.msra.mxu1 %v5948_v9 }
 0x442   :  { %2076 = vmatprep.subr.bf16.mxu0 %v5954_v55  ;;  %2117 = vmatprep.subr.bf16.mxu1 %v5956_v43 }
 0x445   :  { %2077 = vmatpush1.bf16.msra.mxu0 %v5958_v0  ;;  %2118 = vmatpush1.bf16.msra.mxu1 %v5960_v58 }
 0x446   :  { %2078 = vmatprep.subr.bf16.mxu0 %v5964_v52  ;;  %2119 = vmatprep.subr.bf16.mxu1 %v5966_v62 }
 0x449   :  { %2079 = vmatpush1.bf16.msra.mxu0 %v5970_v54  ;;  %2120 = vmatpush1.bf16.msra.mxu1 %v5972_v42 }
 0x44a   :  { %2080 = vmatprep.subr.bf16.mxu0 %v5976_v48  ;;  %2121 = vmatprep.subr.bf16.mxu1 %v5978_v49 }
 0x44d   :  { %2081 = vmatpush1.bf16.msra.mxu0 %v5982_v61  ;;  %2122 = vmatpush1.bf16.msra.mxu1 %v5984_v47 }
 0x44e   :  { %2082 = vmatprep.subr.bf16.mxu0 %v5988_v63  ;;  %2123 = vmatprep.subr.bf16.mxu1 %v5990_v59 }
 0x451   :  { %2083 = vmatpush1.bf16.msra.mxu0 %v5994_v53  ;;  %2124 = vmatpush1.bf16.msra.mxu1 %v5996_v5 }
 0x452   :  { %2084 = vmatprep.subr.bf16.mxu0 %v6000_v51  ;;  %2125 = vmatprep.subr.bf16.mxu1 %v6002_v6 }
 0x455   :  { %2085 = vmatpush1.bf16.msra.mxu0 %v6006_v8  ;;  %2126 = vmatpush1.bf16.msra.mxu1 %v6008_v10 }
 0x456   :  { %2378 = vmatprep.subr.bf16.mxu0 %v5918_v32  ;;  %2419 = vmatprep.subr.bf16.mxu1 %v5920_v1 }
 0x4f8   :  { %v1796_v38 = vpop.f32.mrf.mxu0  ;;  %v1837_v19 = vpop.f32.mrf.mxu1 }
 0x4f9   :  { %v1844_v21 = vadd.f32 %v1796_v38, %v6768_v20  ;;  %v1846_v37 = vadd.f32 %v1837_v19, %v6771_v36 }
 0x4fa   :  { %v1798_v22 = vpop.f32.mrf.mxu0  ;;  %v1839_v23 = vpop.f32.mrf.mxu1 }
 0x4fb   :  { %v4652_v24 = vmul.f32 -1.442695, %v1844_v21  ;;  %v1845_v27 = vadd.f32 %v1798_v22, %v6769_v26  ;;  %v1847_v35 = vadd.f32 %v1839_v23, %v6770_v34 }
 0x4fc   :  { %v1800_v28 = vpop.f32.mrf.mxu0  ;;  %v1841_v29 = vpop.f32.mrf.mxu1 }
 0x4fd   :  { %5180 = vpow2.f32 %v4652_v24  ;;  %v4653_v30 = vmul.f32 -1.442695, %v1845_v27  ;;  %v4654_v39 = vmul.f32 -1.442695, %v1847_v35  ;;  %v6772_v27 = vld [vmem:[#allocation24_spill] sm:$0xff] }
 0x4fe   :  { %v1801_v31 = vpop.f32.mrf.mxu0  ;;  %v1842_v33 = vpop.f32.mrf.mxu1 }
 0x4ff   :  { %5182 = vpow2.f32 %v4653_v30  ;;  %v6773_v33 = vld [vmem:[#allocation26_spill] sm:$0xff] }
 0x500   :  { %5184 = vtanh.f32 %v1846_v37 }
 0x501   :  { %5186 = vpow2.f32 %v4654_v39 }
 0x50a   :  { %v5181_v40 = vpop.eup %5180 }
 0x50b   :  { %v1854_v3 = vadd.f32 1.0, %v5181_v40 }
 0x50c   :  { %v5183_v25 = vpop.eup %5182 }
 0x50d   :  { %5188 = vrcp.f32 %v1854_v3  ;;  %v1855_v11 = vadd.f32 1.0, %v5183_v25  ;;  %v5185_v13 = vpop.eup %5184  ;;  %v6774_v3 = vld [vmem:[#allocation27_spill] sm:$0xff]  ;;  %v6775_v25 = vld [vmem:[#allocation25_spill] sm:$0xff] }
 0x50e   :  { %v5187_v12 = vpop.eup %5186 }
 0x50f   :  { %5190 = vrcp.f32 %v1855_v11  ;;  %v1864_v38 = vadd.f32 1.0, %v5187_v12 }
 0x511   :  { %5192 = vrcp.f32 %v1864_v38 }
 0x51a   :  { %v5189_v16 = vpop.eup %5188 }
 0x51b   :  { %v1868_v17 = vmul.f32 %v5189_v16, %v5185_v13 }
 0x51c   :  { %v5191_v18 = vpop.eup %5190 }
 0x51d   :  { %v1867_v20 = vmul.f32 %v5191_v18, %v6021_v15 }
 0x51e   :  { %v5193_v19 = vpop.eup %5192 }
 0x51f   :  { %v6063_v21 = vadd.f32 %v1868_v17, %v1867_v20 }
 0x521   :  { %5194 = vtanh.f32 %v6063_v21 }
 0x52e   :  { %v5195_v22 = vpop.eup %5194 }
 0x52f   :  { %v1871_v23 = vmul.f32 %v5195_v22, %v5193_v19 }
 0x531   :  { %v1872_v24 = vpack.c.bf16 %v1871_v23, %v1871_v23 }
 0x533   :  { %1873 = vst [vmem:[#allocation3 + $0x10] sm:$0xf] %v1872_v24  ;;  %2103 = vmatmul.mubr.bf16.vlgmr.msra.gmra.mxu0 %v1872_v24  ;;  %2144 = vmatmul.mubr.bf16.vlgmr.msra.gmra.mxu1 %v1872_v24 }
 0x534   :  { %2379 = vmatpush1.bf16.msra.mxu0 %v5922_v44  ;;  %2420 = vmatpush1.bf16.msra.mxu1 %v5924_v57 }
 0x535   :  { %2380 = vmatprep.subr.bf16.mxu0 %v5930_v14  ;;  %2421 = vmatprep.subr.bf16.mxu1 %v5932_v60 }
 0x536   :  { %2410 = vmatprep.mubr.bf16.mxu0 %v6762_v56  ;;  %2451 = vmatprep.mubr.bf16.mxu1 %v6762_v56 }
 0x538   :  { %2381 = vmatpush1.bf16.msra.mxu0 %v5934_v2  ;;  %2422 = vmatpush1.bf16.msra.mxu1 %v5936_v46 }
 0x539   :  { %2382 = vmatprep.subr.bf16.mxu0 %v5942_v45  ;;  %2423 = vmatprep.subr.bf16.mxu1 %v5944_v4 }
 0x53c   :  { %2383 = vmatpush1.bf16.msra.mxu0 %v5946_v7  ;;  %2424 = vmatpush1.bf16.msra.mxu1 %v5948_v9 }
 0x53d   :  { %2384 = vmatprep.subr.bf16.mxu0 %v5954_v55  ;;  %2425 = vmatprep.subr.bf16.mxu1 %v5956_v43 }
 0x540   :  { %2385 = vmatpush1.bf16.msra.mxu0 %v5958_v0  ;;  %2426 = vmatpush1.bf16.msra.mxu1 %v5960_v58 }
 0x541   :  { %2386 = vmatprep.subr.bf16.mxu0 %v5964_v52  ;;  %2427 = vmatprep.subr.bf16.mxu1 %v5966_v62 }
 0x544   :  { %2387 = vmatpush1.bf16.msra.mxu0 %v5970_v54  ;;  %2428 = vmatpush1.bf16.msra.mxu1 %v5972_v42 }
 0x545   :  { %2388 = vmatprep.subr.bf16.mxu0 %v5976_v48  ;;  %2429 = vmatprep.subr.bf16.mxu1 %v5978_v49 }
 0x548   :  { %2389 = vmatpush1.bf16.msra.mxu0 %v5982_v61  ;;  %2430 = vmatpush1.bf16.msra.mxu1 %v5984_v47 }
 0x549   :  { %2390 = vmatprep.subr.bf16.mxu0 %v5988_v63  ;;  %2431 = vmatprep.subr.bf16.mxu1 %v5990_v59 }
 0x54c   :  { %2391 = vmatpush1.bf16.msra.mxu0 %v5994_v53  ;;  %2432 = vmatpush1.bf16.msra.mxu1 %v5996_v5 }
 0x54d   :  { %2392 = vmatprep.subr.bf16.mxu0 %v6000_v51  ;;  %2433 = vmatprep.subr.bf16.mxu1 %v6002_v6 }
 0x550   :  { %2393 = vmatpush1.bf16.msra.mxu0 %v6006_v8  ;;  %2434 = vmatpush1.bf16.msra.mxu1 %v6008_v10 }
 0x551   :  { %2686 = vmatprep.subr.bf16.mxu0 %v5918_v32  ;;  %2727 = vmatprep.subr.bf16.mxu1 %v5920_v1 }
 0x5f3   :  { %v2104_v15 = vpop.f32.mrf.mxu0  ;;  %v2145_v26 = vpop.f32.mrf.mxu1 }
 0x5f4   :  { %v2152_v28 = vadd.f32 %v2104_v15, %v6772_v27  ;;  %v2154_v1 = vadd.f32 %v2145_v26, %v6775_v25  ;;  %v5017_v25 = vld [vmem:[#allocation4 + $0xc8] ss:$16 sps:$4 sm:$0xff]  }
 0x5f5   :  { %v2106_v29 = vpop.f32.mrf.mxu0  ;;  %v2147_v30 = vpop.f32.mrf.mxu1 }
 0x5f6   :  { %v4687_v31 = vmul.f32 -1.442695, %v2152_v28  ;;  %v2153_v34 = vadd.f32 %v2106_v29, %v6773_v33  ;;  %v2155_v32 = vadd.f32 %v2147_v30, %v6774_v3  ;;  %v5019_v3 = vld [vmem:[#allocation4 + $0xcc] ss:$16 sps:$4 sm:$0xff]  }
 0x5f7   :  { %v2108_v35 = vpop.f32.mrf.mxu0  ;;  %v2149_v36 = vpop.f32.mrf.mxu1 }
 0x5f8   :  { %5196 = vpow2.f32 %v4687_v31  ;;  %v4688_v37 = vmul.f32 -1.442695, %v2153_v34  ;;  %v4689_v11 = vmul.f32 -1.442695, %v2155_v32  ;;  %v5008_v36 = vld [vmem:[#allocation4 + $0xe0] ss:$16 sps:$4 sm:$0xff]  }
 0x5f9   :  { %v2109_v39 = vpop.f32.mrf.mxu0  ;;  %v2150_v40 = vpop.f32.mrf.mxu1  ;;  %v5014_v32 = vld [vmem:[#allocation4 + $0xc0] ss:$16 sps:$4 sm:$0xff]  }
 0x5fa   :  { %5198 = vpow2.f32 %v4688_v37  ;;  %v5011_v37 = vld [vmem:[#allocation4 + $0xe8] ss:$16 sps:$4 sm:$0xff]   ;;  %v5016_v40 = vld [vmem:[#allocation4 + $0xc4] ss:$16 sps:$4 sm:$0xff]  }
 0x5fb   :  { %5200 = vtanh.f32 %v2154_v1  ;;  %v5022_v1 = vld [vmem:[#allocation4 + $0xa4] ss:$16 sps:$4 sm:$0xff]  }
 0x5fc   :  { %5202 = vpow2.f32 %v4689_v11  ;;  %v5025_v11 = vld [vmem:[#allocation4 + $0xac] ss:$16 sps:$4 sm:$0xff]  }
 0x605   :  { %v5197_v13 = vpop.eup %5196 }
 0x606   :  { %v2162_v12 = vadd.f32 1.0, %v5197_v13  ;;  %v5020_v13 = vld [vmem:[#allocation4 + $0xa0] ss:$16 sps:$4 sm:$0xff]  }
 0x607   :  { %v5199_v16 = vpop.eup %5198 }
 0x608   :  { %5204 = vrcp.f32 %v2162_v12  ;;  %v2163_v17 = vadd.f32 1.0, %v5199_v16  ;;  %v5201_v18 = vpop.eup %5200  ;;  %v5023_v12 = vld [vmem:[#allocation4 + $0xa8] ss:$16 sps:$4 sm:$0xff]   ;;  %v5028_v16 = vld [vmem:[#allocation4 + $0x84] ss:$16 sps:$4 sm:$0xff]  }
 0x609   :  { %v5203_v38 = vpop.eup %5202 }
 0x60a   :  { %5206 = vrcp.f32 %v2163_v17  ;;  %v2172_v23 = vadd.f32 1.0, %v5203_v38  ;;  %v5031_v17 = vld [vmem:[#allocation4 + $0x8c] ss:$16 sps:$4 sm:$0xff]   ;;  %v5029_v38 = vld [vmem:[#allocation4 + $0x88] ss:$16 sps:$4 sm:$0xff]  }
 0x60c   :  { %5208 = vrcp.f32 %v2172_v23  ;;  %v5035_v23 = vld [vmem:[#allocation4 + $0x68] ss:$16 sps:$4 sm:$0xff]  }
 0x615   :  { %v5205_v20 = vpop.eup %5204 }
 0x616   :  { %v2176_v19 = vmul.f32 %v5205_v20, %v5201_v18  ;;  %v5026_v18 = vld [vmem:[#allocation4 + $0x80] ss:$16 sps:$4 sm:$0xff]   ;;  %v5034_v20 = vld [vmem:[#allocation4 + $0x64] ss:$16 sps:$4 sm:$0xff]  }
 0x617   :  { %v5207_v22 = vpop.eup %5206 }
 0x618   :  { %v2175_v24 = vmul.f32 %v5207_v22, %v6063_v21  ;;  %v5032_v22 = vld [vmem:[#allocation4 + $0x60] ss:$16 sps:$4 sm:$0xff]  }
 0x619   :  { %v5209_v26 = vpop.eup %5208 }
 0x61a   :  { %v6105_v15 = vadd.f32 %v2176_v19, %v2175_v24  ;;  %v5037_v19 = vld [vmem:[#allocation4 + $0x6c] ss:$16 sps:$4 sm:$0xff]   ;;  %v5040_v24 = vld [vmem:[#allocation4 + $0x44] ss:$16 sps:$4 sm:$0xff]  }
 0x61c   :  { %5210 = vtanh.f32 %v6105_v15 }
 0x629   :  { %v5211_v27 = vpop.eup %5210 }
 0x62a   :  { %v2179_v28 = vmul.f32 %v5211_v27, %v5209_v26  ;;  %v5038_v26 = vld [vmem:[#allocation4 + $0x40] ss:$16 sps:$4 sm:$0xff]   ;;  %v5041_v27 = vld [vmem:[#allocation4 + $0x48] ss:$16 sps:$4 sm:$0xff]  }
 0x62c   :  { %v2180_v29 = vpack.c.bf16 %v2179_v28, %v2179_v28  ;;  %v5046_v28 = vld [vmem:[#allocation4 + $0x24] ss:$16 sps:$4 sm:$0xff]  }
 0x62e   :  { %2181 = vst [vmem:[#allocation3 + $0x14] sm:$0xf] %v2180_v29  ;;  %2411 = vmatmul.mubr.bf16.vlgmr.msra.gmra.mxu0 %v2180_v29  ;;  %2452 = vmatmul.mubr.bf16.vlgmr.msra.gmra.mxu1 %v2180_v29  ;;  %v5049_v29 = vld [vmem:[#allocation4 + $0x2c] ss:$16 sps:$4 sm:$0xff]  }
 0x62f   :  { %2687 = vmatpush1.bf16.msra.mxu0 %v5922_v44  ;;  %2728 = vmatpush1.bf16.msra.mxu1 %v5924_v57  ;;  %v5010_v44 = vld [vmem:[#allocation4 + $0xe4] ss:$16 sps:$4 sm:$0xff]   ;;  %v5013_v57 = vld [vmem:[#allocation4 + $0xec] ss:$16 sps:$4 sm:$0xff]  }
 0x630   :  { %2688 = vmatprep.subr.bf16.mxu0 %v5930_v14  ;;  %2729 = vmatprep.subr.bf16.mxu1 %v5932_v60 }
 0x631   :  { %2718 = vmatprep.mubr.bf16.mxu0 %v6762_v56  ;;  %2759 = vmatprep.mubr.bf16.mxu1 %v6762_v56 }
 0x633   :  { %2689 = vmatpush1.bf16.msra.mxu0 %v5934_v2  ;;  %2730 = vmatpush1.bf16.msra.mxu1 %v5936_v46  ;;  %v6776_v2 = vld [vmem:[#allocation28_spill] sm:$0xff] }
 0x634   :  { %2690 = vmatprep.subr.bf16.mxu0 %v5942_v45  ;;  %2731 = vmatprep.subr.bf16.mxu1 %v5944_v4 }
 0x637   :  { %2691 = vmatpush1.bf16.msra.mxu0 %v5946_v7  ;;  %2732 = vmatpush1.bf16.msra.mxu1 %v5948_v9  ;;  %v6777_v9 = vld [vmem:[#allocation30_spill] sm:$0xff] }
 0x638   :  { %2692 = vmatprep.subr.bf16.mxu0 %v5954_v55  ;;  %2733 = vmatprep.subr.bf16.mxu1 %v5956_v43 }
 0x63b   :  { %2693 = vmatpush1.bf16.msra.mxu0 %v5958_v0  ;;  %2734 = vmatpush1.bf16.msra.mxu1 %v5960_v58 }
 0x63c   :  { %2694 = vmatprep.subr.bf16.mxu0 %v5964_v52  ;;  %2735 = vmatprep.subr.bf16.mxu1 %v5966_v62 }
 0x63f   :  { %2695 = vmatpush1.bf16.msra.mxu0 %v5970_v54  ;;  %2736 = vmatpush1.bf16.msra.mxu1 %v5972_v42  ;;  %v6778_v54 = vld [vmem:[#allocation31_spill] sm:$0xff] }
 0x640   :  { %2696 = vmatprep.subr.bf16.mxu0 %v5976_v48  ;;  %2737 = vmatprep.subr.bf16.mxu1 %v5978_v49  ;;  %v6779_v48 = vld [vmem:[#allocation29_spill] sm:$0xff] }
 0x643   :  { %2697 = vmatpush1.bf16.msra.mxu0 %v5982_v61  ;;  %2738 = vmatpush1.bf16.msra.mxu1 %v5984_v47 }
 0x644   :  { %2698 = vmatprep.subr.bf16.mxu0 %v5988_v63  ;;  %2739 = vmatprep.subr.bf16.mxu1 %v5990_v59 }
 0x647   :  { %2699 = vmatpush1.bf16.msra.mxu0 %v5994_v53  ;;  %2740 = vmatpush1.bf16.msra.mxu1 %v5996_v5 }
 0x648   :  { %2700 = vmatprep.subr.bf16.mxu0 %v6000_v51  ;;  %2741 = vmatprep.subr.bf16.mxu1 %v6002_v6 }
 0x64b   :  { %2701 = vmatpush1.bf16.msra.mxu0 %v6006_v8  ;;  %2742 = vmatpush1.bf16.msra.mxu1 %v6008_v10 }
 0x64c   :  { %3045 = vmatprep.subr.bf16.mxu0 %v5010_v44  ;;  %3118 = vmatprep.subr.bf16.mxu1 %v5013_v57  ;;  %v5044_v44 = vld [vmem:[#allocation4 + $0x20] ss:$16 sps:$4 sm:$0xff]   ;;  %v5047_v57 = vld [vmem:[#allocation4 + $0x28] ss:$16 sps:$4 sm:$0xff]  }
 0x6ee   :  { %v2412_v14 = vpop.f32.mrf.mxu0  ;;  %v2453_v60 = vpop.f32.mrf.mxu1 }
 0x6ef   :  { %v2460_v46 = vadd.f32 %v2412_v14, %v6776_v2  ;;  %v2462_v49 = vadd.f32 %v2453_v60, %v6779_v48  ;;  %v5052_v14 = vld [vmem:[#allocation4 + $0x4] ss:$16 sps:$4 sm:$0xff]   ;;  %v5055_v60 = vld [vmem:[#allocation4 + $0xc] ss:$16 sps:$4 sm:$0xff]   ;;  %v5050_v2 = vld [vmem:[#allocation4] ss:$16 sps:$4 sm:$0xff]  }
 0x6f0   :  { %v2414_v45 = vpop.f32.mrf.mxu0  ;;  %v2455_v4 = vpop.f32.mrf.mxu1  ;;  %v6182_v48 = vld [vmem:[#allocation7 + $0x1ac] ss:$16 sps:$4 sm:$0xff]  }
 0x6f1   :  { %v4722_v7 = vmul.f32 -1.442695, %v2460_v46  ;;  %v2461_v55 = vadd.f32 %v2414_v45, %v6777_v9  ;;  %v2463_v42 = vadd.f32 %v2455_v4, %v6778_v54  ;;  %v5053_v46 = vld [vmem:[#allocation4 + $0x8] ss:$16 sps:$4 sm:$0xff]   ;;  %v5056_v45 = vld [vmem:[#allocation3] sm:$0xff]  }
 0x6f2   :  { %v2416_v43 = vpop.f32.mrf.mxu0  ;;  %v2457_v0 = vpop.f32.mrf.mxu1  ;;  %v5057_v4 = vld [vmem:[#allocation3 + $0x8] sm:$0xff]   ;;  %v6156_v9 = vld [vmem:[#allocation7 + $0x1e4] ss:$16 sps:$4 sm:$0xff]  }
 0x6f3   :  { %5212 = vpow2.f32 %v4722_v7  ;;  %v4723_v58 = vmul.f32 -1.442695, %v2461_v55  ;;  %v4724_v61 = vmul.f32 -1.442695, %v2463_v42  ;;  %v5058_v7 = vld [vmem:[#allocation3 + $0x10] sm:$0xff]  }
 0x6f4   :  { %v2417_v52 = vpop.f32.mrf.mxu0  ;;  %v2458_v62 = vpop.f32.mrf.mxu1  ;;  %v6158_v55 = vld [vmem:[#allocation7 + $0x1ec] ss:$16 sps:$4 sm:$0xff]   ;;  %v6160_v43 = vld [vmem:[#allocation7 + $0x1e0] ss:$16 sps:$4 sm:$0xff]   ;;  %v6162_v0 = vld [vmem:[#allocation7 + $0x1e8] ss:$16 sps:$4 sm:$0xff]  }
 0x6f5   :  { %5214 = vpow2.f32 %v4723_v58  ;;  %v6168_v58 = vld [vmem:[#allocation7 + $0x1c4] ss:$16 sps:$4 sm:$0xff]   ;;  %v6170_v52 = vld [vmem:[#allocation7 + $0x1cc] ss:$16 sps:$4 sm:$0xff]   ;;  %v6172_v62 = vld [vmem:[#allocation7 + $0x1c0] ss:$16 sps:$4 sm:$0xff]  }
 0x6f6   :  { %5216 = vtanh.f32 %v2462_v49  ;;  %v6174_v54 = vld [vmem:[#allocation7 + $0x1c8] ss:$16 sps:$4 sm:$0xff]   ;;  %v6180_v42 = vld [vmem:[#allocation7 + $0x1a4] ss:$16 sps:$4 sm:$0xff]   ;;  %v6184_v49 = vld [vmem:[#allocation7 + $0x1a0] ss:$16 sps:$4 sm:$0xff]  }
 0x6f7   :  { %5218 = vpow2.f32 %v4724_v61  ;;  %v6186_v61 = vld [vmem:[#allocation7 + $0x1a8] ss:$16 sps:$4 sm:$0xff]  }
 0x700   :  { %v5213_v47 = vpop.eup %5212 }
 0x701   :  { %v2470_v63 = vadd.f32 1.0, %v5213_v47  ;;  %v6192_v47 = vld [vmem:[#allocation7 + $0x184] ss:$16 sps:$4 sm:$0xff]  }
 0x702   :  { %v5215_v59 = vpop.eup %5214 }
 0x703   :  { %5220 = vrcp.f32 %v2470_v63  ;;  %v2471_v53 = vadd.f32 1.0, %v5215_v59  ;;  %v5217_v5 = vpop.eup %5216  ;;  %v6194_v63 = vld [vmem:[#allocation7 + $0x18c] ss:$16 sps:$4 sm:$0xff]   ;;  %v6196_v59 = vld [vmem:[#allocation7 + $0x180] ss:$16 sps:$4 sm:$0xff]  }
 0x704   :  { %v5219_v51 = vpop.eup %5218 }
 0x705   :  { %5222 = vrcp.f32 %v2471_v53  ;;  %v2480_v21 = vadd.f32 1.0, %v5219_v51  ;;  %v6198_v53 = vld [vmem:[#allocation7 + $0x188] ss:$16 sps:$4 sm:$0xff]   ;;  %v6206_v51 = vld [vmem:[#allocation7 + $0x16c] ss:$16 sps:$4 sm:$0xff]  }
 0x707   :  { %5224 = vrcp.f32 %v2480_v21  ;;  %v6214_v21 = vld [vmem:[#allocation7 + $0x14c] ss:$16 sps:$4 sm:$0xff]  }
 0x710   :  { %v5221_v6 = vpop.eup %5220 }
 0x711   :  { %v2484_v8 = vmul.f32 %v5221_v6, %v5217_v5  ;;  %v6204_v5 = vld [vmem:[#allocation7 + $0x164] ss:$16 sps:$4 sm:$0xff]   ;;  %v6208_v6 = vld [vmem:[#allocation7 + $0x160] ss:$16 sps:$4 sm:$0xff]  }
 0x712   :  { %v5223_v10 = vpop.eup %5222 }
 0x713   :  { %v2483_v30 = vmul.f32 %v5223_v10, %v6105_v15  ;;  %v5043_v15 = vld [vmem:[#allocation4 + $0x4c] ss:$16 sps:$4 sm:$0xff]   ;;  %v6212_v10 = vld [vmem:[#allocation7 + $0x144] ss:$16 sps:$4 sm:$0xff]  }
 0x714   :  { %v5225_v33 = vpop.eup %5224 }
 0x715   :  { %v6145_v31 = vadd.f32 %v2484_v8, %v2483_v30  ;;  %v6210_v8 = vld [vmem:[#allocation7 + $0x168] ss:$16 sps:$4 sm:$0xff]   ;;  %v6220_v30 = vld [vmem:[#allocation7 + $0x140] ss:$16 sps:$4 sm:$0xff]  }
 0x717   :  { %5226 = vtanh.f32 %v6145_v31 }
 0x724   :  { %v5227_v34 = vpop.eup %5226 }
 0x725   :  { %v2487_v35 = vmul.f32 %v5227_v34, %v5225_v33  ;;  %v6222_v33 = vld [vmem:[#allocation7 + $0x148] ss:$16 sps:$4 sm:$0xff]   ;;  %v6228_v34 = vld [vmem:[#allocation7 + $0x124] ss:$16 sps:$4 sm:$0xff]  }
 0x727   :  { %v2488_v39 = vpack.c.bf16 %v2487_v35, %v2487_v35  ;;  %v6230_v35 = vld [vmem:[#allocation7 + $0x12c] ss:$16 sps:$4 sm:$0xff]  }
 0x729   :  { %2489 = vst [vmem:[#allocation3 + $0x18] sm:$0xf] %v2488_v39  ;;  %2719 = vmatmul.mubr.bf16.vlgmr.msra.gmra.mxu0 %v2488_v39  ;;  %2760 = vmatmul.mubr.bf16.vlgmr.msra.gmra.mxu1 %v2488_v39  ;;  %v6236_v39 = vld [vmem:[#allocation7 + $0x104] ss:$16 sps:$4 sm:$0xff]  }
 0x72a   :  { %3046 = vmatpush1.bf16.msra.mxu0 %v5008_v36  ;;  %3119 = vmatpush1.bf16.msra.mxu1 %v5011_v37  ;;  %v6232_v36 = vld [vmem:[#allocation7 + $0x120] ss:$16 sps:$4 sm:$0xff]   ;;  %v6234_v37 = vld [vmem:[#allocation7 + $0x128] ss:$16 sps:$4 sm:$0xff]  }
 0x72b   :  { %3047 = vmatprep.subr.bf16.mxu0 %v5016_v40  ;;  %3120 = vmatprep.subr.bf16.mxu1 %v5019_v3  ;;  %v6240_v40 = vld [vmem:[#allocation7 + $0x10c] ss:$16 sps:$4 sm:$0xff]   ;;  %v6244_v3 = vld [vmem:[#allocation7 + $0x100] ss:$16 sps:$4 sm:$0xff]  }
 0x72c   :  { %3077 = vmatprep.mubr.bf16.mxu0 %v6762_v56  ;;  %3150 = vmatprep.mubr.bf16.mxu1 %v6762_v56 }
 0x72e   :  { %3048 = vmatpush1.bf16.msra.mxu0 %v5014_v32  ;;  %3121 = vmatpush1.bf16.msra.mxu1 %v5017_v25  ;;  %v6246_v32 = vld [vmem:[#allocation7 + $0x108] ss:$16 sps:$4 sm:$0xff]  }
 0x72f   :  { %3049 = vmatprep.subr.bf16.mxu0 %v5022_v1  ;;  %3122 = vmatprep.subr.bf16.mxu1 %v5025_v11  ;;  %v6780_v11 = vld [vmem:[#allocation32_spill] sm:$0xff] }
 0x732   :  { %3050 = vmatpush1.bf16.msra.mxu0 %v5020_v13  ;;  %3123 = vmatpush1.bf16.msra.mxu1 %v5023_v12 }
 0x733   :  { %3051 = vmatprep.subr.bf16.mxu0 %v5028_v16  ;;  %3124 = vmatprep.subr.bf16.mxu1 %v5031_v17 }
 0x736   :  { %3052 = vmatpush1.bf16.msra.mxu0 %v5026_v18  ;;  %3125 = vmatpush1.bf16.msra.mxu1 %v5029_v38 }
 0x737   :  { %3053 = vmatprep.subr.bf16.mxu0 %v5034_v20  ;;  %3126 = vmatprep.subr.bf16.mxu1 %v5037_v19 }
 0x73a   :  { %3054 = vmatpush1.bf16.msra.mxu0 %v5032_v22  ;;  %3127 = vmatpush1.bf16.msra.mxu1 %v5035_v23 }
 0x73b   :  { %3055 = vmatprep.subr.bf16.mxu0 %v5040_v24  ;;  %3128 = vmatprep.subr.bf16.mxu1 %v5043_v15  ;;  %v6781_v15 = vld [vmem:[#allocation33_spill] sm:$0xff] }
 0x73e   :  { %3056 = vmatpush1.bf16.msra.mxu0 %v5038_v26  ;;  %3129 = vmatpush1.bf16.msra.mxu1 %v5041_v27 }
 0x73f   :  { %3057 = vmatprep.subr.bf16.mxu0 %v5046_v28  ;;  %3130 = vmatprep.subr.bf16.mxu1 %v5049_v29 }
 0x742   :  { %3058 = vmatpush1.bf16.msra.mxu0 %v5044_v44  ;;  %3131 = vmatpush1.bf16.msra.mxu1 %v5047_v57 }
 0x743   :  { %3059 = vmatprep.subr.bf16.mxu0 %v5052_v14  ;;  %3132 = vmatprep.subr.bf16.mxu1 %v5055_v60 }
 0x746   :  { %3060 = vmatpush1.bf16.msra.mxu0 %v5050_v2  ;;  %3133 = vmatpush1.bf16.msra.mxu1 %v5053_v46 }
 0x747   :  { %3420 = vmatprep.subr.bf16.mxu0 %v6156_v9  ;;  %3461 = vmatprep.subr.bf16.mxu1 %v6158_v55 }
 0x749   :  { %3078 = vmatmul.mubr.bf16.vlgmr.msra.gmra.mxu0 %v5056_v45  ;;  %3151 = vmatmul.mubr.bf16.vlgmr.msra.gmra.mxu1 %v5056_v45 }
 0x74a   :  { %3087 = vmatprep.mubr.bf16.mxu0 %v6762_v56  ;;  %3160 = vmatprep.mubr.bf16.mxu1 %v6762_v56 }
 0x74b   :  { %3421 = vmatpush1.bf16.msra.mxu0 %v6160_v43  ;;  %3462 = vmatpush1.bf16.msra.mxu1 %v6162_v0 }
 0x74c   :  { %3422 = vmatprep.subr.bf16.mxu0 %v6168_v58  ;;  %3463 = vmatprep.subr.bf16.mxu1 %v6170_v52 }
 0x74f   :  { %3423 = vmatpush1.bf16.msra.mxu0 %v6172_v62  ;;  %3464 = vmatpush1.bf16.msra.mxu1 %v6174_v54 }
 0x750   :  { %3424 = vmatprep.subr.bf16.mxu0 %v6180_v42  ;;  %3465 = vmatprep.subr.bf16.mxu1 %v6182_v48 }
 0x751   :  { %3088 = vmatmul.mubr.bf16.gmra.mxu0 %v5057_v4  ;;  %3161 = vmatmul.mubr.bf16.gmra.mxu1 %v5057_v4 }
 0x752   :  { %3097 = vmatprep.mubr.bf16.mxu0 %v6762_v56  ;;  %3170 = vmatprep.mubr.bf16.mxu1 %v6762_v56 }
 0x753   :  { %3425 = vmatpush1.bf16.msra.mxu0 %v6184_v49  ;;  %3466 = vmatpush1.bf16.msra.mxu1 %v6186_v61 }
 0x754   :  { %3426 = vmatprep.subr.bf16.mxu0 %v6192_v47  ;;  %3467 = vmatprep.subr.bf16.mxu1 %v6194_v63 }
 0x757   :  { %3427 = vmatpush1.bf16.msra.mxu0 %v6196_v59  ;;  %3468 = vmatpush1.bf16.msra.mxu1 %v6198_v53 }
 0x758   :  { %3428 = vmatprep.subr.bf16.mxu0 %v6204_v5  ;;  %3469 = vmatprep.subr.bf16.mxu1 %v6206_v51 }
 0x759   :  { %3098 = vmatmul.mubr.bf16.gmra.mxu0 %v5058_v7  ;;  %3171 = vmatmul.mubr.bf16.gmra.mxu1 %v5058_v7 }
 0x75a   :  { %3107 = vmatprep.mubr.bf16.mxu0 %v6762_v56  ;;  %3180 = vmatprep.mubr.bf16.mxu1 %v6762_v56 }
 0x75b   :  { %3429 = vmatpush1.bf16.msra.mxu0 %v6208_v6  ;;  %3470 = vmatpush1.bf16.msra.mxu1 %v6210_v8 }
 0x75c   :  { %3430 = vmatprep.subr.bf16.mxu0 %v6212_v10  ;;  %3471 = vmatprep.subr.bf16.mxu1 %v6214_v21 }
 0x75f   :  { %3431 = vmatpush1.bf16.msra.mxu0 %v6220_v30  ;;  %3472 = vmatpush1.bf16.msra.mxu1 %v6222_v33 }
 0x760   :  { %3432 = vmatprep.subr.bf16.mxu0 %v6228_v34  ;;  %3473 = vmatprep.subr.bf16.mxu1 %v6230_v35 }
 0x763   :  { %3433 = vmatpush1.bf16.msra.mxu0 %v6232_v36  ;;  %3474 = vmatpush1.bf16.msra.mxu1 %v6234_v37 }
 0x764   :  { %3434 = vmatprep.subr.bf16.mxu0 %v6236_v39  ;;  %3475 = vmatprep.subr.bf16.mxu1 %v6240_v40 }
 0x767   :  { %3435 = vmatpush1.bf16.msra.mxu0 %v6244_v3  ;;  %3476 = vmatpush1.bf16.msra.mxu1 %v6246_v32 }
 0x768   :  { %3535 = vmatprep.subr.bf16.mxu0 %v6156_v9  ;;  %3576 = vmatprep.subr.bf16.mxu1 %v6158_v55 }
 0x7e9   :  { %v2720_v25 = vpop.f32.mrf.mxu0  ;;  %v2761_v1 = vpop.f32.mrf.mxu1 }
 0x7ea   :  { %v2768_v13 = vadd.f32 %v2720_v25, %v6780_v11  ;;  %v2770_v26 = vadd.f32 %v2761_v1, %v6781_v15 }
 0x7eb   :  { %v2722_v12 = vpop.f32.mrf.mxu0  ;;  %v2763_v16 = vpop.f32.mrf.mxu1 }
 0x7ec   :  { %v4757_v17 = vmul.f32 -1.442695, %v2768_v13  ;;  %v2769_v18 = vadd.f32 %v2722_v12, %v5821_v50  ;;  %v2771_v24 = vadd.f32 %v2763_v16, %v5824_v41 }
 0x7ed   :  { %v2724_v38 = vpop.f32.mrf.mxu0  ;;  %v2765_v20 = vpop.f32.mrf.mxu1 }
 0x7ee   :  { %5228 = vpow2.f32 %v4757_v17  ;;  %v4758_v19 = vmul.f32 -1.442695, %v2769_v18  ;;  %v4759_v27 = vmul.f32 -1.442695, %v2771_v24 }
 0x7ef   :  { %v2725_v22 = vpop.f32.mrf.mxu0  ;;  %v2766_v23 = vpop.f32.mrf.mxu1 }
 0x7f0   :  { %5230 = vpow2.f32 %v4758_v19 }
 0x7f1   :  { %5232 = vtanh.f32 %v2770_v26 }
 0x7f2   :  { %5234 = vpow2.f32 %v4759_v27 }
 0x7fb   :  { %v5229_v28 = vpop.eup %5228 }
 0x7fc   :  { %v2778_v29 = vadd.f32 1.0, %v5229_v28 }
 0x7fd   :  { %v5231_v44 = vpop.eup %5230 }
 0x7fe   :  { %5236 = vrcp.f32 %v2778_v29  ;;  %v2779_v57 = vadd.f32 1.0, %v5231_v44  ;;  %v5233_v50 = vpop.eup %5232 }
 0x7ff   :  { %v5235_v14 = vpop.eup %5234 }
 0x800   :  { %5238 = vrcp.f32 %v2779_v57  ;;  %v2788_v45 = vadd.f32 1.0, %v5235_v14 }
 0x802   :  { %5240 = vrcp.f32 %v2788_v45 }
 0x809   :  { %v3152_v12 = vpop.f32.mrf.mxu1 }
 0x80b   :  { %v5237_v60 = vpop.eup %5236  ;;  %v3154_v17 = vpop.f32.mrf.mxu1 }
 0x80c   :  { %v2792_v2 = vmul.f32 %v5237_v60, %v5233_v50 }
 0x80d   :  { %v5239_v46 = vpop.eup %5238  ;;  %v6299_v38 = vpop.f32.mrf.mxu1 }
 0x80e   :  { %v2791_v4 = vmul.f32 %v5239_v46, %v6145_v31  ;;  %v3079_v31 = vpop.f32.mrf.mxu0 }
 0x80f   :  { %v5241_v7 = vpop.eup %5240  ;;  %v6303_v19 = vpop.f32.mrf.mxu1 }
 0x810   :  { %v2793_v41 = vadd.f32 %v2792_v2, %v2791_v4  ;;  %v3081_v16 = vpop.f32.mrf.mxu0  ;;  %v4760_v4 = vld [vmem:[%s6730_s4 + $0x4] sm:$0xf] }
 0x811   :  { %v6307_v23 = vpop.f32.mrf.mxu1 }
 0x812   :  { %5242 = vtanh.f32 %v2793_v41  ;;  %v6297_v18 = vpop.f32.mrf.mxu0  ;;  %6782 = vst [vmem:[#allocation15_spill] sm:$0xff] %v6307_v23 }
 0x813   :  { %v6311_v15 = vpop.f32.mrf.mxu1 }
 0x814   :  { %v6301_v20 = vpop.f32.mrf.mxu0 }
 0x815   :  { %v6315_v27 = vpop.f32.mrf.mxu1 }
 0x816   :  { %v6305_v22 = vpop.f32.mrf.mxu0  ;;  %6784 = vst [vmem:[#allocation18_spill] sm:$0xff] %v6315_v27 }
 0x817   :  { %v6319_v29 = vpop.f32.mrf.mxu1 }
 0x818   :  { %v6309_v24 = vpop.f32.mrf.mxu0  ;;  %6786 = vst [vmem:[#allocation17_spill] sm:$0xff] %v6319_v29 }
 0x819   :  { %v6323_v57 = vpop.f32.mrf.mxu1 }
 0x81a   :  { %v6313_v26 = vpop.f32.mrf.mxu0  ;;  %6788 = vst [vmem:[#allocation22_spill] sm:$0xff] %v6323_v57 }
 0x81b   :  { %6783 = vst [vmem:[#allocation16_spill] sm:$0xff] %v6313_v26  ;;  %v6327_v14 = vpop.f32.mrf.mxu1 }
 0x81c   :  { %v6317_v28 = vpop.f32.mrf.mxu0  ;;  %6790 = vst [vmem:[#allocation21_spill] sm:$0xff] %v6327_v14 }
 0x81d   :  { %6785 = vst [vmem:[#allocation19_spill] sm:$0xff] %v6317_v28  ;;  %v6331_v2 = vpop.f32.mrf.mxu1 }
 0x81e   :  { %v6321_v44 = vpop.f32.mrf.mxu0  ;;  %6792 = vst [vmem:[#allocation26_spill] sm:$0xff] %v6331_v2 }
 0x81f   :  { %v5243_v25 = vpop.eup %5242  ;;  %6787 = vst [vmem:[#allocation20_spill] sm:$0xff] %v6321_v44  ;;  %v6335_v45 = vpop.f32.mrf.mxu1 }
 0x820   :  { %v2795_v1 = vmul.f32 %v5243_v25, %v5241_v7  ;;  %v6325_v50 = vpop.f32.mrf.mxu0  ;;  %6794 = vst [vmem:[#allocation25_spill] sm:$0xff] %v6335_v45 }
 0x821   :  { %6789 = vst [vmem:[#allocation23_spill] sm:$0xff] %v6325_v50 }
 0x822   :  { %v2796_v11 = vpack.c.bf16 %v2795_v1, %v2795_v1  ;;  %v6329_v60 = vpop.f32.mrf.mxu0 }
 0x823   :  { %6791 = vst [vmem:[#allocation24_spill] sm:$0xff] %v6329_v60 }
 0x824   :  { %2797 = vst [vmem:[#allocation3 + $0x1c] sm:$0xf] %v2796_v11  ;;  %v6333_v46 = vpop.f32.mrf.mxu0  ;;  %v6799_v11 = vld [vmem:[#allocation14_spill] sm:$0xff] }
 0x825   :  { %6793 = vst [vmem:[#allocation27_spill] sm:$0xff] %v6333_v46  ;;  %v6803_v45 = vsub.s32 1, %v6799_v11  ;;  %v6806_v26 = vsub.s32 3, %v6799_v11 }
 0x827   :  { %v6358_v57 = vrot.slane %v4760_v4, %v6803_v45 }
 0x829   :  { %v3082_v50 = vadd.f32 %v3081_v16, %v6358_v57  ;;  %v6807_v16 = vsub.s32 2, %v6799_v11 }
 0x82b   :  { %v5095_v13 = vld [vmem:[#allocation3 + $0x18] sm:$0xff]  }
 0x82c   :  { %3108 = vmatmul.mubr.bf16.gmra.mxu0 %v5095_v13  ;;  %3181 = vmatmul.mubr.bf16.gmra.mxu1 %v5095_v13  ;;  %v6800_v13 = vsub.s32 0, %v6799_v11 }
 0x82d   :  { %3452 = vmatprep.mubr.bf16.mxu0 %v6762_v56  ;;  %3493 = vmatprep.mubr.bf16.mxu1 %v6762_v56 }
 0x82e   :  { %v6350_v60 = vrot.slane %v4760_v4, %v6800_v13 }
 0x834   :  { %3453 = vmatmul.mubr.bf16.vlgmr.msra.gmra.mxu0 %v6762_v56  ;;  %3494 = vmatmul.mubr.bf16.vlgmr.msra.gmra.mxu1 %v6762_v56 }
 0x835   :  { %3536 = vmatpush1.bf16.msra.mxu0 %v6160_v43  ;;  %3577 = vmatpush1.bf16.msra.mxu1 %v6162_v0 }
 0x836   :  { %3537 = vmatprep.subr.bf16.mxu0 %v6168_v58  ;;  %3578 = vmatprep.subr.bf16.mxu1 %v6170_v52 }
 0x837   :  { %3567 = vmatprep.mubr.bf16.mxu0 %v6762_v56  ;;  %3608 = vmatprep.mubr.bf16.mxu1 %v6762_v56 }
 0x839   :  { %3538 = vmatpush1.bf16.msra.mxu0 %v6172_v62  ;;  %3579 = vmatpush1.bf16.msra.mxu1 %v6174_v54 }
 0x83a   :  { %3539 = vmatprep.subr.bf16.mxu0 %v6180_v42  ;;  %3580 = vmatprep.subr.bf16.mxu1 %v6182_v48 }
 0x83d   :  { %3540 = vmatpush1.bf16.msra.mxu0 %v6184_v49  ;;  %3581 = vmatpush1.bf16.msra.mxu1 %v6186_v61 }
 0x83e   :  { %3541 = vmatprep.subr.bf16.mxu0 %v6192_v47  ;;  %3582 = vmatprep.subr.bf16.mxu1 %v6194_v63 }
 0x841   :  { %3542 = vmatpush1.bf16.msra.mxu0 %v6196_v59  ;;  %3583 = vmatpush1.bf16.msra.mxu1 %v6198_v53 }
 0x842   :  { %3543 = vmatprep.subr.bf16.mxu0 %v6204_v5  ;;  %3584 = vmatprep.subr.bf16.mxu1 %v6206_v51 }
 0x845   :  { %3544 = vmatpush1.bf16.msra.mxu0 %v6208_v6  ;;  %3585 = vmatpush1.bf16.msra.mxu1 %v6210_v8 }
 0x846   :  { %3545 = vmatprep.subr.bf16.mxu0 %v6212_v10  ;;  %3586 = vmatprep.subr.bf16.mxu1 %v6214_v21 }
 0x849   :  { %3546 = vmatpush1.bf16.msra.mxu0 %v6220_v30  ;;  %3587 = vmatpush1.bf16.msra.mxu1 %v6222_v33 }
 0x84a   :  { %3547 = vmatprep.subr.bf16.mxu0 %v6228_v34  ;;  %3588 = vmatprep.subr.bf16.mxu1 %v6230_v35 }
 0x84d   :  { %3548 = vmatpush1.bf16.msra.mxu0 %v6232_v36  ;;  %3589 = vmatpush1.bf16.msra.mxu1 %v6234_v37 }
 0x84e   :  { %3549 = vmatprep.subr.bf16.mxu0 %v6236_v39  ;;  %3590 = vmatprep.subr.bf16.mxu1 %v6240_v40 }
 0x851   :  { %3550 = vmatpush1.bf16.msra.mxu0 %v6244_v3  ;;  %3591 = vmatpush1.bf16.msra.mxu1 %v6246_v32 }
 0x852   :  { %3650 = vmatprep.subr.bf16.mxu0 %v6156_v9  ;;  %3691 = vmatprep.subr.bf16.mxu1 %v6158_v55 }
 0x8ec   :  { %v6340_v41 = vpop.f32.mrf.mxu0  ;;  %v6342_v7 = vpop.f32.mrf.mxu1 }
 0x8ed   :  { %6795 = vst [vmem:[#allocation28_spill] sm:$0xff] %v6340_v41  ;;  %6796 = vst [vmem:[#allocation30_spill] sm:$0xff] %v6342_v7  ;;  %v3080_v7 = vadd.f32 %v3079_v31, %v6350_v60 }
 0x8ee   :  { %v6344_v25 = vpop.f32.mrf.mxu0  ;;  %v6346_v1 = vpop.f32.mrf.mxu1 }
 0x8ef   :  { %6797 = vst [vmem:[#allocation31_spill] sm:$0xff] %v6344_v25  ;;  %6798 = vst [vmem:[#allocation29_spill] sm:$0xff] %v6346_v1 }
 0x8f0   :  { %v6352_v2 = vpop.f32.mrf.mxu0  ;;  %v6354_v46 = vpop.f32.mrf.mxu1 }
 0x8f1   :  { %6801 = vst [vmem:[#allocation32_spill] sm:$0xff] %v6352_v2  ;;  %6802 = vst [vmem:[#allocation33_spill] sm:$0xff] %v6354_v46 }
 0x8f2   :  { %v6360_v14 = vpop.f32.mrf.mxu0  ;;  %v6362_v41 = vpop.f32.mrf.mxu1 }
 0x8f3   :  { %6804 = vst [vmem:[#allocation14_spill] sm:$0xff] %v6360_v14  ;;  %6805 = vst [vmem:[#allocation34_spill] sm:$0xff] %v6362_v41  ;;  %v6368_v14 = vrot.slane %v4760_v4, %v6806_v26 }
 0x8f4   :  { %v3454_v25 = vpop.f32.mrf.mxu0  ;;  %v3495_v1 = vpop.f32.mrf.mxu1 }
 0x8f5   :  { %v3502_v13 = vadd.f32 %v3454_v25, %v3080_v7  ;;  %v3155_v31 = vadd.f32 %v3154_v17, %v6368_v14  ;;  %v6373_v7 = vrot.slane %v4760_v4, %v6807_v16 }
 0x8f6   :  { %v3456_v44 = vpop.f32.mrf.mxu0  ;;  %v3497_v27 = vpop.f32.mrf.mxu1 }
 0x8f7   :  { %v4829_v2 = vmul.f32 -1.442695, %v3502_v13  ;;  %v3503_v29 = vadd.f32 %v3456_v44, %v3082_v50  ;;  %v3505_v25 = vadd.f32 %v3497_v27, %v3155_v31  ;;  %v3153_v44 = vadd.f32 %v3152_v12, %v6373_v7 }
 0x8f8   :  { %v3458_v46 = vpop.f32.mrf.mxu0  ;;  %v3499_v28 = vpop.f32.mrf.mxu1 }
 0x8f9   :  { %5244 = vpow2.f32 %v4829_v2  ;;  %v4830_v45 = vmul.f32 -1.442695, %v3503_v29  ;;  %v4831_v50 = vmul.f32 -1.442695, %v3505_v25  ;;  %v3504_v2 = vadd.f32 %v3495_v1, %v3153_v44 }
 0x8fa   :  { %v3459_v41 = vpop.f32.mrf.mxu0  ;;  %v3500_v23 = vpop.f32.mrf.mxu1  ;;  %v3084_v25 = vadd.f32 %v6297_v18, %v6350_v60  ;;  %v3159_v18 = vadd.f32 %v6303_v19, %v6368_v14 }
 0x8fb   :  { %5246 = vpow2.f32 %v4830_v45 }
 0x8fc   :  { %5248 = vpow2.f32 %v4831_v50 }
 0x906   :  { %v5245_v28 = vpop.eup %5244 }
 0x907   :  { %v3512_v29 = vadd.f32 1.0, %v5245_v28  ;;  %v3086_v28 = vadd.f32 %v6301_v20, %v6358_v57 }
 0x908   :  { %v5247_v46 = vpop.eup %5246 }
 0x909   :  { %5250 = vrcp.f32 %v3512_v29  ;;  %v3513_v26 = vadd.f32 1.0, %v5247_v46  ;;  %v5249_v23 = vpop.eup %5248 }
 0x90a   :  { %5252 = vtanh.f32 %v3504_v2  ;;  %v3522_v11 = vadd.f32 1.0, %v5249_v23 }
 0x90b   :  { %5254 = vrcp.f32 %v3513_v26 }
 0x90c   :  { %5256 = vrcp.f32 %v3522_v11 }
 0x916   :  { %v5251_v41 = vpop.eup %5250 }
 0x917   :  { %v5253_v17 = vpop.eup %5252 }
 0x918   :  { %v5255_v13 = vpop.eup %5254  ;;  %v3526_v45 = vmul.f32 %v5253_v17, %v5251_v41 }
 0x919   :  { %v3525_v4 = vmul.f32 0.0, %v5255_v13  ;;  %v5257_v12 = vpop.eup %5256 }
 0x91b   :  { %v6376_v27 = vadd.f32 %v3526_v45, %v3525_v4 }
 0x91d   :  { %5258 = vtanh.f32 %v6376_v27 }
 0x92a   :  { %v5259_v1 = vpop.eup %5258 }
 0x92b   :  { %v3529_v31 = vmul.f32 %v5259_v1, %v5257_v12  ;;  %v3157_v12 = vadd.f32 %v6299_v38, %v6373_v7 }
 0x92d   :  { %v3534_v16 = vpack.c.bf16 %v3529_v31, %v3529_v31 }
 0x92f   :  { %3568 = vmatmul.mubr.bf16.vlgmr.msra.gmra.mxu0 %v3534_v16  ;;  %3609 = vmatmul.mubr.bf16.vlgmr.msra.gmra.mxu1 %v3534_v16 }
 0x930   :  { %3651 = vmatpush1.bf16.msra.mxu0 %v6160_v43  ;;  %3692 = vmatpush1.bf16.msra.mxu1 %v6162_v0 }
 0x931   :  { %3652 = vmatprep.subr.bf16.mxu0 %v6168_v58  ;;  %3693 = vmatprep.subr.bf16.mxu1 %v6170_v52 }
 0x932   :  { %3682 = vmatprep.mubr.bf16.mxu0 %v6762_v56  ;;  %3723 = vmatprep.mubr.bf16.mxu1 %v6762_v56 }
 0x934   :  { %3653 = vmatpush1.bf16.msra.mxu0 %v6172_v62  ;;  %3694 = vmatpush1.bf16.msra.mxu1 %v6174_v54 }
 0x935   :  { %3654 = vmatprep.subr.bf16.mxu0 %v6180_v42  ;;  %3695 = vmatprep.subr.bf16.mxu1 %v6182_v48 }
 0x938   :  { %3655 = vmatpush1.bf16.msra.mxu0 %v6184_v49  ;;  %3696 = vmatpush1.bf16.msra.mxu1 %v6186_v61 }
 0x939   :  { %3656 = vmatprep.subr.bf16.mxu0 %v6192_v47  ;;  %3697 = vmatprep.subr.bf16.mxu1 %v6194_v63 }
 0x93c   :  { %3657 = vmatpush1.bf16.msra.mxu0 %v6196_v59  ;;  %3698 = vmatpush1.bf16.msra.mxu1 %v6198_v53 }
 0x93d   :  { %3658 = vmatprep.subr.bf16.mxu0 %v6204_v5  ;;  %3699 = vmatprep.subr.bf16.mxu1 %v6206_v51 }
 0x940   :  { %3659 = vmatpush1.bf16.msra.mxu0 %v6208_v6  ;;  %3700 = vmatpush1.bf16.msra.mxu1 %v6210_v8 }
 0x941   :  { %3660 = vmatprep.subr.bf16.mxu0 %v6212_v10  ;;  %3701 = vmatprep.subr.bf16.mxu1 %v6214_v21 }
 0x944   :  { %3661 = vmatpush1.bf16.msra.mxu0 %v6220_v30  ;;  %3702 = vmatpush1.bf16.msra.mxu1 %v6222_v33 }
 0x945   :  { %3662 = vmatprep.subr.bf16.mxu0 %v6228_v34  ;;  %3703 = vmatprep.subr.bf16.mxu1 %v6230_v35 }
 0x948   :  { %3663 = vmatpush1.bf16.msra.mxu0 %v6232_v36  ;;  %3704 = vmatpush1.bf16.msra.mxu1 %v6234_v37 }
 0x949   :  { %3664 = vmatprep.subr.bf16.mxu0 %v6236_v39  ;;  %3705 = vmatprep.subr.bf16.mxu1 %v6240_v40 }
 0x94c   :  { %3665 = vmatpush1.bf16.msra.mxu0 %v6244_v3  ;;  %3706 = vmatpush1.bf16.msra.mxu1 %v6246_v32 }
 0x94d   :  { %3765 = vmatprep.subr.bf16.mxu0 %v6156_v9  ;;  %3806 = vmatprep.subr.bf16.mxu1 %v6158_v55 }
 0x9ef   :  { %v3569_v44 = vpop.f32.mrf.mxu0  ;;  %v3610_v50 = vpop.f32.mrf.mxu1 }
 0x9f0   :  { %v3617_v2 = vadd.f32 %v3569_v44, %v3084_v25  ;;  %v3619_v20 = vadd.f32 %v3610_v50, %v3157_v12 }
 0x9f1   :  { %v3571_v29 = vpop.f32.mrf.mxu0  ;;  %v3612_v46 = vpop.f32.mrf.mxu1 }
 0x9f2   :  { %v4832_v26 = vmul.f32 -1.442695, %v3617_v2  ;;  %v3618_v23 = vadd.f32 %v3571_v29, %v3086_v28  ;;  %v3620_v45 = vadd.f32 %v3612_v46, %v3159_v18  ;;  %v3092_v18 = vadd.f32 %v6309_v24, %v6358_v57 }
 0x9f3   :  { %v3573_v41 = vpop.f32.mrf.mxu0  ;;  %v3614_v17 = vpop.f32.mrf.mxu1 }
 0x9f4   :  { %5260 = vpow2.f32 %v4832_v26  ;;  %v4833_v13 = vmul.f32 -1.442695, %v3618_v23  ;;  %v4834_v1 = vmul.f32 -1.442695, %v3620_v45 }
 0x9f5   :  { %v3574_v11 = vpop.f32.mrf.mxu0  ;;  %v3615_v4 = vpop.f32.mrf.mxu1 }
 0x9f6   :  { %5262 = vpow2.f32 %v4833_v13 }
 0x9f7   :  { %5264 = vtanh.f32 %v3619_v20 }
 0x9f8   :  { %5266 = vpow2.f32 %v4834_v1 }
 0xa01   :  { %v5261_v31 = vpop.eup %5260 }
 0xa02   :  { %v3627_v16 = vadd.f32 1.0, %v5261_v31 }
 0xa03   :  { %v5263_v25 = vpop.eup %5262 }
 0xa04   :  { %5268 = vrcp.f32 %v3627_v16  ;;  %v3628_v44 = vadd.f32 1.0, %v5263_v25  ;;  %v5265_v28 = vpop.eup %5264 }
 0xa05   :  { %v5267_v2 = vpop.eup %5266 }
 0xa06   :  { %5270 = vrcp.f32 %v3628_v44  ;;  %v3637_v19 = vadd.f32 1.0, %v5267_v2 }
 0xa08   :  { %5272 = vrcp.f32 %v3637_v19 }
 0xa11   :  { %v5269_v29 = vpop.eup %5268 }
 0xa12   :  { %v3641_v26 = vmul.f32 %v5269_v29, %v5265_v28 }
 0xa13   :  { %v5271_v23 = vpop.eup %5270 }
 0xa14   :  { %v3640_v46 = vmul.f32 %v5271_v23, %v6376_v27  ;;  %v3090_v27 = vadd.f32 %v6305_v22, %v6350_v60  ;;  %v3165_v22 = vadd.f32 %v6311_v15, %v6368_v14 }
 0xa15   :  { %v5273_v38 = vpop.eup %5272 }
 0xa16   :  { %v6422_v41 = vadd.f32 %v3641_v26, %v3640_v46  ;;  %v6808_v26 = vld [vmem:[#allocation15_spill] sm:$0xff] }
 0xa17   :  { %v3163_v23 = vadd.f32 %v6808_v26, %v6373_v7 }
 0xa18   :  { %5274 = vtanh.f32 %v6422_v41 }
 0xa25   :  { %v5275_v50 = vpop.eup %5274 }
 0xa26   :  { %v3644_v17 = vmul.f32 %v5275_v50, %v5273_v38 }
 0xa28   :  { %v3649_v13 = vpack.c.bf16 %v3644_v17, %v3644_v17 }
 0xa2a   :  { %3683 = vmatmul.mubr.bf16.vlgmr.msra.gmra.mxu0 %v3649_v13  ;;  %3724 = vmatmul.mubr.bf16.vlgmr.msra.gmra.mxu1 %v3649_v13 }
 0xa2b   :  { %3766 = vmatpush1.bf16.msra.mxu0 %v6160_v43  ;;  %3807 = vmatpush1.bf16.msra.mxu1 %v6162_v0 }
 0xa2c   :  { %3767 = vmatprep.subr.bf16.mxu0 %v6168_v58  ;;  %3808 = vmatprep.subr.bf16.mxu1 %v6170_v52 }
 0xa2d   :  { %3797 = vmatprep.mubr.bf16.mxu0 %v6762_v56  ;;  %3838 = vmatprep.mubr.bf16.mxu1 %v6762_v56 }
 0xa2f   :  { %3768 = vmatpush1.bf16.msra.mxu0 %v6172_v62  ;;  %3809 = vmatpush1.bf16.msra.mxu1 %v6174_v54 }
 0xa30   :  { %3769 = vmatprep.subr.bf16.mxu0 %v6180_v42  ;;  %3810 = vmatprep.subr.bf16.mxu1 %v6182_v48 }
 0xa33   :  { %3770 = vmatpush1.bf16.msra.mxu0 %v6184_v49  ;;  %3811 = vmatpush1.bf16.msra.mxu1 %v6186_v61 }
 0xa34   :  { %3771 = vmatprep.subr.bf16.mxu0 %v6192_v47  ;;  %3812 = vmatprep.subr.bf16.mxu1 %v6194_v63 }
 0xa37   :  { %3772 = vmatpush1.bf16.msra.mxu0 %v6196_v59  ;;  %3813 = vmatpush1.bf16.msra.mxu1 %v6198_v53 }
 0xa38   :  { %3773 = vmatprep.subr.bf16.mxu0 %v6204_v5  ;;  %3814 = vmatprep.subr.bf16.mxu1 %v6206_v51 }
 0xa3b   :  { %3774 = vmatpush1.bf16.msra.mxu0 %v6208_v6  ;;  %3815 = vmatpush1.bf16.msra.mxu1 %v6210_v8 }
 0xa3c   :  { %3775 = vmatprep.subr.bf16.mxu0 %v6212_v10  ;;  %3816 = vmatprep.subr.bf16.mxu1 %v6214_v21 }
 0xa3f   :  { %3776 = vmatpush1.bf16.msra.mxu0 %v6220_v30  ;;  %3817 = vmatpush1.bf16.msra.mxu1 %v6222_v33 }
 0xa40   :  { %3777 = vmatprep.subr.bf16.mxu0 %v6228_v34  ;;  %3818 = vmatprep.subr.bf16.mxu1 %v6230_v35 }
 0xa43   :  { %3778 = vmatpush1.bf16.msra.mxu0 %v6232_v36  ;;  %3819 = vmatpush1.bf16.msra.mxu1 %v6234_v37 }
 0xa44   :  { %3779 = vmatprep.subr.bf16.mxu0 %v6236_v39  ;;  %3820 = vmatprep.subr.bf16.mxu1 %v6240_v40 }
 0xa47   :  { %3780 = vmatpush1.bf16.msra.mxu0 %v6244_v3  ;;  %3821 = vmatpush1.bf16.msra.mxu1 %v6246_v32 }
 0xa48   :  { %3880 = vmatprep.subr.bf16.mxu0 %v6156_v9  ;;  %3921 = vmatprep.subr.bf16.mxu1 %v6158_v55 }
 0xaea   :  { %v3684_v11 = vpop.f32.mrf.mxu0  ;;  %v3725_v4 = vpop.f32.mrf.mxu1 }
 0xaeb   :  { %v3732_v45 = vadd.f32 %v3684_v11, %v3090_v27  ;;  %v3734_v24 = vadd.f32 %v3725_v4, %v3163_v23 }
 0xaec   :  { %v3686_v12 = vpop.f32.mrf.mxu0  ;;  %v3727_v20 = vpop.f32.mrf.mxu1 }
 0xaed   :  { %v4835_v1 = vmul.f32 -1.442695, %v3732_v45  ;;  %v3733_v31 = vadd.f32 %v3686_v12, %v3092_v18  ;;  %v3735_v29 = vadd.f32 %v3727_v20, %v3165_v22 }
 0xaee   :  { %v3688_v16 = vpop.f32.mrf.mxu0  ;;  %v3729_v25 = vpop.f32.mrf.mxu1 }
 0xaef   :  { %5276 = vpow2.f32 %v4835_v1  ;;  %v4836_v44 = vmul.f32 -1.442695, %v3733_v31  ;;  %v4837_v19 = vmul.f32 -1.442695, %v3735_v29 }
 0xaf0   :  { %v3689_v28 = vpop.f32.mrf.mxu0  ;;  %v3730_v2 = vpop.f32.mrf.mxu1 }
 0xaf1   :  { %5278 = vpow2.f32 %v4836_v44  ;;  %v6810_v2 = vld [vmem:[#allocation19_spill] sm:$0xff] }
 0xaf2   :  { %5280 = vtanh.f32 %v3734_v24  ;;  %v3096_v22 = vadd.f32 %v6810_v2, %v6358_v57 }
 0xaf3   :  { %5282 = vpow2.f32 %v4837_v19 }
 0xafc   :  { %v5277_v46 = vpop.eup %5276 }
 0xafd   :  { %v3742_v38 = vadd.f32 1.0, %v5277_v46 }
 0xafe   :  { %v5279_v50 = vpop.eup %5278 }
 0xaff   :  { %5284 = vrcp.f32 %v3742_v38  ;;  %v3743_v17 = vadd.f32 1.0, %v5279_v50  ;;  %v5281_v13 = vpop.eup %5280 }
 0xb00   :  { %v5283_v27 = vpop.eup %5282 }
 0xb01   :  { %5286 = vrcp.f32 %v3743_v17  ;;  %v3752_v15 = vadd.f32 1.0, %v5283_v27  ;;  %v6811_v27 = vld [vmem:[#allocation17_spill] sm:$0xff] }
 0xb03   :  { %5288 = vrcp.f32 %v3752_v15 }
 0xb0c   :  { %v5285_v11 = vpop.eup %5284 }
 0xb0d   :  { %v3756_v18 = vmul.f32 %v5285_v11, %v5281_v13  ;;  %v3169_v11 = vadd.f32 %v6811_v27, %v6368_v14 }
 0xb0e   :  { %v5287_v45 = vpop.eup %5286 }
 0xb0f   :  { %v3755_v12 = vmul.f32 %v5287_v45, %v6422_v41  ;;  %v6809_v41 = vld [vmem:[#allocation16_spill] sm:$0xff]  ;;  %v6812_v45 = vld [vmem:[#allocation18_spill] sm:$0xff] }
 0xb10   :  { %v5289_v4 = vpop.eup %5288  ;;  %v3094_v25 = vadd.f32 %v6809_v41, %v6350_v60  ;;  %v3167_v15 = vadd.f32 %v6812_v45, %v6373_v7  ;;  %v6563_v45 = vld [vmem:[#allocation7 + $0x1e0] ss:$16 sps:$4 sm:$0xff]  }
 0xb11   :  { %v6468_v20 = vadd.f32 %v3756_v18, %v3755_v12 }
 0xb13   :  { %5290 = vtanh.f32 %v6468_v20 }
 0xb20   :  { %v5291_v1 = vpop.eup %5290 }
 0xb21   :  { %v3759_v31 = vmul.f32 %v5291_v1, %v5289_v4 }
 0xb23   :  { %v3764_v16 = vpack.c.bf16 %v3759_v31, %v3759_v31 }
 0xb25   :  { %3798 = vmatmul.mubr.bf16.vlgmr.msra.gmra.mxu0 %v3764_v16  ;;  %3839 = vmatmul.mubr.bf16.vlgmr.msra.gmra.mxu1 %v3764_v16 }
 0xb26   :  { %3881 = vmatpush1.bf16.msra.mxu0 %v6160_v43  ;;  %3922 = vmatpush1.bf16.msra.mxu1 %v6162_v0 }
 0xb27   :  { %3882 = vmatprep.subr.bf16.mxu0 %v6168_v58  ;;  %3923 = vmatprep.subr.bf16.mxu1 %v6170_v52 }
 0xb28   :  { %3912 = vmatprep.mubr.bf16.mxu0 %v6762_v56  ;;  %3953 = vmatprep.mubr.bf16.mxu1 %v6762_v56 }
 0xb2a   :  { %3883 = vmatpush1.bf16.msra.mxu0 %v6172_v62  ;;  %3924 = vmatpush1.bf16.msra.mxu1 %v6174_v54 }
 0xb2b   :  { %3884 = vmatprep.subr.bf16.mxu0 %v6180_v42  ;;  %3925 = vmatprep.subr.bf16.mxu1 %v6182_v48 }
 0xb2e   :  { %3885 = vmatpush1.bf16.msra.mxu0 %v6184_v49  ;;  %3926 = vmatpush1.bf16.msra.mxu1 %v6186_v61 }
 0xb2f   :  { %3886 = vmatprep.subr.bf16.mxu0 %v6192_v47  ;;  %3927 = vmatprep.subr.bf16.mxu1 %v6194_v63 }
 0xb32   :  { %3887 = vmatpush1.bf16.msra.mxu0 %v6196_v59  ;;  %3928 = vmatpush1.bf16.msra.mxu1 %v6198_v53 }
 0xb33   :  { %3888 = vmatprep.subr.bf16.mxu0 %v6204_v5  ;;  %3929 = vmatprep.subr.bf16.mxu1 %v6206_v51 }
 0xb36   :  { %3889 = vmatpush1.bf16.msra.mxu0 %v6208_v6  ;;  %3930 = vmatpush1.bf16.msra.mxu1 %v6210_v8 }
 0xb37   :  { %3890 = vmatprep.subr.bf16.mxu0 %v6212_v10  ;;  %3931 = vmatprep.subr.bf16.mxu1 %v6214_v21 }
 0xb3a   :  { %3891 = vmatpush1.bf16.msra.mxu0 %v6220_v30  ;;  %3932 = vmatpush1.bf16.msra.mxu1 %v6222_v33 }
 0xb3b   :  { %3892 = vmatprep.subr.bf16.mxu0 %v6228_v34  ;;  %3933 = vmatprep.subr.bf16.mxu1 %v6230_v35 }
 0xb3e   :  { %3893 = vmatpush1.bf16.msra.mxu0 %v6232_v36  ;;  %3934 = vmatpush1.bf16.msra.mxu1 %v6234_v37 }
 0xb3f   :  { %3894 = vmatprep.subr.bf16.mxu0 %v6236_v39  ;;  %3935 = vmatprep.subr.bf16.mxu1 %v6240_v40 }
 0xb42   :  { %3895 = vmatpush1.bf16.msra.mxu0 %v6244_v3  ;;  %3936 = vmatpush1.bf16.msra.mxu1 %v6246_v32 }
 0xb43   :  { %3995 = vmatprep.subr.bf16.mxu0 %v6156_v9  ;;  %4036 = vmatprep.subr.bf16.mxu1 %v6158_v55 }
 0xbe5   :  { %v3799_v44 = vpop.f32.mrf.mxu0  ;;  %v3840_v28 = vpop.f32.mrf.mxu1 }
 0xbe6   :  { %v3847_v29 = vadd.f32 %v3799_v44, %v3094_v25  ;;  %v3849_v12 = vadd.f32 %v3840_v28, %v3167_v15  ;;  %v6566_v15 = vld [vmem:[#allocation7 + $0x1e8] ss:$16 sps:$4 sm:$0xff]  }
 0xbe7   :  { %v3801_v26 = vpop.f32.mrf.mxu0  ;;  %v3842_v23 = vpop.f32.mrf.mxu1 }
 0xbe8   :  { %v4838_v24 = vmul.f32 -1.442695, %v3847_v29  ;;  %v3848_v19 = vadd.f32 %v3801_v26, %v3096_v22  ;;  %v3850_v18 = vadd.f32 %v3842_v23, %v3169_v11 }
 0xbe9   :  { %v3803_v46 = vpop.f32.mrf.mxu0  ;;  %v3844_v38 = vpop.f32.mrf.mxu1 }
 0xbea   :  { %5292 = vpow2.f32 %v4838_v24  ;;  %v4839_v50 = vmul.f32 -1.442695, %v3848_v19  ;;  %v4840_v4 = vmul.f32 -1.442695, %v3850_v18 }
 0xbeb   :  { %v3804_v17 = vpop.f32.mrf.mxu0  ;;  %v3845_v13 = vpop.f32.mrf.mxu1 }
 0xbec   :  { %5294 = vpow2.f32 %v4839_v50 }
 0xbed   :  { %5296 = vtanh.f32 %v3849_v12  ;;  %v6569_v12 = vld [vmem:[#allocation7 + $0x1c4] ss:$16 sps:$4 sm:$0xff]  }
 0xbee   :  { %5298 = vpow2.f32 %v4840_v4  ;;  %v6572_v4 = vld [vmem:[#allocation7 + $0x1cc] ss:$16 sps:$4 sm:$0xff]  }
 0xbf7   :  { %v5293_v1 = vpop.eup %5292 }
 0xbf8   :  { %v3857_v31 = vadd.f32 1.0, %v5293_v1  ;;  %v6577_v1 = vld [vmem:[#allocation7 + $0x1c0] ss:$16 sps:$4 sm:$0xff]  }
 0xbf9   :  { %v5295_v16 = vpop.eup %5294 }
 0xbfa   :  { %5300 = vrcp.f32 %v3857_v31  ;;  %v3858_v41 = vadd.f32 1.0, %v5295_v16  ;;  %v5297_v25 = vpop.eup %5296  ;;  %v6580_v31 = vld [vmem:[#allocation7 + $0x1c8] ss:$16 sps:$4 sm:$0xff]   ;;  %v6583_v16 = vld [vmem:[#allocation7 + $0x1a4] ss:$16 sps:$4 sm:$0xff]  }
 0xbfb   :  { %v5299_v44 = vpop.eup %5298 }
 0xbfc   :  { %5302 = vrcp.f32 %v3858_v41  ;;  %v3867_v26 = vadd.f32 1.0, %v5299_v44  ;;  %v6586_v41 = vld [vmem:[#allocation7 + $0x1ac] ss:$16 sps:$4 sm:$0xff]   ;;  %v6592_v44 = vld [vmem:[#allocation7 + $0x1a8] ss:$16 sps:$4 sm:$0xff]  }
 0xbfe   :  { %5304 = vrcp.f32 %v3867_v26  ;;  %v6604_v26 = vld [vmem:[#allocation7 + $0x188] ss:$16 sps:$4 sm:$0xff]  }
 0xc07   :  { %v5301_v2 = vpop.eup %5300 }
 0xc08   :  { %v3871_v22 = vmul.f32 %v5301_v2, %v5297_v25  ;;  %v6589_v25 = vld [vmem:[#allocation7 + $0x1a0] ss:$16 sps:$4 sm:$0xff]   ;;  %v6595_v2 = vld [vmem:[#allocation7 + $0x184] ss:$16 sps:$4 sm:$0xff]  }
 0xc09   :  { %v5303_v29 = vpop.eup %5302 }
 0xc0a   :  { %v3870_v23 = vmul.f32 %v5303_v29, %v6468_v20  ;;  %v6601_v29 = vld [vmem:[#allocation7 + $0x180] ss:$16 sps:$4 sm:$0xff]  }
 0xc0b   :  { %v5305_v28 = vpop.eup %5304 }
 0xc0c   :  { %v6514_v24 = vadd.f32 %v3871_v22, %v3870_v23  ;;  %v6598_v22 = vld [vmem:[#allocation7 + $0x18c] ss:$16 sps:$4 sm:$0xff]   ;;  %v6607_v23 = vld [vmem:[#allocation7 + $0x164] ss:$16 sps:$4 sm:$0xff]  }
 0xc0e   :  { %5306 = vtanh.f32 %v6514_v24 }
 0xc1b   :  { %v5307_v19 = vpop.eup %5306 }
 0xc1c   :  { %v3874_v46 = vmul.f32 %v5307_v19, %v5305_v28  ;;  %v6613_v28 = vld [vmem:[#allocation7 + $0x160] ss:$16 sps:$4 sm:$0xff]   ;;  %v6616_v19 = vld [vmem:[#allocation7 + $0x168] ss:$16 sps:$4 sm:$0xff]  }
 0xc1e   :  { %v3879_v38 = vpack.c.bf16 %v3874_v46, %v3874_v46  ;;  %v6619_v46 = vld [vmem:[#allocation7 + $0x144] ss:$16 sps:$4 sm:$0xff]  }
 0xc20   :  { %3913 = vmatmul.mubr.bf16.vlgmr.msra.gmra.mxu0 %v3879_v38  ;;  %3954 = vmatmul.mubr.bf16.vlgmr.msra.gmra.mxu1 %v3879_v38  ;;  %v6622_v38 = vld [vmem:[#allocation7 + $0x14c] ss:$16 sps:$4 sm:$0xff]  }
 0xc21   :  { %3996 = vmatpush1.bf16.msra.mxu0 %v6160_v43  ;;  %4037 = vmatpush1.bf16.msra.mxu1 %v6162_v0  ;;  %v6813_v43 = vld [vmem:[#allocation20_spill] sm:$0xff] }
 0xc22   :  { %3997 = vmatprep.subr.bf16.mxu0 %v6168_v58  ;;  %4038 = vmatprep.subr.bf16.mxu1 %v6170_v52  ;;  %v3100_v0 = vadd.f32 %v6813_v43, %v6350_v60  ;;  %v6625_v43 = vld [vmem:[#allocation7 + $0x140] ss:$16 sps:$4 sm:$0xff]  }
 0xc23   :  { %4027 = vmatprep.mubr.bf16.mxu0 %v6762_v56  ;;  %4068 = vmatprep.mubr.bf16.mxu1 %v6762_v56 }
 0xc25   :  { %3998 = vmatpush1.bf16.msra.mxu0 %v6172_v62  ;;  %4039 = vmatpush1.bf16.msra.mxu1 %v6174_v54  ;;  %v6814_v62 = vld [vmem:[#allocation23_spill] sm:$0xff] }
 0xc26   :  { %3999 = vmatprep.subr.bf16.mxu0 %v6180_v42  ;;  %4040 = vmatprep.subr.bf16.mxu1 %v6182_v48  ;;  %v3102_v54 = vadd.f32 %v6814_v62, %v6358_v57  ;;  %v6637_v62 = vld [vmem:[#allocation7 + $0x120] ss:$16 sps:$4 sm:$0xff]  }
 0xc29   :  { %4000 = vmatpush1.bf16.msra.mxu0 %v6184_v49  ;;  %4041 = vmatpush1.bf16.msra.mxu1 %v6186_v61 }
 0xc2a   :  { %4001 = vmatprep.subr.bf16.mxu0 %v6192_v47  ;;  %4042 = vmatprep.subr.bf16.mxu1 %v6194_v63 }
 0xc2d   :  { %4002 = vmatpush1.bf16.msra.mxu0 %v6196_v59  ;;  %4043 = vmatpush1.bf16.msra.mxu1 %v6198_v53 }
 0xc2e   :  { %4003 = vmatprep.subr.bf16.mxu0 %v6204_v5  ;;  %4044 = vmatprep.subr.bf16.mxu1 %v6206_v51 }
 0xc31   :  { %4004 = vmatpush1.bf16.msra.mxu0 %v6208_v6  ;;  %4045 = vmatpush1.bf16.msra.mxu1 %v6210_v8  ;;  %v6816_v8 = vld [vmem:[#allocation22_spill] sm:$0xff] }
 0xc32   :  { %4005 = vmatprep.subr.bf16.mxu0 %v6212_v10  ;;  %4046 = vmatprep.subr.bf16.mxu1 %v6214_v21  ;;  %v3173_v10 = vadd.f32 %v6816_v8, %v6373_v7 }
 0xc35   :  { %4006 = vmatpush1.bf16.msra.mxu0 %v6220_v30  ;;  %4047 = vmatpush1.bf16.msra.mxu1 %v6222_v33 }
 0xc36   :  { %4007 = vmatprep.subr.bf16.mxu0 %v6228_v34  ;;  %4048 = vmatprep.subr.bf16.mxu1 %v6230_v35 }
 0xc39   :  { %4008 = vmatpush1.bf16.msra.mxu0 %v6232_v36  ;;  %4049 = vmatpush1.bf16.msra.mxu1 %v6234_v37 }
 0xc3a   :  { %4009 = vmatprep.subr.bf16.mxu0 %v6236_v39  ;;  %4050 = vmatprep.subr.bf16.mxu1 %v6240_v40 }
 0xc3d   :  { %4010 = vmatpush1.bf16.msra.mxu0 %v6244_v3  ;;  %4051 = vmatpush1.bf16.msra.mxu1 %v6246_v32 }
 0xc3e   :  { %4110 = vmatprep.subr.bf16.mxu0 %v6156_v9  ;;  %4151 = vmatprep.subr.bf16.mxu1 %v6158_v55  ;;  %v6815_v55 = vld [vmem:[#allocation21_spill] sm:$0xff] }
 0xc3f   :  { %v3175_v51 = vadd.f32 %v6815_v55, %v6368_v14  ;;  %v6818_v55 = vld [vmem:[#allocation27_spill] sm:$0xff] }
 0xce0   :  { %v3914_v58 = vpop.f32.mrf.mxu0  ;;  %v3955_v52 = vpop.f32.mrf.mxu1 }
 0xce1   :  { %v3962_v42 = vadd.f32 %v3914_v58, %v3100_v0  ;;  %v3964_v21 = vadd.f32 %v3955_v52, %v3173_v10  ;;  %v6628_v0 = vld [vmem:[#allocation7 + $0x148] ss:$16 sps:$4 sm:$0xff]   ;;  %v6631_v58 = vld [vmem:[#allocation7 + $0x124] ss:$16 sps:$4 sm:$0xff]   ;;  %v6634_v52 = vld [vmem:[#allocation7 + $0x12c] ss:$16 sps:$4 sm:$0xff]  }
 0xce2   :  { %v3916_v48 = vpop.f32.mrf.mxu0  ;;  %v3957_v49 = vpop.f32.mrf.mxu1 }
 0xce3   :  { %v4841_v61 = vmul.f32 -1.442695, %v3962_v42  ;;  %v3963_v47 = vadd.f32 %v3916_v48, %v3102_v54  ;;  %v3965_v6 = vadd.f32 %v3957_v49, %v3175_v51  ;;  %v6640_v54 = vld [vmem:[#allocation7 + $0x128] ss:$16 sps:$4 sm:$0xff]   ;;  %v6643_v42 = vld [vmem:[#allocation7 + $0x104] ss:$16 sps:$4 sm:$0xff]   ;;  %v3106_v51 = vadd.f32 %v6818_v55, %v6358_v57 }
 0xce4   :  { %v3918_v63 = vpop.f32.mrf.mxu0  ;;  %v3959_v59 = vpop.f32.mrf.mxu1  ;;  %v6646_v48 = vld [vmem:[#allocation7 + $0x10c] ss:$16 sps:$4 sm:$0xff]   ;;  %v6649_v49 = vld [vmem:[#allocation7 + $0x100] ss:$16 sps:$4 sm:$0xff]  }
 0xce5   :  { %5308 = vpow2.f32 %v4841_v61  ;;  %v4842_v53 = vmul.f32 -1.442695, %v3963_v47  ;;  %v4843_v30 = vmul.f32 -1.442695, %v3965_v6  ;;  %v6652_v61 = vld [vmem:[#allocation7 + $0x108] ss:$16 sps:$4 sm:$0xff]  }
 0xce6   :  { %v3919_v9 = vpop.f32.mrf.mxu0  ;;  %v3960_v5 = vpop.f32.mrf.mxu1  ;;  %v5402_v47 = vld [vmem:[#allocation7 + $0x1e4] ss:$16 sps:$4 sm:$0xff]   ;;  %v5403_v63 = vld [vmem:[#allocation7 + $0x1ec] ss:$16 sps:$4 sm:$0xff]  }
 0xce7   :  { %5310 = vpow2.f32 %v4842_v53  ;;  %v6817_v59 = vld [vmem:[#allocation24_spill] sm:$0xff] }
 0xce8   :  { %5312 = vtanh.f32 %v3964_v21  ;;  %v3104_v53 = vadd.f32 %v6817_v59, %v6350_v60 }
 0xce9   :  { %5314 = vpow2.f32 %v4843_v30 }
 0xcf2   :  { %v5309_v33 = vpop.eup %5308 }
 0xcf3   :  { %v3972_v34 = vadd.f32 1.0, %v5309_v33 }
 0xcf4   :  { %v5311_v35 = vpop.eup %5310 }
 0xcf5   :  { %5316 = vrcp.f32 %v3972_v34  ;;  %v3973_v36 = vadd.f32 1.0, %v5311_v35  ;;  %v5313_v37 = vpop.eup %5312 }
 0xcf6   :  { %v5315_v39 = vpop.eup %5314 }
 0xcf7   :  { %5318 = vrcp.f32 %v3973_v36  ;;  %v3982_v20 = vadd.f32 1.0, %v5315_v39  ;;  %v6819_v39 = vld [vmem:[#allocation25_spill] sm:$0xff] }
 0xcf9   :  { %5320 = vrcp.f32 %v3982_v20 }
 0xd02   :  { %v5317_v40 = vpop.eup %5316 }
 0xd03   :  { %v3986_v3 = vmul.f32 %v5317_v40, %v5313_v37  ;;  %v3179_v40 = vadd.f32 %v6819_v39, %v6368_v14 }
 0xd04   :  { %v5319_v32 = vpop.eup %5318 }
 0xd05   :  { %v3985_v50 = vmul.f32 %v5319_v32, %v6514_v24  ;;  %v6610_v24 = vld [vmem:[#allocation7 + $0x16c] ss:$16 sps:$4 sm:$0xff]  }
 0xd06   :  { %v5321_v13 = vpop.eup %5320  ;;  %v6820_v32 = vld [vmem:[#allocation26_spill] sm:$0xff] }
 0xd07   :  { %v6560_v17 = vadd.f32 %v3986_v3, %v3985_v50  ;;  %v3177_v20 = vadd.f32 %v6820_v32, %v6373_v7  ;;  %v5498_v32 = vmov 0.0  }
 0xd09   :  { %5322 = vtanh.f32 %v6560_v17 }
 0xd16   :  { %v5323_v27 = vpop.eup %5322 }
 0xd17   :  { %v3989_v11 = vmul.f32 %v5323_v27, %v5321_v13 }
 0xd19   :  { %v3994_v18 = vpack.c.bf16 %v3989_v11, %v3989_v11 }
 0xd1b   :  { %4028 = vmatmul.mubr.bf16.vlgmr.msra.gmra.mxu0 %v3994_v18  ;;  %4069 = vmatmul.mubr.bf16.vlgmr.msra.gmra.mxu1 %v3994_v18 }
 0xd1c   :  { %4111 = vmatpush1.bf16.msra.mxu0 %v6563_v45  ;;  %4152 = vmatpush1.bf16.msra.mxu1 %v6566_v15 }
 0xd1d   :  { %4112 = vmatprep.subr.bf16.mxu0 %v6569_v12  ;;  %4153 = vmatprep.subr.bf16.mxu1 %v6572_v4 }
 0xd1e   :  { %4142 = vmatprep.mubr.bf16.mxu0 %v6762_v56  ;;  %4183 = vmatprep.mubr.bf16.mxu1 %v6762_v56 }
 0xd20   :  { %4113 = vmatpush1.bf16.msra.mxu0 %v6577_v1  ;;  %4154 = vmatpush1.bf16.msra.mxu1 %v6580_v31 }
 0xd21   :  { %4114 = vmatprep.subr.bf16.mxu0 %v6583_v16  ;;  %4155 = vmatprep.subr.bf16.mxu1 %v6586_v41 }
 0xd24   :  { %4115 = vmatpush1.bf16.msra.mxu0 %v6589_v25  ;;  %4156 = vmatpush1.bf16.msra.mxu1 %v6592_v44 }
 0xd25   :  { %4116 = vmatprep.subr.bf16.mxu0 %v6595_v2  ;;  %4157 = vmatprep.subr.bf16.mxu1 %v6598_v22 }
 0xd28   :  { %4117 = vmatpush1.bf16.msra.mxu0 %v6601_v29  ;;  %4158 = vmatpush1.bf16.msra.mxu1 %v6604_v26 }
 0xd29   :  { %4118 = vmatprep.subr.bf16.mxu0 %v6607_v23  ;;  %4159 = vmatprep.subr.bf16.mxu1 %v6610_v24 }
 0xd2c   :  { %4119 = vmatpush1.bf16.msra.mxu0 %v6613_v28  ;;  %4160 = vmatpush1.bf16.msra.mxu1 %v6616_v19 }
 0xd2d   :  { %4120 = vmatprep.subr.bf16.mxu0 %v6619_v46  ;;  %4161 = vmatprep.subr.bf16.mxu1 %v6622_v38 }
 0xd30   :  { %4121 = vmatpush1.bf16.msra.mxu0 %v6625_v43  ;;  %4162 = vmatpush1.bf16.msra.mxu1 %v6628_v0 }
 0xd31   :  { %4122 = vmatprep.subr.bf16.mxu0 %v6631_v58  ;;  %4163 = vmatprep.subr.bf16.mxu1 %v6634_v52 }
 0xd34   :  { %4123 = vmatpush1.bf16.msra.mxu0 %v6637_v62  ;;  %4164 = vmatpush1.bf16.msra.mxu1 %v6640_v54 }
 0xd35   :  { %4124 = vmatprep.subr.bf16.mxu0 %v6643_v42  ;;  %4165 = vmatprep.subr.bf16.mxu1 %v6646_v48 }
 0xd38   :  { %4125 = vmatpush1.bf16.msra.mxu0 %v6649_v49  ;;  %4166 = vmatpush1.bf16.msra.mxu1 %v6652_v61 }
 0xd39   :  { %4225 = vmatprep.subr.bf16.mxu0 %v5402_v47  ;;  %4266 = vmatprep.subr.bf16.mxu1 %v5403_v63 }
 0xddb   :  { %v4029_v9 = vpop.f32.mrf.mxu0  ;;  %v4070_v5 = vpop.f32.mrf.mxu1 }
 0xddc   :  { %v4077_v6 = vadd.f32 %v4029_v9, %v3104_v53  ;;  %v4079_v50 = vadd.f32 %v4070_v5, %v3177_v20  ;;  %v5109_v20 = vld [vmem:[#allocation9 + $0x30] sm:$0xff]  }
 0xddd   :  { %v4031_v8 = vpop.f32.mrf.mxu0  ;;  %v4072_v10 = vpop.f32.mrf.mxu1 }
 0xdde   :  { %v4844_v21 = vmul.f32 -1.442695, %v4077_v6  ;;  %v4078_v30 = vadd.f32 %v4031_v8, %v3106_v51  ;;  %v4080_v3 = vadd.f32 %v4072_v10, %v3179_v40 }
 0xddf   :  { %v4033_v33 = vpop.f32.mrf.mxu0  ;;  %v4074_v34 = vpop.f32.mrf.mxu1 }
 0xde0   :  { %5324 = vpow2.f32 %v4844_v21  ;;  %v4845_v35 = vmul.f32 -1.442695, %v4078_v30  ;;  %v4846_v13 = vmul.f32 -1.442695, %v4080_v3  ;;  %v5108_v3 = vld [vmem:[#allocation9 + $0x38] sm:$0xff]  }
 0xde1   :  { %v4034_v36 = vpop.f32.mrf.mxu0  ;;  %v4075_v37 = vpop.f32.mrf.mxu1 }
 0xde2   :  { %5326 = vpow2.f32 %v4845_v35 }
 0xde3   :  { %5328 = vtanh.f32 %v4079_v50  ;;  %v5110_v50 = vld [vmem:[#allocation9 + $0x28] sm:$0xff]  }
 0xde4   :  { %5330 = vpow2.f32 %v4846_v13  ;;  %v5111_v13 = vld [vmem:[#allocation9 + $0x20] sm:$0xff]  }
 0xded   :  { %v5325_v27 = vpop.eup %5324 }
 0xdee   :  { %v4087_v11 = vadd.f32 1.0, %v5325_v27  ;;  %v5112_v27 = vld [vmem:[#allocation9 + $0x18] sm:$0xff]  }
 0xdef   :  { %v5327_v18 = vpop.eup %5326 }
 0xdf0   :  { %5332 = vrcp.f32 %v4087_v11  ;;  %v4088_v47 = vadd.f32 1.0, %v5327_v18  ;;  %v5329_v63 = vpop.eup %5328  ;;  %v5113_v11 = vld [vmem:[#allocation9 + $0x10] sm:$0xff]   ;;  %v5114_v18 = vld [vmem:[#allocation9 + $0x8] sm:$0xff]  }
 0xdf1   :  { %v5331_v59 = vpop.eup %5330 }
 0xdf2   :  { %5334 = vrcp.f32 %v4088_v47  ;;  %v4097_v51 = vadd.f32 1.0, %v5331_v59  ;;  %v5115_v47 = vld [vmem:[#allocation9] sm:$0xff]  }
 0xdf4   :  { %5336 = vrcp.f32 %v4097_v51 }
 0xdfd   :  { %v5333_v53 = vpop.eup %5332 }
 0xdfe   :  { %v4101_v9 = vmul.f32 %v5333_v53, %v5329_v63  ;;  %v6825_v63 = vld [vmem:[#allocation32_spill] sm:$0xff] }
 0xdff   :  { %v5335_v55 = vpop.eup %5334  ;;  %v3114_v59 = vadd.f32 %v6825_v63, %v6350_v60 }
 0xe00   :  { %v4100_v6 = vmul.f32 %v5335_v55, %v6560_v17  ;;  %v6826_v55 = vld [vmem:[#allocation14_spill] sm:$0xff] }
 0xe01   :  { %v5337_v5 = vpop.eup %5336  ;;  %v3116_v51 = vadd.f32 %v6826_v55, %v6358_v57 }
 0xe02   :  { %v6664_v8 = vadd.f32 %v4101_v9, %v4100_v6 }
 0xe04   :  { %5338 = vtanh.f32 %v6664_v8 }
 0xe11   :  { %v5339_v10 = vpop.eup %5338 }
 0xe12   :  { %v4104_v21 = vmul.f32 %v5339_v10, %v5337_v5 }
 0xe14   :  { %v4109_v30 = vpack.c.bf16 %v4104_v21, %v4104_v21 }
 0xe16   :  { %4143 = vmatmul.mubr.bf16.vlgmr.msra.gmra.mxu0 %v4109_v30  ;;  %4184 = vmatmul.mubr.bf16.vlgmr.msra.gmra.mxu1 %v4109_v30 }
 0xe17   :  { %4226 = vmatpush1.bf16.msra.mxu0 %v6563_v45  ;;  %4267 = vmatpush1.bf16.msra.mxu1 %v6566_v15 }
 0xe18   :  { %4227 = vmatprep.subr.bf16.mxu0 %v6569_v12  ;;  %4268 = vmatprep.subr.bf16.mxu1 %v6572_v4  ;;  %v6822_v12 = vld [vmem:[#allocation31_spill] sm:$0xff] }
 0xe19   :  { %4257 = vmatprep.mubr.bf16.mxu0 %v6762_v56  ;;  %4298 = vmatprep.mubr.bf16.mxu1 %v6762_v56  ;;  %v6821_v56 = vld [vmem:[#allocation28_spill] sm:$0xff]  ;;  %v3112_v4 = vadd.f32 %v6822_v12, %v6358_v57  ;;  %v6827_v12 = vld [vmem:[#allocation34_spill] sm:$0xff] }
 0xe1a   :  { %v3110_v17 = vadd.f32 %v6821_v56, %v6350_v60  ;;  %v3189_v60 = vadd.f32 %v6827_v12, %v6368_v14 }
 0xe1b   :  { %4228 = vmatpush1.bf16.msra.mxu0 %v6577_v1  ;;  %4269 = vmatpush1.bf16.msra.mxu1 %v6580_v31 }
 0xe1c   :  { %4229 = vmatprep.subr.bf16.mxu0 %v6583_v16  ;;  %4270 = vmatprep.subr.bf16.mxu1 %v6586_v41 }
 0xe1f   :  { %4230 = vmatpush1.bf16.msra.mxu0 %v6589_v25  ;;  %4271 = vmatpush1.bf16.msra.mxu1 %v6592_v44 }
 0xe20   :  { %4231 = vmatprep.subr.bf16.mxu0 %v6595_v2  ;;  %4272 = vmatprep.subr.bf16.mxu1 %v6598_v22 }
 0xe23   :  { %4232 = vmatpush1.bf16.msra.mxu0 %v6601_v29  ;;  %4273 = vmatpush1.bf16.msra.mxu1 %v6604_v26 }
 0xe24   :  { %4233 = vmatprep.subr.bf16.mxu0 %v6607_v23  ;;  %4274 = vmatprep.subr.bf16.mxu1 %v6610_v24  ;;  %v6823_v23 = vld [vmem:[#allocation29_spill] sm:$0xff] }
 0xe25   :  { %v3185_v24 = vadd.f32 %v6823_v23, %v6368_v14 }
 0xe27   :  { %4234 = vmatpush1.bf16.msra.mxu0 %v6613_v28  ;;  %4275 = vmatpush1.bf16.msra.mxu1 %v6616_v19  ;;  %v6824_v19 = vld [vmem:[#allocation30_spill] sm:$0xff] }
 0xe28   :  { %4235 = vmatprep.subr.bf16.mxu0 %v6619_v46  ;;  %4276 = vmatprep.subr.bf16.mxu1 %v6622_v38  ;;  %v3183_v46 = vadd.f32 %v6824_v19, %v6373_v7 }
 0xe2b   :  { %4236 = vmatpush1.bf16.msra.mxu0 %v6625_v43  ;;  %4277 = vmatpush1.bf16.msra.mxu1 %v6628_v0 }
 0xe2c   :  { %4237 = vmatprep.subr.bf16.mxu0 %v6631_v58  ;;  %4278 = vmatprep.subr.bf16.mxu1 %v6634_v52 }
 0xe2f   :  { %4238 = vmatpush1.bf16.msra.mxu0 %v6637_v62  ;;  %4279 = vmatpush1.bf16.msra.mxu1 %v6640_v54 }
 0xe30   :  { %4239 = vmatprep.subr.bf16.mxu0 %v6643_v42  ;;  %4280 = vmatprep.subr.bf16.mxu1 %v6646_v48 }
 0xe33   :  { %4240 = vmatpush1.bf16.msra.mxu0 %v6649_v49  ;;  %4281 = vmatpush1.bf16.msra.mxu1 %v6652_v61 }
 0xe34   :  { %4871 = vmatprep.subr.bf16.mxu0 %v5498_v32 }
 0xed6   :  { %v4144_v45 = vpop.f32.mrf.mxu0  ;;  %v4185_v15 = vpop.f32.mrf.mxu1 }
 0xed7   :  { %v4192_v1 = vadd.f32 %v4144_v45, %v3110_v17  ;;  %v4194_v38 = vadd.f32 %v4185_v15, %v3183_v46 }
 0xed8   :  { %v4146_v31 = vpop.f32.mrf.mxu0  ;;  %v4187_v16 = vpop.f32.mrf.mxu1 }
 0xed9   :  { %v4847_v41 = vmul.f32 -1.442695, %v4192_v1  ;;  %v4193_v25 = vadd.f32 %v4146_v31, %v3112_v4  ;;  %v4195_v28 = vadd.f32 %v4187_v16, %v3185_v24  ;;  %v6828_v1 = vld [vmem:[#allocation33_spill] sm:$0xff] }
 0xeda   :  { %v4148_v44 = vpop.f32.mrf.mxu0  ;;  %v4189_v2 = vpop.f32.mrf.mxu1  ;;  %v3187_v31 = vadd.f32 %v6828_v1, %v6373_v7 }
 0xedb   :  { %5340 = vpow2.f32 %v4847_v41  ;;  %v4848_v22 = vmul.f32 -1.442695, %v4193_v25  ;;  %v4849_v43 = vmul.f32 -1.442695, %v4195_v28 }
 0xedc   :  { %v4149_v29 = vpop.f32.mrf.mxu0  ;;  %v4190_v26 = vpop.f32.mrf.mxu1 }
 0xedd   :  { %5342 = vpow2.f32 %v4848_v22 }
 0xede   :  { %5344 = vtanh.f32 %v4194_v38 }
 0xedf   :  { %5346 = vpow2.f32 %v4849_v43 }
 0xee8   :  { %v5341_v0 = vpop.eup %5340 }
 0xee9   :  { %v4202_v58 = vadd.f32 1.0, %v5341_v0  ;;  %v4853_v0 = vld [vmem:[%s6732_s6] ss:$0 sm:$0xff] }
 0xeea   :  { %v5343_v52 = vpop.eup %5342 }
 0xeeb   :  { %5348 = vrcp.f32 %v4202_v58  ;;  %v4203_v62 = vadd.f32 1.0, %v5343_v52  ;;  %v5345_v54 = vpop.eup %5344 }
 0xeec   :  { %v5347_v42 = vpop.eup %5346 }
 0xeed   :  { %5350 = vrcp.f32 %v4203_v62  ;;  %v4212_v33 = vadd.f32 1.0, %v5347_v42 }
 0xeef   :  { %5352 = vrcp.f32 %v4212_v33 }
 0xef8   :  { %v5349_v48 = vpop.eup %5348 }
 0xef9   :  { %v4216_v49 = vmul.f32 %v5349_v48, %v5345_v54 }
 0xefa   :  { %v5351_v61 = vpop.eup %5350 }
 0xefb   :  { %v4215_v34 = vmul.f32 %v5351_v61, %v6664_v8 }
 0xefc   :  { %v5353_v36 = vpop.eup %5352 }
 0xefd   :  { %v6708_v35 = vadd.f32 %v4216_v49, %v4215_v34 }
 0xeff   :  { %5354 = vtanh.f32 %v6708_v35 }
 0xf0c   :  { %v5355_v37 = vpop.eup %5354 }
 0xf0d   :  { %v4219_v39 = vmul.f32 %v5355_v37, %v5353_v36 }
 0xf0f   :  { %v4224_v40 = vpack.c.bf16 %v4219_v39, %v4219_v39 }
 0xf11   :  { %4258 = vmatmul.mubr.bf16.vlgmr.msra.gmra.mxu0 %v4224_v40  ;;  %4299 = vmatmul.mubr.bf16.vlgmr.msra.gmra.mxu1 %v4224_v40 }
 0xf12   :  { %4872 = vmatpush3.bf16.msra.mxu0 %v5108_v3  ;;  %4887 = vmatprep.mubr.msk.bf16.mxu0 %vm5499_vm1, %v5498_v32 }
 0xf13   :  { %4873 = vmatprep.subr.bf16.mxu0 %v5498_v32 }
 0xf16   :  { %4874 = vmatpush3.bf16.msra.mxu0 %v5109_v20 }
 0xf17   :  { %4875 = vmatprep.subr.bf16.mxu0 %v5498_v32 }
 0xf1a   :  { %4876 = vmatpush3.bf16.msra.mxu0 %v5110_v50 }
 0xf1b   :  { %4877 = vmatprep.subr.bf16.mxu0 %v5498_v32 }
 0xf1e   :  { %4878 = vmatpush3.bf16.msra.mxu0 %v5111_v13 }
 0xf1f   :  { %4879 = vmatprep.subr.bf16.mxu0 %v5498_v32 }
 0xf22   :  { %4880 = vmatpush3.bf16.msra.mxu0 %v5112_v27 }
 0xf23   :  { %4881 = vmatprep.subr.bf16.mxu0 %v5498_v32 }
 0xf26   :  { %4882 = vmatpush3.bf16.msra.mxu0 %v5113_v11 }
 0xf27   :  { %4883 = vmatprep.subr.bf16.mxu0 %v5498_v32 }
 0xf2a   :  { %4884 = vmatpush3.bf16.msra.mxu0 %v5114_v18 }
 0xf2b   :  { %4885 = vmatprep.subr.bf16.mxu0 %v5498_v32 }
 0xf2e   :  { %4886 = vmatpush3.bf16.msra.mxu0 %v5115_v47 }
 0xfd1   :  { %v4259_v53 = vpop.f32.mrf.mxu0  ;;  %v4300_v9 = vpop.f32.mrf.mxu1 }
 0xfd2   :  { %v4307_v6 = vadd.f32 %v4259_v53, %v3114_v59  ;;  %v4309_v57 = vadd.f32 %v4300_v9, %v3187_v31 }
 0xfd3   :  { %v4261_v8 = vpop.f32.mrf.mxu0  ;;  %v4302_v5 = vpop.f32.mrf.mxu1 }
 0xfd4   :  { %v4850_v10 = vmul.f32 -1.442695, %v4307_v6  ;;  %v4308_v21 = vadd.f32 %v4261_v8, %v3116_v51  ;;  %v4310_v4 = vadd.f32 %v4302_v5, %v3189_v60 }
 0xfd5   :  { %v4263_v30 = vpop.f32.mrf.mxu0  ;;  %v4304_v56 = vpop.f32.mrf.mxu1 }
 0xfd6   :  { %5356 = vpow2.f32 %v4850_v10  ;;  %v4851_v17 = vmul.f32 -1.442695, %v4308_v21  ;;  %v4852_v16 = vmul.f32 -1.442695, %v4310_v4 }
 0xfd7   :  { %v4264_v45 = vpop.f32.mrf.mxu0  ;;  %v4305_v15 = vpop.f32.mrf.mxu1 }
 0xfd8   :  { %5358 = vpow2.f32 %v4851_v17 }
 0xfd9   :  { %5360 = vtanh.f32 %v4309_v57 }
 0xfda   :  { %5362 = vpow2.f32 %v4852_v16 }
 0xfe3   :  { %v5357_v41 = vpop.eup %5356 }
 0xfe4   :  { %v4317_v25 = vadd.f32 1.0, %v5357_v41 }
 0xfe5   :  { %v5359_v44 = vpop.eup %5358 }
 0xfe6   :  { %5364 = vrcp.f32 %v4317_v25  ;;  %v4318_v2 = vadd.f32 1.0, %v5359_v44  ;;  %v5361_v22 = vpop.eup %5360 }
 0xfe7   :  { %v5363_v29 = vpop.eup %5362 }
 0xfe8   :  { %5366 = vrcp.f32 %v4318_v2  ;;  %v4327_v14 = vadd.f32 1.0, %v5363_v29 }
 0xfea   :  { %5368 = vrcp.f32 %v4327_v14 }
 0xff3   :  { %v5365_v26 = vpop.eup %5364 }
 0xff4   :  { %v4331_v23 = vmul.f32 %v5365_v26, %v5361_v22 }
 0xff5   :  { %v5367_v24 = vpop.eup %5366 }
 0xff6   :  { %v4330_v28 = vmul.f32 %v5367_v24, %v6708_v35 }
 0xff7   :  { %v5369_v7 = vpop.eup %5368 }
 0xff8   :  { %v4332_v19 = vadd.f32 %v4331_v23, %v4330_v28 }
 0xffa   :  { %5370 = vtanh.f32 %v4332_v19 }
0x1007   :  { %v5371_v46 = vpop.eup %5370 }
0x1008   :  { %v4334_v38 = vmul.f32 %v5371_v46, %v5369_v7 }
0x100a   :  { %v4335_v43 = vpack.c.bf16 %v4334_v38, %v4334_v38 }
0x100c   :  { %4888 = vmatmul.mubr.bf16.vlgmr.msra.gmra.mxu0 %v4335_v43 }
0x10cc   :  { %v4441_v58 = vpop.f32.mrf.mxu0 }
0x10cd   :  { %v4442_v52 = vadd.f32 %v4853_v0, %v4441_v58 }
0x10ce   :  { %v4889_v62 = vpop.f32.mrf.mxu0 }
0x10cf   :  { %4447 = vst [vmem:[#allocation10] sm:$0xff] %v4442_v52 }
0x10d0   :  { %v4444_v54 = vpop.f32.mrf.mxu0 }
0x10d1   :  { %5475 = shalt.err (!%p5472_p5)
}
0x10d2   :  { %4457 = dma.vmem_to_hbm [thread:$0]  %s4455_s14, 128, %s6733_s7, [#allocation6]   ;;  %v4890_v42 = vpop.f32.mrf.mxu0 }
0x10d3   :  { %5488 = dma.done.wait [#allocation6], 128  }
0x10d4   :  { %5489 = vsyncadd [#allocation6], 4294967168 }
0x10d5   :  { %4461 = vsyncpa [#allocation5], 1 }
0x10d6   :  { %4462 = vsyncpa [#allocation8], 1 }
0x10d7   :  { %4463 = vsyncpa [#allocation6], 1 }

</bundles_post_ra>
